<compile_context>
chip_gen: v7x
topology: tpu7x:2x2x1
jax: 0.10.0
libtpu: 0.0.40
codegen_flags: <defaults>
</compile_context>

<pallas_src>
import numpy as np
import jax
import jax.numpy as jnp
from jax.experimental import pallas as pl
from jax.experimental.pallas import tpu as pltpu

# ---------------- model config (small demo sizes, structure faithful to the module) ----------
N_CHN = 20                   # n_chn (module default)
ENCODER_H = 32               # encoder_h (divisible by 16 for grouped position conv, even for GN)
D_MODEL = 3 * ENCODER_H      # transformer width = 3 * encoder_h
N_HEADS = 8                  # fixed inside BENDRContextualizer
HEAD_DIM = D_MODEL // N_HEADS
N_LAYERS = 8                 # fixed inside BENDRContextualizer
FFN_DIM = 64                 # contextualizer_hidden (demo size)
N_TARGETS = 2
SAMPLES_LEN = 384            # -> encoded length 4 after strides (3,2,2,2,2,2)
STRIDES = (3, 2, 2, 2, 2, 2)
POS_K = 25                   # position_encoder kernel width
POS_PAD = POS_K // 2
EPS = 1e-5


def _gelu(v):
    c = 0.7978845608028654
    return 0.5 * v * (1.0 + jnp.tanh(c * (v + 0.044715 * v * v * v)))


def _encoder_lengths(L):
    lens = []
    for s in STRIDES:
        L = (L - 1) // s + 1         # Conv1d(k=3, stride=s, padding=1)
        lens.append(L)
    return lens


# ------------------------------ kernel 1: conv encoder + conditioning ------------------------
def make_encoder_kernel(lens, Cin, H, D):
    n_stage = len(STRIDES)
    L_enc = lens[-1]

    def kernel(x_ref, w0_ref, wr_ref, cb_ref, gng_ref, gnb_ref, gmat_ref,
               posw_ref, posb_ref, lng_ref, lnb_ref, wcond_ref, bcond_ref,
               out_ref, buf_a, buf_b, buf_p):
        # row 0 of each ping-pong buffer is the conv left zero-padding; keep it zero.
        buf_a[0:8, :] = jnp.zeros((8, H), jnp.float32)
        buf_b[0:8, :] = jnp.zeros((8, H), jnp.float32)
        gmat = gmat_ref[...]                                   # (H, H) same-group indicator

        for i in range(n_stage):
            s = STRIDES[i]
            Lout = lens[i]
            acc = jnp.zeros((Lout, H), jnp.float32)
            for k in range(3):                                 # conv = 3 strided-tap matmuls
                if i == 0:
                    tap = x_ref[pl.ds(k, Lout, stride=s), :]   # (Lout, Cin)
                    wk = w0_ref[k]                             # (Cin, H)
                else:
                    rbuf = buf_a if (i % 2 == 1) else buf_b
                    tap = rbuf[pl.ds(k, Lout, stride=s), :]
                    wk = wr_ref[i - 1, k]
                acc = acc + jnp.dot(tap, wk, preferred_element_type=jnp.float32)
            acc = acc + cb_ref[i]                              # (1, H) bias

            # GroupNorm: H//2 groups of 2 channels, normalized over (2 channels x Lout)
            inv_n = 1.0 / (2.0 * Lout)
            mean = jnp.dot(jnp.sum(acc, axis=0, keepdims=True), gmat,
                           preferred_element_type=jnp.float32) * inv_n
            d = acc - mean
            var = jnp.dot(jnp.sum(d * d, axis=0, keepdims=True), gmat,
                          preferred_element_type=jnp.float32) * inv_n
            y = _gelu(d * jax.lax.rsqrt(var + EPS) * gng_ref[i] + gnb_ref[i])

            wbuf = buf_a if (i % 2 == 0) else buf_b
            wbuf[1:1 + Lout, :] = y
            wbuf[1 + Lout:1 + Lout + 4, :] = jnp.zeros((4, H), jnp.float32)

        enc_buf = buf_a if ((n_stage - 1) % 2 == 0) else buf_b
        enc = enc_buf[1:1 + L_enc, :]                          # (L_enc, H)

        # relative position conv (grouped k=25, pad=12; dense block-diagonal weights) + GELU
        buf_p[...] = jnp.zeros(buf_p.shape, jnp.float32)
        buf_p[POS_PAD:POS_PAD + L_enc, :] = enc
        pacc = jnp.zeros((L_enc, H), jnp.float32)
        for k in range(POS_K):
            pacc = pacc + jnp.dot(buf_p[k:k + L_enc, :], posw_ref[k],
                                  preferred_element_type=jnp.float32)
        x2 = enc + _gelu(pacc + posb_ref[...])

        # input conditioning: LayerNorm(H) -> 1x1 conv (H -> D), then prepend start token (-5)
        mu = jnp.mean(x2, axis=-1, keepdims=True)
        dc = x2 - mu
        var = jnp.mean(dc * dc, axis=-1, keepdims=True)
        xn = dc * jax.lax.rsqrt(var + EPS) * lng_ref[...] + lnb_ref[...]
        cond = jnp.dot(xn, wcond_ref[...], preferred_element_type=jnp.float32) + bcond_ref[...]
        out_ref[0, 0:1, :] = jnp.full((1, D), -5.0, jnp.float32)
        out_ref[0, 1:1 + L_enc, :] = cond

    return kernel


# ------------------------- kernel 2: transformer layers + output head ------------------------
def make_transformer_kernel(S, D, H, FF, T):
    scale = 1.0 / float(np.sqrt(HEAD_DIM))

    def kernel(xc_ref, hm_ref, aw_ref, ab_ref, w1_ref, b1_ref, w2_ref, b2_ref,
               wout_ref, bout_ref, wcls_ref, bcls_ref,
               feat_ref, logit_ref, stream):
        l = pl.program_id(1)

        @pl.when(l == 0)
        def _init():
            stream[...] = xc_ref[0]                            # load residual stream once

        x = stream[...]                                        # (S, D)
        bq = ab_ref[0, 0:1, :]
        bk = ab_ref[0, 1:2, :]
        bv = ab_ref[0, 2:3, :]
        bo = ab_ref[0, 3:4, :]
        q = jnp.dot(x, aw_ref[0, 0], preferred_element_type=jnp.float32) + bq
        k = jnp.dot(x, aw_ref[0, 1], preferred_element_type=jnp.float32) + bk
        v = jnp.dot(x, aw_ref[0, 2], preferred_element_type=jnp.float32) + bv

        attn = jnp.zeros((S, D), jnp.float32)
        for h in range(N_HEADS):                               # head split via 0/1 lane masks
            m = hm_ref[h:h + 1, :]                             # (1, D)
            sc = jnp.einsum('qd,kd->qk', q * m, k,
                            preferred_element_type=jnp.float32) * scale
            sc = sc - jnp.max(sc, axis=-1, keepdims=True)
            e = jnp.exp(sc)
            p = e / jnp.sum(e, axis=-1, keepdims=True)
            attn = attn + jnp.dot(p, v * m, preferred_element_type=jnp.float32)

        x = x + jnp.dot(attn, aw_ref[0, 3], preferred_element_type=jnp.float32) + bo
        hid = _gelu(jnp.dot(x, w1_ref[0], preferred_element_type=jnp.float32) + b1_ref[0])
        x = x + jnp.dot(hid, w2_ref[0], preferred_element_type=jnp.float32) + b2_ref[0]
        stream[...] = x

        @pl.when(l == N_LAYERS - 1)
        def _finalize():
            # output_layer (1x1 conv) at the last sequence position + classifier Linear
            feat = jnp.dot(x[S - 1:S, :], wout_ref[...],
                           preferred_element_type=jnp.float32) + bout_ref[...]       # (1, H)
            feat_ref[0] = feat
            logit_ref[0] = jnp.dot(feat, wcls_ref[...],
                                   preferred_element_type=jnp.float32) + bcls_ref[...]

    return kernel


# ------------------------------------------ wrapper ------------------------------------------
def bendr_forward(x_ncl, params):
    """x_ncl: (N, n_chn, samples_len) float32 (PyTorch NCW). Returns (logits (N,T), features (N,H))."""
    (w0, wr, cb, gng, gnb, posw, posb, lng, lnb, wcond, bcond,
     aw, ab, w1, b1, w2, b2, wout, bout, wcls, bcls) = params
    N, Cin, L0 = x_ncl.shape
    H, D, FF, T = ENCODER_H, D_MODEL, FFN_DIM, N_TARGETS
    lens = _encoder_lengths(L0)
    L_enc = lens[-1]
    S = L_enc + 1
    assert L_enc >= 1, "input length too small for this architecture"

    # (length, channels) layout per sample; row 0 = conv left zero-pad; pad length to mult of 8.
    L0p = ((L0 + 1 + 7) // 8) * 8
    xt = jnp.transpose(x_ncl, (0, 2, 1)).astype(jnp.float32)          # (N, L0, Cin)
    xp = jnp.pad(xt, ((0, 0), (1, L0p - L0 - 1), (0, 0)))
    x2d = xp.reshape(N * L0p, Cin)

    # static helper matrices used inside the kernels
    gmat = (jnp.arange(H)[:, None] // 2 == jnp.arange(H)[None, :] // 2).astype(jnp.float32)
    hmask = (jnp.arange(D)[None, :] // HEAD_DIM
             == jnp.arange(N_HEADS)[:, None]).astype(jnp.float32)     # (heads, D)

    def full_spec(a, n_grid):
        nd = a.ndim
        if n_grid == 1:
            return pl.BlockSpec(a.shape, lambda n, _nd=nd: (0,) * _nd)
        return pl.BlockSpec(a.shape, lambda n, l, _nd=nd: (0,) * _nd)

    buf_rows = lens[0] + 8
    pos_rows = ((L_enc + 2 * POS_PAD + 7) // 8) * 8

    xc = pl.pallas_call(
        make_encoder_kernel(lens, Cin, H, D),
        out_shape=jax.ShapeDtypeStruct((N, S, D), jnp.float32),
        grid=(N,),
        in_specs=[pl.BlockSpec((L0p, Cin), lambda n: (n, 0))]
                 + [full_spec(a, 1) for a in
                    (w0, wr, cb, gng, gnb, gmat, posw, posb, lng, lnb, wcond, bcond)],
        out_specs=pl.BlockSpec((1, S, D), lambda n: (n, 0, 0)),
        scratch_shapes=[pltpu.VMEM((buf_rows, H), jnp.float32),
                        pltpu.VMEM((buf_rows, H), jnp.float32),
                        pltpu.VMEM((pos_rows, H), jnp.float32)],
        compiler_params=pltpu.CompilerParams(dimension_semantics=("parallel",)),
    )(x2d, w0, wr, cb, gng, gnb, gmat, posw, posb, lng, lnb, wcond, bcond)

    feats, logits = pl.pallas_call(
        make_transformer_kernel(S, D, H, FF, T),
        out_shape=(jax.ShapeDtypeStruct((N, 1, H), jnp.float32),
                   jax.ShapeDtypeStruct((N, 1, T), jnp.float32)),
        grid=(N, N_LAYERS),
        in_specs=[
            pl.BlockSpec((1, S, D), lambda n, l: (n, 0, 0)),
            full_spec(hmask, 2),
            pl.BlockSpec((1, 4, D, D), lambda n, l: (l, 0, 0, 0)),
            pl.BlockSpec((1, 4, D), lambda n, l: (l, 0, 0)),
            pl.BlockSpec((1, D, FF), lambda n, l: (l, 0, 0)),
            pl.BlockSpec((1, 1, FF), lambda n, l: (l, 0, 0)),
            pl.BlockSpec((1, FF, D), lambda n, l: (l, 0, 0)),
            pl.BlockSpec((1, 1, D), lambda n, l: (l, 0, 0)),
            full_spec(wout, 2), full_spec(bout, 2),
            full_spec(wcls, 2), full_spec(bcls, 2),
        ],
        out_specs=(pl.BlockSpec((1, 1, H), lambda n, l: (n, 0, 0)),
                   pl.BlockSpec((1, 1, T), lambda n, l: (n, 0, 0))),
        scratch_shapes=[pltpu.VMEM((S, D), jnp.float32)],
        compiler_params=pltpu.CompilerParams(
            dimension_semantics=("parallel", "arbitrary")),
    )(xc, hmask, aw, ab, w1, b1, w2, b2, wout, bout, wcls, bcls)

    return logits.reshape(N, T), feats.reshape(N, H)


# ------------------------------------- parameters / reference --------------------------------
def init_params(key):
    H, D, FF, T, Lyr, Cin = ENCODER_H, D_MODEL, FFN_DIM, N_TARGETS, N_LAYERS, N_CHN
    keys = iter(jax.random.split(key, 40))

    def u(shape, fan_in, gain=1.0):
        b = gain / np.sqrt(fan_in)
        return jax.random.uniform(next(keys), shape, jnp.float32, -b, b)

    def nrm(shape, mean, std):
        return mean + std * jax.random.normal(next(keys), shape, jnp.float32)

    # conv encoder (weights stored as (tap, Cin, Cout); PyTorch stores (Cout, Cin, tap))
    w0 = u((3, Cin, H), 3 * Cin)
    wr = u((5, 3, H, H), 3 * H)
    cb = u((6, 1, H), 3 * H)
    gng = nrm((6, 1, H), 1.0, 0.1)
    gnb = nrm((6, 1, H), 0.0, 0.1)

    gs = H // 16                                  # grouped position conv: 16 groups
    gmask = (jnp.arange(H)[:, None] // gs == jnp.arange(H)[None, :] // gs).astype(jnp.float32)
    posw = u((POS_K, H, H), POS_K * gs) * gmask[None]   # dense block-diagonal (weight_norm folded)
    posb = u((1, H), POS_K * gs)
    lng = nrm((1, H), 1.0, 0.1)
    lnb = nrm((1, H), 0.0, 0.1)
    wcond = u((H, D), H)
    bcond = u((1, D), H)

    # transformer layers: [Wq, Wk, Wv, Wo] stacked per layer, transposed for `x @ W`
    aw = u((Lyr, 4, D, D), D, gain=0.25)
    ab = u((Lyr, 4, D), D, gain=0.25)
    w1 = u((Lyr, D, FF), D, gain=0.25)
    b1 = u((Lyr, 1, FF), D, gain=0.25)
    w2 = u((Lyr, FF, D), FF, gain=0.25)
    b2 = u((Lyr, 1, D), FF, gain=0.25)

    wout = u((D, H), D)                           # output_layer 1x1 conv
    bout = u((1, H), D)
    wcls = u((H, T), H)                           # classifier Linear
    bcls = u((1, T), H)
    return (w0, wr, cb, gng, gnb, posw, posb, lng, lnb, wcond, bcond,
            aw, ab, w1, b1, w2, b2, wout, bout, wcls, bcls)


def ref_forward(x_ncl, params):
    """Pure-JAX reference with identical semantics (for the correctness self-check)."""
    (w0, wr, cb, gng, gnb, posw, posb, lng, lnb, wcond, bcond,
     aw, ab, w1, b1, w2, b2, wout, bout, wcls, bcls) = params
    N = x_ncl.shape[0]
    H, D = ENCODER_H, D_MODEL
    hi = jax.lax.Precision.HIGHEST

    h = jnp.transpose(x_ncl, (0, 2, 1)).astype(jnp.float32)
    for i, s in enumerate(STRIDES):
        w = w0 if i == 0 else wr[i - 1]
        Lin = h.shape[1]
        Lout = (Lin - 1) // s + 1
        hp = jnp.pad(h, ((0, 0), (1, 3), (0, 0)))
        acc = jnp.zeros((N, Lout, H), jnp.float32) + cb[i][None]
        for k in range(3):
            acc = acc + jnp.einsum('nlc,cd->nld',
                                   hp[:, k:k + s * (Lout - 1) + 1:s, :], w[k], precision=hi)
        g = acc.reshape(N, Lout, H // 2, 2)
        mu = g.mean(axis=(1, 3), keepdims=True)
        var = ((g - mu) ** 2).mean(axis=(1, 3), keepdims=True)
        gn = ((g - mu) / jnp.sqrt(var + EPS)).reshape(N, Lout, H)
        h = _gelu(gn * gng[i][None] + gnb[i][None])
    enc = h
    L_enc = enc.shape[1]

    ep = jnp.pad(enc, ((0, 0), (POS_PAD, POS_PAD), (0, 0)))
    pa = jnp.zeros((N, L_enc, H), jnp.float32) + posb[None]
    for k in range(POS_K):
        pa = pa + jnp.einsum('nlc,cd->nld', ep[:, k:k + L_enc, :], posw[k], precision=hi)
    x2 = enc + _gelu(pa)

    mu = x2.mean(axis=-1, keepdims=True)
    var = ((x2 - mu) ** 2).mean(axis=-1, keepdims=True)
    xn = (x2 - mu) / jnp.sqrt(var + EPS) * lng[None] + lnb[None]
    cond = jnp.einsum('nlc,cd->nld', xn, wcond, precision=hi) + bcond[None]
    xx = jnp.concatenate([jnp.full((N, 1, D), -5.0, jnp.float32), cond], axis=1)

    S = xx.shape[1]
    dh = HEAD_DIM
    for l in range(N_LAYERS):
        q = jnp.einsum('nsd,de->nse', xx, aw[l, 0], precision=hi) + ab[l, 0]
        k_ = jnp.einsum('nsd,de->nse', xx, aw[l, 1], precision=hi) + ab[l, 1]
        v = jnp.einsum('nsd,de->nse', xx, aw[l, 2], precision=hi) + ab[l, 2]
        qh = q.reshape(N, S, N_HEADS, dh)
        kh = k_.reshape(N, S, N_HEADS, dh)
        vh = v.reshape(N, S, N_HEADS, dh)
        sc = jnp.einsum('nqhd,nkhd->nhqk', qh, kh, precision=hi) / np.sqrt(dh)
        p = jax.nn.softmax(sc, axis=-1)
        o = jnp.einsum('nhqk,nkhd->nqhd', p, vh, precision=hi).reshape(N, S, D)
        xx = xx + jnp.einsum('nsd,de->nse', o, aw[l, 3], precision=hi) + ab[l, 3]
        hid = _gelu(jnp.einsum('nsd,df->nsf', xx, w1[l], precision=hi) + b1[l][None])
        xx = xx + jnp.einsum('nsf,fd->nsd', hid, w2[l], precision=hi) + b2[l][None]

    feat = jnp.einsum('nd,dh->nh', xx[:, -1, :], wout, precision=hi) + bout
    logits = jnp.einsum('nh,ht->nt', feat, wcls, precision=hi) + bcls
    return logits, feat


if __name__ == "__main__":
    key = jax.random.PRNGKey(0)
    kx, kp = jax.random.split(key)
    # PyTorch input layout: (batch, n_chn, samples_len)
    x = jax.random.normal(kx, (2, N_CHN, SAMPLES_LEN), jnp.float32)
    params = init_params(kp)

    fwd = jax.jit(bendr_forward)
    logits, feats = fwd(x, params)
    logits.block_until_ready()
    feats.block_until_ready()

    ref_logits, ref_feats = ref_forward(x, params)
    scale_f = 1.0 + float(jnp.max(jnp.abs(ref_feats)))
    scale_l = 1.0 + float(jnp.max(jnp.abs(ref_logits)))
    err_f = float(jnp.max(jnp.abs(feats - ref_feats)))
    err_l = float(jnp.max(jnp.abs(logits - ref_logits)))

    assert logits.shape == (2, N_TARGETS) and feats.shape == (2, ENCODER_H)
    assert np.isfinite(err_f) and np.isfinite(err_l)
    assert err_f < 3e-3 * scale_f and err_l < 3e-3 * scale_l, (err_f, err_l, scale_f, scale_l)
    print("KERNEL_OK")
</pallas_src>

<mosaic_0001>
module attributes {stable_mosaic.version = 11 : i64} {
  func.func @kernel(%arg0: i32, %arg1: i32, %arg2: memref<1x5x96xf32, #tpu.memory_space<vmem>>, %arg3: memref<8x96xf32, #tpu.memory_space<vmem>>, %arg4: memref<1x4x96x96xf32, #tpu.memory_space<vmem>>, %arg5: memref<1x4x96xf32, #tpu.memory_space<vmem>>, %arg6: memref<1x96x64xf32, #tpu.memory_space<vmem>>, %arg7: memref<1x1x64xf32, #tpu.memory_space<vmem>>, %arg8: memref<1x64x96xf32, #tpu.memory_space<vmem>>, %arg9: memref<1x1x96xf32, #tpu.memory_space<vmem>>, %arg10: memref<96x32xf32, #tpu.memory_space<vmem>>, %arg11: memref<1x32xf32, #tpu.memory_space<vmem>>, %arg12: memref<32x2xf32, #tpu.memory_space<vmem>>, %arg13: memref<1x2xf32, #tpu.memory_space<vmem>>, %arg14: memref<1x1x32xf32, #tpu.memory_space<vmem>>, %arg15: memref<1x1x2xf32, #tpu.memory_space<vmem>>, %arg16: memref<5x96xf32, #tpu.memory_space<vmem>>) attributes {dimension_semantics = [#tpu.dimension_semantics<parallel>, #tpu.dimension_semantics<arbitrary>], iteration_bounds = array<i64: 2, 8>, scalar_prefetch = 0 : i64, scratch_operands = 1 : i64, tpu.core_type = #tpu.core_type<tc>, window_params = [{transform_indices = @transform_0, window_bounds = array<i64: 1, 5, 96>}, {pipeline_mode = #tpu.pipeline_mode<synchronous>, transform_indices = @transform_1, window_bounds = array<i64: 8, 96>}, {transform_indices = @transform_2, window_bounds = array<i64: 1, 4, 96, 96>}, {transform_indices = @transform_3, window_bounds = array<i64: 1, 4, 96>}, {transform_indices = @transform_4, window_bounds = array<i64: 1, 96, 64>}, {transform_indices = @transform_5, window_bounds = array<i64: 1, 1, 64>}, {transform_indices = @transform_6, window_bounds = array<i64: 1, 64, 96>}, {transform_indices = @transform_7, window_bounds = array<i64: 1, 1, 96>}, {pipeline_mode = #tpu.pipeline_mode<synchronous>, transform_indices = @transform_8, window_bounds = array<i64: 96, 32>}, {pipeline_mode = #tpu.pipeline_mode<synchronous>, transform_indices = @transform_9, window_bounds = array<i64: 1, 32>}, {pipeline_mode = #tpu.pipeline_mode<synchronous>, transform_indices = @transform_10, window_bounds = array<i64: 32, 2>}, {pipeline_mode = #tpu.pipeline_mode<synchronous>, transform_indices = @transform_11, window_bounds = array<i64: 1, 2>}, {transform_indices = @transform_12, window_bounds = array<i64: 1, 1, 32>}, {transform_indices = @transform_13, window_bounds = array<i64: 1, 1, 2>}]} {
    %c0_i32 = arith.constant 0 : i32
    %0 = arith.cmpi eq, %arg1, %c0_i32 : i32
    %1 = arith.extui %0 : i1 to i32
    %c0_i32_0 = arith.constant 0 : i32
    %2 = arith.cmpi ne, %1, %c0_i32_0 : i32
    scf.if %2 {
      %c0_104 = arith.constant 0 : index
      %c0_105 = arith.constant 0 : index
      %c0_106 = arith.constant 0 : index
      %218 = vector.load %arg2[%c0_104, %c0_105, %c0_106] : memref<1x5x96xf32, #tpu.memory_space<vmem>>, vector<1x5x96xf32>
      %219 = vector.shape_cast %218 : vector<1x5x96xf32> to vector<5x96xf32>
      %c0_107 = arith.constant 0 : index
      %c0_108 = arith.constant 0 : index
      %220 = vector.load %arg16[%c0_107, %c0_108] : memref<5x96xf32, #tpu.memory_space<vmem>>, vector<5x96xf32>
      tpu.vector_store %arg16[%c0_107, %c0_108], %219 {strides = array<i32>} : memref<5x96xf32, #tpu.memory_space<vmem>>, vector<5x96xf32>,
    } else {
    }
    %c0 = arith.constant 0 : index
    %c0_1 = arith.constant 0 : index
    %3 = vector.load %arg16[%c0, %c0_1] : memref<5x96xf32, #tpu.memory_space<vmem>>, vector<5x96xf32>
    %c0_2 = arith.constant 0 : index
    %c0_3 = arith.constant 0 : index
    %c0_4 = arith.constant 0 : index
    %4 = vector.load %arg5[%c0_2, %c0_3, %c0_4] : memref<1x4x96xf32, #tpu.memory_space<vmem>>, vector<1x1x96xf32>
    %5 = vector.shape_cast %4 : vector<1x1x96xf32> to vector<1x96xf32>
    %c0_5 = arith.constant 0 : index
    %c1 = arith.constant 1 : index
    %c0_6 = arith.constant 0 : index
    %6 = vector.load %arg5[%c0_5, %c1, %c0_6] : memref<1x4x96xf32, #tpu.memory_space<vmem>>, vector<1x1x96xf32>
    %7 = vector.shape_cast %6 : vector<1x1x96xf32> to vector<1x96xf32>
    %c0_7 = arith.constant 0 : index
    %c2 = arith.constant 2 : index
    %c0_8 = arith.constant 0 : index
    %8 = vector.load %arg5[%c0_7, %c2, %c0_8] : memref<1x4x96xf32, #tpu.memory_space<vmem>>, vector<1x1x96xf32>
    %9 = vector.shape_cast %8 : vector<1x1x96xf32> to vector<1x96xf32>
    %c0_9 = arith.constant 0 : index
    %c3 = arith.constant 3 : index
    %c0_10 = arith.constant 0 : index
    %10 = vector.load %arg5[%c0_9, %c3, %c0_10] : memref<1x4x96xf32, #tpu.memory_space<vmem>>, vector<1x1x96xf32>
    %11 = vector.shape_cast %10 : vector<1x1x96xf32> to vector<1x96xf32>
    %c0_11 = arith.constant 0 : index
    %c0_12 = arith.constant 0 : index
    %c0_13 = arith.constant 0 : index
    %c0_14 = arith.constant 0 : index
    %12 = vector.load %arg4[%c0_11, %c0_12, %c0_13, %c0_14] : memref<1x4x96x96xf32, #tpu.memory_space<vmem>>, vector<1x1x96x96xf32>
    %13 = vector.shape_cast %12 : vector<1x1x96x96xf32> to vector<96x96xf32>
    %cst = arith.constant dense<0.000000e+00> : vector<5x96xf32>
    %14 = tpu.matmul %3, %13, %cst {dimension_numbers = #tpu.dot_dimension_numbers<[1], [0], [0], [1], [0, 0, 1, 1], [], []>} : vector<5x96xf32>, vector<96x96xf32>, vector<5x96xf32> -> vector<5x96xf32>
    %15 = vector.broadcast %5 : vector<1x96xf32> to vector<5x96xf32>
    %16 = arith.addf %14, %15 : vector<5x96xf32>
    %c0_15 = arith.constant 0 : index
    %c1_16 = arith.constant 1 : index
    %c0_17 = arith.constant 0 : index
    %c0_18 = arith.constant 0 : index
    %17 = vector.load %arg4[%c0_15, %c1_16, %c0_17, %c0_18] : memref<1x4x96x96xf32, #tpu.memory_space<vmem>>, vector<1x1x96x96xf32>
    %18 = vector.shape_cast %17 : vector<1x1x96x96xf32> to vector<96x96xf32>
    %cst_19 = arith.constant dense<0.000000e+00> : vector<5x96xf32>
    %19 = tpu.matmul %3, %18, %cst_19 {dimension_numbers = #tpu.dot_dimension_numbers<[1], [0], [0], [1], [0, 0, 1, 1], [], []>} : vector<5x96xf32>, vector<96x96xf32>, vector<5x96xf32> -> vector<5x96xf32>
    %20 = vector.broadcast %7 : vector<1x96xf32> to vector<5x96xf32>
    %21 = arith.addf %19, %20 : vector<5x96xf32>
    %c0_20 = arith.constant 0 : index
    %c2_21 = arith.constant 2 : index
    %c0_22 = arith.constant 0 : index
    %c0_23 = arith.constant 0 : index
    %22 = vector.load %arg4[%c0_20, %c2_21, %c0_22, %c0_23] : memref<1x4x96x96xf32, #tpu.memory_space<vmem>>, vector<1x1x96x96xf32>
    %23 = vector.shape_cast %22 : vector<1x1x96x96xf32> to vector<96x96xf32>
    %cst_24 = arith.constant dense<0.000000e+00> : vector<5x96xf32>
    %24 = tpu.matmul %3, %23, %cst_24 {dimension_numbers = #tpu.dot_dimension_numbers<[1], [0], [0], [1], [0, 0, 1, 1], [], []>} : vector<5x96xf32>, vector<96x96xf32>, vector<5x96xf32> -> vector<5x96xf32>
    %25 = vector.broadcast %9 : vector<1x96xf32> to vector<5x96xf32>
    %26 = arith.addf %24, %25 : vector<5x96xf32>
    %cst_25 = arith.constant 0.000000e+00 : f32
    %27 = vector.broadcast %cst_25 : f32 to vector<5x96xf32>
    %c0_26 = arith.constant 0 : index
    %c0_27 = arith.constant 0 : index
    %28 = vector.load %arg3[%c0_26, %c0_27] : memref<8x96xf32, #tpu.memory_space<vmem>>, vector<1x96xf32>
    %29 = vector.broadcast %28 : vector<1x96xf32> to vector<5x96xf32>
    %30 = arith.mulf %16, %29 : vector<5x96xf32>
    "tpu.trace_start"() <{level = 10 : i32, message = "qd,kd->qk"}> : () -> ()
    %cst_28 = arith.constant dense<0.000000e+00> : vector<5x5xf32>
    %31 = tpu.matmul %30, %21, %cst_28 {dimension_numbers = #tpu.dot_dimension_numbers<[1], [1], [0], [0], [0, 0, 1, 0], [], []>} : vector<5x96xf32>, vector<5x96xf32>, vector<5x5xf32> -> vector<5x5xf32>
    "tpu.trace_stop"() : () -> ()
    %cst_29 = arith.constant 0.288675129 : f32
    %32 = vector.broadcast %cst_29 : f32 to vector<5x5xf32>
    %33 = arith.mulf %31, %32 : vector<5x5xf32>
    %cst_30 = arith.constant dense<0xFF800000> : vector<5xf32>
    %34 = vector.multi_reduction <maximumf>, %33, %cst_30 [1] : vector<5x5xf32> to vector<5xf32>
    %35 = vector.shape_cast %34 : vector<5xf32> to vector<5x1xf32>
    %36 = vector.broadcast %35 : vector<5x1xf32> to vector<5x5xf32>
    %37 = arith.subf %33, %36 : vector<5x5xf32>
    %38 = math.exp %37 : vector<5x5xf32>
    %cst_31 = arith.constant dense<0.000000e+00> : vector<5xf32>
    %39 = vector.multi_reduction <add>, %38, %cst_31 [1] : vector<5x5xf32> to vector<5xf32>
    %40 = vector.shape_cast %39 : vector<5xf32> to vector<5x1xf32>
    %41 = vector.broadcast %40 : vector<5x1xf32> to vector<5x5xf32>
    %42 = arith.divf %38, %41 : vector<5x5xf32>
    %43 = vector.broadcast %28 : vector<1x96xf32> to vector<5x96xf32>
    %44 = arith.mulf %26, %43 : vector<5x96xf32>
    %cst_32 = arith.constant dense<0.000000e+00> : vector<5x96xf32>
    %45 = tpu.matmul %42, %44, %cst_32 {dimension_numbers = #tpu.dot_dimension_numbers<[1], [0], [0], [1], [0, 0, 1, 1], [], []>} : vector<5x5xf32>, vector<5x96xf32>, vector<5x96xf32> -> vector<5x96xf32>
    %46 = arith.addf %27, %45 : vector<5x96xf32>
    %c1_33 = arith.constant 1 : index
    %c0_34 = arith.constant 0 : index
    %47 = vector.load %arg3[%c1_33, %c0_34] : memref<8x96xf32, #tpu.memory_space<vmem>>, vector<1x96xf32>
    %48 = vector.broadcast %47 : vector<1x96xf32> to vector<5x96xf32>
    %49 = arith.mulf %16, %48 : vector<5x96xf32>
    "tpu.trace_start"() <{level = 10 : i32, message = "qd,kd->qk"}> : () -> ()
    %cst_35 = arith.constant dense<0.000000e+00> : vector<5x5xf32>
    %50 = tpu.matmul %49, %21, %cst_35 {dimension_numbers = #tpu.dot_dimension_numbers<[1], [1], [0], [0], [0, 0, 1, 0], [], []>} : vector<5x96xf32>, vector<5x96xf32>, vector<5x5xf32> -> vector<5x5xf32>
    "tpu.trace_stop"() : () -> ()
    %cst_36 = arith.constant 0.288675129 : f32
    %51 = vector.broadcast %cst_36 : f32 to vector<5x5xf32>
    %52 = arith.mulf %50, %51 : vector<5x5xf32>
    %cst_37 = arith.constant dense<0xFF800000> : vector<5xf32>
    %53 = vector.multi_reduction <maximumf>, %52, %cst_37 [1] : vector<5x5xf32> to vector<5xf32>
    %54 = vector.shape_cast %53 : vector<5xf32> to vector<5x1xf32>
    %55 = vector.broadcast %54 : vector<5x1xf32> to vector<5x5xf32>
    %56 = arith.subf %52, %55 : vector<5x5xf32>
    %57 = math.exp %56 : vector<5x5xf32>
    %cst_38 = arith.constant dense<0.000000e+00> : vector<5xf32>
    %58 = vector.multi_reduction <add>, %57, %cst_38 [1] : vector<5x5xf32> to vector<5xf32>
    %59 = vector.shape_cast %58 : vector<5xf32> to vector<5x1xf32>
    %60 = vector.broadcast %59 : vector<5x1xf32> to vector<5x5xf32>
    %61 = arith.divf %57, %60 : vector<5x5xf32>
    %62 = vector.broadcast %47 : vector<1x96xf32> to vector<5x96xf32>
    %63 = arith.mulf %26, %62 : vector<5x96xf32>
    %cst_39 = arith.constant dense<0.000000e+00> : vector<5x96xf32>
    %64 = tpu.matmul %61, %63, %cst_39 {dimension_numbers = #tpu.dot_dimension_numbers<[1], [0], [0], [1], [0, 0, 1, 1], [], []>} : vector<5x5xf32>, vector<5x96xf32>, vector<5x96xf32> -> vector<5x96xf32>
    %65 = arith.addf %46, %64 : vector<5x96xf32>
    %c2_40 = arith.constant 2 : index
    %c0_41 = arith.constant 0 : index
    %66 = vector.load %arg3[%c2_40, %c0_41] : memref<8x96xf32, #tpu.memory_space<vmem>>, vector<1x96xf32>
    %67 = vector.broadcast %66 : vector<1x96xf32> to vector<5x96xf32>
    %68 = arith.mulf %16, %67 : vector<5x96xf32>
    "tpu.trace_start"() <{level = 10 : i32, message = "qd,kd->qk"}> : () -> ()
    %cst_42 = arith.constant dense<0.000000e+00> : vector<5x5xf32>
    %69 = tpu.matmul %68, %21, %cst_42 {dimension_numbers = #tpu.dot_dimension_numbers<[1], [1], [0], [0], [0, 0, 1, 0], [], []>} : vector<5x96xf32>, vector<5x96xf32>, vector<5x5xf32> -> vector<5x5xf32>
    "tpu.trace_stop"() : () -> ()
    %cst_43 = arith.constant 0.288675129 : f32
    %70 = vector.broadcast %cst_43 : f32 to vector<5x5xf32>
    %71 = arith.mulf %69, %70 : vector<5x5xf32>
    %cst_44 = arith.constant dense<0xFF800000> : vector<5xf32>
    %72 = vector.multi_reduction <maximumf>, %71, %cst_44 [1] : vector<5x5xf32> to vector<5xf32>
    %73 = vector.shape_cast %72 : vector<5xf32> to vector<5x1xf32>
    %74 = vector.broadcast %73 : vector<5x1xf32> to vector<5x5xf32>
    %75 = arith.subf %71, %74 : vector<5x5xf32>
    %76 = math.exp %75 : vector<5x5xf32>
    %cst_45 = arith.constant dense<0.000000e+00> : vector<5xf32>
    %77 = vector.multi_reduction <add>, %76, %cst_45 [1] : vector<5x5xf32> to vector<5xf32>
    %78 = vector.shape_cast %77 : vector<5xf32> to vector<5x1xf32>
    %79 = vector.broadcast %78 : vector<5x1xf32> to vector<5x5xf32>
    %80 = arith.divf %76, %79 : vector<5x5xf32>
    %81 = vector.broadcast %66 : vector<1x96xf32> to vector<5x96xf32>
    %82 = arith.mulf %26, %81 : vector<5x96xf32>
    %cst_46 = arith.constant dense<0.000000e+00> : vector<5x96xf32>
    %83 = tpu.matmul %80, %82, %cst_46 {dimension_numbers = #tpu.dot_dimension_numbers<[1], [0], [0], [1], [0, 0, 1, 1], [], []>} : vector<5x5xf32>, vector<5x96xf32>, vector<5x96xf32> -> vector<5x96xf32>
    %84 = arith.addf %65, %83 : vector<5x96xf32>
    %c3_47 = arith.constant 3 : index
    %c0_48 = arith.constant 0 : index
    %85 = vector.load %arg3[%c3_47, %c0_48] : memref<8x96xf32, #tpu.memory_space<vmem>>, vector<1x96xf32>
    %86 = vector.broadcast %85 : vector<1x96xf32> to vector<5x96xf32>
    %87 = arith.mulf %16, %86 : vector<5x96xf32>
    "tpu.trace_start"() <{level = 10 : i32, message = "qd,kd->qk"}> : () -> ()
    %cst_49 = arith.constant dense<0.000000e+00> : vector<5x5xf32>
    %88 = tpu.matmul %87, %21, %cst_49 {dimension_numbers = #tpu.dot_dimension_numbers<[1], [1], [0], [0], [0, 0, 1, 0], [], []>} : vector<5x96xf32>, vector<5x96xf32>, vector<5x5xf32> -> vector<5x5xf32>
    "tpu.trace_stop"() : () -> ()
    %cst_50 = arith.constant 0.288675129 : f32
    %89 = vector.broadcast %cst_50 : f32 to vector<5x5xf32>
    %90 = arith.mulf %88, %89 : vector<5x5xf32>
    %cst_51 = arith.constant dense<0xFF800000> : vector<5xf32>
    %91 = vector.multi_reduction <maximumf>, %90, %cst_51 [1] : vector<5x5xf32> to vector<5xf32>
    %92 = vector.shape_cast %91 : vector<5xf32> to vector<5x1xf32>
    %93 = vector.broadcast %92 : vector<5x1xf32> to vector<5x5xf32>
    %94 = arith.subf %90, %93 : vector<5x5xf32>
    %95 = math.exp %94 : vector<5x5xf32>
    %cst_52 = arith.constant dense<0.000000e+00> : vector<5xf32>
    %96 = vector.multi_reduction <add>, %95, %cst_52 [1] : vector<5x5xf32> to vector<5xf32>
    %97 = vector.shape_cast %96 : vector<5xf32> to vector<5x1xf32>
    %98 = vector.broadcast %97 : vector<5x1xf32> to vector<5x5xf32>
    %99 = arith.divf %95, %98 : vector<5x5xf32>
    %100 = vector.broadcast %85 : vector<1x96xf32> to vector<5x96xf32>
    %101 = arith.mulf %26, %100 : vector<5x96xf32>
    %cst_53 = arith.constant dense<0.000000e+00> : vector<5x96xf32>
    %102 = tpu.matmul %99, %101, %cst_53 {dimension_numbers = #tpu.dot_dimension_numbers<[1], [0], [0], [1], [0, 0, 1, 1], [], []>} : vector<5x5xf32>, vector<5x96xf32>, vector<5x96xf32> -> vector<5x96xf32>
    %103 = arith.addf %84, %102 : vector<5x96xf32>
    %c4 = arith.constant 4 : index
    %c0_54 = arith.constant 0 : index
    %104 = vector.load %arg3[%c4, %c0_54] : memref<8x96xf32, #tpu.memory_space<vmem>>, vector<1x96xf32>
    %105 = vector.broadcast %104 : vector<1x96xf32> to vector<5x96xf32>
    %106 = arith.mulf %16, %105 : vector<5x96xf32>
    "tpu.trace_start"() <{level = 10 : i32, message = "qd,kd->qk"}> : () -> ()
    %cst_55 = arith.constant dense<0.000000e+00> : vector<5x5xf32>
    %107 = tpu.matmul %106, %21, %cst_55 {dimension_numbers = #tpu.dot_dimension_numbers<[1], [1], [0], [0], [0, 0, 1, 0], [], []>} : vector<5x96xf32>, vector<5x96xf32>, vector<5x5xf32> -> vector<5x5xf32>
    "tpu.trace_stop"() : () -> ()
    %cst_56 = arith.constant 0.288675129 : f32
    %108 = vector.broadcast %cst_56 : f32 to vector<5x5xf32>
    %109 = arith.mulf %107, %108 : vector<5x5xf32>
    %cst_57 = arith.constant dense<0xFF800000> : vector<5xf32>
    %110 = vector.multi_reduction <maximumf>, %109, %cst_57 [1] : vector<5x5xf32> to vector<5xf32>
    %111 = vector.shape_cast %110 : vector<5xf32> to vector<5x1xf32>
    %112 = vector.broadcast %111 : vector<5x1xf32> to vector<5x5xf32>
    %113 = arith.subf %109, %112 : vector<5x5xf32>
    %114 = math.exp %113 : vector<5x5xf32>
    %cst_58 = arith.constant dense<0.000000e+00> : vector<5xf32>
    %115 = vector.multi_reduction <add>, %114, %cst_58 [1] : vector<5x5xf32> to vector<5xf32>
    %116 = vector.shape_cast %115 : vector<5xf32> to vector<5x1xf32>
    %117 = vector.broadcast %116 : vector<5x1xf32> to vector<5x5xf32>
    %118 = arith.divf %114, %117 : vector<5x5xf32>
    %119 = vector.broadcast %104 : vector<1x96xf32> to vector<5x96xf32>
    %120 = arith.mulf %26, %119 : vector<5x96xf32>
    %cst_59 = arith.constant dense<0.000000e+00> : vector<5x96xf32>
    %121 = tpu.matmul %118, %120, %cst_59 {dimension_numbers = #tpu.dot_dimension_numbers<[1], [0], [0], [1], [0, 0, 1, 1], [], []>} : vector<5x5xf32>, vector<5x96xf32>, vector<5x96xf32> -> vector<5x96xf32>
    %122 = arith.addf %103, %121 : vector<5x96xf32>
    %c5 = arith.constant 5 : index
    %c0_60 = arith.constant 0 : index
    %123 = vector.load %arg3[%c5, %c0_60] : memref<8x96xf32, #tpu.memory_space<vmem>>, vector<1x96xf32>
    %124 = vector.broadcast %123 : vector<1x96xf32> to vector<5x96xf32>
    %125 = arith.mulf %16, %124 : vector<5x96xf32>
    "tpu.trace_start"() <{level = 10 : i32, message = "qd,kd->qk"}> : () -> ()
    %cst_61 = arith.constant dense<0.000000e+00> : vector<5x5xf32>
    %126 = tpu.matmul %125, %21, %cst_61 {dimension_numbers = #tpu.dot_dimension_numbers<[1], [1], [0], [0], [0, 0, 1, 0], [], []>} : vector<5x96xf32>, vector<5x96xf32>, vector<5x5xf32> -> vector<5x5xf32>
    "tpu.trace_stop"() : () -> ()
    %cst_62 = arith.constant 0.288675129 : f32
    %127 = vector.broadcast %cst_62 : f32 to vector<5x5xf32>
    %128 = arith.mulf %126, %127 : vector<5x5xf32>
    %cst_63 = arith.constant dense<0xFF800000> : vector<5xf32>
    %129 = vector.multi_reduction <maximumf>, %128, %cst_63 [1] : vector<5x5xf32> to vector<5xf32>
    %130 = vector.shape_cast %129 : vector<5xf32> to vector<5x1xf32>
    %131 = vector.broadcast %130 : vector<5x1xf32> to vector<5x5xf32>
    %132 = arith.subf %128, %131 : vector<5x5xf32>
    %133 = math.exp %132 : vector<5x5xf32>
    %cst_64 = arith.constant dense<0.000000e+00> : vector<5xf32>
    %134 = vector.multi_reduction <add>, %133, %cst_64 [1] : vector<5x5xf32> to vector<5xf32>
    %135 = vector.shape_cast %134 : vector<5xf32> to vector<5x1xf32>
    %136 = vector.broadcast %135 : vector<5x1xf32> to vector<5x5xf32>
    %137 = arith.divf %133, %136 : vector<5x5xf32>
    %138 = vector.broadcast %123 : vector<1x96xf32> to vector<5x96xf32>
    %139 = arith.mulf %26, %138 : vector<5x96xf32>
    %cst_65 = arith.constant dense<0.000000e+00> : vector<5x96xf32>
    %140 = tpu.matmul %137, %139, %cst_65 {dimension_numbers = #tpu.dot_dimension_numbers<[1], [0], [0], [1], [0, 0, 1, 1], [], []>} : vector<5x5xf32>, vector<5x96xf32>, vector<5x96xf32> -> vector<5x96xf32>
    %141 = arith.addf %122, %140 : vector<5x96xf32>
    %c6 = arith.constant 6 : index
    %c0_66 = arith.constant 0 : index
    %142 = vector.load %arg3[%c6, %c0_66] : memref<8x96xf32, #tpu.memory_space<vmem>>, vector<1x96xf32>
    %143 = vector.broadcast %142 : vector<1x96xf32> to vector<5x96xf32>
    %144 = arith.mulf %16, %143 : vector<5x96xf32>
    "tpu.trace_start"() <{level = 10 : i32, message = "qd,kd->qk"}> : () -> ()
    %cst_67 = arith.constant dense<0.000000e+00> : vector<5x5xf32>
    %145 = tpu.matmul %144, %21, %cst_67 {dimension_numbers = #tpu.dot_dimension_numbers<[1], [1], [0], [0], [0, 0, 1, 0], [], []>} : vector<5x96xf32>, vector<5x96xf32>, vector<5x5xf32> -> vector<5x5xf32>
    "tpu.trace_stop"() : () -> ()
    %cst_68 = arith.constant 0.288675129 : f32
    %146 = vector.broadcast %cst_68 : f32 to vector<5x5xf32>
    %147 = arith.mulf %145, %146 : vector<5x5xf32>
    %cst_69 = arith.constant dense<0xFF800000> : vector<5xf32>
    %148 = vector.multi_reduction <maximumf>, %147, %cst_69 [1] : vector<5x5xf32> to vector<5xf32>
    %149 = vector.shape_cast %148 : vector<5xf32> to vector<5x1xf32>
    %150 = vector.broadcast %149 : vector<5x1xf32> to vector<5x5xf32>
    %151 = arith.subf %147, %150 : vector<5x5xf32>
    %152 = math.exp %151 : vector<5x5xf32>
    %cst_70 = arith.constant dense<0.000000e+00> : vector<5xf32>
    %153 = vector.multi_reduction <add>, %152, %cst_70 [1] : vector<5x5xf32> to vector<5xf32>
    %154 = vector.shape_cast %153 : vector<5xf32> to vector<5x1xf32>
    %155 = vector.broadcast %154 : vector<5x1xf32> to vector<5x5xf32>
    %156 = arith.divf %152, %155 : vector<5x5xf32>
    %157 = vector.broadcast %142 : vector<1x96xf32> to vector<5x96xf32>
    %158 = arith.mulf %26, %157 : vector<5x96xf32>
    %cst_71 = arith.constant dense<0.000000e+00> : vector<5x96xf32>
    %159 = tpu.matmul %156, %158, %cst_71 {dimension_numbers = #tpu.dot_dimension_numbers<[1], [0], [0], [1], [0, 0, 1, 1], [], []>} : vector<5x5xf32>, vector<5x96xf32>, vector<5x96xf32> -> vector<5x96xf32>
    %160 = arith.addf %141, %159 : vector<5x96xf32>
    %c7 = arith.constant 7 : index
    %c0_72 = arith.constant 0 : index
    %161 = vector.load %arg3[%c7, %c0_72] : memref<8x96xf32, #tpu.memory_space<vmem>>, vector<1x96xf32>
    %162 = vector.broadcast %161 : vector<1x96xf32> to vector<5x96xf32>
    %163 = arith.mulf %16, %162 : vector<5x96xf32>
    "tpu.trace_start"() <{level = 10 : i32, message = "qd,kd->qk"}> : () -> ()
    %cst_73 = arith.constant dense<0.000000e+00> : vector<5x5xf32>
    %164 = tpu.matmul %163, %21, %cst_73 {dimension_numbers = #tpu.dot_dimension_numbers<[1], [1], [0], [0], [0, 0, 1, 0], [], []>} : vector<5x96xf32>, vector<5x96xf32>, vector<5x5xf32> -> vector<5x5xf32>
    "tpu.trace_stop"() : () -> ()
    %cst_74 = arith.constant 0.288675129 : f32
    %165 = vector.broadcast %cst_74 : f32 to vector<5x5xf32>
    %166 = arith.mulf %164, %165 : vector<5x5xf32>
    %cst_75 = arith.constant dense<0xFF800000> : vector<5xf32>
    %167 = vector.multi_reduction <maximumf>, %166, %cst_75 [1] : vector<5x5xf32> to vector<5xf32>
    %168 = vector.shape_cast %167 : vector<5xf32> to vector<5x1xf32>
    %169 = vector.broadcast %168 : vector<5x1xf32> to vector<5x5xf32>
    %170 = arith.subf %166, %169 : vector<5x5xf32>
    %171 = math.exp %170 : vector<5x5xf32>
    %cst_76 = arith.constant dense<0.000000e+00> : vector<5xf32>
    %172 = vector.multi_reduction <add>, %171, %cst_76 [1] : vector<5x5xf32> to vector<5xf32>
    %173 = vector.shape_cast %172 : vector<5xf32> to vector<5x1xf32>
    %174 = vector.broadcast %173 : vector<5x1xf32> to vector<5x5xf32>
    %175 = arith.divf %171, %174 : vector<5x5xf32>
    %176 = vector.broadcast %161 : vector<1x96xf32> to vector<5x96xf32>
    %177 = arith.mulf %26, %176 : vector<5x96xf32>
    %cst_77 = arith.constant dense<0.000000e+00> : vector<5x96xf32>
    %178 = tpu.matmul %175, %177, %cst_77 {dimension_numbers = #tpu.dot_dimension_numbers<[1], [0], [0], [1], [0, 0, 1, 1], [], []>} : vector<5x5xf32>, vector<5x96xf32>, vector<5x96xf32> -> vector<5x96xf32>
    %179 = arith.addf %160, %178 : vector<5x96xf32>
    %c0_78 = arith.constant 0 : index
    %c3_79 = arith.constant 3 : index
    %c0_80 = arith.constant 0 : index
    %c0_81 = arith.constant 0 : index
    %180 = vector.load %arg4[%c0_78, %c3_79, %c0_80, %c0_81] : memref<1x4x96x96xf32, #tpu.memory_space<vmem>>, vector<1x1x96x96xf32>
    %181 = vector.shape_cast %180 : vector<1x1x96x96xf32> to vector<96x96xf32>
    %cst_82 = arith.constant dense<0.000000e+00> : vector<5x96xf32>
    %182 = tpu.matmul %179, %181, %cst_82 {dimension_numbers = #tpu.dot_dimension_numbers<[1], [0], [0], [1], [0, 0, 1, 1], [], []>} : vector<5x96xf32>, vector<96x96xf32>, vector<5x96xf32> -> vector<5x96xf32>
    %183 = arith.addf %3, %182 : vector<5x96xf32>
    %184 = vector.broadcast %11 : vector<1x96xf32> to vector<5x96xf32>
    %185 = arith.addf %183, %184 : vector<5x96xf32>
    %c0_83 = arith.constant 0 : index
    %c0_84 = arith.constant 0 : index
    %c0_85 = arith.constant 0 : index
    %186 = vector.load %arg6[%c0_83, %c0_84, %c0_85] : memref<1x96x64xf32, #tpu.memory_space<vmem>>, vector<1x96x64xf32>
    %187 = vector.shape_cast %186 : vector<1x96x64xf32> to vector<96x64xf32>
    %cst_86 = arith.constant dense<0.000000e+00> : vector<5x64xf32>
    %188 = tpu.matmul %185, %187, %cst_86 {dimension_numbers = #tpu.dot_dimension_numbers<[1], [0], [0], [1], [0, 0, 1, 1], [], []>} : vector<5x96xf32>, vector<96x64xf32>, vector<5x64xf32> -> vector<5x64xf32>
    %c0_87 = arith.constant 0 : index
    %c0_88 = arith.constant 0 : index
    %c0_89 = arith.constant 0 : index
    %189 = vector.load %arg7[%c0_87, %c0_88, %c0_89] : memref<1x1x64xf32, #tpu.memory_space<vmem>>, vector<1x1x64xf32>
    %190 = vector.shape_cast %189 : vector<1x1x64xf32> to vector<1x64xf32>
    %191 = vector.broadcast %190 : vector<1x64xf32> to vector<5x64xf32>
    %192 = arith.addf %188, %191 : vector<5x64xf32>
    %cst_90 = arith.constant 5.000000e-01 : f32
    %193 = vector.broadcast %cst_90 : f32 to vector<5x64xf32>
    %194 = arith.mulf %193, %192 : vector<5x64xf32>
    %cst_91 = arith.constant 4.471500e-02 : f32
    %195 = vector.broadcast %cst_91 : f32 to vector<5x64xf32>
    %196 = arith.mulf %195, %192 : vector<5x64xf32>
    %197 = arith.mulf %196, %192 : vector<5x64xf32>
    %198 = arith.mulf %197, %192 : vector<5x64xf32>
    %199 = arith.addf %192, %198 : vector<5x64xf32>
    %cst_92 = arith.constant 0.797884583 : f32
    %200 = vector.broadcast %cst_92 : f32 to vector<5x64xf32>
    %201 = arith.mulf %200, %199 : vector<5x64xf32>
    %202 = math.tanh %201 : vector<5x64xf32>
    %cst_93 = arith.constant 1.000000e+00 : f32
    %203 = vector.broadcast %cst_93 : f32 to vector<5x64xf32>
    %204 = arith.addf %203, %202 : vector<5x64xf32>
    %205 = arith.mulf %194, %204 : vector<5x64xf32>
    %c0_94 = arith.constant 0 : index
    %c0_95 = arith.constant 0 : index
    %c0_96 = arith.constant 0 : index
    %206 = vector.load %arg8[%c0_94, %c0_95, %c0_96] : memref<1x64x96xf32, #tpu.memory_space<vmem>>, vector<1x64x96xf32>
    %207 = vector.shape_cast %206 : vector<1x64x96xf32> to vector<64x96xf32>
    %cst_97 = arith.constant dense<0.000000e+00> : vector<5x96xf32>
    %208 = tpu.matmul %205, %207, %cst_97 {dimension_numbers = #tpu.dot_dimension_numbers<[1], [0], [0], [1], [0, 0, 1, 1], [], []>} : vector<5x64xf32>, vector<64x96xf32>, vector<5x96xf32> -> vector<5x96xf32>
    %209 = arith.addf %185, %208 : vector<5x96xf32>
    %c0_98 = arith.constant 0 : index
    %c0_99 = arith.constant 0 : index
    %c0_100 = arith.constant 0 : index
    %210 = vector.load %arg9[%c0_98, %c0_99, %c0_100] : memref<1x1x96xf32, #tpu.memory_space<vmem>>, vector<1x1x96xf32>
    %211 = vector.shape_cast %210 : vector<1x1x96xf32> to vector<1x96xf32>
    %212 = vector.broadcast %211 : vector<1x96xf32> to vector<5x96xf32>
    %213 = arith.addf %209, %212 : vector<5x96xf32>
    %c0_101 = arith.constant 0 : index
    %c0_102 = arith.constant 0 : index
    %214 = vector.load %arg16[%c0_101, %c0_102] : memref<5x96xf32, #tpu.memory_space<vmem>>, vector<5x96xf32>
    tpu.vector_store %arg16[%c0_101, %c0_102], %213 {strides = array<i32>} : memref<5x96xf32, #tpu.memory_space<vmem>>, vector<5x96xf32>,
    %c7_i32 = arith.constant 7 : i32
    %215 = arith.cmpi eq, %arg1, %c7_i32 : i32
    %216 = arith.extui %215 : i1 to i32
    %c0_i32_103 = arith.constant 0 : i32
    %217 = arith.cmpi ne, %216, %c0_i32_103 : i32
    scf.if %217 {
      %218 = vector.extract_strided_slice %213 {offsets = [4, 0], sizes = [1, 96], strides = [1, 1]} : vector<5x96xf32> to vector<1x96xf32>
      %c0_104 = arith.constant 0 : index
      %c0_105 = arith.constant 0 : index
      %219 = vector.load %arg10[%c0_104, %c0_105] : memref<96x32xf32, #tpu.memory_space<vmem>>, vector<96x32xf32>
      %cst_106 = arith.constant dense<0.000000e+00> : vector<1x32xf32>
      %220 = tpu.matmul %218, %219, %cst_106 {dimension_numbers = #tpu.dot_dimension_numbers<[1], [0], [0], [1], [0, 0, 1, 1], [], []>} : vector<1x96xf32>, vector<96x32xf32>, vector<1x32xf32> -> vector<1x32xf32>
      %c0_107 = arith.constant 0 : index
      %c0_108 = arith.constant 0 : index
      %221 = vector.load %arg11[%c0_107, %c0_108] : memref<1x32xf32, #tpu.memory_space<vmem>>, vector<1x32xf32>
      %222 = arith.addf %220, %221 : vector<1x32xf32>
      %c0_109 = arith.constant 0 : index
      %c0_110 = arith.constant 0 : index
      %c0_111 = arith.constant 0 : index
      %223 = vector.load %arg14[%c0_109, %c0_110, %c0_111] : memref<1x1x32xf32, #tpu.memory_space<vmem>>, vector<1x1x32xf32>
      %224 = vector.shape_cast %223 : vector<1x1x32xf32> to vector<1x32xf32>
      %225 = vector.shape_cast %222 : vector<1x32xf32> to vector<1x1x32xf32>
      tpu.vector_store %arg14[%c0_109, %c0_110, %c0_111], %225 {strides = array<i32>} : memref<1x1x32xf32, #tpu.memory_space<vmem>>, vector<1x1x32xf32>,
      %c0_112 = arith.constant 0 : index
      %c0_113 = arith.constant 0 : index
      %226 = vector.load %arg12[%c0_112, %c0_113] : memref<32x2xf32, #tpu.memory_space<vmem>>, vector<32x2xf32>
      %cst_114 = arith.constant dense<0.000000e+00> : vector<1x2xf32>
      %227 = tpu.matmul %222, %226, %cst_114 {dimension_numbers = #tpu.dot_dimension_numbers<[1], [0], [0], [1], [0, 0, 1, 1], [], []>} : vector<1x32xf32>, vector<32x2xf32>, vector<1x2xf32> -> vector<1x2xf32>
      %c0_115 = arith.constant 0 : index
      %c0_116 = arith.constant 0 : index
      %228 = vector.load %arg13[%c0_115, %c0_116] : memref<1x2xf32, #tpu.memory_space<vmem>>, vector<1x2xf32>
      %229 = arith.addf %227, %228 : vector<1x2xf32>
      %c0_117 = arith.constant 0 : index
      %c0_118 = arith.constant 0 : index
      %c0_119 = arith.constant 0 : index
      %230 = vector.load %arg15[%c0_117, %c0_118, %c0_119] : memref<1x1x2xf32, #tpu.memory_space<vmem>>, vector<1x1x2xf32>
      %231 = vector.shape_cast %230 : vector<1x1x2xf32> to vector<1x2xf32>
      %232 = vector.shape_cast %229 : vector<1x2xf32> to vector<1x1x2xf32>
      tpu.vector_store %arg15[%c0_117, %c0_118, %c0_119], %232 {strides = array<i32>} : memref<1x1x2xf32, #tpu.memory_space<vmem>>, vector<1x1x2xf32>,
    } else {
    }
    return
  }
  func.func @transform_0(%arg0: i32, %arg1: i32) -> (i32, i32, i32) {
    %c0_i32 = arith.constant 0 : i32
    %c0_i32_0 = arith.constant 0 : i32
    %c0_i32_1 = arith.constant 0 : i32
    return %arg0, %c0_i32, %c0_i32_0 : i32, i32, i32
  }
  func.func @transform_1(%arg0: i32, %arg1: i32) -> (i32, i32) {
    %c0_i32 = arith.constant 0 : i32
    %c0_i32_0 = arith.constant 0 : i32
    %c0_i32_1 = arith.constant 0 : i32
    return %c0_i32, %c0_i32_0 : i32, i32
  }
  func.func @transform_2(%arg0: i32, %arg1: i32) -> (i32, i32, i32, i32) {
    %c0_i32 = arith.constant 0 : i32
    %c0_i32_0 = arith.constant 0 : i32
    %c0_i32_1 = arith.constant 0 : i32
    %c0_i32_2 = arith.constant 0 : i32
    return %arg1, %c0_i32, %c0_i32_0, %c0_i32_1 : i32, i32, i32, i32
  }
  func.func @transform_3(%arg0: i32, %arg1: i32) -> (i32, i32, i32) {
    %c0_i32 = arith.constant 0 : i32
    %c0_i32_0 = arith.constant 0 : i32
    %c0_i32_1 = arith.constant 0 : i32
    return %arg1, %c0_i32, %c0_i32_0 : i32, i32, i32
  }
  func.func @transform_4(%arg0: i32, %arg1: i32) -> (i32, i32, i32) {
    %c0_i32 = arith.constant 0 : i32
    %c0_i32_0 = arith.constant 0 : i32
    %c0_i32_1 = arith.constant 0 : i32
    return %arg1, %c0_i32, %c0_i32_0 : i32, i32, i32
  }
  func.func @transform_5(%arg0: i32, %arg1: i32) -> (i32, i32, i32) {
    %c0_i32 = arith.constant 0 : i32
    %c0_i32_0 = arith.constant 0 : i32
    %c0_i32_1 = arith.constant 0 : i32
    return %arg1, %c0_i32, %c0_i32_0 : i32, i32, i32
  }
  func.func @transform_6(%arg0: i32, %arg1: i32) -> (i32, i32, i32) {
    %c0_i32 = arith.constant 0 : i32
    %c0_i32_0 = arith.constant 0 : i32
    %c0_i32_1 = arith.constant 0 : i32
    return %arg1, %c0_i32, %c0_i32_0 : i32, i32, i32
  }
  func.func @transform_7(%arg0: i32, %arg1: i32) -> (i32, i32, i32) {
    %c0_i32 = arith.constant 0 : i32
    %c0_i32_0 = arith.constant 0 : i32
    %c0_i32_1 = arith.constant 0 : i32
    return %arg1, %c0_i32, %c0_i32_0 : i32, i32, i32
  }
  func.func @transform_8(%arg0: i32, %arg1: i32) -> (i32, i32) {
    %c0_i32 = arith.constant 0 : i32
    %c0_i32_0 = arith.constant 0 : i32
    %c0_i32_1 = arith.constant 0 : i32
    return %c0_i32, %c0_i32_0 : i32, i32
  }
  func.func @transform_9(%arg0: i32, %arg1: i32) -> (i32, i32) {
    %c0_i32 = arith.constant 0 : i32
    %c0_i32_0 = arith.constant 0 : i32
    %c0_i32_1 = arith.constant 0 : i32
    return %c0_i32, %c0_i32_0 : i32, i32
  }
  func.func @transform_10(%arg0: i32, %arg1: i32) -> (i32, i32) {
    %c0_i32 = arith.constant 0 : i32
    %c0_i32_0 = arith.constant 0 : i32
    %c0_i32_1 = arith.constant 0 : i32
    return %c0_i32, %c0_i32_0 : i32, i32
  }
  func.func @transform_11(%arg0: i32, %arg1: i32) -> (i32, i32) {
    %c0_i32 = arith.constant 0 : i32
    %c0_i32_0 = arith.constant 0 : i32
    %c0_i32_1 = arith.constant 0 : i32
    return %c0_i32, %c0_i32_0 : i32, i32
  }
  func.func @transform_12(%arg0: i32, %arg1: i32) -> (i32, i32, i32) {
    %c0_i32 = arith.constant 0 : i32
    %c0_i32_0 = arith.constant 0 : i32
    %c0_i32_1 = arith.constant 0 : i32
    return %arg0, %c0_i32, %c0_i32_0 : i32, i32, i32
  }
  func.func @transform_13(%arg0: i32, %arg1: i32) -> (i32, i32, i32) {
    %c0_i32 = arith.constant 0 : i32
    %c0_i32_0 = arith.constant 0 : i32
    %c0_i32_1 = arith.constant 0 : i32
    return %arg0, %c0_i32, %c0_i32_0 : i32, i32, i32
  }
}

module attributes {stable_mosaic.version = 11 : i64} {
  func.func @kernel(%arg0: i32, %arg1: memref<392x20xf32, #tpu.memory_space<vmem>>, %arg2: memref<3x20x32xf32, #tpu.memory_space<vmem>>, %arg3: memref<5x3x32x32xf32, #tpu.memory_space<vmem>>, %arg4: memref<6x1x32xf32, #tpu.memory_space<vmem>>, %arg5: memref<6x1x32xf32, #tpu.memory_space<vmem>>, %arg6: memref<6x1x32xf32, #tpu.memory_space<vmem>>, %arg7: memref<32x32xf32, #tpu.memory_space<vmem>>, %arg8: memref<25x32x32xf32, #tpu.memory_space<vmem>>, %arg9: memref<1x32xf32, #tpu.memory_space<vmem>>, %arg10: memref<1x32xf32, #tpu.memory_space<vmem>>, %arg11: memref<1x32xf32, #tpu.memory_space<vmem>>, %arg12: memref<32x96xf32, #tpu.memory_space<vmem>>, %arg13: memref<1x96xf32, #tpu.memory_space<vmem>>, %arg14: memref<1x5x96xf32, #tpu.memory_space<vmem>>, %arg15: memref<136x32xf32, #tpu.memory_space<vmem>>, %arg16: memref<136x32xf32, #tpu.memory_space<vmem>>, %arg17: memref<32x32xf32, #tpu.memory_space<vmem>>) attributes {dimension_semantics = [#tpu.dimension_semantics<parallel>], iteration_bounds = array<i64: 2>, scalar_prefetch = 0 : i64, scratch_operands = 3 : i64, tpu.core_type = #tpu.core_type<tc>, window_params = [{transform_indices = @transform_0, window_bounds = array<i64: 392, 20>}, {pipeline_mode = #tpu.pipeline_mode<synchronous>, transform_indices = @transform_1, window_bounds = array<i64: 3, 20, 32>}, {pipeline_mode = #tpu.pipeline_mode<synchronous>, transform_indices = @transform_2, window_bounds = array<i64: 5, 3, 32, 32>}, {pipeline_mode = #tpu.pipeline_mode<synchronous>, transform_indices = @transform_3, window_bounds = array<i64: 6, 1, 32>}, {pipeline_mode = #tpu.pipeline_mode<synchronous>, transform_indices = @transform_4, window_bounds = array<i64: 6, 1, 32>}, {pipeline_mode = #tpu.pipeline_mode<synchronous>, transform_indices = @transform_5, window_bounds = array<i64: 6, 1, 32>}, {pipeline_mode = #tpu.pipeline_mode<synchronous>, transform_indices = @transform_6, window_bounds = array<i64: 32, 32>}, {pipeline_mode = #tpu.pipeline_mode<synchronous>, transform_indices = @transform_7, window_bounds = array<i64: 25, 32, 32>}, {pipeline_mode = #tpu.pipeline_mode<synchronous>, transform_indices = @transform_8, window_bounds = array<i64: 1, 32>}, {pipeline_mode = #tpu.pipeline_mode<synchronous>, transform_indices = @transform_9, window_bounds = array<i64: 1, 32>}, {pipeline_mode = #tpu.pipeline_mode<synchronous>, transform_indices = @transform_10, window_bounds = array<i64: 1, 32>}, {pipeline_mode = #tpu.pipeline_mode<synchronous>, transform_indices = @transform_11, window_bounds = array<i64: 32, 96>}, {pipeline_mode = #tpu.pipeline_mode<synchronous>, transform_indices = @transform_12, window_bounds = array<i64: 1, 96>}, {transform_indices = @transform_13, window_bounds = array<i64: 1, 5, 96>}]} {
    %cst = arith.constant 0.000000e+00 : f32
    %0 = vector.broadcast %cst : f32 to vector<8x32xf32>
    %c0 = arith.constant 0 : index
    %c0_0 = arith.constant 0 : index
    %1 = vector.load %arg15[%c0, %c0_0] : memref<136x32xf32, #tpu.memory_space<vmem>>, vector<8x32xf32>
    tpu.vector_store %arg15[%c0, %c0_0], %0 {strides = array<i32>} : memref<136x32xf32, #tpu.memory_space<vmem>>, vector<8x32xf32>,
    %cst_1 = arith.constant 0.000000e+00 : f32
    %2 = vector.broadcast %cst_1 : f32 to vector<8x32xf32>
    %c0_2 = arith.constant 0 : index
    %c0_3 = arith.constant 0 : index
    %3 = vector.load %arg16[%c0_2, %c0_3] : memref<136x32xf32, #tpu.memory_space<vmem>>, vector<8x32xf32>
    tpu.vector_store %arg16[%c0_2, %c0_3], %2 {strides = array<i32>} : memref<136x32xf32, #tpu.memory_space<vmem>>, vector<8x32xf32>,
    %c0_4 = arith.constant 0 : index
    %c0_5 = arith.constant 0 : index
    %4 = vector.load %arg7[%c0_4, %c0_5] : memref<32x32xf32, #tpu.memory_space<vmem>>, vector<32x32xf32>
    %cst_6 = arith.constant 0.000000e+00 : f32
    %5 = vector.broadcast %cst_6 : f32 to vector<128x32xf32>
    %c0_7 = arith.constant 0 : index
    %c0_8 = arith.constant 0 : index
    %6 = tpu.strided_load %arg1[%c0_7, %c0_8] {strides = array<i32: 3, 1>} : memref<392x20xf32, #tpu.memory_space<vmem>>, vector<128x20xf32>
    %c0_9 = arith.constant 0 : index
    %c0_10 = arith.constant 0 : index
    %c0_11 = arith.constant 0 : index
    %7 = vector.load %arg2[%c0_9, %c0_10, %c0_11] : memref<3x20x32xf32, #tpu.memory_space<vmem>>, vector<1x20x32xf32>
    %8 = vector.shape_cast %7 : vector<1x20x32xf32> to vector<20x32xf32>
    %cst_12 = arith.constant dense<0.000000e+00> : vector<128x32xf32>
    %9 = tpu.matmul %6, %8, %cst_12 {dimension_numbers = #tpu.dot_dimension_numbers<[1], [0], [0], [1], [0, 0, 1, 1], [], []>} : vector<128x20xf32>, vector<20x32xf32>, vector<128x32xf32> -> vector<128x32xf32>
    %10 = arith.addf %5, %9 : vector<128x32xf32>
    %c1 = arith.constant 1 : index
    %c0_13 = arith.constant 0 : index
    %11 = tpu.strided_load %arg1[%c1, %c0_13] {strides = array<i32: 3, 1>} : memref<392x20xf32, #tpu.memory_space<vmem>>, vector<128x20xf32>
    %c1_14 = arith.constant 1 : index
    %c0_15 = arith.constant 0 : index
    %c0_16 = arith.constant 0 : index
    %12 = vector.load %arg2[%c1_14, %c0_15, %c0_16] : memref<3x20x32xf32, #tpu.memory_space<vmem>>, vector<1x20x32xf32>
    %13 = vector.shape_cast %12 : vector<1x20x32xf32> to vector<20x32xf32>
    %cst_17 = arith.constant dense<0.000000e+00> : vector<128x32xf32>
    %14 = tpu.matmul %11, %13, %cst_17 {dimension_numbers = #tpu.dot_dimension_numbers<[1], [0], [0], [1], [0, 0, 1, 1], [], []>} : vector<128x20xf32>, vector<20x32xf32>, vector<128x32xf32> -> vector<128x32xf32>
    %15 = arith.addf %10, %14 : vector<128x32xf32>
    %c2 = arith.constant 2 : index
    %c0_18 = arith.constant 0 : index
    %16 = tpu.strided_load %arg1[%c2, %c0_18] {strides = array<i32: 3, 1>} : memref<392x20xf32, #tpu.memory_space<vmem>>, vector<128x20xf32>
    %c2_19 = arith.constant 2 : index
    %c0_20 = arith.constant 0 : index
    %c0_21 = arith.constant 0 : index
    %17 = vector.load %arg2[%c2_19, %c0_20, %c0_21] : memref<3x20x32xf32, #tpu.memory_space<vmem>>, vector<1x20x32xf32>
    %18 = vector.shape_cast %17 : vector<1x20x32xf32> to vector<20x32xf32>
    %cst_22 = arith.constant dense<0.000000e+00> : vector<128x32xf32>
    %19 = tpu.matmul %16, %18, %cst_22 {dimension_numbers = #tpu.dot_dimension_numbers<[1], [0], [0], [1], [0, 0, 1, 1], [], []>} : vector<128x20xf32>, vector<20x32xf32>, vector<128x32xf32> -> vector<128x32xf32>
    %20 = arith.addf %15, %19 : vector<128x32xf32>
    %c0_23 = arith.constant 0 : index
    %c0_24 = arith.constant 0 : index
    %c0_25 = arith.constant 0 : index
    %21 = vector.load %arg4[%c0_23, %c0_24, %c0_25] : memref<6x1x32xf32, #tpu.memory_space<vmem>>, vector<1x1x32xf32>
    %22 = vector.shape_cast %21 : vector<1x1x32xf32> to vector<1x32xf32>
    %23 = vector.broadcast %22 : vector<1x32xf32> to vector<128x32xf32>
    %24 = arith.addf %20, %23 : vector<128x32xf32>
    %cst_26 = arith.constant dense<0.000000e+00> : vector<32xf32>
    %25 = vector.multi_reduction <add>, %24, %cst_26 [0] : vector<128x32xf32> to vector<32xf32>
    %26 = vector.shape_cast %25 : vector<32xf32> to vector<1x32xf32>
    %cst_27 = arith.constant dense<0.000000e+00> : vector<1x32xf32>
    %27 = tpu.matmul %26, %4, %cst_27 {dimension_numbers = #tpu.dot_dimension_numbers<[1], [0], [0], [1], [0, 0, 1, 1], [], []>} : vector<1x32xf32>, vector<32x32xf32>, vector<1x32xf32> -> vector<1x32xf32>
    %cst_28 = arith.constant 3.906250e-03 : f32
    %28 = vector.broadcast %cst_28 : f32 to vector<1x32xf32>
    %29 = arith.mulf %27, %28 : vector<1x32xf32>
    %30 = vector.broadcast %29 : vector<1x32xf32> to vector<128x32xf32>
    %31 = arith.subf %24, %30 : vector<128x32xf32>
    %32 = arith.mulf %31, %31 : vector<128x32xf32>
    %cst_29 = arith.constant dense<0.000000e+00> : vector<32xf32>
    %33 = vector.multi_reduction <add>, %32, %cst_29 [0] : vector<128x32xf32> to vector<32xf32>
    %34 = vector.shape_cast %33 : vector<32xf32> to vector<1x32xf32>
    %cst_30 = arith.constant dense<0.000000e+00> : vector<1x32xf32>
    %35 = tpu.matmul %34, %4, %cst_30 {dimension_numbers = #tpu.dot_dimension_numbers<[1], [0], [0], [1], [0, 0, 1, 1], [], []>} : vector<1x32xf32>, vector<32x32xf32>, vector<1x32xf32> -> vector<1x32xf32>
    %cst_31 = arith.constant 3.906250e-03 : f32
    %36 = vector.broadcast %cst_31 : f32 to vector<1x32xf32>
    %37 = arith.mulf %35, %36 : vector<1x32xf32>
    %cst_32 = arith.constant 9.99999974E-6 : f32
    %38 = vector.broadcast %cst_32 : f32 to vector<1x32xf32>
    %39 = arith.addf %37, %38 : vector<1x32xf32>
    %40 = math.rsqrt %39 : vector<1x32xf32>
    %41 = vector.broadcast %40 : vector<1x32xf32> to vector<128x32xf32>
    %42 = arith.mulf %31, %41 : vector<128x32xf32>
    %c0_33 = arith.constant 0 : index
    %c0_34 = arith.constant 0 : index
    %c0_35 = arith.constant 0 : index
    %43 = vector.load %arg5[%c0_33, %c0_34, %c0_35] : memref<6x1x32xf32, #tpu.memory_space<vmem>>, vector<1x1x32xf32>
    %44 = vector.shape_cast %43 : vector<1x1x32xf32> to vector<1x32xf32>
    %45 = vector.broadcast %44 : vector<1x32xf32> to vector<128x32xf32>
    %46 = arith.mulf %42, %45 : vector<128x32xf32>
    %c0_36 = arith.constant 0 : index
    %c0_37 = arith.constant 0 : index
    %c0_38 = arith.constant 0 : index
    %47 = vector.load %arg6[%c0_36, %c0_37, %c0_38] : memref<6x1x32xf32, #tpu.memory_space<vmem>>, vector<1x1x32xf32>
    %48 = vector.shape_cast %47 : vector<1x1x32xf32> to vector<1x32xf32>
    %49 = vector.broadcast %48 : vector<1x32xf32> to vector<128x32xf32>
    %50 = arith.addf %46, %49 : vector<128x32xf32>
    %cst_39 = arith.constant 5.000000e-01 : f32
    %51 = vector.broadcast %cst_39 : f32 to vector<128x32xf32>
    %52 = arith.mulf %51, %50 : vector<128x32xf32>
    %cst_40 = arith.constant 4.471500e-02 : f32
    %53 = vector.broadcast %cst_40 : f32 to vector<128x32xf32>
    %54 = arith.mulf %53, %50 : vector<128x32xf32>
    %55 = arith.mulf %54, %50 : vector<128x32xf32>
    %56 = arith.mulf %55, %50 : vector<128x32xf32>
    %57 = arith.addf %50, %56 : vector<128x32xf32>
    %cst_41 = arith.constant 0.797884583 : f32
    %58 = vector.broadcast %cst_41 : f32 to vector<128x32xf32>
    %59 = arith.mulf %58, %57 : vector<128x32xf32>
    %60 = math.tanh %59 : vector<128x32xf32>
    %cst_42 = arith.constant 1.000000e+00 : f32
    %61 = vector.broadcast %cst_42 : f32 to vector<128x32xf32>
    %62 = arith.addf %61, %60 : vector<128x32xf32>
    %63 = arith.mulf %52, %62 : vector<128x32xf32>
    %c1_43 = arith.constant 1 : index
    %c0_44 = arith.constant 0 : index
    %64 = vector.load %arg15[%c1_43, %c0_44] : memref<136x32xf32, #tpu.memory_space<vmem>>, vector<128x32xf32>
    tpu.vector_store %arg15[%c1_43, %c0_44], %63 {strides = array<i32>} : memref<136x32xf32, #tpu.memory_space<vmem>>, vector<128x32xf32>,
    %cst_45 = arith.constant 0.000000e+00 : f32
    %65 = vector.broadcast %cst_45 : f32 to vector<4x32xf32>
    %c129 = arith.constant 129 : index
    %c0_46 = arith.constant 0 : index
    %66 = vector.load %arg15[%c129, %c0_46] : memref<136x32xf32, #tpu.memory_space<vmem>>, vector<4x32xf32>
    tpu.vector_store %arg15[%c129, %c0_46], %65 {strides = array<i32>} : memref<136x32xf32, #tpu.memory_space<vmem>>, vector<4x32xf32>,
    %cst_47 = arith.constant 0.000000e+00 : f32
    %67 = vector.broadcast %cst_47 : f32 to vector<64x32xf32>
    %c0_48 = arith.constant 0 : index
    %c0_49 = arith.constant 0 : index
    %68 = tpu.strided_load %arg15[%c0_48, %c0_49] {strides = array<i32: 2, 1>} : memref<136x32xf32, #tpu.memory_space<vmem>>, vector<64x32xf32>
    %c0_50 = arith.constant 0 : index
    %c0_51 = arith.constant 0 : index
    %c0_52 = arith.constant 0 : index
    %c0_53 = arith.constant 0 : index
    %69 = vector.load %arg3[%c0_50, %c0_51, %c0_52, %c0_53] : memref<5x3x32x32xf32, #tpu.memory_space<vmem>>, vector<1x1x32x32xf32>
    %70 = vector.shape_cast %69 : vector<1x1x32x32xf32> to vector<32x32xf32>
    %cst_54 = arith.constant dense<0.000000e+00> : vector<64x32xf32>
    %71 = tpu.matmul %68, %70, %cst_54 {dimension_numbers = #tpu.dot_dimension_numbers<[1], [0], [0], [1], [0, 0, 1, 1], [], []>} : vector<64x32xf32>, vector<32x32xf32>, vector<64x32xf32> -> vector<64x32xf32>
    %72 = arith.addf %67, %71 : vector<64x32xf32>
    %c1_55 = arith.constant 1 : index
    %c0_56 = arith.constant 0 : index
    %73 = tpu.strided_load %arg15[%c1_55, %c0_56] {strides = array<i32: 2, 1>} : memref<136x32xf32, #tpu.memory_space<vmem>>, vector<64x32xf32>
    %c0_57 = arith.constant 0 : index
    %c1_58 = arith.constant 1 : index
    %c0_59 = arith.constant 0 : index
    %c0_60 = arith.constant 0 : index
    %74 = vector.load %arg3[%c0_57, %c1_58, %c0_59, %c0_60] : memref<5x3x32x32xf32, #tpu.memory_space<vmem>>, vector<1x1x32x32xf32>
    %75 = vector.shape_cast %74 : vector<1x1x32x32xf32> to vector<32x32xf32>
    %cst_61 = arith.constant dense<0.000000e+00> : vector<64x32xf32>
    %76 = tpu.matmul %73, %75, %cst_61 {dimension_numbers = #tpu.dot_dimension_numbers<[1], [0], [0], [1], [0, 0, 1, 1], [], []>} : vector<64x32xf32>, vector<32x32xf32>, vector<64x32xf32> -> vector<64x32xf32>
    %77 = arith.addf %72, %76 : vector<64x32xf32>
    %c2_62 = arith.constant 2 : index
    %c0_63 = arith.constant 0 : index
    %78 = tpu.strided_load %arg15[%c2_62, %c0_63] {strides = array<i32: 2, 1>} : memref<136x32xf32, #tpu.memory_space<vmem>>, vector<64x32xf32>
    %c0_64 = arith.constant 0 : index
    %c2_65 = arith.constant 2 : index
    %c0_66 = arith.constant 0 : index
    %c0_67 = arith.constant 0 : index
    %79 = vector.load %arg3[%c0_64, %c2_65, %c0_66, %c0_67] : memref<5x3x32x32xf32, #tpu.memory_space<vmem>>, vector<1x1x32x32xf32>
    %80 = vector.shape_cast %79 : vector<1x1x32x32xf32> to vector<32x32xf32>
    %cst_68 = arith.constant dense<0.000000e+00> : vector<64x32xf32>
    %81 = tpu.matmul %78, %80, %cst_68 {dimension_numbers = #tpu.dot_dimension_numbers<[1], [0], [0], [1], [0, 0, 1, 1], [], []>} : vector<64x32xf32>, vector<32x32xf32>, vector<64x32xf32> -> vector<64x32xf32>
    %82 = arith.addf %77, %81 : vector<64x32xf32>
    %c1_69 = arith.constant 1 : index
    %c0_70 = arith.constant 0 : index
    %c0_71 = arith.constant 0 : index
    %83 = vector.load %arg4[%c1_69, %c0_70, %c0_71] : memref<6x1x32xf32, #tpu.memory_space<vmem>>, vector<1x1x32xf32>
    %84 = vector.shape_cast %83 : vector<1x1x32xf32> to vector<1x32xf32>
    %85 = vector.broadcast %84 : vector<1x32xf32> to vector<64x32xf32>
    %86 = arith.addf %82, %85 : vector<64x32xf32>
    %cst_72 = arith.constant dense<0.000000e+00> : vector<32xf32>
    %87 = vector.multi_reduction <add>, %86, %cst_72 [0] : vector<64x32xf32> to vector<32xf32>
    %88 = vector.shape_cast %87 : vector<32xf32> to vector<1x32xf32>
    %cst_73 = arith.constant dense<0.000000e+00> : vector<1x32xf32>
    %89 = tpu.matmul %88, %4, %cst_73 {dimension_numbers = #tpu.dot_dimension_numbers<[1], [0], [0], [1], [0, 0, 1, 1], [], []>} : vector<1x32xf32>, vector<32x32xf32>, vector<1x32xf32> -> vector<1x32xf32>
    %cst_74 = arith.constant 7.812500e-03 : f32
    %90 = vector.broadcast %cst_74 : f32 to vector<1x32xf32>
    %91 = arith.mulf %89, %90 : vector<1x32xf32>
    %92 = vector.broadcast %91 : vector<1x32xf32> to vector<64x32xf32>
    %93 = arith.subf %86, %92 : vector<64x32xf32>
    %94 = arith.mulf %93, %93 : vector<64x32xf32>
    %cst_75 = arith.constant dense<0.000000e+00> : vector<32xf32>
    %95 = vector.multi_reduction <add>, %94, %cst_75 [0] : vector<64x32xf32> to vector<32xf32>
    %96 = vector.shape_cast %95 : vector<32xf32> to vector<1x32xf32>
    %cst_76 = arith.constant dense<0.000000e+00> : vector<1x32xf32>
    %97 = tpu.matmul %96, %4, %cst_76 {dimension_numbers = #tpu.dot_dimension_numbers<[1], [0], [0], [1], [0, 0, 1, 1], [], []>} : vector<1x32xf32>, vector<32x32xf32>, vector<1x32xf32> -> vector<1x32xf32>
    %cst_77 = arith.constant 7.812500e-03 : f32
    %98 = vector.broadcast %cst_77 : f32 to vector<1x32xf32>
    %99 = arith.mulf %97, %98 : vector<1x32xf32>
    %cst_78 = arith.constant 9.99999974E-6 : f32
    %100 = vector.broadcast %cst_78 : f32 to vector<1x32xf32>
    %101 = arith.addf %99, %100 : vector<1x32xf32>
    %102 = math.rsqrt %101 : vector<1x32xf32>
    %103 = vector.broadcast %102 : vector<1x32xf32> to vector<64x32xf32>
    %104 = arith.mulf %93, %103 : vector<64x32xf32>
    %c1_79 = arith.constant 1 : index
    %c0_80 = arith.constant 0 : index
    %c0_81 = arith.constant 0 : index
    %105 = vector.load %arg5[%c1_79, %c0_80, %c0_81] : memref<6x1x32xf32, #tpu.memory_space<vmem>>, vector<1x1x32xf32>
    %106 = vector.shape_cast %105 : vector<1x1x32xf32> to vector<1x32xf32>
    %107 = vector.broadcast %106 : vector<1x32xf32> to vector<64x32xf32>
    %108 = arith.mulf %104, %107 : vector<64x32xf32>
    %c1_82 = arith.constant 1 : index
    %c0_83 = arith.constant 0 : index
    %c0_84 = arith.constant 0 : index
    %109 = vector.load %arg6[%c1_82, %c0_83, %c0_84] : memref<6x1x32xf32, #tpu.memory_space<vmem>>, vector<1x1x32xf32>
    %110 = vector.shape_cast %109 : vector<1x1x32xf32> to vector<1x32xf32>
    %111 = vector.broadcast %110 : vector<1x32xf32> to vector<64x32xf32>
    %112 = arith.addf %108, %111 : vector<64x32xf32>
    %cst_85 = arith.constant 5.000000e-01 : f32
    %113 = vector.broadcast %cst_85 : f32 to vector<64x32xf32>
    %114 = arith.mulf %113, %112 : vector<64x32xf32>
    %cst_86 = arith.constant 4.471500e-02 : f32
    %115 = vector.broadcast %cst_86 : f32 to vector<64x32xf32>
    %116 = arith.mulf %115, %112 : vector<64x32xf32>
    %117 = arith.mulf %116, %112 : vector<64x32xf32>
    %118 = arith.mulf %117, %112 : vector<64x32xf32>
    %119 = arith.addf %112, %118 : vector<64x32xf32>
    %cst_87 = arith.constant 0.797884583 : f32
    %120 = vector.broadcast %cst_87 : f32 to vector<64x32xf32>
    %121 = arith.mulf %120, %119 : vector<64x32xf32>
    %122 = math.tanh %121 : vector<64x32xf32>
    %cst_88 = arith.constant 1.000000e+00 : f32
    %123 = vector.broadcast %cst_88 : f32 to vector<64x32xf32>
    %124 = arith.addf %123, %122 : vector<64x32xf32>
    %125 = arith.mulf %114, %124 : vector<64x32xf32>
    %c1_89 = arith.constant 1 : index
    %c0_90 = arith.constant 0 : index
    %126 = vector.load %arg16[%c1_89, %c0_90] : memref<136x32xf32, #tpu.memory_space<vmem>>, vector<64x32xf32>
    tpu.vector_store %arg16[%c1_89, %c0_90], %125 {strides = array<i32>} : memref<136x32xf32, #tpu.memory_space<vmem>>, vector<64x32xf32>,
    %cst_91 = arith.constant 0.000000e+00 : f32
    %127 = vector.broadcast %cst_91 : f32 to vector<4x32xf32>
    %c65 = arith.constant 65 : index
    %c0_92 = arith.constant 0 : index
    %128 = vector.load %arg16[%c65, %c0_92] : memref<136x32xf32, #tpu.memory_space<vmem>>, vector<4x32xf32>
    tpu.vector_store %arg16[%c65, %c0_92], %127 {strides = array<i32>} : memref<136x32xf32, #tpu.memory_space<vmem>>, vector<4x32xf32>,
    %cst_93 = arith.constant 0.000000e+00 : f32
    %129 = vector.broadcast %cst_93 : f32 to vector<32x32xf32>
    %c0_94 = arith.constant 0 : index
    %c0_95 = arith.constant 0 : index
    %130 = tpu.strided_load %arg16[%c0_94, %c0_95] {strides = array<i32: 2, 1>} : memref<136x32xf32, #tpu.memory_space<vmem>>, vector<32x32xf32>
    %c1_96 = arith.constant 1 : index
    %c0_97 = arith.constant 0 : index
    %c0_98 = arith.constant 0 : index
    %c0_99 = arith.constant 0 : index
    %131 = vector.load %arg3[%c1_96, %c0_97, %c0_98, %c0_99] : memref<5x3x32x32xf32, #tpu.memory_space<vmem>>, vector<1x1x32x32xf32>
    %132 = vector.shape_cast %131 : vector<1x1x32x32xf32> to vector<32x32xf32>
    %cst_100 = arith.constant dense<0.000000e+00> : vector<32x32xf32>
    %133 = tpu.matmul %130, %132, %cst_100 {dimension_numbers = #tpu.dot_dimension_numbers<[1], [0], [0], [1], [0, 0, 1, 1], [], []>} : vector<32x32xf32>, vector<32x32xf32>, vector<32x32xf32> -> vector<32x32xf32>
    %134 = arith.addf %129, %133 : vector<32x32xf32>
    %c1_101 = arith.constant 1 : index
    %c0_102 = arith.constant 0 : index
    %135 = tpu.strided_load %arg16[%c1_101, %c0_102] {strides = array<i32: 2, 1>} : memref<136x32xf32, #tpu.memory_space<vmem>>, vector<32x32xf32>
    %c1_103 = arith.constant 1 : index
    %c1_104 = arith.constant 1 : index
    %c0_105 = arith.constant 0 : index
    %c0_106 = arith.constant 0 : index
    %136 = vector.load %arg3[%c1_103, %c1_104, %c0_105, %c0_106] : memref<5x3x32x32xf32, #tpu.memory_space<vmem>>, vector<1x1x32x32xf32>
    %137 = vector.shape_cast %136 : vector<1x1x32x32xf32> to vector<32x32xf32>
    %cst_107 = arith.constant dense<0.000000e+00> : vector<32x32xf32>
    %138 = tpu.matmul %135, %137, %cst_107 {dimension_numbers = #tpu.dot_dimension_numbers<[1], [0], [0], [1], [0, 0, 1, 1], [], []>} : vector<32x32xf32>, vector<32x32xf32>, vector<32x32xf32> -> vector<32x32xf32>
    %139 = arith.addf %134, %138 : vector<32x32xf32>
    %c2_108 = arith.constant 2 : index
    %c0_109 = arith.constant 0 : index
    %140 = tpu.strided_load %arg16[%c2_108, %c0_109] {strides = array<i32: 2, 1>} : memref<136x32xf32, #tpu.memory_space<vmem>>, vector<32x32xf32>
    %c1_110 = arith.constant 1 : index
    %c2_111 = arith.constant 2 : index
    %c0_112 = arith.constant 0 : index
    %c0_113 = arith.constant 0 : index
    %141 = vector.load %arg3[%c1_110, %c2_111, %c0_112, %c0_113] : memref<5x3x32x32xf32, #tpu.memory_space<vmem>>, vector<1x1x32x32xf32>
    %142 = vector.shape_cast %141 : vector<1x1x32x32xf32> to vector<32x32xf32>
    %cst_114 = arith.constant dense<0.000000e+00> : vector<32x32xf32>
    %143 = tpu.matmul %140, %142, %cst_114 {dimension_numbers = #tpu.dot_dimension_numbers<[1], [0], [0], [1], [0, 0, 1, 1], [], []>} : vector<32x32xf32>, vector<32x32xf32>, vector<32x32xf32> -> vector<32x32xf32>
    %144 = arith.addf %139, %143 : vector<32x32xf32>
    %c2_115 = arith.constant 2 : index
    %c0_116 = arith.constant 0 : index
    %c0_117 = arith.constant 0 : index
    %145 = vector.load %arg4[%c2_115, %c0_116, %c0_117] : memref<6x1x32xf32, #tpu.memory_space<vmem>>, vector<1x1x32xf32>
    %146 = vector.shape_cast %145 : vector<1x1x32xf32> to vector<1x32xf32>
    %147 = vector.broadcast %146 : vector<1x32xf32> to vector<32x32xf32>
    %148 = arith.addf %144, %147 : vector<32x32xf32>
    %cst_118 = arith.constant dense<0.000000e+00> : vector<32xf32>
    %149 = vector.multi_reduction <add>, %148, %cst_118 [0] : vector<32x32xf32> to vector<32xf32>
    %150 = vector.shape_cast %149 : vector<32xf32> to vector<1x32xf32>
    %cst_119 = arith.constant dense<0.000000e+00> : vector<1x32xf32>
    %151 = tpu.matmul %150, %4, %cst_119 {dimension_numbers = #tpu.dot_dimension_numbers<[1], [0], [0], [1], [0, 0, 1, 1], [], []>} : vector<1x32xf32>, vector<32x32xf32>, vector<1x32xf32> -> vector<1x32xf32>
    %cst_120 = arith.constant 1.562500e-02 : f32
    %152 = vector.broadcast %cst_120 : f32 to vector<1x32xf32>
    %153 = arith.mulf %151, %152 : vector<1x32xf32>
    %154 = vector.broadcast %153 : vector<1x32xf32> to vector<32x32xf32>
    %155 = arith.subf %148, %154 : vector<32x32xf32>
    %156 = arith.mulf %155, %155 : vector<32x32xf32>
    %cst_121 = arith.constant dense<0.000000e+00> : vector<32xf32>
    %157 = vector.multi_reduction <add>, %156, %cst_121 [0] : vector<32x32xf32> to vector<32xf32>
    %158 = vector.shape_cast %157 : vector<32xf32> to vector<1x32xf32>
    %cst_122 = arith.constant dense<0.000000e+00> : vector<1x32xf32>
    %159 = tpu.matmul %158, %4, %cst_122 {dimension_numbers = #tpu.dot_dimension_numbers<[1], [0], [0], [1], [0, 0, 1, 1], [], []>} : vector<1x32xf32>, vector<32x32xf32>, vector<1x32xf32> -> vector<1x32xf32>
    %cst_123 = arith.constant 1.562500e-02 : f32
    %160 = vector.broadcast %cst_123 : f32 to vector<1x32xf32>
    %161 = arith.mulf %159, %160 : vector<1x32xf32>
    %cst_124 = arith.constant 9.99999974E-6 : f32
    %162 = vector.broadcast %cst_124 : f32 to vector<1x32xf32>
    %163 = arith.addf %161, %162 : vector<1x32xf32>
    %164 = math.rsqrt %163 : vector<1x32xf32>
    %165 = vector.broadcast %164 : vector<1x32xf32> to vector<32x32xf32>
    %166 = arith.mulf %155, %165 : vector<32x32xf32>
    %c2_125 = arith.constant 2 : index
    %c0_126 = arith.constant 0 : index
    %c0_127 = arith.constant 0 : index
    %167 = vector.load %arg5[%c2_125, %c0_126, %c0_127] : memref<6x1x32xf32, #tpu.memory_space<vmem>>, vector<1x1x32xf32>
    %168 = vector.shape_cast %167 : vector<1x1x32xf32> to vector<1x32xf32>
    %169 = vector.broadcast %168 : vector<1x32xf32> to vector<32x32xf32>
    %170 = arith.mulf %166, %169 : vector<32x32xf32>
    %c2_128 = arith.constant 2 : index
    %c0_129 = arith.constant 0 : index
    %c0_130 = arith.constant 0 : index
    %171 = vector.load %arg6[%c2_128, %c0_129, %c0_130] : memref<6x1x32xf32, #tpu.memory_space<vmem>>, vector<1x1x32xf32>
    %172 = vector.shape_cast %171 : vector<1x1x32xf32> to vector<1x32xf32>
    %173 = vector.broadcast %172 : vector<1x32xf32> to vector<32x32xf32>
    %174 = arith.addf %170, %173 : vector<32x32xf32>
    %cst_131 = arith.constant 5.000000e-01 : f32
    %175 = vector.broadcast %cst_131 : f32 to vector<32x32xf32>
    %176 = arith.mulf %175, %174 : vector<32x32xf32>
    %cst_132 = arith.constant 4.471500e-02 : f32
    %177 = vector.broadcast %cst_132 : f32 to vector<32x32xf32>
    %178 = arith.mulf %177, %174 : vector<32x32xf32>
    %179 = arith.mulf %178, %174 : vector<32x32xf32>
    %180 = arith.mulf %179, %174 : vector<32x32xf32>
    %181 = arith.addf %174, %180 : vector<32x32xf32>
    %cst_133 = arith.constant 0.797884583 : f32
    %182 = vector.broadcast %cst_133 : f32 to vector<32x32xf32>
    %183 = arith.mulf %182, %181 : vector<32x32xf32>
    %184 = math.tanh %183 : vector<32x32xf32>
    %cst_134 = arith.constant 1.000000e+00 : f32
    %185 = vector.broadcast %cst_134 : f32 to vector<32x32xf32>
    %186 = arith.addf %185, %184 : vector<32x32xf32>
    %187 = arith.mulf %176, %186 : vector<32x32xf32>
    %c1_135 = arith.constant 1 : index
    %c0_136 = arith.constant 0 : index
    %188 = vector.load %arg15[%c1_135, %c0_136] : memref<136x32xf32, #tpu.memory_space<vmem>>, vector<32x32xf32>
    tpu.vector_store %arg15[%c1_135, %c0_136], %187 {strides = array<i32>} : memref<136x32xf32, #tpu.memory_space<vmem>>, vector<32x32xf32>,
    %cst_137 = arith.constant 0.000000e+00 : f32
    %189 = vector.broadcast %cst_137 : f32 to vector<4x32xf32>
    %c33 = arith.constant 33 : index
    %c0_138 = arith.constant 0 : index
    %190 = vector.load %arg15[%c33, %c0_138] : memref<136x32xf32, #tpu.memory_space<vmem>>, vector<4x32xf32>
    tpu.vector_store %arg15[%c33, %c0_138], %189 {strides = array<i32>} : memref<136x32xf32, #tpu.memory_space<vmem>>, vector<4x32xf32>,
    %cst_139 = arith.constant 0.000000e+00 : f32
    %191 = vector.broadcast %cst_139 : f32 to vector<16x32xf32>
    %c0_140 = arith.constant 0 : index
    %c0_141 = arith.constant 0 : index
    %192 = tpu.strided_load %arg15[%c0_140, %c0_141] {strides = array<i32: 2, 1>} : memref<136x32xf32, #tpu.memory_space<vmem>>, vector<16x32xf32>
    %c2_142 = arith.constant 2 : index
    %c0_143 = arith.constant 0 : index
    %c0_144 = arith.constant 0 : index
    %c0_145 = arith.constant 0 : index
    %193 = vector.load %arg3[%c2_142, %c0_143, %c0_144, %c0_145] : memref<5x3x32x32xf32, #tpu.memory_space<vmem>>, vector<1x1x32x32xf32>
    %194 = vector.shape_cast %193 : vector<1x1x32x32xf32> to vector<32x32xf32>
    %cst_146 = arith.constant dense<0.000000e+00> : vector<16x32xf32>
    %195 = tpu.matmul %192, %194, %cst_146 {dimension_numbers = #tpu.dot_dimension_numbers<[1], [0], [0], [1], [0, 0, 1, 1], [], []>} : vector<16x32xf32>, vector<32x32xf32>, vector<16x32xf32> -> vector<16x32xf32>
    %196 = arith.addf %191, %195 : vector<16x32xf32>
    %c1_147 = arith.constant 1 : index
    %c0_148 = arith.constant 0 : index
    %197 = tpu.strided_load %arg15[%c1_147, %c0_148] {strides = array<i32: 2, 1>} : memref<136x32xf32, #tpu.memory_space<vmem>>, vector<16x32xf32>
    %c2_149 = arith.constant 2 : index
    %c1_150 = arith.constant 1 : index
    %c0_151 = arith.constant 0 : index
    %c0_152 = arith.constant 0 : index
    %198 = vector.load %arg3[%c2_149, %c1_150, %c0_151, %c0_152] : memref<5x3x32x32xf32, #tpu.memory_space<vmem>>, vector<1x1x32x32xf32>
    %199 = vector.shape_cast %198 : vector<1x1x32x32xf32> to vector<32x32xf32>
    %cst_153 = arith.constant dense<0.000000e+00> : vector<16x32xf32>
    %200 = tpu.matmul %197, %199, %cst_153 {dimension_numbers = #tpu.dot_dimension_numbers<[1], [0], [0], [1], [0, 0, 1, 1], [], []>} : vector<16x32xf32>, vector<32x32xf32>, vector<16x32xf32> -> vector<16x32xf32>
    %201 = arith.addf %196, %200 : vector<16x32xf32>
    %c2_154 = arith.constant 2 : index
    %c0_155 = arith.constant 0 : index
    %202 = tpu.strided_load %arg15[%c2_154, %c0_155] {strides = array<i32: 2, 1>} : memref<136x32xf32, #tpu.memory_space<vmem>>, vector<16x32xf32>
    %c2_156 = arith.constant 2 : index
    %c2_157 = arith.constant 2 : index
    %c0_158 = arith.constant 0 : index
    %c0_159 = arith.constant 0 : index
    %203 = vector.load %arg3[%c2_156, %c2_157, %c0_158, %c0_159] : memref<5x3x32x32xf32, #tpu.memory_space<vmem>>, vector<1x1x32x32xf32>
    %204 = vector.shape_cast %203 : vector<1x1x32x32xf32> to vector<32x32xf32>
    %cst_160 = arith.constant dense<0.000000e+00> : vector<16x32xf32>
    %205 = tpu.matmul %202, %204, %cst_160 {dimension_numbers = #tpu.dot_dimension_numbers<[1], [0], [0], [1], [0, 0, 1, 1], [], []>} : vector<16x32xf32>, vector<32x32xf32>, vector<16x32xf32> -> vector<16x32xf32>
    %206 = arith.addf %201, %205 : vector<16x32xf32>
    %c3 = arith.constant 3 : index
    %c0_161 = arith.constant 0 : index
    %c0_162 = arith.constant 0 : index
    %207 = vector.load %arg4[%c3, %c0_161, %c0_162] : memref<6x1x32xf32, #tpu.memory_space<vmem>>, vector<1x1x32xf32>
    %208 = vector.shape_cast %207 : vector<1x1x32xf32> to vector<1x32xf32>
    %209 = vector.broadcast %208 : vector<1x32xf32> to vector<16x32xf32>
    %210 = arith.addf %206, %209 : vector<16x32xf32>
    %cst_163 = arith.constant dense<0.000000e+00> : vector<32xf32>
    %211 = vector.multi_reduction <add>, %210, %cst_163 [0] : vector<16x32xf32> to vector<32xf32>
    %212 = vector.shape_cast %211 : vector<32xf32> to vector<1x32xf32>
    %cst_164 = arith.constant dense<0.000000e+00> : vector<1x32xf32>
    %213 = tpu.matmul %212, %4, %cst_164 {dimension_numbers = #tpu.dot_dimension_numbers<[1], [0], [0], [1], [0, 0, 1, 1], [], []>} : vector<1x32xf32>, vector<32x32xf32>, vector<1x32xf32> -> vector<1x32xf32>
    %cst_165 = arith.constant 3.125000e-02 : f32
    %214 = vector.broadcast %cst_165 : f32 to vector<1x32xf32>
    %215 = arith.mulf %213, %214 : vector<1x32xf32>
    %216 = vector.broadcast %215 : vector<1x32xf32> to vector<16x32xf32>
    %217 = arith.subf %210, %216 : vector<16x32xf32>
    %218 = arith.mulf %217, %217 : vector<16x32xf32>
    %cst_166 = arith.constant dense<0.000000e+00> : vector<32xf32>
    %219 = vector.multi_reduction <add>, %218, %cst_166 [0] : vector<16x32xf32> to vector<32xf32>
    %220 = vector.shape_cast %219 : vector<32xf32> to vector<1x32xf32>
    %cst_167 = arith.constant dense<0.000000e+00> : vector<1x32xf32>
    %221 = tpu.matmul %220, %4, %cst_167 {dimension_numbers = #tpu.dot_dimension_numbers<[1], [0], [0], [1], [0, 0, 1, 1], [], []>} : vector<1x32xf32>, vector<32x32xf32>, vector<1x32xf32> -> vector<1x32xf32>
    %cst_168 = arith.constant 3.125000e-02 : f32
    %222 = vector.broadcast %cst_168 : f32 to vector<1x32xf32>
    %223 = arith.mulf %221, %222 : vector<1x32xf32>
    %cst_169 = arith.constant 9.99999974E-6 : f32
    %224 = vector.broadcast %cst_169 : f32 to vector<1x32xf32>
    %225 = arith.addf %223, %224 : vector<1x32xf32>
    %226 = math.rsqrt %225 : vector<1x32xf32>
    %227 = vector.broadcast %226 : vector<1x32xf32> to vector<16x32xf32>
    %228 = arith.mulf %217, %227 : vector<16x32xf32>
    %c3_170 = arith.constant 3 : index
    %c0_171 = arith.constant 0 : index
    %c0_172 = arith.constant 0 : index
    %229 = vector.load %arg5[%c3_170, %c0_171, %c0_172] : memref<6x1x32xf32, #tpu.memory_space<vmem>>, vector<1x1x32xf32>
    %230 = vector.shape_cast %229 : vector<1x1x32xf32> to vector<1x32xf32>
    %231 = vector.broadcast %230 : vector<1x32xf32> to vector<16x32xf32>
    %232 = arith.mulf %228, %231 : vector<16x32xf32>
    %c3_173 = arith.constant 3 : index
    %c0_174 = arith.constant 0 : index
    %c0_175 = arith.constant 0 : index
    %233 = vector.load %arg6[%c3_173, %c0_174, %c0_175] : memref<6x1x32xf32, #tpu.memory_space<vmem>>, vector<1x1x32xf32>
    %234 = vector.shape_cast %233 : vector<1x1x32xf32> to vector<1x32xf32>
    %235 = vector.broadcast %234 : vector<1x32xf32> to vector<16x32xf32>
    %236 = arith.addf %232, %235 : vector<16x32xf32>
    %cst_176 = arith.constant 5.000000e-01 : f32
    %237 = vector.broadcast %cst_176 : f32 to vector<16x32xf32>
    %238 = arith.mulf %237, %236 : vector<16x32xf32>
    %cst_177 = arith.constant 4.471500e-02 : f32
    %239 = vector.broadcast %cst_177 : f32 to vector<16x32xf32>
    %240 = arith.mulf %239, %236 : vector<16x32xf32>
    %241 = arith.mulf %240, %236 : vector<16x32xf32>
    %242 = arith.mulf %241, %236 : vector<16x32xf32>
    %243 = arith.addf %236, %242 : vector<16x32xf32>
    %cst_178 = arith.constant 0.797884583 : f32
    %244 = vector.broadcast %cst_178 : f32 to vector<16x32xf32>
    %245 = arith.mulf %244, %243 : vector<16x32xf32>
    %246 = math.tanh %245 : vector<16x32xf32>
    %cst_179 = arith.constant 1.000000e+00 : f32
    %247 = vector.broadcast %cst_179 : f32 to vector<16x32xf32>
    %248 = arith.addf %247, %246 : vector<16x32xf32>
    %249 = arith.mulf %238, %248 : vector<16x32xf32>
    %c1_180 = arith.constant 1 : index
    %c0_181 = arith.constant 0 : index
    %250 = vector.load %arg16[%c1_180, %c0_181] : memref<136x32xf32, #tpu.memory_space<vmem>>, vector<16x32xf32>
    tpu.vector_store %arg16[%c1_180, %c0_181], %249 {strides = array<i32>} : memref<136x32xf32, #tpu.memory_space<vmem>>, vector<16x32xf32>,
    %cst_182 = arith.constant 0.000000e+00 : f32
    %251 = vector.broadcast %cst_182 : f32 to vector<4x32xf32>
    %c17 = arith.constant 17 : index
    %c0_183 = arith.constant 0 : index
    %252 = vector.load %arg16[%c17, %c0_183] : memref<136x32xf32, #tpu.memory_space<vmem>>, vector<4x32xf32>
    tpu.vector_store %arg16[%c17, %c0_183], %251 {strides = array<i32>} : memref<136x32xf32, #tpu.memory_space<vmem>>, vector<4x32xf32>,
    %cst_184 = arith.constant 0.000000e+00 : f32
    %253 = vector.broadcast %cst_184 : f32 to vector<8x32xf32>
    %c0_185 = arith.constant 0 : index
    %c0_186 = arith.constant 0 : index
    %254 = tpu.strided_load %arg16[%c0_185, %c0_186] {strides = array<i32: 2, 1>} : memref<136x32xf32, #tpu.memory_space<vmem>>, vector<8x32xf32>
    %c3_187 = arith.constant 3 : index
    %c0_188 = arith.constant 0 : index
    %c0_189 = arith.constant 0 : index
    %c0_190 = arith.constant 0 : index
    %255 = vector.load %arg3[%c3_187, %c0_188, %c0_189, %c0_190] : memref<5x3x32x32xf32, #tpu.memory_space<vmem>>, vector<1x1x32x32xf32>
    %256 = vector.shape_cast %255 : vector<1x1x32x32xf32> to vector<32x32xf32>
    %cst_191 = arith.constant dense<0.000000e+00> : vector<8x32xf32>
    %257 = tpu.matmul %254, %256, %cst_191 {dimension_numbers = #tpu.dot_dimension_numbers<[1], [0], [0], [1], [0, 0, 1, 1], [], []>} : vector<8x32xf32>, vector<32x32xf32>, vector<8x32xf32> -> vector<8x32xf32>
    %258 = arith.addf %253, %257 : vector<8x32xf32>
    %c1_192 = arith.constant 1 : index
    %c0_193 = arith.constant 0 : index
    %259 = tpu.strided_load %arg16[%c1_192, %c0_193] {strides = array<i32: 2, 1>} : memref<136x32xf32, #tpu.memory_space<vmem>>, vector<8x32xf32>
    %c3_194 = arith.constant 3 : index
    %c1_195 = arith.constant 1 : index
    %c0_196 = arith.constant 0 : index
    %c0_197 = arith.constant 0 : index
    %260 = vector.load %arg3[%c3_194, %c1_195, %c0_196, %c0_197] : memref<5x3x32x32xf32, #tpu.memory_space<vmem>>, vector<1x1x32x32xf32>
    %261 = vector.shape_cast %260 : vector<1x1x32x32xf32> to vector<32x32xf32>
    %cst_198 = arith.constant dense<0.000000e+00> : vector<8x32xf32>
    %262 = tpu.matmul %259, %261, %cst_198 {dimension_numbers = #tpu.dot_dimension_numbers<[1], [0], [0], [1], [0, 0, 1, 1], [], []>} : vector<8x32xf32>, vector<32x32xf32>, vector<8x32xf32> -> vector<8x32xf32>
    %263 = arith.addf %258, %262 : vector<8x32xf32>
    %c2_199 = arith.constant 2 : index
    %c0_200 = arith.constant 0 : index
    %264 = tpu.strided_load %arg16[%c2_199, %c0_200] {strides = array<i32: 2, 1>} : memref<136x32xf32, #tpu.memory_space<vmem>>, vector<8x32xf32>
    %c3_201 = arith.constant 3 : index
    %c2_202 = arith.constant 2 : index
    %c0_203 = arith.constant 0 : index
    %c0_204 = arith.constant 0 : index
    %265 = vector.load %arg3[%c3_201, %c2_202, %c0_203, %c0_204] : memref<5x3x32x32xf32, #tpu.memory_space<vmem>>, vector<1x1x32x32xf32>
    %266 = vector.shape_cast %265 : vector<1x1x32x32xf32> to vector<32x32xf32>
    %cst_205 = arith.constant dense<0.000000e+00> : vector<8x32xf32>
    %267 = tpu.matmul %264, %266, %cst_205 {dimension_numbers = #tpu.dot_dimension_numbers<[1], [0], [0], [1], [0, 0, 1, 1], [], []>} : vector<8x32xf32>, vector<32x32xf32>, vector<8x32xf32> -> vector<8x32xf32>
    %268 = arith.addf %263, %267 : vector<8x32xf32>
    %c4 = arith.constant 4 : index
    %c0_206 = arith.constant 0 : index
    %c0_207 = arith.constant 0 : index
    %269 = vector.load %arg4[%c4, %c0_206, %c0_207] : memref<6x1x32xf32, #tpu.memory_space<vmem>>, vector<1x1x32xf32>
    %270 = vector.shape_cast %269 : vector<1x1x32xf32> to vector<1x32xf32>
    %271 = vector.broadcast %270 : vector<1x32xf32> to vector<8x32xf32>
    %272 = arith.addf %268, %271 : vector<8x32xf32>
    %cst_208 = arith.constant dense<0.000000e+00> : vector<32xf32>
    %273 = vector.multi_reduction <add>, %272, %cst_208 [0] : vector<8x32xf32> to vector<32xf32>
    %274 = vector.shape_cast %273 : vector<32xf32> to vector<1x32xf32>
    %cst_209 = arith.constant dense<0.000000e+00> : vector<1x32xf32>
    %275 = tpu.matmul %274, %4, %cst_209 {dimension_numbers = #tpu.dot_dimension_numbers<[1], [0], [0], [1], [0, 0, 1, 1], [], []>} : vector<1x32xf32>, vector<32x32xf32>, vector<1x32xf32> -> vector<1x32xf32>
    %cst_210 = arith.constant 6.250000e-02 : f32
    %276 = vector.broadcast %cst_210 : f32 to vector<1x32xf32>
    %277 = arith.mulf %275, %276 : vector<1x32xf32>
    %278 = vector.broadcast %277 : vector<1x32xf32> to vector<8x32xf32>
    %279 = arith.subf %272, %278 : vector<8x32xf32>
    %280 = arith.mulf %279, %279 : vector<8x32xf32>
    %cst_211 = arith.constant dense<0.000000e+00> : vector<32xf32>
    %281 = vector.multi_reduction <add>, %280, %cst_211 [0] : vector<8x32xf32> to vector<32xf32>
    %282 = vector.shape_cast %281 : vector<32xf32> to vector<1x32xf32>
    %cst_212 = arith.constant dense<0.000000e+00> : vector<1x32xf32>
    %283 = tpu.matmul %282, %4, %cst_212 {dimension_numbers = #tpu.dot_dimension_numbers<[1], [0], [0], [1], [0, 0, 1, 1], [], []>} : vector<1x32xf32>, vector<32x32xf32>, vector<1x32xf32> -> vector<1x32xf32>
    %cst_213 = arith.constant 6.250000e-02 : f32
    %284 = vector.broadcast %cst_213 : f32 to vector<1x32xf32>
    %285 = arith.mulf %283, %284 : vector<1x32xf32>
    %cst_214 = arith.constant 9.99999974E-6 : f32
    %286 = vector.broadcast %cst_214 : f32 to vector<1x32xf32>
    %287 = arith.addf %285, %286 : vector<1x32xf32>
    %288 = math.rsqrt %287 : vector<1x32xf32>
    %289 = vector.broadcast %288 : vector<1x32xf32> to vector<8x32xf32>
    %290 = arith.mulf %279, %289 : vector<8x32xf32>
    %c4_215 = arith.constant 4 : index
    %c0_216 = arith.constant 0 : index
    %c0_217 = arith.constant 0 : index
    %291 = vector.load %arg5[%c4_215, %c0_216, %c0_217] : memref<6x1x32xf32, #tpu.memory_space<vmem>>, vector<1x1x32xf32>
    %292 = vector.shape_cast %291 : vector<1x1x32xf32> to vector<1x32xf32>
    %293 = vector.broadcast %292 : vector<1x32xf32> to vector<8x32xf32>
    %294 = arith.mulf %290, %293 : vector<8x32xf32>
    %c4_218 = arith.constant 4 : index
    %c0_219 = arith.constant 0 : index
    %c0_220 = arith.constant 0 : index
    %295 = vector.load %arg6[%c4_218, %c0_219, %c0_220] : memref<6x1x32xf32, #tpu.memory_space<vmem>>, vector<1x1x32xf32>
    %296 = vector.shape_cast %295 : vector<1x1x32xf32> to vector<1x32xf32>
    %297 = vector.broadcast %296 : vector<1x32xf32> to vector<8x32xf32>
    %298 = arith.addf %294, %297 : vector<8x32xf32>
    %cst_221 = arith.constant 5.000000e-01 : f32
    %299 = vector.broadcast %cst_221 : f32 to vector<8x32xf32>
    %300 = arith.mulf %299, %298 : vector<8x32xf32>
    %cst_222 = arith.constant 4.471500e-02 : f32
    %301 = vector.broadcast %cst_222 : f32 to vector<8x32xf32>
    %302 = arith.mulf %301, %298 : vector<8x32xf32>
    %303 = arith.mulf %302, %298 : vector<8x32xf32>
    %304 = arith.mulf %303, %298 : vector<8x32xf32>
    %305 = arith.addf %298, %304 : vector<8x32xf32>
    %cst_223 = arith.constant 0.797884583 : f32
    %306 = vector.broadcast %cst_223 : f32 to vector<8x32xf32>
    %307 = arith.mulf %306, %305 : vector<8x32xf32>
    %308 = math.tanh %307 : vector<8x32xf32>
    %cst_224 = arith.constant 1.000000e+00 : f32
    %309 = vector.broadcast %cst_224 : f32 to vector<8x32xf32>
    %310 = arith.addf %309, %308 : vector<8x32xf32>
    %311 = arith.mulf %300, %310 : vector<8x32xf32>
    %c1_225 = arith.constant 1 : index
    %c0_226 = arith.constant 0 : index
    %312 = vector.load %arg15[%c1_225, %c0_226] : memref<136x32xf32, #tpu.memory_space<vmem>>, vector<8x32xf32>
    tpu.vector_store %arg15[%c1_225, %c0_226], %311 {strides = array<i32>} : memref<136x32xf32, #tpu.memory_space<vmem>>, vector<8x32xf32>,
    %cst_227 = arith.constant 0.000000e+00 : f32
    %313 = vector.broadcast %cst_227 : f32 to vector<4x32xf32>
    %c9 = arith.constant 9 : index
    %c0_228 = arith.constant 0 : index
    %314 = vector.load %arg15[%c9, %c0_228] : memref<136x32xf32, #tpu.memory_space<vmem>>, vector<4x32xf32>
    tpu.vector_store %arg15[%c9, %c0_228], %313 {strides = array<i32>} : memref<136x32xf32, #tpu.memory_space<vmem>>, vector<4x32xf32>,
    %cst_229 = arith.constant 0.000000e+00 : f32
    %315 = vector.broadcast %cst_229 : f32 to vector<4x32xf32>
    %c0_230 = arith.constant 0 : index
    %c0_231 = arith.constant 0 : index
    %316 = tpu.strided_load %arg15[%c0_230, %c0_231] {strides = array<i32: 2, 1>} : memref<136x32xf32, #tpu.memory_space<vmem>>, vector<4x32xf32>
    %c4_232 = arith.constant 4 : index
    %c0_233 = arith.constant 0 : index
    %c0_234 = arith.constant 0 : index
    %c0_235 = arith.constant 0 : index
    %317 = vector.load %arg3[%c4_232, %c0_233, %c0_234, %c0_235] : memref<5x3x32x32xf32, #tpu.memory_space<vmem>>, vector<1x1x32x32xf32>
    %318 = vector.shape_cast %317 : vector<1x1x32x32xf32> to vector<32x32xf32>
    %cst_236 = arith.constant dense<0.000000e+00> : vector<4x32xf32>
    %319 = tpu.matmul %316, %318, %cst_236 {dimension_numbers = #tpu.dot_dimension_numbers<[1], [0], [0], [1], [0, 0, 1, 1], [], []>} : vector<4x32xf32>, vector<32x32xf32>, vector<4x32xf32> -> vector<4x32xf32>
    %320 = arith.addf %315, %319 : vector<4x32xf32>
    %c1_237 = arith.constant 1 : index
    %c0_238 = arith.constant 0 : index
    %321 = tpu.strided_load %arg15[%c1_237, %c0_238] {strides = array<i32: 2, 1>} : memref<136x32xf32, #tpu.memory_space<vmem>>, vector<4x32xf32>
    %c4_239 = arith.constant 4 : index
    %c1_240 = arith.constant 1 : index
    %c0_241 = arith.constant 0 : index
    %c0_242 = arith.constant 0 : index
    %322 = vector.load %arg3[%c4_239, %c1_240, %c0_241, %c0_242] : memref<5x3x32x32xf32, #tpu.memory_space<vmem>>, vector<1x1x32x32xf32>
    %323 = vector.shape_cast %322 : vector<1x1x32x32xf32> to vector<32x32xf32>
    %cst_243 = arith.constant dense<0.000000e+00> : vector<4x32xf32>
    %324 = tpu.matmul %321, %323, %cst_243 {dimension_numbers = #tpu.dot_dimension_numbers<[1], [0], [0], [1], [0, 0, 1, 1], [], []>} : vector<4x32xf32>, vector<32x32xf32>, vector<4x32xf32> -> vector<4x32xf32>
    %325 = arith.addf %320, %324 : vector<4x32xf32>
    %c2_244 = arith.constant 2 : index
    %c0_245 = arith.constant 0 : index
    %326 = tpu.strided_load %arg15[%c2_244, %c0_245] {strides = array<i32: 2, 1>} : memref<136x32xf32, #tpu.memory_space<vmem>>, vector<4x32xf32>
    %c4_246 = arith.constant 4 : index
    %c2_247 = arith.constant 2 : index
    %c0_248 = arith.constant 0 : index
    %c0_249 = arith.constant 0 : index
    %327 = vector.load %arg3[%c4_246, %c2_247, %c0_248, %c0_249] : memref<5x3x32x32xf32, #tpu.memory_space<vmem>>, vector<1x1x32x32xf32>
    %328 = vector.shape_cast %327 : vector<1x1x32x32xf32> to vector<32x32xf32>
    %cst_250 = arith.constant dense<0.000000e+00> : vector<4x32xf32>
    %329 = tpu.matmul %326, %328, %cst_250 {dimension_numbers = #tpu.dot_dimension_numbers<[1], [0], [0], [1], [0, 0, 1, 1], [], []>} : vector<4x32xf32>, vector<32x32xf32>, vector<4x32xf32> -> vector<4x32xf32>
    %330 = arith.addf %325, %329 : vector<4x32xf32>
    %c5 = arith.constant 5 : index
    %c0_251 = arith.constant 0 : index
    %c0_252 = arith.constant 0 : index
    %331 = vector.load %arg4[%c5, %c0_251, %c0_252] : memref<6x1x32xf32, #tpu.memory_space<vmem>>, vector<1x1x32xf32>
    %332 = vector.shape_cast %331 : vector<1x1x32xf32> to vector<1x32xf32>
    %333 = vector.broadcast %332 : vector<1x32xf32> to vector<4x32xf32>
    %334 = arith.addf %330, %333 : vector<4x32xf32>
    %cst_253 = arith.constant dense<0.000000e+00> : vector<32xf32>
    %335 = vector.multi_reduction <add>, %334, %cst_253 [0] : vector<4x32xf32> to vector<32xf32>
    %336 = vector.shape_cast %335 : vector<32xf32> to vector<1x32xf32>
    %cst_254 = arith.constant dense<0.000000e+00> : vector<1x32xf32>
    %337 = tpu.matmul %336, %4, %cst_254 {dimension_numbers = #tpu.dot_dimension_numbers<[1], [0], [0], [1], [0, 0, 1, 1], [], []>} : vector<1x32xf32>, vector<32x32xf32>, vector<1x32xf32> -> vector<1x32xf32>
    %cst_255 = arith.constant 1.250000e-01 : f32
    %338 = vector.broadcast %cst_255 : f32 to vector<1x32xf32>
    %339 = arith.mulf %337, %338 : vector<1x32xf32>
    %340 = vector.broadcast %339 : vector<1x32xf32> to vector<4x32xf32>
    %341 = arith.subf %334, %340 : vector<4x32xf32>
    %342 = arith.mulf %341, %341 : vector<4x32xf32>
    %cst_256 = arith.constant dense<0.000000e+00> : vector<32xf32>
    %343 = vector.multi_reduction <add>, %342, %cst_256 [0] : vector<4x32xf32> to vector<32xf32>
    %344 = vector.shape_cast %343 : vector<32xf32> to vector<1x32xf32>
    %cst_257 = arith.constant dense<0.000000e+00> : vector<1x32xf32>
    %345 = tpu.matmul %344, %4, %cst_257 {dimension_numbers = #tpu.dot_dimension_numbers<[1], [0], [0], [1], [0, 0, 1, 1], [], []>} : vector<1x32xf32>, vector<32x32xf32>, vector<1x32xf32> -> vector<1x32xf32>
    %cst_258 = arith.constant 1.250000e-01 : f32
    %346 = vector.broadcast %cst_258 : f32 to vector<1x32xf32>
    %347 = arith.mulf %345, %346 : vector<1x32xf32>
    %cst_259 = arith.constant 9.99999974E-6 : f32
    %348 = vector.broadcast %cst_259 : f32 to vector<1x32xf32>
    %349 = arith.addf %347, %348 : vector<1x32xf32>
    %350 = math.rsqrt %349 : vector<1x32xf32>
    %351 = vector.broadcast %350 : vector<1x32xf32> to vector<4x32xf32>
    %352 = arith.mulf %341, %351 : vector<4x32xf32>
    %c5_260 = arith.constant 5 : index
    %c0_261 = arith.constant 0 : index
    %c0_262 = arith.constant 0 : index
    %353 = vector.load %arg5[%c5_260, %c0_261, %c0_262] : memref<6x1x32xf32, #tpu.memory_space<vmem>>, vector<1x1x32xf32>
    %354 = vector.shape_cast %353 : vector<1x1x32xf32> to vector<1x32xf32>
    %355 = vector.broadcast %354 : vector<1x32xf32> to vector<4x32xf32>
    %356 = arith.mulf %352, %355 : vector<4x32xf32>
    %c5_263 = arith.constant 5 : index
    %c0_264 = arith.constant 0 : index
    %c0_265 = arith.constant 0 : index
    %357 = vector.load %arg6[%c5_263, %c0_264, %c0_265] : memref<6x1x32xf32, #tpu.memory_space<vmem>>, vector<1x1x32xf32>
    %358 = vector.shape_cast %357 : vector<1x1x32xf32> to vector<1x32xf32>
    %359 = vector.broadcast %358 : vector<1x32xf32> to vector<4x32xf32>
    %360 = arith.addf %356, %359 : vector<4x32xf32>
    %cst_266 = arith.constant 5.000000e-01 : f32
    %361 = vector.broadcast %cst_266 : f32 to vector<4x32xf32>
    %362 = arith.mulf %361, %360 : vector<4x32xf32>
    %cst_267 = arith.constant 4.471500e-02 : f32
    %363 = vector.broadcast %cst_267 : f32 to vector<4x32xf32>
    %364 = arith.mulf %363, %360 : vector<4x32xf32>
    %365 = arith.mulf %364, %360 : vector<4x32xf32>
    %366 = arith.mulf %365, %360 : vector<4x32xf32>
    %367 = arith.addf %360, %366 : vector<4x32xf32>
    %cst_268 = arith.constant 0.797884583 : f32
    %368 = vector.broadcast %cst_268 : f32 to vector<4x32xf32>
    %369 = arith.mulf %368, %367 : vector<4x32xf32>
    %370 = math.tanh %369 : vector<4x32xf32>
    %cst_269 = arith.constant 1.000000e+00 : f32
    %371 = vector.broadcast %cst_269 : f32 to vector<4x32xf32>
    %372 = arith.addf %371, %370 : vector<4x32xf32>
    %373 = arith.mulf %362, %372 : vector<4x32xf32>
    %c1_270 = arith.constant 1 : index
    %c0_271 = arith.constant 0 : index
    %374 = vector.load %arg16[%c1_270, %c0_271] : memref<136x32xf32, #tpu.memory_space<vmem>>, vector<4x32xf32>
    tpu.vector_store %arg16[%c1_270, %c0_271], %373 {strides = array<i32>} : memref<136x32xf32, #tpu.memory_space<vmem>>, vector<4x32xf32>,
    %cst_272 = arith.constant 0.000000e+00 : f32
    %375 = vector.broadcast %cst_272 : f32 to vector<4x32xf32>
    %c5_273 = arith.constant 5 : index
    %c0_274 = arith.constant 0 : index
    %376 = vector.load %arg16[%c5_273, %c0_274] : memref<136x32xf32, #tpu.memory_space<vmem>>, vector<4x32xf32>
    tpu.vector_store %arg16[%c5_273, %c0_274], %375 {strides = array<i32>} : memref<136x32xf32, #tpu.memory_space<vmem>>, vector<4x32xf32>,
    %c1_275 = arith.constant 1 : index
    %c0_276 = arith.constant 0 : index
    %377 = vector.load %arg16[%c1_275, %c0_276] : memref<136x32xf32, #tpu.memory_space<vmem>>, vector<4x32xf32>
    %cst_277 = arith.constant 0.000000e+00 : f32
    %378 = vector.broadcast %cst_277 : f32 to vector<32x32xf32>
    %c0_278 = arith.constant 0 : index
    %c0_279 = arith.constant 0 : index
    %379 = vector.load %arg17[%c0_278, %c0_279] : memref<32x32xf32, #tpu.memory_space<vmem>>, vector<32x32xf32>
    tpu.vector_store %arg17[%c0_278, %c0_279], %378 {strides = array<i32>} : memref<32x32xf32, #tpu.memory_space<vmem>>, vector<32x32xf32>,
    %c12 = arith.constant 12 : index
    %c0_280 = arith.constant 0 : index
    %380 = vector.load %arg17[%c12, %c0_280] : memref<32x32xf32, #tpu.memory_space<vmem>>, vector<4x32xf32>
    tpu.vector_store %arg17[%c12, %c0_280], %377 {strides = array<i32>} : memref<32x32xf32, #tpu.memory_space<vmem>>, vector<4x32xf32>,
    %cst_281 = arith.constant 0.000000e+00 : f32
    %381 = vector.broadcast %cst_281 : f32 to vector<4x32xf32>
    %c0_282 = arith.constant 0 : index
    %c0_283 = arith.constant 0 : index
    %382 = vector.load %arg17[%c0_282, %c0_283] : memref<32x32xf32, #tpu.memory_space<vmem>>, vector<4x32xf32>
    %c0_284 = arith.constant 0 : index
    %c0_285 = arith.constant 0 : index
    %c0_286 = arith.constant 0 : index
    %383 = vector.load %arg8[%c0_284, %c0_285, %c0_286] : memref<25x32x32xf32, #tpu.memory_space<vmem>>, vector<1x32x32xf32>
    %384 = vector.shape_cast %383 : vector<1x32x32xf32> to vector<32x32xf32>
    %cst_287 = arith.constant dense<0.000000e+00> : vector<4x32xf32>
    %385 = tpu.matmul %382, %384, %cst_287 {dimension_numbers = #tpu.dot_dimension_numbers<[1], [0], [0], [1], [0, 0, 1, 1], [], []>} : vector<4x32xf32>, vector<32x32xf32>, vector<4x32xf32> -> vector<4x32xf32>
    %386 = arith.addf %381, %385 : vector<4x32xf32>
    %c1_288 = arith.constant 1 : index
    %c0_289 = arith.constant 0 : index
    %387 = vector.load %arg17[%c1_288, %c0_289] : memref<32x32xf32, #tpu.memory_space<vmem>>, vector<4x32xf32>
    %c1_290 = arith.constant 1 : index
    %c0_291 = arith.constant 0 : index
    %c0_292 = arith.constant 0 : index
    %388 = vector.load %arg8[%c1_290, %c0_291, %c0_292] : memref<25x32x32xf32, #tpu.memory_space<vmem>>, vector<1x32x32xf32>
    %389 = vector.shape_cast %388 : vector<1x32x32xf32> to vector<32x32xf32>
    %cst_293 = arith.constant dense<0.000000e+00> : vector<4x32xf32>
    %390 = tpu.matmul %387, %389, %cst_293 {dimension_numbers = #tpu.dot_dimension_numbers<[1], [0], [0], [1], [0, 0, 1, 1], [], []>} : vector<4x32xf32>, vector<32x32xf32>, vector<4x32xf32> -> vector<4x32xf32>
    %391 = arith.addf %386, %390 : vector<4x32xf32>
    %c2_294 = arith.constant 2 : index
    %c0_295 = arith.constant 0 : index
    %392 = vector.load %arg17[%c2_294, %c0_295] : memref<32x32xf32, #tpu.memory_space<vmem>>, vector<4x32xf32>
    %c2_296 = arith.constant 2 : index
    %c0_297 = arith.constant 0 : index
    %c0_298 = arith.constant 0 : index
    %393 = vector.load %arg8[%c2_296, %c0_297, %c0_298] : memref<25x32x32xf32, #tpu.memory_space<vmem>>, vector<1x32x32xf32>
    %394 = vector.shape_cast %393 : vector<1x32x32xf32> to vector<32x32xf32>
    %cst_299 = arith.constant dense<0.000000e+00> : vector<4x32xf32>
    %395 = tpu.matmul %392, %394, %cst_299 {dimension_numbers = #tpu.dot_dimension_numbers<[1], [0], [0], [1], [0, 0, 1, 1], [], []>} : vector<4x32xf32>, vector<32x32xf32>, vector<4x32xf32> -> vector<4x32xf32>
    %396 = arith.addf %391, %395 : vector<4x32xf32>
    %c3_300 = arith.constant 3 : index
    %c0_301 = arith.constant 0 : index
    %397 = vector.load %arg17[%c3_300, %c0_301] : memref<32x32xf32, #tpu.memory_space<vmem>>, vector<4x32xf32>
    %c3_302 = arith.constant 3 : index
    %c0_303 = arith.constant 0 : index
    %c0_304 = arith.constant 0 : index
    %398 = vector.load %arg8[%c3_302, %c0_303, %c0_304] : memref<25x32x32xf32, #tpu.memory_space<vmem>>, vector<1x32x32xf32>
    %399 = vector.shape_cast %398 : vector<1x32x32xf32> to vector<32x32xf32>
    %cst_305 = arith.constant dense<0.000000e+00> : vector<4x32xf32>
    %400 = tpu.matmul %397, %399, %cst_305 {dimension_numbers = #tpu.dot_dimension_numbers<[1], [0], [0], [1], [0, 0, 1, 1], [], []>} : vector<4x32xf32>, vector<32x32xf32>, vector<4x32xf32> -> vector<4x32xf32>
    %401 = arith.addf %396, %400 : vector<4x32xf32>
    %c4_306 = arith.constant 4 : index
    %c0_307 = arith.constant 0 : index
    %402 = vector.load %arg17[%c4_306, %c0_307] : memref<32x32xf32, #tpu.memory_space<vmem>>, vector<4x32xf32>
    %c4_308 = arith.constant 4 : index
    %c0_309 = arith.constant 0 : index
    %c0_310 = arith.constant 0 : index
    %403 = vector.load %arg8[%c4_308, %c0_309, %c0_310] : memref<25x32x32xf32, #tpu.memory_space<vmem>>, vector<1x32x32xf32>
    %404 = vector.shape_cast %403 : vector<1x32x32xf32> to vector<32x32xf32>
    %cst_311 = arith.constant dense<0.000000e+00> : vector<4x32xf32>
    %405 = tpu.matmul %402, %404, %cst_311 {dimension_numbers = #tpu.dot_dimension_numbers<[1], [0], [0], [1], [0, 0, 1, 1], [], []>} : vector<4x32xf32>, vector<32x32xf32>, vector<4x32xf32> -> vector<4x32xf32>
    %406 = arith.addf %401, %405 : vector<4x32xf32>
    %c5_312 = arith.constant 5 : index
    %c0_313 = arith.constant 0 : index
    %407 = vector.load %arg17[%c5_312, %c0_313] : memref<32x32xf32, #tpu.memory_space<vmem>>, vector<4x32xf32>
    %c5_314 = arith.constant 5 : index
    %c0_315 = arith.constant 0 : index
    %c0_316 = arith.constant 0 : index
    %408 = vector.load %arg8[%c5_314, %c0_315, %c0_316] : memref<25x32x32xf32, #tpu.memory_space<vmem>>, vector<1x32x32xf32>
    %409 = vector.shape_cast %408 : vector<1x32x32xf32> to vector<32x32xf32>
    %cst_317 = arith.constant dense<0.000000e+00> : vector<4x32xf32>
    %410 = tpu.matmul %407, %409, %cst_317 {dimension_numbers = #tpu.dot_dimension_numbers<[1], [0], [0], [1], [0, 0, 1, 1], [], []>} : vector<4x32xf32>, vector<32x32xf32>, vector<4x32xf32> -> vector<4x32xf32>
    %411 = arith.addf %406, %410 : vector<4x32xf32>
    %c6 = arith.constant 6 : index
    %c0_318 = arith.constant 0 : index
    %412 = vector.load %arg17[%c6, %c0_318] : memref<32x32xf32, #tpu.memory_space<vmem>>, vector<4x32xf32>
    %c6_319 = arith.constant 6 : index
    %c0_320 = arith.constant 0 : index
    %c0_321 = arith.constant 0 : index
    %413 = vector.load %arg8[%c6_319, %c0_320, %c0_321] : memref<25x32x32xf32, #tpu.memory_space<vmem>>, vector<1x32x32xf32>
    %414 = vector.shape_cast %413 : vector<1x32x32xf32> to vector<32x32xf32>
    %cst_322 = arith.constant dense<0.000000e+00> : vector<4x32xf32>
    %415 = tpu.matmul %412, %414, %cst_322 {dimension_numbers = #tpu.dot_dimension_numbers<[1], [0], [0], [1], [0, 0, 1, 1], [], []>} : vector<4x32xf32>, vector<32x32xf32>, vector<4x32xf32> -> vector<4x32xf32>
    %416 = arith.addf %411, %415 : vector<4x32xf32>
    %c7 = arith.constant 7 : index
    %c0_323 = arith.constant 0 : index
    %417 = vector.load %arg17[%c7, %c0_323] : memref<32x32xf32, #tpu.memory_space<vmem>>, vector<4x32xf32>
    %c7_324 = arith.constant 7 : index
    %c0_325 = arith.constant 0 : index
    %c0_326 = arith.constant 0 : index
    %418 = vector.load %arg8[%c7_324, %c0_325, %c0_326] : memref<25x32x32xf32, #tpu.memory_space<vmem>>, vector<1x32x32xf32>
    %419 = vector.shape_cast %418 : vector<1x32x32xf32> to vector<32x32xf32>
    %cst_327 = arith.constant dense<0.000000e+00> : vector<4x32xf32>
    %420 = tpu.matmul %417, %419, %cst_327 {dimension_numbers = #tpu.dot_dimension_numbers<[1], [0], [0], [1], [0, 0, 1, 1], [], []>} : vector<4x32xf32>, vector<32x32xf32>, vector<4x32xf32> -> vector<4x32xf32>
    %421 = arith.addf %416, %420 : vector<4x32xf32>
    %c8 = arith.constant 8 : index
    %c0_328 = arith.constant 0 : index
    %422 = vector.load %arg17[%c8, %c0_328] : memref<32x32xf32, #tpu.memory_space<vmem>>, vector<4x32xf32>
    %c8_329 = arith.constant 8 : index
    %c0_330 = arith.constant 0 : index
    %c0_331 = arith.constant 0 : index
    %423 = vector.load %arg8[%c8_329, %c0_330, %c0_331] : memref<25x32x32xf32, #tpu.memory_space<vmem>>, vector<1x32x32xf32>
    %424 = vector.shape_cast %423 : vector<1x32x32xf32> to vector<32x32xf32>
    %cst_332 = arith.constant dense<0.000000e+00> : vector<4x32xf32>
    %425 = tpu.matmul %422, %424, %cst_332 {dimension_numbers = #tpu.dot_dimension_numbers<[1], [0], [0], [1], [0, 0, 1, 1], [], []>} : vector<4x32xf32>, vector<32x32xf32>, vector<4x32xf32> -> vector<4x32xf32>
    %426 = arith.addf %421, %425 : vector<4x32xf32>
    %c9_333 = arith.constant 9 : index
    %c0_334 = arith.constant 0 : index
    %427 = vector.load %arg17[%c9_333, %c0_334] : memref<32x32xf32, #tpu.memory_space<vmem>>, vector<4x32xf32>
    %c9_335 = arith.constant 9 : index
    %c0_336 = arith.constant 0 : index
    %c0_337 = arith.constant 0 : index
    %428 = vector.load %arg8[%c9_335, %c0_336, %c0_337] : memref<25x32x32xf32, #tpu.memory_space<vmem>>, vector<1x32x32xf32>
    %429 = vector.shape_cast %428 : vector<1x32x32xf32> to vector<32x32xf32>
    %cst_338 = arith.constant dense<0.000000e+00> : vector<4x32xf32>
    %430 = tpu.matmul %427, %429, %cst_338 {dimension_numbers = #tpu.dot_dimension_numbers<[1], [0], [0], [1], [0, 0, 1, 1], [], []>} : vector<4x32xf32>, vector<32x32xf32>, vector<4x32xf32> -> vector<4x32xf32>
    %431 = arith.addf %426, %430 : vector<4x32xf32>
    %c10 = arith.constant 10 : index
    %c0_339 = arith.constant 0 : index
    %432 = vector.load %arg17[%c10, %c0_339] : memref<32x32xf32, #tpu.memory_space<vmem>>, vector<4x32xf32>
    %c10_340 = arith.constant 10 : index
    %c0_341 = arith.constant 0 : index
    %c0_342 = arith.constant 0 : index
    %433 = vector.load %arg8[%c10_340, %c0_341, %c0_342] : memref<25x32x32xf32, #tpu.memory_space<vmem>>, vector<1x32x32xf32>
    %434 = vector.shape_cast %433 : vector<1x32x32xf32> to vector<32x32xf32>
    %cst_343 = arith.constant dense<0.000000e+00> : vector<4x32xf32>
    %435 = tpu.matmul %432, %434, %cst_343 {dimension_numbers = #tpu.dot_dimension_numbers<[1], [0], [0], [1], [0, 0, 1, 1], [], []>} : vector<4x32xf32>, vector<32x32xf32>, vector<4x32xf32> -> vector<4x32xf32>
    %436 = arith.addf %431, %435 : vector<4x32xf32>
    %c11 = arith.constant 11 : index
    %c0_344 = arith.constant 0 : index
    %437 = vector.load %arg17[%c11, %c0_344] : memref<32x32xf32, #tpu.memory_space<vmem>>, vector<4x32xf32>
    %c11_345 = arith.constant 11 : index
    %c0_346 = arith.constant 0 : index
    %c0_347 = arith.constant 0 : index
    %438 = vector.load %arg8[%c11_345, %c0_346, %c0_347] : memref<25x32x32xf32, #tpu.memory_space<vmem>>, vector<1x32x32xf32>
    %439 = vector.shape_cast %438 : vector<1x32x32xf32> to vector<32x32xf32>
    %cst_348 = arith.constant dense<0.000000e+00> : vector<4x32xf32>
    %440 = tpu.matmul %437, %439, %cst_348 {dimension_numbers = #tpu.dot_dimension_numbers<[1], [0], [0], [1], [0, 0, 1, 1], [], []>} : vector<4x32xf32>, vector<32x32xf32>, vector<4x32xf32> -> vector<4x32xf32>
    %441 = arith.addf %436, %440 : vector<4x32xf32>
    %c12_349 = arith.constant 12 : index
    %c0_350 = arith.constant 0 : index
    %442 = vector.load %arg17[%c12_349, %c0_350] : memref<32x32xf32, #tpu.memory_space<vmem>>, vector<4x32xf32>
    %c12_351 = arith.constant 12 : index
    %c0_352 = arith.constant 0 : index
    %c0_353 = arith.constant 0 : index
    %443 = vector.load %arg8[%c12_351, %c0_352, %c0_353] : memref<25x32x32xf32, #tpu.memory_space<vmem>>, vector<1x32x32xf32>
    %444 = vector.shape_cast %443 : vector<1x32x32xf32> to vector<32x32xf32>
    %cst_354 = arith.constant dense<0.000000e+00> : vector<4x32xf32>
    %445 = tpu.matmul %442, %444, %cst_354 {dimension_numbers = #tpu.dot_dimension_numbers<[1], [0], [0], [1], [0, 0, 1, 1], [], []>} : vector<4x32xf32>, vector<32x32xf32>, vector<4x32xf32> -> vector<4x32xf32>
    %446 = arith.addf %441, %445 : vector<4x32xf32>
    %c13 = arith.constant 13 : index
    %c0_355 = arith.constant 0 : index
    %447 = vector.load %arg17[%c13, %c0_355] : memref<32x32xf32, #tpu.memory_space<vmem>>, vector<4x32xf32>
    %c13_356 = arith.constant 13 : index
    %c0_357 = arith.constant 0 : index
    %c0_358 = arith.constant 0 : index
    %448 = vector.load %arg8[%c13_356, %c0_357, %c0_358] : memref<25x32x32xf32, #tpu.memory_space<vmem>>, vector<1x32x32xf32>
    %449 = vector.shape_cast %448 : vector<1x32x32xf32> to vector<32x32xf32>
    %cst_359 = arith.constant dense<0.000000e+00> : vector<4x32xf32>
    %450 = tpu.matmul %447, %449, %cst_359 {dimension_numbers = #tpu.dot_dimension_numbers<[1], [0], [0], [1], [0, 0, 1, 1], [], []>} : vector<4x32xf32>, vector<32x32xf32>, vector<4x32xf32> -> vector<4x32xf32>
    %451 = arith.addf %446, %450 : vector<4x32xf32>
    %c14 = arith.constant 14 : index
    %c0_360 = arith.constant 0 : index
    %452 = vector.load %arg17[%c14, %c0_360] : memref<32x32xf32, #tpu.memory_space<vmem>>, vector<4x32xf32>
    %c14_361 = arith.constant 14 : index
    %c0_362 = arith.constant 0 : index
    %c0_363 = arith.constant 0 : index
    %453 = vector.load %arg8[%c14_361, %c0_362, %c0_363] : memref<25x32x32xf32, #tpu.memory_space<vmem>>, vector<1x32x32xf32>
    %454 = vector.shape_cast %453 : vector<1x32x32xf32> to vector<32x32xf32>
    %cst_364 = arith.constant dense<0.000000e+00> : vector<4x32xf32>
    %455 = tpu.matmul %452, %454, %cst_364 {dimension_numbers = #tpu.dot_dimension_numbers<[1], [0], [0], [1], [0, 0, 1, 1], [], []>} : vector<4x32xf32>, vector<32x32xf32>, vector<4x32xf32> -> vector<4x32xf32>
    %456 = arith.addf %451, %455 : vector<4x32xf32>
    %c15 = arith.constant 15 : index
    %c0_365 = arith.constant 0 : index
    %457 = vector.load %arg17[%c15, %c0_365] : memref<32x32xf32, #tpu.memory_space<vmem>>, vector<4x32xf32>
    %c15_366 = arith.constant 15 : index
    %c0_367 = arith.constant 0 : index
    %c0_368 = arith.constant 0 : index
    %458 = vector.load %arg8[%c15_366, %c0_367, %c0_368] : memref<25x32x32xf32, #tpu.memory_space<vmem>>, vector<1x32x32xf32>
    %459 = vector.shape_cast %458 : vector<1x32x32xf32> to vector<32x32xf32>
    %cst_369 = arith.constant dense<0.000000e+00> : vector<4x32xf32>
    %460 = tpu.matmul %457, %459, %cst_369 {dimension_numbers = #tpu.dot_dimension_numbers<[1], [0], [0], [1], [0, 0, 1, 1], [], []>} : vector<4x32xf32>, vector<32x32xf32>, vector<4x32xf32> -> vector<4x32xf32>
    %461 = arith.addf %456, %460 : vector<4x32xf32>
    %c16 = arith.constant 16 : index
    %c0_370 = arith.constant 0 : index
    %462 = vector.load %arg17[%c16, %c0_370] : memref<32x32xf32, #tpu.memory_space<vmem>>, vector<4x32xf32>
    %c16_371 = arith.constant 16 : index
    %c0_372 = arith.constant 0 : index
    %c0_373 = arith.constant 0 : index
    %463 = vector.load %arg8[%c16_371, %c0_372, %c0_373] : memref<25x32x32xf32, #tpu.memory_space<vmem>>, vector<1x32x32xf32>
    %464 = vector.shape_cast %463 : vector<1x32x32xf32> to vector<32x32xf32>
    %cst_374 = arith.constant dense<0.000000e+00> : vector<4x32xf32>
    %465 = tpu.matmul %462, %464, %cst_374 {dimension_numbers = #tpu.dot_dimension_numbers<[1], [0], [0], [1], [0, 0, 1, 1], [], []>} : vector<4x32xf32>, vector<32x32xf32>, vector<4x32xf32> -> vector<4x32xf32>
    %466 = arith.addf %461, %465 : vector<4x32xf32>
    %c17_375 = arith.constant 17 : index
    %c0_376 = arith.constant 0 : index
    %467 = vector.load %arg17[%c17_375, %c0_376] : memref<32x32xf32, #tpu.memory_space<vmem>>, vector<4x32xf32>
    %c17_377 = arith.constant 17 : index
    %c0_378 = arith.constant 0 : index
    %c0_379 = arith.constant 0 : index
    %468 = vector.load %arg8[%c17_377, %c0_378, %c0_379] : memref<25x32x32xf32, #tpu.memory_space<vmem>>, vector<1x32x32xf32>
    %469 = vector.shape_cast %468 : vector<1x32x32xf32> to vector<32x32xf32>
    %cst_380 = arith.constant dense<0.000000e+00> : vector<4x32xf32>
    %470 = tpu.matmul %467, %469, %cst_380 {dimension_numbers = #tpu.dot_dimension_numbers<[1], [0], [0], [1], [0, 0, 1, 1], [], []>} : vector<4x32xf32>, vector<32x32xf32>, vector<4x32xf32> -> vector<4x32xf32>
    %471 = arith.addf %466, %470 : vector<4x32xf32>
    %c18 = arith.constant 18 : index
    %c0_381 = arith.constant 0 : index
    %472 = vector.load %arg17[%c18, %c0_381] : memref<32x32xf32, #tpu.memory_space<vmem>>, vector<4x32xf32>
    %c18_382 = arith.constant 18 : index
    %c0_383 = arith.constant 0 : index
    %c0_384 = arith.constant 0 : index
    %473 = vector.load %arg8[%c18_382, %c0_383, %c0_384] : memref<25x32x32xf32, #tpu.memory_space<vmem>>, vector<1x32x32xf32>
    %474 = vector.shape_cast %473 : vector<1x32x32xf32> to vector<32x32xf32>
    %cst_385 = arith.constant dense<0.000000e+00> : vector<4x32xf32>
    %475 = tpu.matmul %472, %474, %cst_385 {dimension_numbers = #tpu.dot_dimension_numbers<[1], [0], [0], [1], [0, 0, 1, 1], [], []>} : vector<4x32xf32>, vector<32x32xf32>, vector<4x32xf32> -> vector<4x32xf32>
    %476 = arith.addf %471, %475 : vector<4x32xf32>
    %c19 = arith.constant 19 : index
    %c0_386 = arith.constant 0 : index
    %477 = vector.load %arg17[%c19, %c0_386] : memref<32x32xf32, #tpu.memory_space<vmem>>, vector<4x32xf32>
    %c19_387 = arith.constant 19 : index
    %c0_388 = arith.constant 0 : index
    %c0_389 = arith.constant 0 : index
    %478 = vector.load %arg8[%c19_387, %c0_388, %c0_389] : memref<25x32x32xf32, #tpu.memory_space<vmem>>, vector<1x32x32xf32>
    %479 = vector.shape_cast %478 : vector<1x32x32xf32> to vector<32x32xf32>
    %cst_390 = arith.constant dense<0.000000e+00> : vector<4x32xf32>
    %480 = tpu.matmul %477, %479, %cst_390 {dimension_numbers = #tpu.dot_dimension_numbers<[1], [0], [0], [1], [0, 0, 1, 1], [], []>} : vector<4x32xf32>, vector<32x32xf32>, vector<4x32xf32> -> vector<4x32xf32>
    %481 = arith.addf %476, %480 : vector<4x32xf32>
    %c20 = arith.constant 20 : index
    %c0_391 = arith.constant 0 : index
    %482 = vector.load %arg17[%c20, %c0_391] : memref<32x32xf32, #tpu.memory_space<vmem>>, vector<4x32xf32>
    %c20_392 = arith.constant 20 : index
    %c0_393 = arith.constant 0 : index
    %c0_394 = arith.constant 0 : index
    %483 = vector.load %arg8[%c20_392, %c0_393, %c0_394] : memref<25x32x32xf32, #tpu.memory_space<vmem>>, vector<1x32x32xf32>
    %484 = vector.shape_cast %483 : vector<1x32x32xf32> to vector<32x32xf32>
    %cst_395 = arith.constant dense<0.000000e+00> : vector<4x32xf32>
    %485 = tpu.matmul %482, %484, %cst_395 {dimension_numbers = #tpu.dot_dimension_numbers<[1], [0], [0], [1], [0, 0, 1, 1], [], []>} : vector<4x32xf32>, vector<32x32xf32>, vector<4x32xf32> -> vector<4x32xf32>
    %486 = arith.addf %481, %485 : vector<4x32xf32>
    %c21 = arith.constant 21 : index
    %c0_396 = arith.constant 0 : index
    %487 = vector.load %arg17[%c21, %c0_396] : memref<32x32xf32, #tpu.memory_space<vmem>>, vector<4x32xf32>
    %c21_397 = arith.constant 21 : index
    %c0_398 = arith.constant 0 : index
    %c0_399 = arith.constant 0 : index
    %488 = vector.load %arg8[%c21_397, %c0_398, %c0_399] : memref<25x32x32xf32, #tpu.memory_space<vmem>>, vector<1x32x32xf32>
    %489 = vector.shape_cast %488 : vector<1x32x32xf32> to vector<32x32xf32>
    %cst_400 = arith.constant dense<0.000000e+00> : vector<4x32xf32>
    %490 = tpu.matmul %487, %489, %cst_400 {dimension_numbers = #tpu.dot_dimension_numbers<[1], [0], [0], [1], [0, 0, 1, 1], [], []>} : vector<4x32xf32>, vector<32x32xf32>, vector<4x32xf32> -> vector<4x32xf32>
    %491 = arith.addf %486, %490 : vector<4x32xf32>
    %c22 = arith.constant 22 : index
    %c0_401 = arith.constant 0 : index
    %492 = vector.load %arg17[%c22, %c0_401] : memref<32x32xf32, #tpu.memory_space<vmem>>, vector<4x32xf32>
    %c22_402 = arith.constant 22 : index
    %c0_403 = arith.constant 0 : index
    %c0_404 = arith.constant 0 : index
    %493 = vector.load %arg8[%c22_402, %c0_403, %c0_404] : memref<25x32x32xf32, #tpu.memory_space<vmem>>, vector<1x32x32xf32>
    %494 = vector.shape_cast %493 : vector<1x32x32xf32> to vector<32x32xf32>
    %cst_405 = arith.constant dense<0.000000e+00> : vector<4x32xf32>
    %495 = tpu.matmul %492, %494, %cst_405 {dimension_numbers = #tpu.dot_dimension_numbers<[1], [0], [0], [1], [0, 0, 1, 1], [], []>} : vector<4x32xf32>, vector<32x32xf32>, vector<4x32xf32> -> vector<4x32xf32>
    %496 = arith.addf %491, %495 : vector<4x32xf32>
    %c23 = arith.constant 23 : index
    %c0_406 = arith.constant 0 : index
    %497 = vector.load %arg17[%c23, %c0_406] : memref<32x32xf32, #tpu.memory_space<vmem>>, vector<4x32xf32>
    %c23_407 = arith.constant 23 : index
    %c0_408 = arith.constant 0 : index
    %c0_409 = arith.constant 0 : index
    %498 = vector.load %arg8[%c23_407, %c0_408, %c0_409] : memref<25x32x32xf32, #tpu.memory_space<vmem>>, vector<1x32x32xf32>
    %499 = vector.shape_cast %498 : vector<1x32x32xf32> to vector<32x32xf32>
    %cst_410 = arith.constant dense<0.000000e+00> : vector<4x32xf32>
    %500 = tpu.matmul %497, %499, %cst_410 {dimension_numbers = #tpu.dot_dimension_numbers<[1], [0], [0], [1], [0, 0, 1, 1], [], []>} : vector<4x32xf32>, vector<32x32xf32>, vector<4x32xf32> -> vector<4x32xf32>
    %501 = arith.addf %496, %500 : vector<4x32xf32>
    %c24 = arith.constant 24 : index
    %c0_411 = arith.constant 0 : index
    %502 = vector.load %arg17[%c24, %c0_411] : memref<32x32xf32, #tpu.memory_space<vmem>>, vector<4x32xf32>
    %c24_412 = arith.constant 24 : index
    %c0_413 = arith.constant 0 : index
    %c0_414 = arith.constant 0 : index
    %503 = vector.load %arg8[%c24_412, %c0_413, %c0_414] : memref<25x32x32xf32, #tpu.memory_space<vmem>>, vector<1x32x32xf32>
    %504 = vector.shape_cast %503 : vector<1x32x32xf32> to vector<32x32xf32>
    %cst_415 = arith.constant dense<0.000000e+00> : vector<4x32xf32>
    %505 = tpu.matmul %502, %504, %cst_415 {dimension_numbers = #tpu.dot_dimension_numbers<[1], [0], [0], [1], [0, 0, 1, 1], [], []>} : vector<4x32xf32>, vector<32x32xf32>, vector<4x32xf32> -> vector<4x32xf32>
    %506 = arith.addf %501, %505 : vector<4x32xf32>
    %c0_416 = arith.constant 0 : index
    %c0_417 = arith.constant 0 : index
    %507 = vector.load %arg9[%c0_416, %c0_417] : memref<1x32xf32, #tpu.memory_space<vmem>>, vector<1x32xf32>
    %508 = vector.broadcast %507 : vector<1x32xf32> to vector<4x32xf32>
    %509 = arith.addf %506, %508 : vector<4x32xf32>
    %cst_418 = arith.constant 5.000000e-01 : f32
    %510 = vector.broadcast %cst_418 : f32 to vector<4x32xf32>
    %511 = arith.mulf %510, %509 : vector<4x32xf32>
    %cst_419 = arith.constant 4.471500e-02 : f32
    %512 = vector.broadcast %cst_419 : f32 to vector<4x32xf32>
    %513 = arith.mulf %512, %509 : vector<4x32xf32>
    %514 = arith.mulf %513, %509 : vector<4x32xf32>
    %515 = arith.mulf %514, %509 : vector<4x32xf32>
    %516 = arith.addf %509, %515 : vector<4x32xf32>
    %cst_420 = arith.constant 0.797884583 : f32
    %517 = vector.broadcast %cst_420 : f32 to vector<4x32xf32>
    %518 = arith.mulf %517, %516 : vector<4x32xf32>
    %519 = math.tanh %518 : vector<4x32xf32>
    %cst_421 = arith.constant 1.000000e+00 : f32
    %520 = vector.broadcast %cst_421 : f32 to vector<4x32xf32>
    %521 = arith.addf %520, %519 : vector<4x32xf32>
    %522 = arith.mulf %511, %521 : vector<4x32xf32>
    %523 = arith.addf %377, %522 : vector<4x32xf32>
    %cst_422 = arith.constant dense<0.000000e+00> : vector<4xf32>
    %524 = vector.multi_reduction <add>, %523, %cst_422 [1] : vector<4x32xf32> to vector<4xf32>
    %525 = vector.shape_cast %524 : vector<4xf32> to vector<4x1xf32>
    %cst_423 = arith.constant 3.200000e+01 : f32
    %526 = vector.broadcast %cst_423 : f32 to vector<4x1xf32>
    %527 = arith.divf %525, %526 : vector<4x1xf32>
    %528 = vector.broadcast %527 : vector<4x1xf32> to vector<4x32xf32>
    %529 = arith.subf %523, %528 : vector<4x32xf32>
    %530 = arith.mulf %529, %529 : vector<4x32xf32>
    %cst_424 = arith.constant dense<0.000000e+00> : vector<4xf32>
    %531 = vector.multi_reduction <add>, %530, %cst_424 [1] : vector<4x32xf32> to vector<4xf32>
    %532 = vector.shape_cast %531 : vector<4xf32> to vector<4x1xf32>
    %cst_425 = arith.constant 3.200000e+01 : f32
    %533 = vector.broadcast %cst_425 : f32 to vector<4x1xf32>
    %534 = arith.divf %532, %533 : vector<4x1xf32>
    %cst_426 = arith.constant 9.99999974E-6 : f32
    %535 = vector.broadcast %cst_426 : f32 to vector<4x1xf32>
    %536 = arith.addf %534, %535 : vector<4x1xf32>
    %537 = math.rsqrt %536 : vector<4x1xf32>
    %538 = vector.broadcast %537 : vector<4x1xf32> to vector<4x32xf32>
    %539 = arith.mulf %529, %538 : vector<4x32xf32>
    %c0_427 = arith.constant 0 : index
    %c0_428 = arith.constant 0 : index
    %540 = vector.load %arg10[%c0_427, %c0_428] : memref<1x32xf32, #tpu.memory_space<vmem>>, vector<1x32xf32>
    %541 = vector.broadcast %540 : vector<1x32xf32> to vector<4x32xf32>
    %542 = arith.mulf %539, %541 : vector<4x32xf32>
    %c0_429 = arith.constant 0 : index
    %c0_430 = arith.constant 0 : index
    %543 = vector.load %arg11[%c0_429, %c0_430] : memref<1x32xf32, #tpu.memory_space<vmem>>, vector<1x32xf32>
    %544 = vector.broadcast %543 : vector<1x32xf32> to vector<4x32xf32>
    %545 = arith.addf %542, %544 : vector<4x32xf32>
    %c0_431 = arith.constant 0 : index
    %c0_432 = arith.constant 0 : index
    %546 = vector.load %arg12[%c0_431, %c0_432] : memref<32x96xf32, #tpu.memory_space<vmem>>, vector<32x96xf32>
    %cst_433 = arith.constant dense<0.000000e+00> : vector<4x96xf32>
    %547 = tpu.matmul %545, %546, %cst_433 {dimension_numbers = #tpu.dot_dimension_numbers<[1], [0], [0], [1], [0, 0, 1, 1], [], []>} : vector<4x32xf32>, vector<32x96xf32>, vector<4x96xf32> -> vector<4x96xf32>
    %c0_434 = arith.constant 0 : index
    %c0_435 = arith.constant 0 : index
    %548 = vector.load %arg13[%c0_434, %c0_435] : memref<1x96xf32, #tpu.memory_space<vmem>>, vector<1x96xf32>
    %549 = vector.broadcast %548 : vector<1x96xf32> to vector<4x96xf32>
    %550 = arith.addf %547, %549 : vector<4x96xf32>
    %cst_436 = arith.constant -5.000000e+00 : f32
    %551 = vector.broadcast %cst_436 : f32 to vector<1x96xf32>
    %c0_437 = arith.constant 0 : index
    %c0_438 = arith.constant 0 : index
    %c0_439 = arith.constant 0 : index
    %552 = vector.load %arg14[%c0_437, %c0_438, %c0_439] : memref<1x5x96xf32, #tpu.memory_space<vmem>>, vector<1x1x96xf32>
    %553 = vector.shape_cast %552 : vector<1x1x96xf32> to vector<1x96xf32>
    %554 = vector.shape_cast %551 : vector<1x96xf32> to vector<1x1x96xf32>
    tpu.vector_store %arg14[%c0_437, %c0_438, %c0_439], %554 {strides = array<i32>} : memref<1x5x96xf32, #tpu.memory_space<vmem>>, vector<1x1x96xf32>,
    %c0_440 = arith.constant 0 : index
    %c1_441 = arith.constant 1 : index
    %c0_442 = arith.constant 0 : index
    %555 = vector.load %arg14[%c0_440, %c1_441, %c0_442] : memref<1x5x96xf32, #tpu.memory_space<vmem>>, vector<1x4x96xf32>
    %556 = vector.shape_cast %555 : vector<1x4x96xf32> to vector<4x96xf32>
    %557 = vector.shape_cast %550 : vector<4x96xf32> to vector<1x4x96xf32>
    tpu.vector_store %arg14[%c0_440, %c1_441, %c0_442], %557 {strides = array<i32>} : memref<1x5x96xf32, #tpu.memory_space<vmem>>, vector<1x4x96xf32>,
    return
  }
  func.func @transform_0(%arg0: i32) -> (i32, i32) {
    %c0_i32 = arith.constant 0 : i32
    %c0_i32_0 = arith.constant 0 : i32
    return %arg0, %c0_i32 : i32, i32
  }
  func.func @transform_1(%arg0: i32) -> (i32, i32, i32) {
    %c0_i32 = arith.constant 0 : i32
    %c0_i32_0 = arith.constant 0 : i32
    %c0_i32_1 = arith.constant 0 : i32
    %c0_i32_2 = arith.constant 0 : i32
    return %c0_i32, %c0_i32_0, %c0_i32_1 : i32, i32, i32
  }
  func.func @transform_2(%arg0: i32) -> (i32, i32, i32, i32) {
    %c0_i32 = arith.constant 0 : i32
    %c0_i32_0 = arith.constant 0 : i32
    %c0_i32_1 = arith.constant 0 : i32
    %c0_i32_2 = arith.constant 0 : i32
    %c0_i32_3 = arith.constant 0 : i32
    return %c0_i32, %c0_i32_0, %c0_i32_1, %c0_i32_2 : i32, i32, i32, i32
  }
  func.func @transform_3(%arg0: i32) -> (i32, i32, i32) {
    %c0_i32 = arith.constant 0 : i32
    %c0_i32_0 = arith.constant 0 : i32
    %c0_i32_1 = arith.constant 0 : i32
    %c0_i32_2 = arith.constant 0 : i32
    return %c0_i32, %c0_i32_0, %c0_i32_1 : i32, i32, i32
  }
  func.func @transform_4(%arg0: i32) -> (i32, i32, i32) {
    %c0_i32 = arith.constant 0 : i32
    %c0_i32_0 = arith.constant 0 : i32
    %c0_i32_1 = arith.constant 0 : i32
    %c0_i32_2 = arith.constant 0 : i32
    return %c0_i32, %c0_i32_0, %c0_i32_1 : i32, i32, i32
  }
  func.func @transform_5(%arg0: i32) -> (i32, i32, i32) {
    %c0_i32 = arith.constant 0 : i32
    %c0_i32_0 = arith.constant 0 : i32
    %c0_i32_1 = arith.constant 0 : i32
    %c0_i32_2 = arith.constant 0 : i32
    return %c0_i32, %c0_i32_0, %c0_i32_1 : i32, i32, i32
  }
  func.func @transform_6(%arg0: i32) -> (i32, i32) {
    %c0_i32 = arith.constant 0 : i32
    %c0_i32_0 = arith.constant 0 : i32
    %c0_i32_1 = arith.constant 0 : i32
    return %c0_i32, %c0_i32_0 : i32, i32
  }
  func.func @transform_7(%arg0: i32) -> (i32, i32, i32) {
    %c0_i32 = arith.constant 0 : i32
    %c0_i32_0 = arith.constant 0 : i32
    %c0_i32_1 = arith.constant 0 : i32
    %c0_i32_2 = arith.constant 0 : i32
    return %c0_i32, %c0_i32_0, %c0_i32_1 : i32, i32, i32
  }
  func.func @transform_8(%arg0: i32) -> (i32, i32) {
    %c0_i32 = arith.constant 0 : i32
    %c0_i32_0 = arith.constant 0 : i32
    %c0_i32_1 = arith.constant 0 : i32
    return %c0_i32, %c0_i32_0 : i32, i32
  }
  func.func @transform_9(%arg0: i32) -> (i32, i32) {
    %c0_i32 = arith.constant 0 : i32
    %c0_i32_0 = arith.constant 0 : i32
    %c0_i32_1 = arith.constant 0 : i32
    return %c0_i32, %c0_i32_0 : i32, i32
  }
  func.func @transform_10(%arg0: i32) -> (i32, i32) {
    %c0_i32 = arith.constant 0 : i32
    %c0_i32_0 = arith.constant 0 : i32
    %c0_i32_1 = arith.constant 0 : i32
    return %c0_i32, %c0_i32_0 : i32, i32
  }
  func.func @transform_11(%arg0: i32) -> (i32, i32) {
    %c0_i32 = arith.constant 0 : i32
    %c0_i32_0 = arith.constant 0 : i32
    %c0_i32_1 = arith.constant 0 : i32
    return %c0_i32, %c0_i32_0 : i32, i32
  }
  func.func @transform_12(%arg0: i32) -> (i32, i32) {
    %c0_i32 = arith.constant 0 : i32
    %c0_i32_0 = arith.constant 0 : i32
    %c0_i32_1 = arith.constant 0 : i32
    return %c0_i32, %c0_i32_0 : i32, i32
  }
  func.func @transform_13(%arg0: i32) -> (i32, i32, i32) {
    %c0_i32 = arith.constant 0 : i32
    %c0_i32_0 = arith.constant 0 : i32
    %c0_i32_1 = arith.constant 0 : i32
    return %arg0, %c0_i32, %c0_i32_0 : i32, i32, i32
  }
}

</mosaic_0001>

<bundles_post_ra>
// kernel: bendr_forward.3
= control target key start
LH: loop header
LB: loop body
LE: loop exit
PB: predicated region body
PF: predicated region fallthrough
CT: control target
= control target key end

     0   :  { %s4393_s0 = inlined_call_operand.vmem [shape: f32[2,5,96], index: 0, kind: input, shape index: {}]   ;;  %s4394_s1 = inlined_call_operand.vmem [shape: f32[8,96], index: 1, kind: input, shape index: {}]   ;;  %s4395_s2 = inlined_call_operand.vmem [shape: f32[8,4,96,96], index: 2, kind: input, shape index: {}]   ;;  %s4396_s3 = inlined_call_operand.vmem [shape: f32[8,4,96], index: 3, kind: input, shape index: {}]   ;;  %s4397_s4 = inlined_call_operand.vmem [shape: f32[8,96,64], index: 4, kind: input, shape index: {}]   ;;  %s4398_s5 = inlined_call_operand.vmem [shape: f32[8,1,64], index: 5, kind: input, shape index: {}]   ;;  %s4399_s6 = inlined_call_operand.vmem [shape: f32[8,64,96], index: 6, kind: input, shape index: {}]   ;;  %s4400_s7 = inlined_call_operand.vmem [shape: f32[8,1,96], index: 7, kind: input, shape index: {}]   ;;  %s4401_s8 = inlined_call_operand.vmem [shape: f32[96,32], index: 8, kind: input, shape index: {}]   ;;  %s4402_s9 = inlined_call_operand.vmem [shape: f32[1,32], index: 9, kind: input, shape index: {}]   ;;  %s4403_s10 = inlined_call_operand.vmem [shape: f32[32,2], index: 10, kind: input, shape index: {}]   ;;  %s4404_s11 = inlined_call_operand.vmem [shape: f32[1,2], index: 11, kind: input, shape index: {}]   ;;  %s4405_s12 = inlined_call_operand.hbm [shape: f32[2,1,32], index: 12, kind: output, shape index: {0}]   ;;  %s4406_s13 = inlined_call_operand.hbm [shape: f32[2,1,2], index: 13, kind: output, shape index: {1}]  }
   0x1   :  { %4422 = sst [smem:[#allocation21_spill]] %s4393_s0 }
   0x2   :  { %4423 = sst [smem:[#allocation22_spill]] %s4396_s3 }
   0x3   :  { %4424 = sst [smem:[#allocation23_spill]] %s4404_s11 }
   0x4   :  { %4425 = sst [smem:[#allocation24_spill]] %s4405_s12 }
   0x5   :  { %4426 = sst [smem:[#allocation25_spill]] %s4406_s13 }
   0x6   :  { %19 = vsyncpa [#allocation4], 0 }
   0x7   :  { %21 = vsyncpa [#allocation4 + $0x1], 0 }
   0x8   :  { %22 = vsyncpa [#allocation6], 0 }
   0x9   :  { %24 = vsyncpa [#allocation6 + $0x1], 0  ;;  %s3812_s25 = smov 0   ;;  %s3814_s26 = smov 0  }
   0xa   :  { %s3816_s27 = smov 0   ;;  %s3818_s28 = smov 0  }
   0xb   :  { %s3820_s29 = smov 0   ;;  %s3822_s30 = smov 0  }
   0xc   :  { %s3824_s14 = smov 0   ;;  %s3826_s15 = smov 0  }
   0xd LB: > { %4427 = sst [smem:[#allocation9_spill]] %s3704_s25  ;;  %s2844_s16 = sadd.s32 4294967295, %s3732_s15   ;;  %s3732_s15 = sphi %s3826_s15, %s30_s15   ;;  %s3728_s14 = sphi %s3824_s14, %s4457_s14   ;;  %s3724_s30 = sphi %s3822_s30, %s4456_s30   ;;  %s3720_s29 = sphi %s3820_s29, %s4455_s29   ;;  %s3716_s28 = sphi %s3818_s28, %s4454_s28   ;;  %s3712_s27 = sphi %s3816_s27, %s4453_s27   ;;  %s3708_s26 = sphi %s3814_s26, %s4452_s26   ;;  %s3704_s25 = sphi %s3812_s25, %s4451_s25  }
   0xe   : > { %4428 = sst [smem:[#allocation10_spill]] %s3708_s26  ;;  %s2845_s17 = sadd.s32 4294967294, %s3732_s15  }
   0xf   : > { %4429 = sst [smem:[#allocation11_spill]] %s3712_s27  ;;  %s39_s18 = sadd.s32 1, %s3724_s30 }
  0x10   : > { %4430 = sst [smem:[#allocation12_spill]] %s3720_s29  ;;  %p40_p0 = scmp.ge.s32.totalorder %s39_s18, 8 }
  0x11   : > { %4431 = sst [smem:[#allocation13_spill]] %s3724_s30  ;;  %s42_s19 = sadd.s32 1, %s3728_s14 }
  0x12   : > { %4432 = sst [smem:[#allocation14_spill]] %s3728_s14  ;;  %p346_p1 = scmp.ne.s32.totalorder %s3712_s27, %s3708_s26 }
  0x13   : > { %4433 = sst [smem:[#allocation15_spill]] %s3732_s15  ;;  %p347_p2 = scmp.eq.s32.totalorder %s2844_s16, 15 }
  0x14   : > { %s4459_s18 = smov (%p40_p0, %s39_s18), 0  ;;  %s4461_s19 = smov (!%p40_p0, %s42_s19), %s3728_s14 }
  0x15   : > { %4434 = sst [smem:[#allocation16_spill]] %s4459_s18  ;;  %p3861_p3 = por %p347_p2, %p346_p1 }
  0x16   : > { %p352_p4 = scmp.ne.s32.totalorder %s3708_s26, %s3704_s25  ;;  %p44_p5 = scmp.ge.s32.totalorder %s4461_s19, 2 }
  0x17   : > { %s4435_s20 = scalar_select %p3861_p3, 1, 0 }
  0x18   : > { %p353_p6 = scmp.eq.s32.totalorder %s2845_s17, 15  ;;  %p2848_p7 = scmp.ge.s32.totalorder %s3732_s15, 1 }
  0x19   : > { %4436 = sst [smem:[#allocation17_spill]] %s4435_s20  ;;  %p462_p8 = scmp.lt.s32.totalorder %s3732_s15, 17 }
  0x1a   : > { %s4463_s19 = smov (%p44_p5, %s4461_s19), 0  ;;  %p3871_p9 = por %p353_p6, %p352_p4 }
  0x1b   : > { %4437 = sst [smem:[#allocation18_spill]] %s4463_s19  ;;  %p463_p10 = pnand %p2848_p7, %p462_p8 }
  0x1c   : > { %s4438_s21 = scalar_select %p3871_p9, 1, 0 }
  0x1d   : > { %s333_s22 = ssub.s32 %s3728_s14, %s4463_s19  ;;  %s336_s23 = sadd.s32 1, %s3712_s27 }
  0x1e   : > { %4439 = sst [smem:[#allocation19_spill]] %s4438_s21  ;;  %p334_p11 = scmp.eq.s32.totalorder %s333_s22, 0 }
  0x1f   : > { %466 = sbr.rel (%p463_p10) target bundleno = 3813 (0xee5), region = 68  ;;  %s3882_s16 = sand.u32 (!%p463_p10), 1, %s3708_s26  }
  0x20   : > { %s3879_s24 = scalar_select %p334_p11, %s3712_s27, %s336_s23  }
  0x21   : > { %p533_p12 = scmp.lt.s32.totalorder (!%p463_p10), %s3720_s29, 1  ;;  %p537_p13 = scmp.lt.s32.totalorder (!%p463_p10), %s3716_s28, 7 }
  0x22   : > { %4440 = sst [smem:[#allocation20_spill]] %s3879_s24  ;;  %s4441_s0 = sld [smem:[#allocation21_spill]] (!%p463_p10) }
  0x23   : > { %s4442_s3 = sld [smem:[#allocation22_spill]] (!%p463_p10)  ;;  %s532_s15 = scalar_lea.vmem (!%p463_p10), [#allocation5], %s3882_s16 }
  0x24   : > { %p2855_p0 = scmp.ne.s32.totalorder (!%p463_p10), %s3716_s28, 0 }
  0x26   : > { %s534_s17 = scalar_select %p533_p12, %s3720_s29, 1 }
  0x27   : > { %s3891_s23 = scalar_select %p537_p13, %s3716_s28, 7 }
  0x28   : > { %s2849_s18 = sshll.u32 %s534_s17, 3  ;;  %565 = sbr.rel (%p2855_p0) target bundleno = 47 (0x2f), region = 72  ;;  %vm567_vm0 = vcmask (!%p2855_p0), 782336  }
  0x29   : > { %s536_s22 = scalar_lea.vmem %s4441_s0, %s2849_s18  ;;  %s3488_s14 = smul.u32 384, %s3891_s23 }
  0x2a   : > { %s2851_s24 = sshll.u32 %s3891_s23, 2  ;;  %s3489_s17 = smul.u32 96, %s3891_s23  ;;  %v566_v0 = vld [vmem:[%s536_s22] sm:$0x1f] (!%p2855_p0) }
  0x2b   : > { %s3898_s21 = scalar_lea.vmem %s4442_s3, %s2851_s24  ;;  %s3904_s30 = scalar_lea.vmem %s4395_s2, %s3488_s14  ;;  %568 = vst.msk [vmem:[#allocation2] sm:$0x1f] (!%p2855_p0), %vm567_vm0, %v566_v0 }
  0x2c   : > { %s553_s0 = scalar_lea.vmem %s4398_s5, %s3891_s23  ;;  %s3913_s20 = scalar_lea.vmem %s4397_s4, %s3489_s17 }
  0x2d   : > { %s2951_s29 = sshll.u32 %s3891_s23, 6  ;;  %s561_s25 = scalar_lea.vmem %s4400_s7, %s3891_s23 }
  0x2e   : > { %s3919_s27 = scalar_lea.vmem %s4399_s6, %s2951_s29  ;;  %s526_s14 = scalar_lea.vmem [#allocation3], %s3882_s16 }
  0x2f PF: > { %v2858_v1 = vld [vmem:[%s3904_s30 + $0x60] sm:$0xff]  ;;  %v2859_v2 = vld [vmem:[%s3904_s30 + $0x68] sm:$0xff]  ;;  %v3734_v4 = vmov 0.0|0.0   ;;  %v2860_v7 = vld [vmem:[%s3904_s30 + $0x70] sm:$0xff]  ;;  %vm3735_vm1 = vmmov 0   ;;  %v3736_v12 = vmov 0.0  }
  0x30   : > { %v574_v3 = vld [vmem:[%s3904_s30] sm:$0xff]  ;;  %3366 = vmatprep.subr.bf16.mxu1 %v3734_v4  ;;  %3348 = vmatprep.subr.bf16.mxu0 %v3734_v4  ;;  %v3367_v5 = vpack.c.bf16 %v2859_v2, %v2858_v1  ;;  %v575_v6 = vld [vmem:[%s3904_s30 + $0x8] sm:$0xff]  ;;  %v2861_v8 = vld [vmem:[%s3904_s30 + $0x78] sm:$0xff]  ;;  %vm590_vm2 = vcmask 785408   ;;  %vm921_vm3 = vcmask 36864   ;;  %vm1030_vm4 = vcmask 1044480  }
  0x31   : > { %v3349_v9 = vpack.c.bf16 %v575_v6, %v574_v3  ;;  %v576_v10 = vld [vmem:[%s3904_s30 + $0x10] sm:$0xff]  ;;  %v577_v11 = vld [vmem:[%s3904_s30 + $0x18] sm:$0xff]  ;;  %3127 = vmatprep.mubr.msk.f32.mxu1 %vm3735_vm1, %v3736_v12  ;;  %3100 = vmatprep.mubr.msk.f32.mxu0 %vm3735_vm1, %v3736_v12  ;;  %v3370_v13 = vpack.c.bf16 %v2861_v8, %v2860_v7  ;;  %v2862_v15 = vld [vmem:[%s3904_s30 + $0x80] sm:$0xff]  ;;  %vm1026_vm5 = vcmask 39936   ;;  %vm2395_vm6 = vcmask 523264   ;;  %p2944_p1 = scmp.ne.s32.totalorder %s3716_s28, 7 }
  0x32   : > { %3368 = vmatpush3.bf16.msra.mxu1 %v3367_v5  ;;  %v3352_v14 = vpack.c.bf16 %v577_v11, %v576_v10  ;;  %v2863_v16 = vld [vmem:[%s3904_s30 + $0x88] sm:$0xff]  ;;  %v578_v17 = vld [vmem:[%s3904_s30 + $0x20] sm:$0xff]  ;;  %v2864_v21 = vld [vmem:[%s3904_s30 + $0x90] sm:$0xff]  ;;  %vm2478_vm7 = vcmask 782336   ;;  %vm3738_vm8 = vmmov (!%p2944_p1), 0   ;;  %vm2571_vm9 = vcmask (!%p2944_p1), 253952  }
  0x33   : > { %3350 = vmatpush3.bf16.msra.mxu0 %v3349_v9  ;;  %3369 = vmatprep.subr.bf16.mxu1 %v3734_v4  ;;  %v579_v18 = vld [vmem:[%s3904_s30 + $0x28] sm:$0xff]  ;;  %v3373_v19 = vpack.c.bf16 %v2863_v16, %v2862_v15  ;;  %v2865_v22 = vld [vmem:[%s3904_s30 + $0x98] sm:$0xff]  ;;  %v580_v23 = vld [vmem:[%s3904_s30 + $0x30] sm:$0xff]  ;;  %vm2578_vm10 = vcmask (!%p2944_p1), 261120   ;;  %vm2652_vm11 = vcmask (!%p2944_p1), 8192  }
  0x34   : > { %3351 = vmatprep.subr.bf16.mxu0 %v3734_v4  ;;  %v3355_v20 = vpack.c.bf16 %v579_v18, %v578_v17  ;;  %v581_v24 = vld [vmem:[%s3904_s30 + $0x38] sm:$0xff]  ;;  %v3376_v25 = vpack.c.bf16 %v2865_v22, %v2864_v21  ;;  %v2866_v27 = vld [vmem:[%s3904_s30 + $0xa0] sm:$0xff]  ;;  %v2867_v28 = vld [vmem:[%s3904_s30 + $0xa8] sm:$0xff] }
  0x35   : > { %v3358_v26 = vpack.c.bf16 %v581_v24, %v580_v23  ;;  %v582_v29 = vld [vmem:[%s3904_s30 + $0x40] sm:$0xff]  ;;  %v583_v30 = vld [vmem:[%s3904_s30 + $0x48] sm:$0xff]  ;;  %v3379_v31 = vpack.c.bf16 %v2867_v28, %v2866_v27  ;;  %v2868_v33 = vld [vmem:[%s3904_s30 + $0xb0] sm:$0xff] }
  0x36   : > { %3371 = vmatpush3.bf16.msra.mxu1 %v3370_v13  ;;  %v3361_v32 = vpack.c.bf16 %v583_v30, %v582_v29  ;;  %v2869_v34 = vld [vmem:[%s3904_s30 + $0xb8] sm:$0xff]  ;;  %v584_v35 = vld [vmem:[%s3904_s30 + $0x50] sm:$0xff]  ;;  %v2872_v39 = vld [vmem:[%s3904_s30 + $0xc0] sm:$0xff] }
  0x37   : > { %3353 = vmatpush3.bf16.msra.mxu0 %v3352_v14  ;;  %3372 = vmatprep.subr.bf16.mxu1 %v3734_v4  ;;  %v585_v36 = vld [vmem:[%s3904_s30 + $0x58] sm:$0xff]  ;;  %v3382_v37 = vpack.c.bf16 %v2869_v34, %v2868_v33  ;;  %v2873_v40 = vld [vmem:[%s3904_s30 + $0xc8] sm:$0xff]  ;;  %v3970_v41 = vld [vmem:[#allocation2] sm:$0x1f] }
  0x38   : > { %3354 = vmatprep.subr.bf16.mxu0 %v3734_v4  ;;  %v3364_v38 = vpack.c.bf16 %v585_v36, %v584_v35  ;;  %v3385_v42 = vpack.c.bf16 %v2873_v40, %v2872_v39  ;;  %v2874_v43 = vld [vmem:[%s3904_s30 + $0xd0] sm:$0xff]  ;;  %v2875_v44 = vld [vmem:[%s3904_s30 + $0xd8] sm:$0xff]  ;;  %v2876_v46 = vld [vmem:[%s3904_s30 + $0xe0] sm:$0xff] }
  0x39   : > { %v3388_v45 = vpack.c.bf16 %v2875_v44, %v2874_v43  ;;  %v2877_v47 = vld [vmem:[%s3904_s30 + $0xe8] sm:$0xff]  ;;  %v2878_v49 = vld [vmem:[%s3904_s30 + $0xf0] sm:$0xff]  ;;  %v2879_v50 = vld [vmem:[%s3904_s30 + $0xf8] sm:$0xff] }
  0x3a   : > { %3374 = vmatpush3.bf16.msra.mxu1 %v3373_v19  ;;  %v3391_v48 = vpack.c.bf16 %v2877_v47, %v2876_v46  ;;  %v3394_v51 = vpack.c.bf16 %v2879_v50, %v2878_v49  ;;  %v2880_v52 = vld [vmem:[%s3904_s30 + $0x100] sm:$0xff]  ;;  %v2881_v53 = vld [vmem:[%s3904_s30 + $0x108] sm:$0xff]  ;;  %v2882_v55 = vld [vmem:[%s3904_s30 + $0x110] sm:$0xff] }
  0x3b   : > { %3356 = vmatpush3.bf16.msra.mxu0 %v3355_v20  ;;  %3375 = vmatprep.subr.bf16.mxu1 %v3734_v4  ;;  %v3397_v54 = vpack.c.bf16 %v2881_v53, %v2880_v52  ;;  %v2883_v56 = vld [vmem:[%s3904_s30 + $0x118] sm:$0xff]  ;;  %v2870_v58 = vld [vmem:[%s3898_s21 + $0x1] ss:$0 sm:$0xff]  ;;  %v2856_v59 = vld [vmem:[%s3898_s21] ss:$0 sm:$0xff] }
  0x3c   : > { %3357 = vmatprep.subr.bf16.mxu0 %v3734_v4  ;;  %v3400_v57 = vpack.c.bf16 %v2883_v56, %v2882_v55  ;;  %v4009_v0 = vld [vmem:[%s4394_s1] ss:$0 sm:$0xff]  ;;  %v4014_v1 = vld [vmem:[%s4394_s1 + $0x5] ss:$0 sm:$0xff]  ;;  %v2889_v7 = vld [vmem:[%s4394_s1 + $0x1] ss:$0 sm:$0xff] }
  0x3d   : > { %v4034_v8 = vld [vmem:[%s4394_s1 + $0x6] ss:$0 sm:$0xff]  ;;  %v4053_v11 = vld [vmem:[%s4394_s1 + $0x7] ss:$0 sm:$0xff]  ;;  %v2884_v40 = vld [vmem:[%s3898_s21 + $0x2] ss:$0 sm:$0xff] }
  0x3e   : > { %3377 = vmatpush3.bf16.msra.mxu1 %v3376_v25 }
  0x3f   : > { %3359 = vmatpush3.bf16.msra.mxu0 %v3358_v26  ;;  %3378 = vmatprep.subr.bf16.mxu1 %v3734_v4 }
  0x40   : > { %3360 = vmatprep.subr.bf16.mxu0 %v3734_v4 }
  0x42   : > { %3380 = vmatpush3.bf16.msra.mxu1 %v3379_v31 }
  0x43   : > { %3362 = vmatpush3.bf16.msra.mxu0 %v3361_v32  ;;  %3381 = vmatprep.subr.bf16.mxu1 %v3734_v4 }
  0x44   : > { %3363 = vmatprep.subr.bf16.mxu0 %v3734_v4 }
  0x46   : > { %3383 = vmatpush3.bf16.msra.mxu1 %v3382_v37 }
  0x47   : > { %3365 = vmatpush3.bf16.msra.mxu0 %v3364_v38  ;;  %3157 = vmatprep.subr.mxu1 %v3736_v12 }
  0x48   : > { %3384 = vmatprep.subr.bf16.mxu0 %v3734_v4 }
  0x49   : > { %3128 = vmatmul.mubr.msk.f32.vlgmr.msra.gmra.mrb[0].mxu1 %vm590_vm2, %v3970_v41 }
  0x4a   : > { %3101 = vmatmul.mubr.msk.f32.vlgmr.msra.gmra.mrb[0].mxu0 %vm590_vm2, %v3970_v41  ;;  %3159 = vmatprep.mubr.msk.f32.mxu1 %vm3735_vm1, %v3736_v12 }
  0x4b   : > { %3386 = vmatpush3.bf16.msra.mxu0 %v3385_v42  ;;  %3154 = vmatprep.mubr.msk.f32.mxu0 %vm3735_vm1, %v3736_v12 }
  0x4c   : > { %3387 = vmatprep.subr.bf16.mxu0 %v3734_v4 }
  0x4f   : > { %3389 = vmatpush3.bf16.msra.mxu0 %v3388_v45 }
  0x50   : > { %3390 = vmatprep.subr.bf16.mxu0 %v3734_v4 }
  0x53   : > { %3392 = vmatpush3.bf16.msra.mxu0 %v3391_v48 }
  0x54   : > { %3393 = vmatprep.subr.bf16.mxu0 %v3734_v4 }
  0x57   : > { %3395 = vmatpush3.bf16.msra.mxu0 %v3394_v51  ;;  %v2896_v51 = vld [vmem:[%s4394_s1 + $0x2] ss:$0 sm:$0xff] }
  0x58   : > { %3396 = vmatprep.subr.bf16.mxu0 %v3734_v4 }
  0x5b   : > { %3398 = vmatpush3.bf16.msra.mxu0 %v3397_v54 }
  0x5c   : > { %3399 = vmatprep.subr.bf16.mxu0 %v3734_v4 }
  0x5f   : > { %3401 = vmatpush3.bf16.msra.mxu0 %v3400_v57 }
  0x60   : > { %3207 = vmatprep.subr.mxu0 %v3736_v12 }
  0x62   : > { %3155 = vmatmul.mubr.msk.f32.vlgmr.msra.gmra.mrb[2].mxu0 %vm590_vm2, %v3970_v41 }
  0x63   : > { %3209 = vmatprep.mubr.msk.f32.mxu0 %vm3735_vm1, %v3736_v12 }
 0x11c   : > { %v747_v60 = vpop.f32.mrb[0].mxu1 }
 0x11d   : > { %v4004_v61 = vadd.f32 %v2870_v58, %v747_v60  ;;  %v660_v62 = vpop.f32.mrb[0].mxu0  ;;  %v3129_v63 = vpop.f32.mrb[1].mxu1 }
 0x11e   : > { %v4016_v2 = vadd.f32 %v2856_v59, %v660_v62  ;;  %v3102_v3 = vpop.f32.mrb[1].mxu0 }
 0x11f   : > { %3158 = vmatpush3.xpose.msk.msra.mxu1 %vm590_vm2, %v4004_v61  ;;  %3208 = vmatpush3.xpose.msk.msra.mxu0 %vm590_vm2, %v4004_v61 }
 0x120   : > { %v843_v5 = vmul.f32 %v4009_v0, %v4016_v2  ;;  %3162 = vmatprep.subr.mxu1 %v3736_v12  ;;  %v1692_v6 = vmul.f32 %v4014_v1, %v4016_v2  ;;  %3217 = vmatprep.subr.mxu0 %v3736_v12  ;;  %v939_v9 = vmul.f32 %v2889_v7, %v4016_v2 }
 0x121   : > { %v1861_v10 = vmul.f32 %v4034_v8, %v4016_v2  ;;  %v2030_v13 = vmul.f32 %v4053_v11, %v4016_v2  ;;  %v1185_v52 = vmul.f32 %v2896_v51, %v4016_v2 }
 0x122   : > { %3160 = vmatmul.mubr.msk.f32.vlgmr.msra.gmra.mrb[2].mxu1 %vm590_vm2, %v843_v5  ;;  %3210 = vmatmul.mubr.msk.f32.vlgmr.msra.gmra.mrb[4].mxu0 %vm590_vm2, %v1692_v6  ;;  %v2901_v6 = vld [vmem:[%s4394_s1 + $0x3] ss:$0 sm:$0xff] }
 0x123   : > { %3163 = vmatpush3.xpose.msk.msra.mxu1 %vm590_vm2, %v4004_v61  ;;  %3218 = vmatpush3.xpose.msk.msra.mxu0 %vm590_vm2, %v4004_v61 }
 0x124   : > { %3164 = vmatprep.mubr.msk.f32.mxu1 %vm3735_vm1, %v3736_v12  ;;  %3219 = vmatprep.mubr.msk.f32.mxu0 %vm3735_vm1, %v3736_v12 }
 0x125   : > { %3227 = vmatprep.subr.mxu0 %v3736_v12  ;;  %3167 = vmatprep.subr.mxu1 %v3736_v12 }
 0x126   : > { %3165 = vmatmul.mubr.msk.f32.vlgmr.msra.gmra.mrb[4].mxu1 %vm590_vm2, %v939_v9  ;;  %3220 = vmatmul.mubr.msk.f32.vlgmr.msra.gmra.mrb[6].mxu0 %vm590_vm2, %v1861_v10 }
 0x127   : > { %3228 = vmatpush3.xpose.msk.msra.mxu0 %vm590_vm2, %v4004_v61  ;;  %3229 = vmatprep.mubr.msk.f32.mxu0 %vm3735_vm1, %v3736_v12 }
 0x128   : > { %3169 = vmatprep.mubr.msk.f32.mxu1 %vm3735_vm1, %v3736_v12  ;;  %3402 = vmatprep.subr.bf16.mxu0 %v3734_v4 }
 0x12a   : > { %3230 = vmatmul.mubr.msk.f32.vlgmr.msra.gmra.mrb[8].mxu0 %vm590_vm2, %v2030_v13 }
 0x12b   : > { %3261 = vmatprep.mubr.msk.f32.mxu0 %vm3735_vm1, %v3736_v12 }
 0x135   : > { %v834_v14 = vpop.f32.mrb[2].mxu0 }
 0x136   : > { %v3156_v15 = vpop.f32.mrb[3].mxu0  ;;  %v4081_v42 = vadd.f32 %v2884_v40, %v834_v14 }
 0x138   : > { %v1025_v43 = vmul.f32 %v2889_v7, %v4081_v42  ;;  %v933_v47 = vmul.f32 %v4009_v0, %v4081_v42  ;;  %v1271_v53 = vmul.f32 %v2896_v51, %v4081_v42  ;;  %v1354_v7 = vmul.f32 %v2901_v6, %v4016_v2 }
 0x139   : > { %v1440_v9 = vmul.f32 %v2901_v6, %v4081_v42  ;;  %v2932_v6 = vld [vmem:[%s3904_s30 + $0x150] sm:$0xff] }
 0x13a   : > { %3168 = vmatpush3.msk.msra.mxu1 %vm1030_vm4, %v1025_v43 }
 0x13b   : > { %3172 = vmatprep.subr.mxu1 %v3736_v12 }
 0x1f5   : > { %v916_v16 = vpop.f32.mrb[2].mxu1  ;;  %v4070_v17 = vpop.f32.mrb[4].mxu0 }
 0x1f6   : > { %v3161_v18 = vpop.f32.mrb[3].mxu1  ;;  %v3211_v19 = vpop.f32.mrb[5].mxu0  ;;  %v920_v25 = vmul.f32 0.28867513, %v916_v16 }
 0x1f8   : > { %v922_v29 = vsel %vm921_vm3, %v920_v25, -inf }
 0x1f9   : > { %v1009_v20 = vpop.f32.mrb[4].mxu1  ;;  %v4072_v21 = vpop.f32.mrb[6].mxu0 }
 0x1fa   : > { %v1013_v22 = vmul.f32 0.28867513, %v1009_v20  ;;  %v3166_v23 = vpop.f32.mrb[5].mxu1  ;;  %v3221_v24 = vpop.f32.mrb[7].mxu0 }
 0x1fc   : > { %v1014_v26 = vsel %vm921_vm3, %v1013_v22, -inf }
 0x1fd   : > { %1015 = vmax.xlane.f32.xlu0 %v1014_v26  ;;  %v4075_v27 = vpop.f32.mrb[8].mxu0 }
 0x1fe   : > { %v3231_v28 = vpop.f32.mrb[9].mxu0  ;;  %v2104_v24 = vmul.f32 0.28867513, %v4075_v27  ;;  %v2906_v27 = vld [vmem:[%s4394_s1 + $0x4] ss:$0 sm:$0xff] }
 0x200   : > { %v2105_v26 = vsel %vm921_vm3, %v2104_v24, -inf }
 0x201   : > { %923 = vmax.xlane.f32.xlu0 %v922_v29 }
 0x28a   : > { %v1016_v30 = vpop.xlane.xlu0 %1015 }
 0x28b   : > { %v1017_v31 = vsub.f32 %v1013_v22, %v1016_v30  ;;  %v1766_v22 = vmul.f32 0.28867513, %v4070_v17 }
 0x28d   : > { %v1018_v32 = vmul.f32 1.442695, %v1017_v31 }
 0x28e   : > { %v924_v33 = vpop.xlane.xlu0 %923 }
 0x28f   : > { %3572 = vpow2.f32 %v1018_v32  ;;  %v925_v34 = vsub.f32 %v920_v25, %v924_v33  ;;  %v1767_v25 = vsel %vm921_vm3, %v1766_v22, -inf }
 0x291   : > { %v926_v35 = vmul.f32 1.442695, %v925_v34 }
 0x293   : > { %3574 = vpow2.f32 %v926_v35 }
 0x299   : > { %v3573_v36 = vpop.eup %3572 }
 0x29a   : > { %v1020_v37 = vsel %vm921_vm3, %v3573_v36, 0.0 }
 0x29b   : > { %1021 = vadd.xlane.f32.xlu1 %v1020_v37  ;;  %v1609_v37 = vmul.f32 %v2906_v27, %v4081_v42 }
 0x29d   : > { %v3575_v38 = vpop.eup %3574 }
 0x29e   : > { %v928_v39 = vsel %vm921_vm3, %v3575_v38, 0.0 }
 0x29f   : > { %929 = vadd.xlane.f32.xlu1 %v928_v39 }
 0x328   : > { %v1022_v44 = vpop.xlane.xlu1 %1021 }
 0x329   : > { %3576 = vrcp.f32 %v1022_v44 }
 0x32c   : > { %v930_v45 = vpop.xlane.xlu1 %929 }
 0x32d   : > { %3578 = vrcp.f32 %v930_v45  ;;  %v1935_v45 = vmul.f32 0.28867513, %v4072_v21 }
 0x333   : > { %v3577_v46 = vpop.eup %3576 }
 0x334   : > { %v1024_v48 = vmul.f32 %v3577_v46, %v3573_v36  ;;  %v1523_v36 = vmul.f32 %v2906_v27, %v4016_v2 }
 0x336   : > { %3170 = vmatmul.mubr.msk.f32.vlgmr.msra.gmra.mrb[6].mxu1 %vm1026_vm5, %v1024_v48 }
 0x337   : > { %3173 = vmatpush3.msk.msra.mxu1 %vm1030_vm4, %v933_v47  ;;  %3174 = vmatprep.mubr.msk.f32.mxu1 %vm3735_vm1, %v3736_v12  ;;  %v3579_v49 = vpop.eup %3578  ;;  %v1936_v47 = vsel %vm921_vm3, %v1935_v45, -inf }
 0x338   : > { %3177 = vmatprep.subr.mxu1 %v3736_v12  ;;  %v932_v50 = vmul.f32 %v3579_v49, %v3575_v38 }
 0x33e   : > { %3175 = vmatmul.mubr.msk.f32.vlgmr.msra.gmra.mrb[6].mxu1 %vm1026_vm5, %v932_v50 }
 0x33f   : > { %3178 = vmatpush3.xpose.msk.msra.mxu1 %vm590_vm2, %v4004_v61  ;;  %3179 = vmatprep.mubr.msk.f32.mxu1 %vm3735_vm1, %v3736_v12 }
 0x340   : > { %3182 = vmatprep.subr.mxu1 %v3736_v12 }
 0x342   : > { %3180 = vmatmul.mubr.msk.f32.vlgmr.msra.gmra.mrb[8].mxu1 %vm590_vm2, %v1185_v52 }
 0x343   : > { %3183 = vmatpush3.msk.msra.mxu1 %vm1030_vm4, %v1271_v53  ;;  %3184 = vmatprep.mubr.msk.f32.mxu1 %vm3735_vm1, %v3736_v12 }
 0x344   : > { %3187 = vmatprep.subr.mxu1 %v3736_v12 }
 0x415   : > { %v1255_v54 = vpop.f32.mrb[8].mxu1 }
 0x416   : > { %v1259_v55 = vmul.f32 0.28867513, %v1255_v54  ;;  %v3181_v56 = vpop.f32.mrb[9].mxu1 }
 0x418   : > { %v1260_v57 = vsel %vm921_vm3, %v1259_v55, -inf }
 0x419   : > { %1261 = vmax.xlane.f32.xlu0 %v1260_v57  ;;  %v2926_v57 = vld [vmem:[%s3904_s30 + $0x120] sm:$0xff] }
 0x4a6   : > { %v1262_v58 = vpop.xlane.xlu0 %1261 }
 0x4a7   : > { %v1263_v59 = vsub.f32 %v1259_v55, %v1262_v58  ;;  %v2927_v58 = vld [vmem:[%s3904_s30 + $0x128] sm:$0xff] }
 0x4a9   : > { %v1264_v60 = vmul.f32 1.442695, %v1263_v59  ;;  %v2928_v59 = vld [vmem:[%s3904_s30 + $0x130] sm:$0xff] }
 0x4ab   : > { %3580 = vpow2.f32 %v1264_v60  ;;  %v3403_v60 = vpack.c.bf16 %v2927_v58, %v2926_v57  ;;  %v2390_v57 = vld [vmem:[%s3919_s27 + $0x18] sm:$0xff] }
 0x4ad   : > { %3404 = vmatpush3.bf16.msra.mxu0 %v3403_v60  ;;  %v2392_v60 = vld [vmem:[%s3919_s27 + $0x28] sm:$0xff] }
 0x4ae   : > { %3405 = vmatprep.subr.bf16.mxu0 %v3734_v4 }
 0x4b5   : > { %v3581_v62 = vpop.eup %3580 }
 0x4b6   : > { %v1266_v63 = vsel %vm921_vm3, %v3581_v62, 0.0 }
 0x4b7   : > { %1267 = vadd.xlane.f32.xlu1 %v1266_v63 }
 0x544   : > { %v1268_v0 = vpop.xlane.xlu1 %1267 }
 0x545   : > { %3582 = vrcp.f32 %v1268_v0  ;;  %v2930_v0 = vld [vmem:[%s3904_s30 + $0x140] sm:$0xff] }
 0x54f   : > { %v3583_v3 = vpop.eup %3582 }
 0x550   : > { %v1270_v5 = vmul.f32 %v3583_v3, %v3581_v62  ;;  %v2929_v62 = vld [vmem:[%s3904_s30 + $0x138] sm:$0xff]  ;;  %v2931_v3 = vld [vmem:[%s3904_s30 + $0x148] sm:$0xff] }
 0x551   : > { %v3406_v63 = vpack.c.bf16 %v2929_v62, %v2928_v59  ;;  %v2391_v59 = vld [vmem:[%s3919_s27 + $0x20] sm:$0xff]  ;;  %v2393_v62 = vld [vmem:[%s3919_s27 + $0x30] sm:$0xff] }
 0x552   : > { %3185 = vmatmul.mubr.msk.f32.vlgmr.msra.gmra.mrb[6].mxu1 %vm1026_vm5, %v1270_v5  ;;  %v3409_v5 = vpack.c.bf16 %v2931_v3, %v2930_v0  ;;  %v2940_v3 = vld [vmem:[%s553_s0] ss:$0 sm:$0xff] }
 0x553   : > { %3188 = vmatpush3.xpose.msk.msra.mxu1 %vm590_vm2, %v4004_v61  ;;  %3189 = vmatprep.mubr.msk.f32.mxu1 %vm3735_vm1, %v3736_v12 }
 0x554   : > { %3192 = vmatprep.subr.mxu1 %v3736_v12  ;;  %3407 = vmatpush3.bf16.msra.mxu0 %v3406_v63  ;;  %v2394_v63 = vld [vmem:[%s3919_s27 + $0x38] sm:$0xff] }
 0x555   : > { %3408 = vmatprep.subr.bf16.mxu0 %v3734_v4  ;;  %v3448_v0 = vpack.c.bf16 %v2394_v63, %v2393_v62 }
 0x556   : > { %3190 = vmatmul.mubr.msk.f32.vlgmr.msra.gmra.mrb[10].mxu1 %vm590_vm2, %v1354_v7  ;;  %v2933_v7 = vld [vmem:[%s3904_s30 + $0x158] sm:$0xff] }
 0x557   : > { %3193 = vmatpush3.msk.msra.mxu1 %vm1030_vm4, %v1440_v9  ;;  %3194 = vmatprep.mubr.msk.f32.mxu1 %vm3735_vm1, %v3736_v12  ;;  %v3412_v9 = vpack.c.bf16 %v2933_v7, %v2932_v6 }
 0x558   : > { %3197 = vmatprep.subr.mxu1 %v3736_v12  ;;  %3410 = vmatpush3.bf16.msra.mxu0 %v3409_v5 }
 0x559   : > { %3411 = vmatprep.subr.bf16.mxu0 %v3734_v4 }
 0x55c   : > { %3413 = vmatpush3.bf16.msra.mxu0 %v3412_v9 }
 0x55d   : > { %3414 = vmatprep.subr.bf16.mxu0 %v3734_v4 }
 0x629   : > { %v1424_v10 = vpop.f32.mrb[10].mxu1 }
 0x62a   : > { %v1428_v13 = vmul.f32 0.28867513, %v1424_v10  ;;  %v3191_v14 = vpop.f32.mrb[11].mxu1  ;;  %v2934_v10 = vld [vmem:[%s3904_s30 + $0x160] sm:$0xff] }
 0x62c   : > { %v1429_v15 = vsel %vm921_vm3, %v1428_v13, -inf }
 0x62d   : > { %1430 = vmax.xlane.f32.xlu0 %v1429_v15  ;;  %v2936_v15 = vld [vmem:[%s3904_s30 + $0x170] sm:$0xff] }
 0x6ba   : > { %v1431_v16 = vpop.xlane.xlu0 %1430 }
 0x6bb   : > { %v1432_v18 = vsub.f32 %v1428_v13, %v1431_v16  ;;  %v2935_v13 = vld [vmem:[%s3904_s30 + $0x168] sm:$0xff]  ;;  %v2937_v16 = vld [vmem:[%s3904_s30 + $0x178] sm:$0xff]  ;;  %s4443_s30 = sld [smem:[#allocation23_spill]] (!%p2944_p1) }
 0x6bc   : > { %v3415_v14 = vpack.c.bf16 %v2935_v13, %v2934_v10 }
 0x6bd   : > { %v1433_v19 = vmul.f32 1.442695, %v1432_v18  ;;  %v3418_v18 = vpack.c.bf16 %v2937_v16, %v2936_v15 }
 0x6be   : > { %3416 = vmatpush3.bf16.msra.mxu0 %v3415_v14 }
 0x6bf   : > { %3584 = vpow2.f32 %v1433_v19  ;;  %3417 = vmatprep.subr.bf16.mxu0 %v3734_v4 }
 0x6c2   : > { %3419 = vmatpush3.bf16.msra.mxu0 %v3418_v18 }
 0x6c3   : > { %3438 = vmatprep.subr.bf16.mxu0 %v3734_v4 }
 0x6c9   : > { %v3585_v20 = vpop.eup %3584 }
 0x6ca   : > { %v1435_v23 = vsel %vm921_vm3, %v3585_v20, 0.0 }
 0x6cb   : > { %1436 = vadd.xlane.f32.xlu1 %v1435_v23 }
 0x6cf   : > { %1768 = vmax.xlane.f32.xlu1 %v1767_v25  ;;  %v1778_v25 = vmul.f32 %v4014_v1, %v4081_v42 }
 0x6d3   : > { %2106 = vmax.xlane.f32.xlu1 %v2105_v26 }
 0x758   : > { %v1437_v28 = vpop.xlane.xlu1 %1436 }
 0x759   : > { %3586 = vrcp.f32 %v1437_v28 }
 0x75c   : > { %v1769_v29 = vpop.xlane.xlu1 %1768 }
 0x75d   : > { %v1770_v30 = vsub.f32 %v1766_v22, %v1769_v29 }
 0x75f   : > { %v1771_v31 = vmul.f32 1.442695, %v1770_v30  ;;  %v1947_v30 = vmul.f32 %v4034_v8, %v4081_v42 }
 0x760   : > { %v2107_v32 = vpop.xlane.xlu1 %2106 }
 0x761   : > { %3588 = vpow2.f32 %v1771_v31  ;;  %v2108_v33 = vsub.f32 %v2104_v24, %v2107_v32  ;;  %v2116_v32 = vmul.f32 %v4053_v11, %v4081_v42  ;;  %v2286_v11 = vld [vmem:[%s3913_s20] sm:$0xff]  ;;  %v2287_v42 = vld [vmem:[%s3913_s20 + $0x8] sm:$0xff] }
 0x763   : > { %v3587_v17 = vpop.eup %3586  ;;  %v2109_v34 = vmul.f32 1.442695, %v2108_v33 }
 0x764   : > { %v1439_v35 = vmul.f32 %v3587_v17, %v3585_v20  ;;  %v2288_v17 = vld [vmem:[%s3913_s20 + $0x10] sm:$0xff] }
 0x765   : > { %3590 = vpow2.f32 %v2109_v34  ;;  %v3421_v34 = vpack.c.bf16 %v2287_v42, %v2286_v11  ;;  %v2489_v11 = vld [vmem:[%s4401_s8 + $0x28] sm:$0xff] (!%p2944_p1)  ;;  %v2573_v42 = vld [vmem:[%s4403_s10] sm:$0xff] (!%p2944_p1) }
 0x766   : > { %3195 = vmatmul.mubr.msk.f32.vlgmr.msra.gmra.mrb[6].mxu1 %vm1026_vm5, %v1439_v35  ;;  %v2289_v35 = vld [vmem:[%s3913_s20 + $0x18] sm:$0xff] }
 0x767   : > { %3198 = vmatpush3.xpose.msk.msra.mxu1 %vm590_vm2, %v4004_v61  ;;  %3199 = vmatprep.mubr.msk.f32.mxu1 %vm3735_vm1, %v3736_v12  ;;  %v3424_v27 = vpack.c.bf16 %v2289_v35, %v2288_v17  ;;  %v2574_v17 = vld [vmem:[%s4403_s10 + $0x8] sm:$0xff] (!%p2944_p1) }
 0x768   : > { %3202 = vmatprep.subr.mxu1 %v3736_v12 }
 0x76a   : > { %3200 = vmatmul.mubr.msk.f32.vlgmr.msra.gmra.mrb[12].mxu1 %vm590_vm2, %v1523_v36  ;;  %v2290_v36 = vld [vmem:[%s3913_s20 + $0x20] sm:$0xff] }
 0x76b   : > { %v4145_v38 = vpop.eup %3588  ;;  %3203 = vmatpush3.msk.msra.mxu1 %vm1030_vm4, %v1609_v37  ;;  %3204 = vmatprep.mubr.msk.f32.mxu1 %vm3735_vm1, %v3736_v12  ;;  %v2291_v37 = vld [vmem:[%s3913_s20 + $0x28] sm:$0xff] }
 0x76c   : > { %v1773_v61 = vsel %vm921_vm3, %v4145_v38, 0.0  ;;  %3212 = vmatprep.subr.mxu1 %v3736_v12 }
 0x76d   : > { %1774 = vadd.xlane.f32.xlu1 %v1773_v61  ;;  %v2292_v61 = vld [vmem:[%s3913_s20 + $0x30] sm:$0xff] }
 0x76f   : > { %v4153_v39 = vpop.eup %3590 }
 0x770   : > { %v2111_v2 = vsel %vm921_vm3, %v4153_v39, 0.0 }
 0x771   : > { %2112 = vadd.xlane.f32.xlu1 %v2111_v2 }
 0x7fa   : > { %v1775_v20 = vpop.xlane.xlu1 %1774 }
 0x7fe   : > { %v2113_v29 = vpop.xlane.xlu1 %2112 }
 0x83d   : > { %v1593_v40 = vpop.f32.mrb[12].mxu1 }
 0x83e   : > { %v1597_v43 = vmul.f32 0.28867513, %v1593_v40  ;;  %v3201_v44 = vpop.f32.mrb[13].mxu1  ;;  %v2294_v40 = vld [vmem:[%s3913_s20 + $0x40] sm:$0xff] }
 0x840   : > { %v1598_v46 = vsel %vm921_vm3, %v1597_v43, -inf }
 0x841   : > { %1599 = vmax.xlane.f32.xlu0 %v1598_v46 }
 0x845   : > { %1937 = vmax.xlane.f32.xlu0 %v1936_v47  ;;  %v2296_v47 = vld [vmem:[%s3913_s20 + $0x50] sm:$0xff] }
 0x8ce   : > { %v1600_v48 = vpop.xlane.xlu0 %1599 }
 0x8cf   : > { %v1601_v49 = vsub.f32 %v1597_v43, %v1600_v48  ;;  %v2295_v43 = vld [vmem:[%s3913_s20 + $0x48] sm:$0xff]  ;;  %v2297_v48 = vld [vmem:[%s3913_s20 + $0x58] sm:$0xff] }
 0x8d0   : > { %v3433_v44 = vpack.c.bf16 %v2295_v43, %v2294_v40  ;;  %v2495_v40 = vld [vmem:[%s4401_s8 + $0x58] sm:$0xff] (!%p2944_p1) }
 0x8d1   : > { %v1602_v50 = vmul.f32 1.442695, %v1601_v49  ;;  %v3436_v49 = vpack.c.bf16 %v2297_v48, %v2296_v47  ;;  %v2496_v48 = vld [vmem:[%s4402_s9] sm:$0x1] (!%p2944_p1) }
 0x8d2   : > { %v1938_v51 = vpop.xlane.xlu0 %1937 }
 0x8d3   : > { %3592 = vpow2.f32 %v1602_v50  ;;  %v1939_v52 = vsub.f32 %v1935_v45, %v1938_v51  ;;  %v2939_v50 = vld [vmem:[%s3898_s21 + $0x3] ss:$0 sm:$0xff] }
 0x8d5   : > { %v1940_v53 = vmul.f32 1.442695, %v1939_v52 }
 0x8d7   : > { %3594 = vpow2.f32 %v1940_v53 }
 0x8dd   : > { %v3593_v21 = vpop.eup %3592 }
 0x8de   : > { %v1604_v54 = vsel %vm921_vm3, %v3593_v21, 0.0 }
 0x8df   : > { %1605 = vadd.xlane.f32.xlu0 %v1604_v54  ;;  %v2387_v54 = vld [vmem:[%s3919_s27] sm:$0xff] }
 0x8e1   : > { %v3595_v55 = vpop.eup %3594 }
 0x8e2   : > { %v1942_v56 = vsel %vm921_vm3, %v3595_v55, 0.0 }
 0x8e3   : > { %1943 = vadd.xlane.f32.xlu0 %v1942_v56 }
 0x96c   : > { %v1606_v19 = vpop.xlane.xlu0 %1605 }
 0x96d   : > { %3596 = vrcp.f32 %v1606_v19 }
 0x96e   : > { %3598 = vrcp.f32 %v1775_v20 }
 0x970   : > { %v1944_v24 = vpop.xlane.xlu0 %1943 }
 0x971   : > { %3600 = vrcp.f32 %v1944_v24 }
 0x972   : > { %3602 = vrcp.f32 %v2113_v29  ;;  %v2486_v29 = vld [vmem:[%s4401_s8 + $0x10] sm:$0xff] (!%p2944_p1) }
 0x977   : > { %v3597_v22 = vpop.eup %3596 }
 0x978   : > { %v1608_v23 = vmul.f32 %v3597_v22, %v3593_v21  ;;  %v3599_v26 = vpop.eup %3598  ;;  %v2943_v22 = vld [vmem:[%s561_s25] ss:$0 sm:$0xff] }
 0x979   : > { %v1777_v28 = vmul.f32 %v3599_v26, %v4145_v38  ;;  %v3427_v38 = vpack.c.bf16 %v2291_v37, %v2290_v36  ;;  %v2484_v26 = vld [vmem:[%s4401_s8] sm:$0xff] (!%p2944_p1)  ;;  %v2491_v36 = vld [vmem:[%s4401_s8 + $0x38] sm:$0xff] (!%p2944_p1) }
 0x97a   : > { %3205 = vmatmul.mubr.msk.f32.vlgmr.msra.gmra.mrb[6].mxu1 %vm1026_vm5, %v1608_v23 }
 0x97b   : > { %3213 = vmatpush3.msk.msra.mxu1 %vm1030_vm4, %v1778_v25  ;;  %3214 = vmatprep.mubr.msk.f32.mxu1 %vm3735_vm1, %v3736_v12  ;;  %v3601_v1 = vpop.eup %3600 }
 0x97c   : > { %3222 = vmatprep.subr.mxu1 %v3736_v12  ;;  %v1946_v31 = vmul.f32 %v3601_v1, %v3595_v55  ;;  %v3603_v8 = vpop.eup %3602  ;;  %v2388_v55 = vld [vmem:[%s3919_s27 + $0x8] sm:$0xff] }
 0x97d   : > { %v2115_v33 = vmul.f32 %v3603_v8, %v4153_v39  ;;  %v2293_v39 = vld [vmem:[%s3913_s20 + $0x38] sm:$0xff]  ;;  %v3439_v56 = vpack.c.bf16 %v2388_v55, %v2387_v54 }
 0x97e   : > { %v3430_v2 = vpack.c.bf16 %v2293_v39, %v2292_v61  ;;  %v2493_v61 = vld [vmem:[%s4401_s8 + $0x48] sm:$0xff] (!%p2944_p1) }
 0x982   : > { %3215 = vmatmul.mubr.msk.f32.vlgmr.msra.gmra.mrb[6].mxu1 %vm1026_vm5, %v1777_v28  ;;  %v2485_v28 = vld [vmem:[%s4401_s8 + $0x8] sm:$0xff] (!%p2944_p1) }
 0x983   : > { %3223 = vmatpush3.msk.msra.mxu1 %vm1030_vm4, %v1947_v30  ;;  %3224 = vmatprep.mubr.msk.f32.mxu1 %vm3735_vm1, %v3736_v12  ;;  %v3737_v30 = vmov (!%p2944_p1), 0.0|0.0   ;;  %v3451_v1 = vpack.c.bf16 (!%p2944_p1), %v2485_v28, %v2484_v26 }
 0x984   : > { %3232 = vmatprep.subr.mxu1 %v3736_v12 }
 0x98a   : > { %3225 = vmatmul.mubr.msk.f32.vlgmr.msra.gmra.mrb[6].mxu1 %vm1026_vm5, %v1946_v31  ;;  %v2487_v31 = vld [vmem:[%s4401_s8 + $0x18] sm:$0xff] (!%p2944_p1) }
 0x98b   : > { %3233 = vmatpush3.msk.msra.mxu1 %vm1030_vm4, %v2116_v32  ;;  %3234 = vmatprep.mubr.msk.f32.mxu1 %vm3735_vm1, %v3736_v12  ;;  %v3739_v32 = vmov (!%p2944_p1), 0.0   ;;  %v3454_v8 = vpack.c.bf16 (!%p2944_p1), %v2487_v31, %v2486_v29 }
 0x98c   : > { %3420 = vmatprep.subr.bf16.mxu1 %v3734_v4 }
 0x992   : > { %3235 = vmatmul.mubr.msk.f32.vlgmr.msra.gmra.mrb[6].mxu1 %vm1026_vm5, %v2115_v33  ;;  %v2488_v33 = vld [vmem:[%s4401_s8 + $0x20] sm:$0xff] (!%p2944_p1) }
 0x993   : > { %3288 = vmatprep.mubr.msk.f32.mxu1 %vm3735_vm1, %v3736_v12  ;;  %3422 = vmatpush3.bf16.msra.mxu1 %v3421_v34  ;;  %v3469_v34 = vpack.c.bf16 (!%p2944_p1), %v2574_v17, %v2573_v42  ;;  %v3457_v35 = vpack.c.bf16 (!%p2944_p1), %v2489_v11, %v2488_v33 }
 0x994   : > { %3423 = vmatprep.subr.bf16.mxu1 %v3734_v4 }
 0x997   : > { %3425 = vmatpush3.bf16.msra.mxu1 %v3424_v27  ;;  %v2490_v27 = vld [vmem:[%s4401_s8 + $0x30] sm:$0xff] (!%p2944_p1) }
 0x998   : > { %3426 = vmatprep.subr.bf16.mxu1 %v3734_v4  ;;  %v3460_v37 = vpack.c.bf16 (!%p2944_p1), %v2491_v36, %v2490_v27 }
 0x99b   : > { %3428 = vmatpush3.bf16.msra.mxu1 %v3427_v38  ;;  %v2492_v38 = vld [vmem:[%s4401_s8 + $0x40] sm:$0xff] (!%p2944_p1) }
 0x99c   : > { %3429 = vmatprep.subr.bf16.mxu1 %v3734_v4  ;;  %v3463_v39 = vpack.c.bf16 (!%p2944_p1), %v2493_v61, %v2492_v38 }
 0x99f   : > { %3431 = vmatpush3.bf16.msra.mxu1 %v3430_v2  ;;  %v2494_v2 = vld [vmem:[%s4401_s8 + $0x50] sm:$0xff] (!%p2944_p1) }
 0x9a0   : > { %3432 = vmatprep.subr.bf16.mxu1 %v3734_v4  ;;  %v3466_v43 = vpack.c.bf16 (!%p2944_p1), %v2495_v40, %v2494_v2 }
 0x9a3   : > { %3434 = vmatpush3.bf16.msra.mxu1 %v3433_v44 }
 0x9a4   : > { %3435 = vmatprep.subr.bf16.mxu1 %v3734_v4 }
 0x9a7   : > { %3437 = vmatpush3.bf16.msra.mxu1 %v3436_v49 }
 0x9a8   : > { %3468 = vmatprep.subr.bf16.mxu1 (!%p2944_p1), %v3737_v30 }
 0xa65   : > { %v2189_v45 = vpop.f32.mrb[6].mxu1 }
 0xa66   : > { %v3236_v46 = vpop.f32.mrb[7].mxu1  ;;  %3262 = vmatmul.mubr.msk.f32.vlgmr.msra.gmra.mrb[10].mxu0 %vm590_vm2, %v2189_v45  ;;  %v2575_v45 = vld [vmem:[%s4403_s10 + $0x10] sm:$0xff] (!%p2944_p1) }
 0xa67   : > { %3307 = vmatprep.mubr.msk.f32.mxu0 %vm3735_vm1, %v3736_v12  ;;  %v2389_v12 = vld [vmem:[%s3919_s27 + $0x10] sm:$0xff]  ;;  %3440 = vmatpush3.bf16.msra.mxu0 %v3439_v56  ;;  %v2576_v46 = vld [vmem:[%s4403_s10 + $0x18] sm:$0xff] (!%p2944_p1) }
 0xa68   : > { %v3442_v58 = vpack.c.bf16 %v2390_v57, %v2389_v12  ;;  %3441 = vmatprep.subr.bf16.mxu0 %v3734_v4  ;;  %v3472_v47 = vpack.c.bf16 (!%p2944_p1), %v2576_v46, %v2575_v45 }
 0xa6b   : > { %3443 = vmatpush3.bf16.msra.mxu0 %v3442_v58 }
 0xa6c   : > { %3444 = vmatprep.subr.bf16.mxu0 %v3734_v4 }
 0xb39   : > { %v2276_v51 = vpop.f32.mrb[10].mxu0 }
 0xb3a   : > { %v2280_v52 = vadd.f32 %v2276_v51, %v3970_v41  ;;  %v3263_v53 = vpop.f32.mrb[11].mxu0  ;;  %v3445_v41 = vpack.c.bf16 %v2392_v60, %v2391_v59 }
 0xb3c   : > { %v2285_v21 = vadd.f32 %v2939_v50, %v2280_v52  ;;  %3446 = vmatpush3.bf16.msra.mxu0 %v3445_v41  ;;  %v2577_v52 = vld [vmem:[%s4443_s30] sm:$0x1] (!%p2944_p1) }
 0xb3d   : > { %3447 = vmatprep.subr.bf16.mxu0 %v3734_v4 }
 0xb3e   : > { %3289 = vmatmul.mubr.msk.f32.vlgmr.msra.gmra.mrb[14].mxu1 %vm590_vm2, %v2285_v21 }
 0xb3f   : > { %3345 = vmatprep.mubr.msk.f32.mxu1 (!%p2944_p1), %vm3738_vm8, %v3739_v32  ;;  %3470 = vmatpush3.bf16.msra.mxu1 (!%p2944_p1), %v3469_v34 }
 0xb40   : > { %3449 = vmatpush3.bf16.msra.mxu0 %v3448_v0  ;;  %3471 = vmatprep.subr.bf16.mxu1 (!%p2944_p1), %v3737_v30 }
 0xb41   : > { %3450 = vmatprep.subr.bf16.mxu0 (!%p2944_p1), %v3737_v30 }
 0xb43   : > { %3473 = vmatpush3.bf16.msra.mxu1 (!%p2944_p1), %v3472_v47 }
 0xc11   : > { %v2374_v5 = vpop.f32.mrb[14].mxu1 }
 0xc12   : > { %v2375_v6 = vadd.f32 %v2940_v3, %v2374_v5  ;;  %v3290_v7 = vpop.f32.mrb[15].mxu1 }
 0xc14   : > { %v2379_v9 = vmul.f32 0.044715, %v2375_v6  ;;  %v2378_v18 = vmul.f32 0.5, %v2375_v6 }
 0xc16   : > { %v2380_v10 = vmul.f32 %v2379_v9, %v2375_v6 }
 0xc18   : > { %v2381_v13 = vmul.f32 %v2380_v10, %v2375_v6 }
 0xc1a   : > { %v2382_v14 = vadd.f32 %v2381_v13, %v2375_v6 }
 0xc1c   : > { %v2383_v15 = vmul.f32 0.7978846, %v2382_v14 }
 0xc1e   : > { %3604 = vtanh.f32 %v2383_v15 }
 0xc28   : > { %v3605_v16 = vpop.eup %3604 }
 0xc29   : > { %v2385_v19 = vadd.f32 1.0, %v3605_v16 }
 0xc2b   : > { %v2386_v4 = vmul.f32 %v2385_v19, %v2378_v18 }
 0xc2d   : > { %3308 = vmatmul.mubr.msk.f32.vlgmr.msra.gmra.mrb[12].mxu0 %vm2395_vm6, %v2386_v4 }
 0xc2e   : > { %3334 = vmatprep.mubr.msk.f32.mxu0 (!%p2944_p1), %vm3738_vm8, %v3739_v32  ;;  %3452 = vmatpush3.bf16.msra.mxu0 (!%p2944_p1), %v3451_v1 }
 0xc2f   : > { %3453 = vmatprep.subr.bf16.mxu0 (!%p2944_p1), %v3737_v30 }
 0xc32   : > { %3455 = vmatpush3.bf16.msra.mxu0 (!%p2944_p1), %v3454_v8 }
 0xc33   : > { %3456 = vmatprep.subr.bf16.mxu0 (!%p2944_p1), %v3737_v30 }
 0xc36   : > { %3458 = vmatpush3.bf16.msra.mxu0 (!%p2944_p1), %v3457_v35 }
 0xc37   : > { %3459 = vmatprep.subr.bf16.mxu0 (!%p2944_p1), %v3737_v30 }
 0xc3a   : > { %3461 = vmatpush3.bf16.msra.mxu0 (!%p2944_p1), %v3460_v37 }
 0xc3b   : > { %3462 = vmatprep.subr.bf16.mxu0 (!%p2944_p1), %v3737_v30 }
 0xc3e   : > { %3464 = vmatpush3.bf16.msra.mxu0 (!%p2944_p1), %v3463_v39 }
 0xc3f   : > { %3465 = vmatprep.subr.bf16.mxu0 (!%p2944_p1), %v3737_v30 }
 0xc42   : > { %3467 = vmatpush3.bf16.msra.mxu0 (!%p2944_p1), %v3466_v43 }
 0xcff   : > { %2483 = sbr.rel (%p2944_p1) target bundleno = 3764 (0xeb4), region = 76 }
 0xd00   : > { %v2465_v20 = vpop.f32.mrb[12].mxu0 }
 0xd01   : > { %v2469_v23 = vadd.f32 %v2465_v20, %v2285_v21  ;;  %v3309_v24 = vpop.f32.mrb[13].mxu0 }
 0xd03   : > { %v2477_v25 = vadd.f32 %v2943_v22, %v2469_v23 }
 0xd05   : > { %2479 = vst.msk [vmem:[#allocation2] sm:$0x1f] %vm2478_vm7, %v2477_v25  ;;  %v2498_v44 = vrot.slane (!%p2944_p1), %v2477_v25, 4 }
 0xd07   : > { %3335 = vmatmul.mubr.msk.f32.vlgmr.msra.gmra.mrb[0].mxu0 %vm590_vm2, %v2498_v44 }
 0xdda   : > { %v2567_v49 = vpop.f32.mrb[0].mxu0 }
 0xddb   : > { %v2568_v50 = vadd.f32 %v2567_v49, %v2496_v48  ;;  %v3336_v51 = vpop.f32.mrb[1].mxu0 }
 0xddd   : > { %2572 = vst.msk [vmem:[%s526_s14] sm:$0x1] %vm2571_vm9, %v2568_v50  ;;  %3346 = vmatmul.mubr.msk.f32.vlgmr.msra.gmra.mrb[0].mxu1 %vm2578_vm10, %v2568_v50 }
 0xeb0   : > { %v2648_v53 = vpop.f32.mrb[0].mxu1 }
 0xeb1   : > { %v2649_v21 = vadd.f32 %v2648_v53, %v2577_v52  ;;  %v3347_v54 = vpop.f32.mrb[1].mxu1 }
 0xeb3   : > { %2653 = vst.msk [vmem:[%s532_s15] sm:$0x1] %vm2652_vm11, %v2649_v21 }
 0xeb4 PF: > { %s4444_s27 = sld [smem:[#allocation12_spill]]  ;;  %s4446_s19 = sld [smem:[#allocation24_spill]] }
 0xeb5   : > { %s2671_s23 = sshll.u32 %s526_s14, 4  ;;  %s2655_s25 = scalar_lea.sflag [#allocation4], %s3882_s16  ;;  %s2672_s23 = int_to_ptr.vmem [resolvable:$true] %s2671_s23 }
 0xeb6   : > { %s3606_s28 = scalar_lea.vmem %s2672_s23, 16  ;;  %s3740_s24 = smov [#allocation3]  }
 0xeb7   : > { %p3607_p2 = scmp.ne.s32.totalorder %s2672_s23, %s3606_s28  ;;  %s3610_s3 = sshll.u32 %s3740_s24, 4  ;;  %s3611_s3 = int_to_ptr.vmem [resolvable:$false] %s3610_s3 }
 0xeb8   : > { %s3612_s11 = scalar_lea.vmem %s3611_s3, 32  ;;  %p3613_p6 = scmp.lt.s32.totalorder %s2672_s23, %s3611_s3 }
 0xeb9   : > { %p3608_p4 = pnand %p3607_p2, %p3861_p3  ;;  %p3614_p7 = scmp.lt.s32.totalorder %s3612_s11, %s3606_s28 }
 0xeba   : > { %s2947_s22 = sshll.u32 %s4444_s27, 4 }
 0xebb   : > { %s4316_s26 = scalar_lea.hbm %s4446_s19, %s2947_s22  ;;  %p3609_p5 = pneg %p3608_p4 }
 0xebc   : > { %p3615_p8 = por %p3614_p7, %p3613_p6 }
 0xebe   : > { %p3616_p10 = pnand %p3615_p8, %p3609_p5 }
 0xec0   : > { %3619 = shalt.err (!%p3616_p10)
}
 0xec1   : > { %s3620_s14 = scalar_lea.hbm %s4316_s26, 16  ;;  %s3624_s29 = scalar_lea.hbm %s4446_s19, 32 }
 0xec2   : > { %p3621_p11 = scmp.ne.s32.totalorder %s4316_s26, %s3620_s14  ;;  %p3625_p0 = scmp.lt.u32.totalorder %s4316_s26, %s4446_s19 }
 0xec3   : > { %p3626_p1 = scmp.lt.u32.totalorder %s3624_s29, %s3620_s14  ;;  %p3628_p4 = scmp.lt.u32.totalorder %s3620_s14, %s4316_s26 }
 0xec4   : > { %p3622_p12 = pnand %p3621_p11, %p3861_p3 }
 0xec5   : > { %p3627_p2 = por %p3626_p1, %p3625_p0 }
 0xec6   : > { %p3623_p13 = pneg %p3622_p12 }
 0xec7   : > { %p3629_p5 = por %p3628_p4, %p3627_p2 }
 0xec9   : > { %p3630_p6 = pnand %p3629_p5, %p3623_p13 }
 0xecb   : > { %3633 = shalt.err (!%p3630_p6)
}
 0xecc   : > { %3490 = dma.vmem_to_hbm [thread:$0]  (%p3861_p3), %s2672_s23, 16, %s4316_s26, %s2655_s25  }
 0xecd   : > { %s4447_s18 = sld [smem:[#allocation25_spill]]  ;;  %s2684_s24 = sshll.u32 %s532_s15, 4  ;;  %s2685_s24 = int_to_ptr.vmem [resolvable:$true] %s2684_s24 }
 0xece   : > { %s2659_s3 = scalar_lea.sflag [#allocation6], %s3882_s16  ;;  %s3634_s11 = scalar_lea.vmem %s2685_s24, 16 }
 0xecf   : > { %p3635_p7 = scmp.ne.s32.totalorder %s2685_s24, %s3634_s11  ;;  %s3741_s14 = smov [#allocation5]  }
 0xed0   : > { %s3638_s12 = sshll.u32 %s3741_s14, 4  ;;  %s3639_s12 = int_to_ptr.vmem [resolvable:$false] %s3638_s12 }
 0xed1   : > { %p3636_p8 = pnand %p3635_p7, %p3861_p3  ;;  %s3640_s13 = scalar_lea.vmem %s3639_s12, 32 }
 0xed2   : > { %p3641_p11 = scmp.lt.s32.totalorder %s2685_s24, %s3639_s12  ;;  %p3642_p12 = scmp.lt.s32.totalorder %s3640_s13, %s3634_s11 }
 0xed3   : > { %s4343_s28 = scalar_lea.hbm %s4447_s18, %s2947_s22  ;;  %p3637_p10 = pneg %p3636_p8 }
 0xed4   : > { %p3643_p13 = por %p3642_p12, %p3641_p11 }
 0xed6   : > { %p3644_p0 = pnand %p3643_p13, %p3637_p10 }
 0xed8   : > { %3647 = shalt.err (!%p3644_p0)
}
 0xed9   : > { %s3648_s16 = scalar_lea.hbm %s4343_s28, 16  ;;  %s3652_s22 = scalar_lea.hbm %s4447_s18, 32 }
 0xeda   : > { %p3649_p1 = scmp.ne.s32.totalorder %s4343_s28, %s3648_s16  ;;  %p3653_p5 = scmp.lt.u32.totalorder %s4343_s28, %s4447_s18 }
 0xedb   : > { %p3654_p6 = scmp.lt.u32.totalorder %s3652_s22, %s3648_s16  ;;  %p3656_p8 = scmp.lt.u32.totalorder %s3648_s16, %s4343_s28 }
 0xedc   : > { %p3650_p2 = pnand %p3649_p1, %p3861_p3 }
 0xedd   : > { %p3655_p7 = por %p3654_p6, %p3653_p5 }
 0xede   : > { %p3651_p4 = pneg %p3650_p2 }
 0xedf   : > { %p3657_p10 = por %p3656_p8, %p3655_p7 }
 0xee1   : > { %p3658_p11 = pnand %p3657_p10, %p3651_p4 }
 0xee3   : > { %3661 = shalt.err (!%p3658_p11)
}
 0xee4   : > { %3491 = dma.vmem_to_hbm [thread:$0]  (%p3861_p3), %s2685_s24, 16, %s4343_s28, %s2659_s3  }
 0xee5 PF: > { %s4448_s25 = sld [smem:[#allocation15_spill]]  ;;  %s4449_s29 = sld [smem:[#allocation9_spill]] }
 0xeeb   : > { %p3501_p12 = scmp.ge.s32.totalorder %s4448_s25, 2  ;;  %s2696_s21 = sand.u32 1, %s4449_s29  }
 0xeec   : > { %s2697_s30 = scalar_lea.sflag [#allocation4], %s2696_s21 }
 0xeed   : > { %p3495_p13 = pnand %p3501_p12, %p3871_p9 }
 0xeef   : > { %3695 = dma.done.wait (!%p3495_p13), %s2697_s30, 16  }
 0xef0   : > { %3697 = vsyncadd (!%p3495_p13), %s2697_s30, 4294967280  ;;  %s2705_s17 = scalar_lea.sflag [#allocation6], %s2696_s21 }
 0xef1   : > { %3699 = dma.done.wait (!%p3495_p13), %s2705_s17, 16  }
 0xef2   : > { %3701 = vsyncadd (!%p3495_p13), %s2705_s17, 4294967280  ;;  %s30_s15 = sadd.s32 1, %s4448_s25   ;;  %s4451_s25 = sld [smem:[#allocation10_spill]] }
 0xef3   : > { %p27_p0 = scmp.ge.s32.totalorder %s30_s15, 18   ;;  %s4452_s26 = sld [smem:[#allocation11_spill]] }
 0xef4   : > { %s4453_s27 = sld [smem:[#allocation20_spill]]  ;;  %s4454_s28 = sld [smem:[#allocation13_spill]] }
 0xef5   : > { %s4455_s29 = sld [smem:[#allocation14_spill]]  ;;  %s4456_s30 = sld [smem:[#allocation16_spill]] }
 0xef6   : > { %s4457_s14 = sld [smem:[#allocation18_spill]]  ;;  %29 = sbr.rel (!%p27_p0) target bundleno = 13 (0xd), region = 149 }
 0xefd   :  { %2709 = vsyncpa [#allocation4], 1 }
 0xefe   :  { %2711 = vsyncpa [#allocation4 + $0x1], 1 }
 0xeff   :  { %2712 = vsyncpa [#allocation6], 1 }
 0xf00   :  { %2714 = vsyncpa [#allocation6 + $0x1], 1 }

// kernel: bendr_forward.2
= control target key start
LH: loop header
LB: loop body
LE: loop exit
PB: predicated region body
PF: predicated region fallthrough
CT: control target
= control target key end

     0   :  { %s10830_s0 = inlined_call_operand.vmem [shape: f32[784,20], index: 0, kind: input, shape index: {}]   ;;  %s10831_s1 = inlined_call_operand.hbm [shape: f32[3,20,32], index: 1, kind: input, shape index: {}]   ;;  %s10832_s2 = inlined_call_operand.hbm [shape: f32[5,3,32,32], index: 2, kind: input, shape index: {}]   ;;  %s10833_s3 = inlined_call_operand.hbm [shape: f32[6,1,32], index: 3, kind: input, shape index: {}]   ;;  %s10834_s4 = inlined_call_operand.hbm [shape: f32[6,1,32], index: 4, kind: input, shape index: {}]   ;;  %s10835_s5 = inlined_call_operand.hbm [shape: f32[6,1,32], index: 5, kind: input, shape index: {}]   ;;  %s10836_s6 = inlined_call_operand.vmem [shape: f32[32,32], index: 6, kind: input, shape index: {}]   ;;  %s10837_s7 = inlined_call_operand.vmem [shape: f32[25,32,32], index: 7, kind: input, shape index: {}]   ;;  %s10838_s8 = inlined_call_operand.hbm [shape: f32[1,32], index: 8, kind: input, shape index: {}]   ;;  %s10839_s9 = inlined_call_operand.hbm [shape: f32[1,32], index: 9, kind: input, shape index: {}]   ;;  %s10840_s10 = inlined_call_operand.hbm [shape: f32[1,32], index: 10, kind: input, shape index: {}]   ;;  %s10841_s11 = inlined_call_operand.hbm [shape: f32[32,96], index: 11, kind: input, shape index: {}]   ;;  %s10842_s12 = inlined_call_operand.hbm [shape: f32[1,96], index: 12, kind: input, shape index: {}]   ;;  %s10843_s13 = inlined_call_operand.vmem [shape: f32[2,5,96], index: 13, kind: output, shape index: {}]  }
   0x1   :  { %10854 = sst [smem:[#allocation28_spill]] %s10831_s1 }
   0x2   :  { %10855 = sst [smem:[#allocation29_spill]] %s10843_s13 }
   0x3   :  { %18 = vsyncpa [#allocation6], 0 }
   0x4   :  { %19 = vsyncpa [#allocation8], 0 }
   0x5   :  { %20 = vsyncpa [#allocation11], 0 }
   0x6   :  { %21 = vsyncpa [#allocation14], 0 }
   0x7   :  { %22 = vsyncpa [#allocation17], 0 }
   0x8   :  { %23 = vsyncpa [#allocation20], 0  ;;  %s9315_s25 = smov 0  }
   0x9 LB: > { %10856 = sst [smem:[#allocation27_spill]] %s9225_s25  ;;  %s9321_s26 = sadd.s32 4294967295, %s9225_s25   ;;  %s9225_s25 = sphi %s9315_s25, %s29_s25  }
   0xa   : > { %p6917_p0 = scmp.ge.s32.totalorder %s9225_s25, 1  ;;  %p338_p1 = scmp.lt.s32.totalorder %s9225_s25, 3 }
   0xb   : > { %p10849_p2 = scmp.eq.s32.totalorder %s9321_s26, 0  ;;  %s9227_s28 = smov [#allocation7]  }
   0xc   : > { %p9326_p3 = pnand %p6917_p0, %p338_p1  ;;  %s363_s29 = sshll.u32 %s9227_s28, 4  ;;  %s9330_s29 = int_to_ptr.vmem [resolvable:$true] %s363_s29 }
   0xd   : > { %s9228_s14 = smov [#allocation10]   ;;  %s9229_s16 = smov [#allocation13]  }
   0xe   : > { %s10857_s27 = scalar_select %p9326_p3, 1, 0 }
   0xf   : > { %p8758_p4 = pneg %p9326_p3  ;;  %s389_s15 = sshll.u32 %s9228_s14, 4  ;;  %s9340_s15 = int_to_ptr.vmem [resolvable:$true] %s389_s15 }
  0x10   : > { %s422_s17 = sshll.u32 %s9229_s16, 4  ;;  %s8915_s20 = scalar_lea.hbm %s10832_s2, 7680  ;;  %s9342_s17 = int_to_ptr.vmem [resolvable:$true] %s422_s17 }
  0x11   : > { %p9336_p5 = pnand %p10849_p2, %p8758_p4  ;;  %p8916_p6 = scmp.ne.s32.totalorder %s10832_s2, %s8915_s20 }
  0x12   : > { %p8922_p10 = scmp.lt.u32.totalorder %s8915_s20, %s10832_s2 }
  0x13   : > { %p9352_p7 = pneg %p9336_p5 }
  0x15   : > { %p8918_p8 = pnand %p9352_p7, %p8916_p6 }
  0x17   : > { %p8919_p9 = pneg %p8918_p8 }
  0x19   : > { %p8924_p11 = pnand %p8922_p10, %p8919_p9 }
  0x1b   : > { %8927 = shalt.err (!%p8924_p11)
}
  0x1c   : > { %s8928_s14 = scalar_lea.vmem %s9330_s29, 7680  ;;  %p8936_p1 = scmp.lt.s32.totalorder %s9330_s29, %s9330_s29 }
  0x1d   : > { %p8929_p12 = scmp.ne.s32.totalorder %s9330_s29, %s8928_s14  ;;  %p8937_p4 = scmp.lt.s32.totalorder %s8928_s14, %s8928_s14 }
  0x1f   : > { %p8931_p13 = pnand %p8929_p12, %p9352_p7  ;;  %p8938_p6 = por %p8937_p4, %p8936_p1 }
  0x21   : > { %p8932_p0 = pneg %p8931_p13 }
  0x23   : > { %p8939_p8 = pnand %p8938_p6, %p8932_p0 }
  0x25   : > { %8942 = shalt.err (!%p8939_p8)
}
  0x26   : > { %s10845_s16 = smov 128   ;;  %s10853_s18 = smov 8  }
  0x27   : > { %8764 = dma.hbm_to_vmem [thread:$0]  (!%p9336_p5), %s10832_s2, 7680, %s9330_s29, [#allocation8], %s10845_s16, %s10845_s16, %s10853_s18  }
  0x28   : > { %s8943_s24 = scalar_lea.hbm %s10834_s4, 96 }
  0x29   : > { %p8944_p9 = scmp.ne.s32.totalorder %s10834_s4, %s8943_s24  ;;  %p8950_p12 = scmp.lt.u32.totalorder %s8943_s24, %s10834_s4 }
  0x2b   : > { %p8946_p10 = pnand %p8944_p9, %p9352_p7 }
  0x2d   : > { %p8947_p11 = pneg %p8946_p10 }
  0x2f   : > { %p8952_p13 = pnand %p8950_p12, %p8947_p11 }
  0x31   : > { %8955 = shalt.err (!%p8952_p13)
}
  0x32   : > { %s8956_s29 = scalar_lea.vmem %s9340_s15, 96  ;;  %p8964_p6 = scmp.lt.s32.totalorder %s9340_s15, %s9340_s15 }
  0x33   : > { %p8957_p0 = scmp.ne.s32.totalorder %s9340_s15, %s8956_s29  ;;  %p8965_p8 = scmp.lt.s32.totalorder %s8956_s29, %s8956_s29 }
  0x35   : > { %p8959_p1 = pnand %p8957_p0, %p9352_p7  ;;  %p8966_p9 = por %p8965_p8, %p8964_p6 }
  0x37   : > { %p8960_p4 = pneg %p8959_p1 }
  0x39   : > { %p8967_p10 = pnand %p8966_p9, %p8960_p4 }
  0x3b   : > { %8970 = shalt.err (!%p8967_p10)
}
  0x3c   : > { %s10847_s19 = smov 16   ;;  %s10851_s13 = smov 1  }
  0x3d   : > { %8770 = dma.hbm_to_vmem [thread:$0]  (!%p9336_p5), %s10834_s4, 96, %s9340_s15, [#allocation11], %s10847_s19, %s10847_s19, %s10851_s13  }
  0x3e   : > { %s8971_s24 = scalar_lea.hbm %s10838_s8, 16 }
  0x3f   : > { %p8972_p11 = scmp.ne.s32.totalorder %s10838_s8, %s8971_s24  ;;  %p8978_p0 = scmp.lt.u32.totalorder %s8971_s24, %s10838_s8 }
  0x41   : > { %p8974_p12 = pnand %p8972_p11, %p9352_p7 }
  0x43   : > { %p8975_p13 = pneg %p8974_p12 }
  0x45   : > { %p8980_p1 = pnand %p8978_p0, %p8975_p13 }
  0x47   : > { %8983 = shalt.err (!%p8980_p1)
}
  0x48   : > { %s8984_s15 = scalar_lea.vmem %s9342_s17, 16  ;;  %s8991_s25 = scalar_lea.vmem %s9342_s17, 32 }
  0x49   : > { %p8985_p4 = scmp.ne.s32.totalorder %s9342_s17, %s8984_s15  ;;  %p8992_p9 = scmp.lt.s32.totalorder %s9342_s17, %s9342_s17 }
  0x4a   : > { %p8993_p10 = scmp.lt.s32.totalorder %s8991_s25, %s8984_s15 }
  0x4b   : > { %p8987_p6 = pnand %p8985_p4, %p9352_p7 }
  0x4c   : > { %p8994_p11 = por %p8993_p10, %p8992_p9 }
  0x4d   : > { %p8988_p8 = pneg %p8987_p6 }
  0x4f   : > { %p8995_p12 = pnand %p8994_p11, %p8988_p8 }
  0x51   : > { %8998 = shalt.err (!%p8995_p12)
}
  0x52   : > { %8776 = dma.hbm_to_vmem [thread:$0]  (!%p9336_p5), %s10838_s8, 16, %s9342_s17, [#allocation14]  }
  0x53   : > { %s9234_s21 = smov [#allocation16]   ;;  %s9235_s24 = smov [#allocation5]  }
  0x54   : > { %s444_s22 = sshll.u32 %s9234_s21, 4  ;;  %s350_s28 = sshll.u32 %s9235_s24, 4  ;;  %s445_s22 = int_to_ptr.vmem [resolvable:$true] %s444_s22  ;;  %s9426_s28 = int_to_ptr.vmem [resolvable:$true] %s350_s28 }
  0x55   : > { %s8999_s15 = scalar_lea.hbm %s10840_s10, 16 }
  0x56   : > { %p9000_p13 = scmp.ne.s32.totalorder %s10840_s10, %s8999_s15  ;;  %p9006_p4 = scmp.lt.u32.totalorder %s8999_s15, %s10840_s10 }
  0x58   : > { %p9002_p0 = pnand %p9000_p13, %p9352_p7 }
  0x5a   : > { %p9003_p1 = pneg %p9002_p0 }
  0x5c   : > { %p9008_p6 = pnand %p9006_p4, %p9003_p1 }
  0x5e   : > { %9011 = shalt.err (!%p9008_p6)
}
  0x5f   : > { %s9012_s20 = scalar_lea.vmem %s445_s22, 16  ;;  %s9019_s21 = scalar_lea.vmem %s445_s22, 32 }
  0x60   : > { %p9013_p8 = scmp.ne.s32.totalorder %s445_s22, %s9012_s20  ;;  %p9020_p11 = scmp.lt.s32.totalorder %s445_s22, %s445_s22 }
  0x61   : > { %p9021_p12 = scmp.lt.s32.totalorder %s9019_s21, %s9012_s20 }
  0x62   : > { %p9015_p9 = pnand %p9013_p8, %p9352_p7 }
  0x63   : > { %p9022_p2 = por %p9021_p12, %p9020_p11 }
  0x64   : > { %p9016_p10 = pneg %p9015_p9 }
  0x66   : > { %p9023_p3 = pnand %p9022_p2, %p9016_p10 }
  0x68   : > { %9026 = shalt.err (!%p9023_p3)
}
  0x69   : > { %8782 = dma.hbm_to_vmem [thread:$0]  (!%p9336_p5), %s10840_s10, 16, %s445_s22, [#allocation17]  }
  0x6a   : > { %s10860_s1 = sld [smem:[#allocation28_spill]] }
  0x70   : > { %s9027_s15 = scalar_lea.hbm %s10860_s1, 1152 }
  0x71   : > { %p9028_p13 = scmp.ne.s32.totalorder %s10860_s1, %s9027_s15  ;;  %p9034_p2 = scmp.lt.u32.totalorder %s9027_s15, %s10860_s1 }
  0x73   : > { %p9030_p0 = pnand %p9028_p13, %p9352_p7 }
  0x75   : > { %p9031_p1 = pneg %p9030_p0 }
  0x77   : > { %p9036_p3 = pnand %p9034_p2, %p9031_p1 }
  0x79   : > { %9039 = shalt.err (!%p9036_p3)
}
  0x7a   : > { %s9040_s22 = scalar_lea.vmem %s9426_s28, 1152  ;;  %p9048_p9 = scmp.lt.s32.totalorder %s9426_s28, %s9426_s28 }
  0x7b   : > { %p9041_p4 = scmp.ne.s32.totalorder %s9426_s28, %s9040_s22  ;;  %p9049_p10 = scmp.lt.s32.totalorder %s9040_s22, %s9040_s22 }
  0x7d   : > { %p9043_p6 = pnand %p9041_p4, %p9352_p7  ;;  %p9050_p11 = por %p9049_p10, %p9048_p9 }
  0x7f   : > { %p9044_p8 = pneg %p9043_p6 }
  0x81   : > { %p9051_p12 = pnand %p9050_p11, %p9044_p8 }
  0x83   : > { %9054 = shalt.err (!%p9051_p12)
}
  0x84   : > { %s10861_s21 = smov 128   ;;  %s9236_s14 = smov [#allocation9]  }
  0x85   : > { %8761 = dma.hbm_to_vmem [thread:$0]  (!%p9336_p5), %s10860_s1, 1152, %s9426_s28, [#allocation6], %s10861_s21, %s10861_s21, %s10853_s18  }
  0x86   : > { %s376_s29 = sshll.u32 %s9236_s14, 4  ;;  %s9237_s15 = smov [#allocation12]   ;;  %s377_s29 = int_to_ptr.vmem [resolvable:$true] %s376_s29 }
  0x87   : > { %s402_s25 = sshll.u32 %s9237_s15, 4  ;;  %s9055_s20 = scalar_lea.hbm %s10833_s3, 96  ;;  %s9472_s25 = int_to_ptr.vmem [resolvable:$true] %s402_s25 }
  0x88   : > { %p9056_p13 = scmp.ne.s32.totalorder %s10833_s3, %s9055_s20  ;;  %p9062_p2 = scmp.lt.u32.totalorder %s9055_s20, %s10833_s3 }
  0x8a   : > { %p9058_p0 = pnand %p9056_p13, %p9352_p7 }
  0x8c   : > { %p9059_p1 = pneg %p9058_p0 }
  0x8e   : > { %p9064_p3 = pnand %p9062_p2, %p9059_p1 }
  0x90   : > { %9067 = shalt.err (!%p9064_p3)
}
  0x91   : > { %s9068_s24 = scalar_lea.vmem %s377_s29, 96  ;;  %p9076_p9 = scmp.lt.s32.totalorder %s377_s29, %s377_s29 }
  0x92   : > { %p9069_p4 = scmp.ne.s32.totalorder %s377_s29, %s9068_s24  ;;  %p9077_p10 = scmp.lt.s32.totalorder %s9068_s24, %s9068_s24 }
  0x94   : > { %p9071_p6 = pnand %p9069_p4, %p9352_p7  ;;  %p9078_p11 = por %p9077_p10, %p9076_p9 }
  0x96   : > { %p9072_p8 = pneg %p9071_p6 }
  0x98   : > { %p9079_p12 = pnand %p9078_p11, %p9072_p8 }
  0x9a   : > { %9082 = shalt.err (!%p9079_p12)
}
  0x9b   : > { %s10862_s13 = smov 1   ;;  %s10863_s14 = smov 16  }
  0x9c   : > { %8767 = dma.hbm_to_vmem [thread:$0]  (!%p9336_p5), %s10833_s3, 96, %s377_s29, [#allocation8], %s10863_s14, %s10863_s14, %s10862_s13  }
  0x9d   : > { %s9083_s22 = scalar_lea.hbm %s10835_s5, 96 }
  0x9e   : > { %p9084_p13 = scmp.ne.s32.totalorder %s10835_s5, %s9083_s22  ;;  %p9090_p2 = scmp.lt.u32.totalorder %s9083_s22, %s10835_s5 }
  0xa0   : > { %p9086_p0 = pnand %p9084_p13, %p9352_p7 }
  0xa2   : > { %p9087_p1 = pneg %p9086_p0 }
  0xa4   : > { %p9092_p3 = pnand %p9090_p2, %p9087_p1 }
  0xa6   : > { %9095 = shalt.err (!%p9092_p3)
}
  0xa7   : > { %s9096_s29 = scalar_lea.vmem %s9472_s25, 96  ;;  %p9104_p9 = scmp.lt.s32.totalorder %s9472_s25, %s9472_s25 }
  0xa8   : > { %p9097_p4 = scmp.ne.s32.totalorder %s9472_s25, %s9096_s29  ;;  %p9105_p10 = scmp.lt.s32.totalorder %s9096_s29, %s9096_s29 }
  0xaa   : > { %p9099_p6 = pnand %p9097_p4, %p9352_p7  ;;  %p9106_p11 = por %p9105_p10, %p9104_p9 }
  0xac   : > { %p9100_p8 = pneg %p9099_p6 }
  0xae   : > { %p9107_p12 = pnand %p9106_p11, %p9100_p8 }
  0xb0   : > { %9110 = shalt.err (!%p9107_p12)
}
  0xb1   : > { %8773 = dma.hbm_to_vmem [thread:$0]  (!%p9336_p5), %s10835_s5, 96, %s9472_s25, [#allocation11], %s10863_s14, %s10863_s14, %s10862_s13  }
  0xb2   : > { %s9238_s16 = smov [#allocation15]   ;;  %s9239_s20 = smov [#allocation18]  }
  0xb3   : > { %s433_s17 = sshll.u32 %s9238_s16, 4  ;;  %s454_s22 = sshll.u32 %s9239_s20, 4  ;;  %s434_s17 = int_to_ptr.vmem [resolvable:$true] %s433_s17  ;;  %s9521_s22 = int_to_ptr.vmem [resolvable:$true] %s454_s22 }
  0xb4   : > { %s9111_s24 = scalar_lea.hbm %s10839_s9, 16 }
  0xb5   : > { %p9112_p13 = scmp.ne.s32.totalorder %s10839_s9, %s9111_s24  ;;  %p9118_p2 = scmp.lt.u32.totalorder %s9111_s24, %s10839_s9 }
  0xb7   : > { %p9114_p0 = pnand %p9112_p13, %p9352_p7 }
  0xb9   : > { %p9115_p1 = pneg %p9114_p0 }
  0xbb   : > { %p9120_p3 = pnand %p9118_p2, %p9115_p1 }
  0xbd   : > { %9123 = shalt.err (!%p9120_p3)
}
  0xbe   : > { %s9124_s13 = scalar_lea.vmem %s434_s17, 16  ;;  %s9131_s14 = scalar_lea.vmem %s434_s17, 32 }
  0xbf   : > { %p9125_p4 = scmp.ne.s32.totalorder %s434_s17, %s9124_s13  ;;  %p9132_p9 = scmp.lt.s32.totalorder %s434_s17, %s434_s17 }
  0xc0   : > { %p9133_p10 = scmp.lt.s32.totalorder %s9131_s14, %s9124_s13 }
  0xc1   : > { %p9127_p6 = pnand %p9125_p4, %p9352_p7 }
  0xc2   : > { %p9134_p11 = por %p9133_p10, %p9132_p9 }
  0xc3   : > { %p9128_p8 = pneg %p9127_p6 }
  0xc5   : > { %p9135_p12 = pnand %p9134_p11, %p9128_p8 }
  0xc7   : > { %9138 = shalt.err (!%p9135_p12)
}
  0xc8   : > { %8779 = dma.hbm_to_vmem [thread:$0]  (!%p9336_p5), %s10839_s9, 16, %s434_s17, [#allocation14]  }
  0xc9   : > { %s9139_s19 = scalar_lea.hbm %s10841_s11, 512 }
  0xca   : > { %p9140_p13 = scmp.ne.s32.totalorder %s10841_s11, %s9139_s19  ;;  %p9146_p2 = scmp.lt.u32.totalorder %s9139_s19, %s10841_s11 }
  0xcc   : > { %p9142_p0 = pnand %p9140_p13, %p9352_p7 }
  0xce   : > { %p9143_p1 = pneg %p9142_p0 }
  0xd0   : > { %p9148_p3 = pnand %p9146_p2, %p9143_p1 }
  0xd2   : > { %9151 = shalt.err (!%p9148_p3)
}
  0xd3   : > { %s9152_s17 = scalar_lea.vmem %s9521_s22, 512  ;;  %p9160_p9 = scmp.lt.s32.totalorder %s9521_s22, %s9521_s22 }
  0xd4   : > { %p9153_p4 = scmp.ne.s32.totalorder %s9521_s22, %s9152_s17  ;;  %p9161_p10 = scmp.lt.s32.totalorder %s9152_s17, %s9152_s17 }
  0xd6   : > { %p9155_p6 = pnand %p9153_p4, %p9352_p7  ;;  %p9162_p11 = por %p9161_p10, %p9160_p9 }
  0xd8   : > { %p9156_p8 = pneg %p9155_p6 }
  0xda   : > { %p9163_p12 = pnand %p9162_p11, %p9156_p8 }
  0xdc   : > { %9166 = shalt.err (!%p9163_p12)
}
  0xdd   : > { %s10864_s25 = smov 8   ;;  %s9240_s1 = smov [#allocation19]  }
  0xde   : > { %8785 = dma.hbm_to_vmem [thread:$0]  (!%p9336_p5), %s10841_s11, 512, %s9521_s22, [#allocation17], %s10861_s21, %s10861_s21, %s10864_s25  }
  0xdf   : > { %s468_s15 = sshll.u32 %s9240_s1, 4  ;;  %s9167_s19 = scalar_lea.hbm %s10842_s12, 16  ;;  %s469_s15 = int_to_ptr.vmem [resolvable:$true] %s468_s15 }
  0xe0   : > { %p9168_p13 = scmp.ne.s32.totalorder %s10842_s12, %s9167_s19  ;;  %p9174_p2 = scmp.lt.u32.totalorder %s9167_s19, %s10842_s12 }
  0xe2   : > { %p9170_p0 = pnand %p9168_p13, %p9352_p7 }
  0xe4   : > { %p9171_p1 = pneg %p9170_p0 }
  0xe6   : > { %p9176_p3 = pnand %p9174_p2, %p9171_p1 }
  0xe8   : > { %9179 = shalt.err (!%p9176_p3)
}
  0xe9   : > { %s9180_s21 = scalar_lea.vmem %s469_s15, 16  ;;  %s9187_s22 = scalar_lea.vmem %s469_s15, 32 }
  0xea   : > { %p9181_p4 = scmp.ne.s32.totalorder %s469_s15, %s9180_s21  ;;  %p9188_p9 = scmp.lt.s32.totalorder %s469_s15, %s469_s15 }
  0xeb   : > { %p9189_p10 = scmp.lt.s32.totalorder %s9187_s22, %s9180_s21 }
  0xec   : > { %p9183_p6 = pnand %p9181_p4, %p9352_p7 }
  0xed   : > { %p9190_p11 = por %p9189_p10, %p9188_p9 }
  0xee   : > { %p9184_p8 = pneg %p9183_p6 }
  0xf0   : > { %p9191_p12 = pnand %p9190_p11, %p9184_p8 }
  0xf2   : > { %9194 = shalt.err (!%p9191_p12)
}
  0xf3   : > { %8788 = dma.hbm_to_vmem [thread:$0]  (!%p9336_p5), %s10842_s12, 16, %s469_s15, [#allocation20]  }
  0xf4   : > { %p10865_p13 = scmp.ne.s32.totalorder %s10857_s27, 0 }
  0xf5   : > { %p10866_p0 = scmp.eq.s32.totalorder (!%p10865_p13), %s9321_s26, 0 }
  0xf6   : > { %490 = sbr.rel (%p10865_p13) target bundleno = 5774 (0x168e), region = 72 }
  0xfd   : > { %9200 = dma.done.wait (%p10866_p0), [#allocation6], 1152   ;;  %p10867_p7 = pmov %p10866_p0 }
  0xfe   : > { %p10868_p1 = pmov %p10866_p0 }
  0xff   : > { %9202 = vsyncadd (%p10867_p7), [#allocation6], 4294966144 }
 0x100   : > { %9204 = dma.done.wait (%p10868_p1), [#allocation8], 7776   ;;  %p10869_p2 = pmov %p10866_p0 }
 0x101   : > { %p10870_p3 = pmov %p10866_p0 }
 0x102   : > { %9206 = vsyncadd (%p10869_p2), [#allocation8], 4294959520 }
 0x103   : > { %9208 = dma.done.wait (%p10870_p3), [#allocation11], 192   ;;  %p10871_p5 = pmov %p10866_p0 }
 0x104   : > { %p10872_p4 = pmov %p10866_p0 }
 0x105   : > { %9210 = vsyncadd (%p10871_p5), [#allocation11], 4294967104 }
 0x106   : > { %9212 = dma.done.wait (%p10872_p4), [#allocation14], 32   ;;  %p10873_p6 = pmov %p10866_p0 }
 0x107   : > { %p10874_p8 = pmov %p10866_p0 }
 0x108   : > { %9214 = vsyncadd (%p10873_p6), [#allocation14], 4294967264 }
 0x109   : > { %9216 = dma.done.wait (%p10874_p8), [#allocation17], 528   ;;  %p10875_p9 = pmov %p10866_p0 }
 0x10a   : > { %p10876_p10 = pmov %p10866_p0 }
 0x10b   : > { %9218 = vsyncadd (%p10875_p9), [#allocation17], 4294966768 }
 0x10c   : > { %9220 = dma.done.wait (%p10876_p10), [#allocation20], 16   ;;  %p10877_p11 = pmov %p10866_p0 }
 0x10d   : > { %s569_s27 = smul.u32 49, %s9321_s26  ;;  %vm656_vm0 = vcmask 162816   ;;  %v653_v0 = vld [vmem:[#allocation5 + $0x18] sm:$0xff]  ;;  %v654_v1 = vld [vmem:[#allocation5 + $0x20] sm:$0xff]  ;;  %v655_v4 = vld [vmem:[#allocation5 + $0x28] sm:$0xf] }
 0x10e   : > { %9222 = vsyncadd (%p10877_p11), [#allocation20], 4294967280  ;;  %v8310_v2 = vpack.c.bf16 %v654_v1, %v653_v0  ;;  %vm705_vm1 = vcmask 1043456   ;;  %v617_v5 = vld [vmem:[#allocation5] sm:$0xff]  ;;  %v618_v6 = vld [vmem:[#allocation5 + $0x8] sm:$0xff]  ;;  %vm579_vm2 = vcmask 261120  }
 0x10f   : > { %p570_p12 = scmp.lt.s32.totalorder %s569_s27, 97  ;;  %v8314_v7 = vpack.c.bf16 %v618_v6, %v617_v5  ;;  %v619_v10 = vld [vmem:[#allocation5 + $0x10] sm:$0xf]  ;;  %v1084_v12 = vld [vmem:[#allocation5 + $0x38] sm:$0xff]  ;;  %v1085_v30 = vld [vmem:[#allocation5 + $0x40] sm:$0xf] }
 0x110   : > { %8311 = vmatprep.subr.bf16.mxu0 %v8310_v2  ;;  %v1083_v11 = vld [vmem:[#allocation5 + $0x30] sm:$0xff]  ;;  %v583_v61 = vld [vmem:[%s10836_s6 + $0x8] sm:$0xff]  ;;  %v9241_v63 = vmov 0.0|0.0   ;;  %v584_v0 = vld [vmem:[%s10836_s6 + $0x10] sm:$0xff]  ;;  %vm9242_vm3 = vmmov 0   ;;  %vm1807_vm4 = vcmask 257024  }
 0x111   : > { %s10881_s27 = smov (!%p570_p12, %s569_s27), 97  ;;  %8313 = vmatpush3.bf16.msra.mxu0 %v8310_v2  ;;  %v8318_v15 = vpack.c.bf16 %v1084_v12, %v1083_v11  ;;  %v582_v60 = vld [vmem:[%s10836_s6] sm:$0xff]  ;;  %8322 = vmatprep.subr.bf16.mxu1 %v9241_v63  ;;  %v585_v1 = vld [vmem:[%s10836_s6 + $0x18] sm:$0xff]  ;;  %p575_p13 = scmp.lt.s32.totalorder %s9321_s26, 1  ;;  %vm6760_vm5 = vcmask 778240   ;;  %vm6762_vm6 = vcmask 781312  }
 0x112   : > { %s6940_s30 = sshll.u32 %s10881_s27, 3  ;;  %7605 = vmatprep.subr.msk.mxu0 %vm705_vm1, %v655_v4  ;;  %v9725_v62 = vpack.c.bf16 %v583_v61, %v582_v60  ;;  %v9736_v2 = vpack.c.bf16 %v585_v1, %v584_v0  ;;  %s10878_s27 = sld [smem:[#allocation29_spill]] }
 0x113   : > { %s9615_s14 = scalar_lea.vmem %s10830_s0, %s6940_s30  ;;  %s10883_s26 = smov (!%p575_p13, %s9321_s26), 1 }
 0x114   : > { %v6957_v3 = vld [vmem:[%s9615_s14 + $0x1] ss:$3 sm:$0xff]  ;;  %v6958_v8 = vld [vmem:[%s9615_s14 + $0x19] ss:$3 sm:$0xff]  ;;  %v6959_v9 = vld [vmem:[%s9615_s14 + $0x31] ss:$3 sm:$0xff]  ;;  %8324 = vmatpush3.bf16.msra.mxu1 %v9725_v62 }
 0x115   : > { %7607 = vmatprep.mubr.msk.f32.mxu0 %vm656_vm0, %v6957_v3  ;;  %7606 = vmatpush3.msk.msra.mxu0 %vm705_vm1, %v655_v4  ;;  %v6960_v13 = vld [vmem:[%s9615_s14 + $0x49] ss:$3 sm:$0xff]  ;;  %v6961_v14 = vld [vmem:[%s9615_s14 + $0x61] ss:$3 sm:$0xff]  ;;  %v6962_v16 = vld [vmem:[%s9615_s14 + $0x79] ss:$3 sm:$0xff] }
 0x116   : > { %7608 = vmatmul.mubr.msk.f32.vlgmr.msra.gmra.mrb[0].mxu0 %vm656_vm0, %v6958_v8  ;;  %8315 = vmatprep.subr.bf16.mxu0 %v8314_v7  ;;  %v6963_v17 = vld [vmem:[%s9615_s14 + $0x91] ss:$3 sm:$0xff]  ;;  %v6964_v18 = vld [vmem:[%s9615_s14 + $0xa9] ss:$3 sm:$0xff]  ;;  %v6965_v19 = vld [vmem:[%s9615_s14 + $0xc1] ss:$3 sm:$0xff] }
 0x117   : > { %8317 = vmatpush3.bf16.msra.mxu0 %v8314_v7  ;;  %7610 = vmatprep.mubr.msk.f32.mxu0 %vm656_vm0, %v6959_v9  ;;  %v6966_v20 = vld [vmem:[%s9615_s14 + $0xd9] ss:$3 sm:$0xff]  ;;  %v6967_v21 = vld [vmem:[%s9615_s14 + $0xf1] ss:$3 sm:$0xff]  ;;  %v6968_v22 = vld [vmem:[%s9615_s14 + $0x109] ss:$3 sm:$0xff] }
 0x118   : > { %7635 = vmatprep.subr.msk.mxu0 %vm705_vm1, %v619_v10  ;;  %v6969_v23 = vld [vmem:[%s9615_s14 + $0x121] ss:$3 sm:$0xff]  ;;  %v6970_v24 = vld [vmem:[%s9615_s14 + $0x139] ss:$3 sm:$0xff]  ;;  %v6971_v25 = vld [vmem:[%s9615_s14 + $0x151] ss:$3 sm:$0xff]  ;;  %8325 = vmatprep.subr.bf16.mxu1 %v9241_v63 }
 0x119   : > { %v6972_v26 = vld [vmem:[%s9615_s14 + $0x169] ss:$3 sm:$0xff]  ;;  %v6943_v29 = vld [vmem:[%s9615_s14 + $0x30] ss:$3 sm:$0xff]  ;;  %v6944_v31 = vld [vmem:[%s9615_s14 + $0x48] ss:$3 sm:$0xff]  ;;  %8327 = vmatpush3.bf16.msra.mxu1 %v9736_v2 }
 0x11a   : > { %7611 = vmatmul.mubr.msk.f32.gmra.mrb[2].mxu0 %vm656_vm0, %v6960_v13  ;;  %v586_v27 = vld [vmem:[%s9615_s14] ss:$3 sm:$0xff]  ;;  %v6942_v28 = vld [vmem:[%s9615_s14 + $0x18] ss:$3 sm:$0xff]  ;;  %v6947_v34 = vld [vmem:[%s9615_s14 + $0x90] ss:$3 sm:$0xff]  ;;  %8328 = vmatprep.subr.bf16.mxu1 %v9241_v63 }
 0x11b   : > { %7613 = vmatprep.mubr.msk.f32.mxu0 %vm656_vm0, %v6961_v14  ;;  %7636 = vmatpush3.msk.msra.mxu0 %vm705_vm1, %v619_v10  ;;  %v6945_v32 = vld [vmem:[%s9615_s14 + $0x60] ss:$3 sm:$0xff]  ;;  %v6946_v33 = vld [vmem:[%s9615_s14 + $0x78] ss:$3 sm:$0xff]  ;;  %v6948_v35 = vld [vmem:[%s9615_s14 + $0xa8] ss:$3 sm:$0xff] }
 0x11c   : > { %8319 = vmatprep.subr.bf16.mxu0 %v8318_v15  ;;  %v6949_v36 = vld [vmem:[%s9615_s14 + $0xc0] ss:$3 sm:$0xff]  ;;  %v6950_v37 = vld [vmem:[%s9615_s14 + $0xd8] ss:$3 sm:$0xff]  ;;  %v6951_v38 = vld [vmem:[%s9615_s14 + $0xf0] ss:$3 sm:$0xff] }
 0x11d   : > { %v6952_v39 = vld [vmem:[%s9615_s14 + $0x108] ss:$3 sm:$0xff]  ;;  %v6953_v40 = vld [vmem:[%s9615_s14 + $0x120] ss:$3 sm:$0xff]  ;;  %v6954_v41 = vld [vmem:[%s9615_s14 + $0x138] ss:$3 sm:$0xff] }
 0x11e   : > { %7614 = vmatmul.mubr.msk.f32.gmra.mrb[4].mxu0 %vm656_vm0, %v6962_v16  ;;  %v6955_v42 = vld [vmem:[%s9615_s14 + $0x150] ss:$3 sm:$0xff]  ;;  %v6956_v43 = vld [vmem:[%s9615_s14 + $0x168] ss:$3 sm:$0xff]  ;;  %v7009_v46 = vld [vmem:[%s9615_s14 + $0x32] ss:$3 sm:$0xff] }
 0x11f   : > { %7616 = vmatprep.mubr.msk.f32.mxu0 %vm656_vm0, %v6963_v17  ;;  %v7007_v44 = vld [vmem:[%s9615_s14 + $0x2] ss:$3 sm:$0xff]  ;;  %v7008_v45 = vld [vmem:[%s9615_s14 + $0x1a] ss:$3 sm:$0xff]  ;;  %v7010_v47 = vld [vmem:[%s9615_s14 + $0x4a] ss:$3 sm:$0xff] }
 0x120   : > { %v7011_v48 = vld [vmem:[%s9615_s14 + $0x62] ss:$3 sm:$0xff]  ;;  %v7012_v49 = vld [vmem:[%s9615_s14 + $0x7a] ss:$3 sm:$0xff]  ;;  %v7013_v50 = vld [vmem:[%s9615_s14 + $0x92] ss:$3 sm:$0xff] }
 0x121   : > { %v7014_v51 = vld [vmem:[%s9615_s14 + $0xaa] ss:$3 sm:$0xff]  ;;  %v7015_v52 = vld [vmem:[%s9615_s14 + $0xc2] ss:$3 sm:$0xff]  ;;  %v7016_v53 = vld [vmem:[%s9615_s14 + $0xda] ss:$3 sm:$0xff] }
 0x122   : > { %7617 = vmatmul.mubr.msk.f32.gmra.mrb[6].mxu0 %vm656_vm0, %v6964_v18  ;;  %v7017_v54 = vld [vmem:[%s9615_s14 + $0xf2] ss:$3 sm:$0xff]  ;;  %v7018_v55 = vld [vmem:[%s9615_s14 + $0x10a] ss:$3 sm:$0xff]  ;;  %v7019_v56 = vld [vmem:[%s9615_s14 + $0x122] ss:$3 sm:$0xff] }
 0x123   : > { %7619 = vmatprep.mubr.msk.f32.mxu0 %vm656_vm0, %v6965_v19  ;;  %v7020_v57 = vld [vmem:[%s9615_s14 + $0x13a] ss:$3 sm:$0xff]  ;;  %v7021_v58 = vld [vmem:[%s9615_s14 + $0x152] ss:$3 sm:$0xff]  ;;  %v7022_v59 = vld [vmem:[%s9615_s14 + $0x16a] ss:$3 sm:$0xff] }
 0x124   : > { %v9243_v3 = vmov 0.0   ;;  %v7040_v4 = vld [vmem:[#allocation9] ss:$0 sm:$0xff]  ;;  %s6941_s22 = sshll.u32 %s10883_s26, 3 }
 0x125   : > { %7699 = vmatprep.mubr.msk.f32.mxu1 %vm9242_vm3, %v9243_v3  ;;  %580 = vst.msk [vmem:[#allocation2] sm:$0xff] %vm579_vm2, %v9243_v3  ;;  %581 = vst.msk [vmem:[#allocation3] sm:$0xff] %vm579_vm2, %v9243_v3  ;;  %s578_s30 = scalar_lea.vmem %s10878_s27, %s6941_s22 }
 0x126   : > { %7620 = vmatmul.mubr.msk.f32.gmra.mrb[8].mxu0 %vm656_vm0, %v6966_v20  ;;  %4626 = vst.msk [vmem:[#allocation4] sm:$0xff] %vm579_vm2, %v9243_v3  ;;  %4627 = vst.msk [vmem:[#allocation4 + $0x8] sm:$0xff] %vm579_vm2, %v9243_v3 }
 0x127   : > { %7622 = vmatprep.mubr.msk.f32.mxu0 %vm656_vm0, %v6967_v21  ;;  %4628 = vst.msk [vmem:[#allocation4 + $0x10] sm:$0xff] %vm579_vm2, %v9243_v3  ;;  %4629 = vst.msk [vmem:[#allocation4 + $0x18] sm:$0xff] %vm579_vm2, %v9243_v3 }
 0x12a   : > { %7623 = vmatmul.mubr.msk.f32.gmra.mrb[10].mxu0 %vm656_vm0, %v6968_v22 }
 0x12b   : > { %7625 = vmatprep.mubr.msk.f32.mxu0 %vm656_vm0, %v6969_v23 }
 0x12e   : > { %7626 = vmatmul.mubr.msk.f32.gmra.mrb[12].mxu0 %vm656_vm0, %v6970_v24 }
 0x12f   : > { %7628 = vmatprep.mubr.msk.f32.mxu0 %vm656_vm0, %v6971_v25 }
 0x132   : > { %7629 = vmatmul.mubr.msk.f32.gmra.mrb[14].mxu0 %vm656_vm0, %v6972_v26 }
 0x133   : > { %7637 = vmatprep.mubr.msk.f32.mxu0 %vm656_vm0, %v586_v27 }
 0x136   : > { %7638 = vmatmul.mubr.msk.f32.vlgmr.msra.gmra.mrb[0].mxu0 %vm656_vm0, %v6942_v28 }
 0x137   : > { %8321 = vmatpush3.bf16.msra.mxu0 %v8318_v15  ;;  %7640 = vmatprep.mubr.msk.f32.mxu0 %vm656_vm0, %v6943_v29 }
 0x138   : > { %7665 = vmatprep.subr.msk.mxu0 %vm705_vm1, %v1085_v30 }
 0x13a   : > { %7641 = vmatmul.mubr.msk.f32.gmra.mrb[2].mxu0 %vm656_vm0, %v6944_v31 }
 0x13b   : > { %7643 = vmatprep.mubr.msk.f32.mxu0 %vm656_vm0, %v6945_v32  ;;  %7666 = vmatpush3.msk.msra.mxu0 %vm705_vm1, %v1085_v30 }
 0x13c   : > { %8394 = vmatprep.subr.bf16.mxu0 %v9241_v63 }
 0x13e   : > { %7644 = vmatmul.mubr.msk.f32.gmra.mrb[4].mxu0 %vm656_vm0, %v6946_v33 }
 0x13f   : > { %7646 = vmatprep.mubr.msk.f32.mxu0 %vm656_vm0, %v6947_v34 }
 0x142   : > { %7647 = vmatmul.mubr.msk.f32.gmra.mrb[6].mxu0 %vm656_vm0, %v6948_v35 }
 0x143   : > { %7649 = vmatprep.mubr.msk.f32.mxu0 %vm656_vm0, %v6949_v36 }
 0x146   : > { %7650 = vmatmul.mubr.msk.f32.gmra.mrb[8].mxu0 %vm656_vm0, %v6950_v37 }
 0x147   : > { %7652 = vmatprep.mubr.msk.f32.mxu0 %vm656_vm0, %v6951_v38 }
 0x14a   : > { %7653 = vmatmul.mubr.msk.f32.gmra.mrb[10].mxu0 %vm656_vm0, %v6952_v39 }
 0x14b   : > { %7655 = vmatprep.mubr.msk.f32.mxu0 %vm656_vm0, %v6953_v40 }
 0x14e   : > { %7656 = vmatmul.mubr.msk.f32.gmra.mrb[12].mxu0 %vm656_vm0, %v6954_v41 }
 0x14f   : > { %7658 = vmatprep.mubr.msk.f32.mxu0 %vm656_vm0, %v6955_v42 }
 0x152   : > { %7659 = vmatmul.mubr.msk.f32.gmra.mrb[14].mxu0 %vm656_vm0, %v6956_v43 }
 0x153   : > { %7667 = vmatprep.mubr.msk.f32.mxu0 %vm656_vm0, %v7007_v44 }
 0x156   : > { %7668 = vmatmul.mubr.msk.f32.vlgmr.msra.gmra.mrb[0].mxu0 %vm656_vm0, %v7008_v45 }
 0x157   : > { %7670 = vmatprep.mubr.msk.f32.mxu0 %vm656_vm0, %v7009_v46  ;;  %8396 = vmatpush3.bf16.msra.mxu0 %v9725_v62 }
 0x158   : > { %8397 = vmatprep.subr.bf16.mxu0 %v9241_v63 }
 0x15a   : > { %7671 = vmatmul.mubr.msk.f32.gmra.mrb[2].mxu0 %vm656_vm0, %v7010_v47 }
 0x15b   : > { %7673 = vmatprep.mubr.msk.f32.mxu0 %vm656_vm0, %v7011_v48  ;;  %8399 = vmatpush3.bf16.msra.mxu0 %v9736_v2 }
 0x15c   : > { %8400 = vmatprep.subr.bf16.mxu0 %v9241_v63 }
 0x15e   : > { %7674 = vmatmul.mubr.msk.f32.gmra.mrb[4].mxu0 %vm656_vm0, %v7012_v49 }
 0x15f   : > { %7676 = vmatprep.mubr.msk.f32.mxu0 %vm656_vm0, %v7013_v50 }
 0x162   : > { %7677 = vmatmul.mubr.msk.f32.gmra.mrb[6].mxu0 %vm656_vm0, %v7014_v51 }
 0x163   : > { %7679 = vmatprep.mubr.msk.f32.mxu0 %vm656_vm0, %v7015_v52 }
 0x166   : > { %7680 = vmatmul.mubr.msk.f32.gmra.mrb[8].mxu0 %vm656_vm0, %v7016_v53 }
 0x167   : > { %7682 = vmatprep.mubr.msk.f32.mxu0 %vm656_vm0, %v7017_v54 }
 0x16a   : > { %7683 = vmatmul.mubr.msk.f32.gmra.mrb[10].mxu0 %vm656_vm0, %v7018_v55 }
 0x16b   : > { %7685 = vmatprep.mubr.msk.f32.mxu0 %vm656_vm0, %v7019_v56 }
 0x16e   : > { %7686 = vmatmul.mubr.msk.f32.gmra.mrb[12].mxu0 %vm656_vm0, %v7020_v57 }
 0x16f   : > { %7688 = vmatprep.mubr.msk.f32.mxu0 %vm656_vm0, %v7021_v58 }
 0x172   : > { %7689 = vmatmul.mubr.msk.f32.gmra.mrb[14].mxu0 %vm656_vm0, %v7022_v59 }
 0x173   : > { %7845 = vmatprep.mubr.msk.f32.mxu0 %vm9242_vm3, %v9243_v3 }
 0x229   : > { %v7669_v5 = vpop.f32.mrb[0].mxu0 }
 0x22a   : > { %v9761_v6 = vadd.f32 %v7669_v5, %v7040_v4  ;;  %v1203_v7 = vpop.f32.mrb[1].mxu0 }
 0x22b   : > { %v9763_v8 = vadd.f32 %v7040_v4, %v1203_v7 }
 0x22c   : > { %v1322_v9 = vsel %vm579_vm2, %v9761_v6, 0.0 }
 0x22d   : > { %v1321_v10 = vsel %vm579_vm2, %v9763_v8, 0.0  ;;  %v7672_v11 = vpop.f32.mrb[2].mxu0 }
 0x22e   : > { %v1213_v12 = vpop.f32.mrb[3].mxu0  ;;  %v9769_v13 = vadd.f32 %v7672_v11, %v7040_v4  ;;  %v1323_v15 = vadd.f32 %v1322_v9, %v1321_v10 }
 0x22f   : > { %v9771_v14 = vadd.f32 %v7040_v4, %v1213_v12 }
 0x230   : > { %v1326_v20 = vsel %vm579_vm2, %v9769_v13, 0.0 }
 0x231   : > { %v1324_v16 = vsel %vm579_vm2, %v9771_v14, 0.0  ;;  %v7675_v17 = vpop.f32.mrb[4].mxu0 }
 0x232   : > { %v1325_v18 = vadd.f32 %v1324_v16, %v1323_v15  ;;  %v1223_v19 = vpop.f32.mrb[5].mxu0  ;;  %v9777_v21 = vadd.f32 %v7675_v17, %v7040_v4 }
 0x233   : > { %v9779_v22 = vadd.f32 %v7040_v4, %v1223_v19 }
 0x234   : > { %v1327_v23 = vadd.f32 %v1326_v20, %v1325_v18  ;;  %v1330_v28 = vsel %vm579_vm2, %v9777_v21, 0.0 }
 0x235   : > { %v1328_v24 = vsel %vm579_vm2, %v9779_v22, 0.0  ;;  %v7678_v25 = vpop.f32.mrb[6].mxu0 }
 0x236   : > { %v1329_v26 = vadd.f32 %v1328_v24, %v1327_v23  ;;  %v1233_v27 = vpop.f32.mrb[7].mxu0  ;;  %v9785_v29 = vadd.f32 %v7678_v25, %v7040_v4 }
 0x237   : > { %v9787_v30 = vadd.f32 %v7040_v4, %v1233_v27 }
 0x238   : > { %v1331_v31 = vadd.f32 %v1330_v28, %v1329_v26  ;;  %v1334_v36 = vsel %vm579_vm2, %v9785_v29, 0.0 }
 0x239   : > { %v1332_v32 = vsel %vm579_vm2, %v9787_v30, 0.0  ;;  %v7681_v33 = vpop.f32.mrb[8].mxu0 }
 0x23a   : > { %v1333_v34 = vadd.f32 %v1332_v32, %v1331_v31  ;;  %v1243_v35 = vpop.f32.mrb[9].mxu0  ;;  %v9793_v37 = vadd.f32 %v7681_v33, %v7040_v4 }
 0x23b   : > { %v9795_v38 = vadd.f32 %v7040_v4, %v1243_v35 }
 0x23c   : > { %v1335_v39 = vadd.f32 %v1334_v36, %v1333_v34  ;;  %v1338_v44 = vsel %vm579_vm2, %v9793_v37, 0.0 }
 0x23d   : > { %v1336_v40 = vsel %vm579_vm2, %v9795_v38, 0.0  ;;  %v7684_v41 = vpop.f32.mrb[10].mxu0 }
 0x23e   : > { %v1337_v42 = vadd.f32 %v1336_v40, %v1335_v39  ;;  %v1253_v43 = vpop.f32.mrb[11].mxu0  ;;  %v9801_v45 = vadd.f32 %v7684_v41, %v7040_v4 }
 0x23f   : > { %v9803_v46 = vadd.f32 %v7040_v4, %v1253_v43 }
 0x240   : > { %v1339_v47 = vadd.f32 %v1338_v44, %v1337_v42  ;;  %v1342_v52 = vsel %vm579_vm2, %v9801_v45, 0.0 }
 0x241   : > { %v1340_v48 = vsel %vm579_vm2, %v9803_v46, 0.0  ;;  %v7687_v49 = vpop.f32.mrb[12].mxu0 }
 0x242   : > { %v1341_v50 = vadd.f32 %v1340_v48, %v1339_v47  ;;  %v1263_v51 = vpop.f32.mrb[13].mxu0  ;;  %v9809_v53 = vadd.f32 %v7687_v49, %v7040_v4 }
 0x243   : > { %v9811_v54 = vadd.f32 %v7040_v4, %v1263_v51 }
 0x244   : > { %v1343_v55 = vadd.f32 %v1342_v52, %v1341_v50  ;;  %v1346_v60 = vsel %vm579_vm2, %v9809_v53, 0.0 }
 0x245   : > { %v1344_v56 = vsel %vm579_vm2, %v9811_v54, 0.0  ;;  %v7690_v57 = vpop.f32.mrb[14].mxu0 }
 0x246   : > { %v1345_v58 = vadd.f32 %v1344_v56, %v1343_v55  ;;  %v1273_v59 = vpop.f32.mrb[15].mxu0  ;;  %v9817_v61 = vadd.f32 %v7690_v57, %v7040_v4 }
 0x247   : > { %v9819_v0 = vadd.f32 %v7040_v4, %v1273_v59  ;;  %v1432_v4 = vlaneseq }
 0x248   : > { %v1347_v1 = vadd.f32 %v1346_v60, %v1345_v58  ;;  %v1350_v9 = vsel %vm579_vm2, %v9817_v61, 0.0 }
 0x249   : > { %v1348_v5 = vsel %vm579_vm2, %v9819_v0, 0.0  ;;  %v1433_v19 = vshrl.u32 %v1432_v4, 7 }
 0x24a   : > { %v1349_v7 = vadd.f32 %v1348_v5, %v1347_v1 }
 0x24b   : > { %v9831_v20 = vsub.s32 0, %v1433_v19 }
 0x24c   : > { %v1351_v10 = vadd.f32 %v1350_v9, %v1349_v7 }
 0x24e   : > { %v1352_v11 = vrot.slane %v1351_v10, 4 }
 0x250   : > { %v1353_v12 = vadd.f32 %v1352_v11, %v1351_v10 }
 0x252   : > { %v1354_v15 = vrot.slane %v1353_v12, 2 }
 0x254   : > { %v1355_v16 = vadd.f32 %v1354_v15, %v1353_v12 }
 0x256   : > { %v1356_v17 = vrot.slane %v1355_v16, 1 }
 0x258   : > { %v1357_v18 = vadd.f32 %v1356_v17, %v1355_v16 }
 0x25a   : > { %7700 = vmatmul.mubr.msk.f32.vlgmr.msra.gmra.mrb[0].mxu1 %vm579_vm2, %v1357_v18 }
 0x25b   : > { %8330 = vmatpush3.bf16.msra.mxu1 %v9725_v62  ;;  %7710 = vmatprep.mubr.msk.f32.mxu1 %vm9242_vm3, %v9243_v3 }
 0x25c   : > { %8331 = vmatprep.subr.bf16.mxu1 %v9241_v63 }
 0x25f   : > { %8333 = vmatpush3.bf16.msra.mxu1 %v9736_v2 }
 0x32d   : > { %v1427_v23 = vpop.f32.mrb[0].mxu1 }
 0x32e   : > { %v1431_v24 = vmul.f32 0.00390625, %v1427_v23  ;;  %v7701_v25 = vpop.f32.mrb[1].mxu1 }
 0x330   : > { %v1435_v26 = vrot.slane %v1431_v24, %v9831_v20 }
 0x332   : > { %v9835_v27 = vsub.f32 %v9763_v8, %v1435_v26  ;;  %v9838_v28 = vsub.f32 %v9761_v6, %v1435_v26  ;;  %v9841_v31 = vsub.f32 %v9771_v14, %v1435_v26  ;;  %v9844_v32 = vsub.f32 %v9769_v13, %v1435_v26 }
 0x333   : > { %v9851_v35 = vsub.f32 %v9779_v22, %v1435_v26  ;;  %v9856_v6 = vsub.f32 %v9777_v21, %v1435_v26  ;;  %v9863_v40 = vsub.f32 %v9787_v30, %v1435_v26  ;;  %v9869_v21 = vsub.f32 %v9785_v29, %v1435_v26 }
 0x334   : > { %v1452_v33 = vmul.f32 %v9835_v27, %v9835_v27  ;;  %v1453_v34 = vmul.f32 %v9838_v28, %v9838_v28  ;;  %v1454_v8 = vmul.f32 %v9841_v31, %v9841_v31  ;;  %v1455_v14 = vmul.f32 %v9844_v32, %v9844_v32 }
 0x335   : > { %v1456_v22 = vmul.f32 %v9851_v35, %v9851_v35  ;;  %v1457_v43 = vmul.f32 %v9856_v6, %v9856_v6  ;;  %v9875_v48 = vsub.f32 %v9795_v38, %v1435_v26  ;;  %v1458_v30 = vmul.f32 %v9863_v40, %v9863_v40 }
 0x336   : > { %v1468_v13 = vsel %vm579_vm2, %v1452_v33, 0.0  ;;  %v1469_v36 = vsel %vm579_vm2, %v1453_v34, 0.0  ;;  %v1471_v41 = vsel %vm579_vm2, %v1454_v8, 0.0  ;;  %v1473_v44 = vsel %vm579_vm2, %v1455_v14, 0.0 }
 0x337   : > { %v1470_v39 = vadd.f32 %v1469_v36, %v1468_v13  ;;  %v1475_v49 = vsel %vm579_vm2, %v1456_v22, 0.0  ;;  %v9881_v51 = vsub.f32 %v9793_v37, %v1435_v26  ;;  %v1459_v29 = vmul.f32 %v9869_v21, %v9869_v21 }
 0x338   : > { %v1477_v52 = vsel %vm579_vm2, %v1457_v43, 0.0  ;;  %v9887_v56 = vsub.f32 %v9803_v46, %v1435_v26  ;;  %v1460_v38 = vmul.f32 %v9875_v48, %v9875_v48  ;;  %v1479_v57 = vsel %vm579_vm2, %v1458_v30, 0.0  ;;  %v1845_v43 = vld [vmem:[#allocation7 + $0x20] sm:$0xff] }
 0x339   : > { %v1472_v42 = vadd.f32 %v1471_v41, %v1470_v39  ;;  %v9893_v59 = vsub.f32 %v9801_v45, %v1435_v26  ;;  %v1461_v37 = vmul.f32 %v9881_v51, %v9881_v51  ;;  %v1481_v60 = vsel %vm579_vm2, %v1459_v29, 0.0  ;;  %v1824_v29 = vld [vmem:[#allocation7] sm:$0xff] }
 0x33a   : > { %v9899_v5 = vsub.f32 %v9811_v54, %v1435_v26  ;;  %v1462_v46 = vmul.f32 %v9887_v56, %v9887_v56  ;;  %v1483_v7 = vsel %vm579_vm2, %v1460_v38, 0.0  ;;  %v9905_v10 = vsub.f32 %v9809_v53, %v1435_v26 }
 0x33b   : > { %v1474_v47 = vadd.f32 %v1473_v44, %v1472_v42  ;;  %v1463_v45 = vmul.f32 %v9893_v59, %v9893_v59  ;;  %v1485_v11 = vsel %vm579_vm2, %v1461_v37, 0.0  ;;  %v9911_v15 = vsub.f32 %v9819_v0, %v1435_v26  ;;  %v1846_v44 = vld [vmem:[#allocation7 + $0x28] sm:$0xff] }
 0x33c   : > { %v1464_v54 = vmul.f32 %v9899_v5, %v9899_v5  ;;  %v1487_v16 = vsel %vm579_vm2, %v1462_v46, 0.0  ;;  %v9917_v18 = vsub.f32 %v9817_v61, %v1435_v26  ;;  %v1465_v53 = vmul.f32 %v9905_v10, %v9905_v10  ;;  %v9937_v46 = vld [vmem:[#allocation10] ss:$0 sm:$0xff] }
 0x33d   : > { %v1476_v50 = vadd.f32 %v1475_v49, %v1474_v47  ;;  %v1489_v4 = vsel %vm579_vm2, %v1463_v45, 0.0  ;;  %v1466_v23 = vmul.f32 %v9911_v15, %v9911_v15  ;;  %v1847_v47 = vld [vmem:[#allocation7 + $0x30] sm:$0xff]  ;;  %v8334_v30 = vpack.c.bf16 %v1846_v44, %v1845_v43  ;;  %v1848_v49 = vld [vmem:[#allocation7 + $0x38] sm:$0xff] }
 0x33e   : > { %v1491_v0 = vsel %vm579_vm2, %v1464_v54, 0.0  ;;  %v1467_v25 = vmul.f32 %v9917_v18, %v9917_v18  ;;  %v1493_v33 = vsel %vm579_vm2, %v1465_v53, 0.0 }
 0x33f   : > { %v1478_v55 = vadd.f32 %v1477_v52, %v1476_v50  ;;  %v1495_v61 = vsel %vm579_vm2, %v1466_v23, 0.0  ;;  %v8338_v50 = vpack.c.bf16 %v1848_v49, %v1847_v47  ;;  %8335 = vmatprep.subr.bf16.mxu1 %v8334_v30  ;;  %v1825_v52 = vld [vmem:[#allocation7 + $0x8] sm:$0xff] }
 0x340   : > { %v1497_v8 = vsel %vm579_vm2, %v1467_v25, 0.0 }
 0x341   : > { %v1480_v58 = vadd.f32 %v1479_v57, %v1478_v55  ;;  %v9931_v55 = vpack.c.bf16 %v1825_v52, %v1824_v29 }
 0x343   : > { %v1482_v1 = vadd.f32 %v1481_v60, %v1480_v58 }
 0x345   : > { %v1484_v9 = vadd.f32 %v1483_v7, %v1482_v1 }
 0x347   : > { %v1486_v12 = vadd.f32 %v1485_v11, %v1484_v9 }
 0x349   : > { %v1488_v17 = vadd.f32 %v1487_v16, %v1486_v12  ;;  %v9947_v12 = vld [vmem:[#allocation12] ss:$0 sm:$0xff] }
 0x34b   : > { %v1490_v19 = vadd.f32 %v1489_v4, %v1488_v17 }
 0x34d   : > { %v1492_v24 = vadd.f32 %v1491_v0, %v1490_v19 }
 0x34f   : > { %v1494_v34 = vadd.f32 %v1493_v33, %v1492_v24 }
 0x351   : > { %v1496_v26 = vadd.f32 %v1495_v61, %v1494_v34 }
 0x353   : > { %v1498_v14 = vadd.f32 %v1497_v8, %v1496_v26 }
 0x355   : > { %v1499_v13 = vrot.slane %v1498_v14, 4 }
 0x357   : > { %v1500_v36 = vadd.f32 %v1499_v13, %v1498_v14 }
 0x359   : > { %v1501_v39 = vrot.slane %v1500_v36, 2 }
 0x35b   : > { %v1502_v22 = vadd.f32 %v1501_v39, %v1500_v36 }
 0x35d   : > { %v1503_v41 = vrot.slane %v1502_v22, 1 }
 0x35f   : > { %v1504_v42 = vadd.f32 %v1503_v41, %v1502_v22 }
 0x361   : > { %7711 = vmatmul.mubr.msk.f32.vlgmr.msra.gmra.mrb[2].mxu1 %vm579_vm2, %v1504_v42 }
 0x362   : > { %8337 = vmatpush3.bf16.msra.mxu1 %v8334_v30 }
 0x363   : > { %8339 = vmatprep.subr.bf16.mxu1 %v8338_v50 }
 0x366   : > { %8341 = vmatpush3.bf16.msra.mxu1 %v8338_v50 }
 0x367   : > { %8343 = vmatprep.subr.bf16.mxu1 %v9931_v55 }
 0x434   : > { %v1574_v38 = vpop.f32.mrb[2].mxu1 }
 0x435   : > { %v1578_v57 = vmul.f32 0.00390625, %v1574_v38  ;;  %v7712_v58 = vpop.f32.mrb[3].mxu1 }
 0x437   : > { %v1579_v37 = vadd.f32 1e-05, %v1578_v57 }
 0x439   : > { %8835 = vrsqrt.f32 %v1579_v37 }
 0x443   : > { %v8836_v60 = vpop.eup %8835 }
 0x444   : > { %v9935_v1 = vrot.slane %v8836_v60, %v9831_v20 }
 0x446   : > { %v1585_v7 = vmul.f32 %v9935_v1, %v9835_v27  ;;  %v1586_v9 = vmul.f32 %v9935_v1, %v9838_v28  ;;  %v1587_v45 = vmul.f32 %v9935_v1, %v9841_v31  ;;  %v1588_v11 = vmul.f32 %v9935_v1, %v9844_v32 }
 0x447   : > { %v1589_v54 = vmul.f32 %v9935_v1, %v9851_v35  ;;  %v1590_v16 = vmul.f32 %v9935_v1, %v9856_v6  ;;  %v1591_v27 = vmul.f32 %v9935_v1, %v9863_v40  ;;  %v1592_v28 = vmul.f32 %v9935_v1, %v9869_v21 }
 0x448   : > { %v1608_v17 = vmul.f32 %v9937_v46, %v1585_v7  ;;  %v1609_v31 = vmul.f32 %v9937_v46, %v1586_v9  ;;  %v1610_v32 = vmul.f32 %v9937_v46, %v1587_v45  ;;  %v1611_v53 = vmul.f32 %v9937_v46, %v1588_v11 }
 0x449   : > { %v1612_v4 = vmul.f32 %v9937_v46, %v1589_v54  ;;  %v1613_v35 = vmul.f32 %v9937_v46, %v1590_v16  ;;  %v1614_v6 = vmul.f32 %v9937_v46, %v1591_v27  ;;  %v1615_v19 = vmul.f32 %v9937_v46, %v1592_v28 }
 0x44a   : > { %v1631_v40 = vadd.f32 %v9947_v12, %v1608_v17  ;;  %v1632_v21 = vadd.f32 %v9947_v12, %v1609_v31  ;;  %v1633_v23 = vadd.f32 %v9947_v12, %v1610_v32  ;;  %v9969_v0 = vadd.f32 %v9947_v12, %v1611_v53 }
 0x44b   : > { %v9972_v24 = vadd.f32 %v9947_v12, %v1612_v4  ;;  %v9975_v25 = vadd.f32 %v9947_v12, %v1613_v35  ;;  %v9979_v8 = vadd.f32 %v9947_v12, %v1614_v6  ;;  %v9984_v39 = vadd.f32 %v9947_v12, %v1615_v19 }
 0x44c   : > { %v1663_v33 = vmul.f32 0.044715, %v1631_v40  ;;  %v1664_v34 = vmul.f32 0.044715, %v1632_v21  ;;  %v1665_v61 = vmul.f32 0.044715, %v1633_v23  ;;  %v1593_v6 = vmul.f32 %v9935_v1, %v9875_v48 }
 0x44d   : > { %v1666_v26 = vmul.f32 0.044715, %v9969_v0  ;;  %v9981_v14 = vmul.f32 0.5, %v1631_v40  ;;  %v1667_v42 = vmul.f32 0.044715, %v9972_v24  ;;  %v9989_v44 = vmul.f32 0.5, %v1632_v21 }
 0x44e   : > { %v1679_v13 = vmul.f32 %v1663_v33, %v1631_v40  ;;  %v1680_v36 = vmul.f32 %v1664_v34, %v1632_v21  ;;  %v1681_v22 = vmul.f32 %v1665_v61, %v1633_v23  ;;  %v1668_v43 = vmul.f32 0.044715, %v9975_v25 }
 0x44f   : > { %v1682_v41 = vmul.f32 %v1666_v26, %v9969_v0  ;;  %v9991_v49 = vmul.f32 0.5, %v1633_v23  ;;  %v1683_v52 = vmul.f32 %v1667_v42, %v9972_v24  ;;  %v1669_v37 = vmul.f32 0.044715, %v9979_v8 }
 0x450   : > { %v1695_v47 = vmul.f32 %v1679_v13, %v1631_v40  ;;  %v1696_v30 = vmul.f32 %v1680_v36, %v1632_v21  ;;  %v1697_v50 = vmul.f32 %v1681_v22, %v1633_v23  ;;  %v1684_v38 = vmul.f32 %v1668_v43, %v9975_v25 }
 0x451   : > { %v1698_v29 = vmul.f32 %v1682_v41, %v9969_v0  ;;  %v1670_v60 = vmul.f32 0.044715, %v9984_v39  ;;  %v1699_v45 = vmul.f32 %v1683_v52, %v9972_v24  ;;  %v1685_v27 = vmul.f32 %v1669_v37, %v9979_v8 }
 0x452   : > { %v1711_v57 = vadd.f32 %v1695_v47, %v1631_v40  ;;  %v1712_v58 = vadd.f32 %v1696_v30, %v1632_v21  ;;  %v1713_v7 = vadd.f32 %v1697_v50, %v1633_v23  ;;  %v1700_v11 = vmul.f32 %v1684_v38, %v9975_v25 }
 0x453   : > { %v1714_v9 = vadd.f32 %v1698_v29, %v9969_v0  ;;  %v1686_v28 = vmul.f32 %v1670_v60, %v9984_v39  ;;  %v1715_v32 = vadd.f32 %v1699_v45, %v9972_v24  ;;  %v1701_v4 = vmul.f32 %v1685_v27, %v9979_v8 }
 0x454   : > { %v1727_v54 = vmul.f32 0.7978846, %v1711_v57  ;;  %v1728_v16 = vmul.f32 0.7978846, %v1712_v58  ;;  %v1729_v17 = vmul.f32 0.7978846, %v1713_v7  ;;  %v1716_v53 = vadd.f32 %v1700_v11, %v9975_v25 }
 0x455   : > { %v1730_v31 = vmul.f32 0.7978846, %v1714_v9  ;;  %v1702_v35 = vmul.f32 %v1686_v28, %v9984_v39  ;;  %v1731_v19 = vmul.f32 0.7978846, %v1715_v32  ;;  %v1594_v21 = vmul.f32 %v9935_v1, %v9881_v51 }
 0x456   : > { %8837 = vtanh.f32 %v1727_v54  ;;  %v1732_v40 = vmul.f32 0.7978846, %v1716_v53  ;;  %v1717_v23 = vadd.f32 %v1701_v4, %v9979_v8  ;;  %v1616_v34 = vmul.f32 %v9937_v46, %v1593_v6 }
 0x457   : > { %8839 = vtanh.f32 %v1728_v16  ;;  %v1718_v33 = vadd.f32 %v1702_v35, %v9984_v39  ;;  %v1617_v61 = vmul.f32 %v9937_v46, %v1594_v21  ;;  %v1595_v26 = vmul.f32 %v9935_v1, %v9887_v56 }
 0x458   : > { %8841 = vtanh.f32 %v1729_v17  ;;  %v1596_v48 = vmul.f32 %v9935_v1, %v9893_v59  ;;  %v1733_v13 = vmul.f32 0.7978846, %v1717_v23  ;;  %v10020_v51 = vadd.f32 %v9947_v12, %v1616_v34 }
 0x459   : > { %8843 = vtanh.f32 %v1730_v31  ;;  %v1734_v36 = vmul.f32 0.7978846, %v1718_v33  ;;  %v10023_v22 = vadd.f32 %v9947_v12, %v1617_v61  ;;  %v1618_v41 = vmul.f32 %v9937_v46, %v1595_v26 }
 0x45a   : > { %8845 = vtanh.f32 %v1731_v19  ;;  %v1619_v42 = vmul.f32 %v9937_v46, %v1596_v48  ;;  %v1650_v43 = vmul.f32 0.5, %v9969_v0  ;;  %v1671_v56 = vmul.f32 0.044715, %v10020_v51 }
 0x45b   : > { %8847 = vtanh.f32 %v1732_v40  ;;  %v1597_v59 = vmul.f32 %v9935_v1, %v9899_v5  ;;  %v1651_v47 = vmul.f32 0.5, %v9972_v24  ;;  %v1672_v30 = vmul.f32 0.044715, %v10023_v22 }
 0x45c   : > { %8849 = vtanh.f32 %v1733_v13  ;;  %v10034_v50 = vadd.f32 %v9947_v12, %v1618_v41  ;;  %v1687_v29 = vmul.f32 %v1671_v56, %v10020_v51  ;;  %v10038_v52 = vadd.f32 %v9947_v12, %v1619_v42 }
 0x45d   : > { %8851 = vtanh.f32 %v1734_v36  ;;  %v1598_v0 = vmul.f32 %v9935_v1, %v9905_v10  ;;  %v1620_v38 = vmul.f32 %v9937_v46, %v1597_v59  ;;  %v1652_v5 = vmul.f32 0.5, %v9975_v25 }
 0x45e   : > { %v1653_v24 = vmul.f32 0.5, %v9979_v8  ;;  %v1688_v57 = vmul.f32 %v1672_v30, %v10023_v22  ;;  %v1673_v58 = vmul.f32 0.044715, %v10034_v50  ;;  %v1703_v60 = vmul.f32 %v1687_v29, %v10020_v51 }
 0x45f   : > { %v1674_v7 = vmul.f32 0.044715, %v10038_v52  ;;  %v1621_v9 = vmul.f32 %v9937_v46, %v1598_v0  ;;  %v1599_v10 = vmul.f32 %v9935_v1, %v9911_v15  ;;  %v10055_v54 = vadd.f32 %v9947_v12, %v1620_v38 }
 0x460   : > { %v8838_v37 = vpop.eup %8837  ;;  %v1704_v25 = vmul.f32 %v1688_v57, %v10023_v22  ;;  %v1689_v8 = vmul.f32 %v1673_v58, %v10034_v50  ;;  %v1719_v28 = vadd.f32 %v1703_v60, %v10020_v51  ;;  %v1654_v30 = vmul.f32 0.5, %v9984_v39  ;;  %v1826_v39 = vld [vmem:[#allocation7 + $0x10] sm:$0xff] }
 0x461   : > { %v8840_v45 = vpop.eup %8839  ;;  %v1759_v11 = vadd.f32 1.0, %v8838_v37  ;;  %v1690_v17 = vmul.f32 %v1674_v7, %v10038_v52  ;;  %v10060_v31 = vadd.f32 %v9947_v12, %v1621_v9  ;;  %v1675_v38 = vmul.f32 0.044715, %v10055_v54 }
 0x462   : > { %v8842_v16 = vpop.eup %8841  ;;  %v1760_v27 = vadd.f32 1.0, %v8840_v45  ;;  %v1720_v4 = vadd.f32 %v1704_v25, %v10023_v22  ;;  %v1705_v35 = vmul.f32 %v1689_v8, %v10034_v50  ;;  %v1735_v21 = vmul.f32 0.7978846, %v1719_v28 }
 0x463   : > { %v8844_v32 = vpop.eup %8843  ;;  %v1775_v15 = vmul.f32 %v1759_v11, %v9981_v14  ;;  %v1761_v53 = vadd.f32 1.0, %v8842_v16  ;;  %v1706_v23 = vmul.f32 %v1690_v17, %v10038_v52  ;;  %v1600_v58 = vmul.f32 %v9935_v1, %v9917_v18  ;;  %v2124_v18 = vld [vmem:[#allocation7 + $0x40] sm:$0xff]  ;;  %v2125_v1 = vld [vmem:[#allocation7 + $0x48] sm:$0xff] }
 0x464   : > { %v8846_v6 = vpop.eup %8845  ;;  %v1776_v19 = vmul.f32 %v1760_v27, %v9989_v44  ;;  %v1762_v40 = vadd.f32 1.0, %v8844_v32  ;;  %v1736_v26 = vmul.f32 0.7978846, %v1720_v4  ;;  %v1721_v14 = vadd.f32 %v1705_v35, %v10034_v50 }
 0x465   : > { %v8848_v33 = vpop.eup %8847  ;;  %1791 = vst.msk [vmem:[#allocation2 + $0x1] sm:$0xff] %vm579_vm2, %v1775_v15  ;;  %v1777_v34 = vmul.f32 %v1761_v53, %v9991_v49  ;;  %v1763_v61 = vadd.f32 1.0, %v8846_v6  ;;  %8853 = vtanh.f32 %v1735_v21  ;;  %v1722_v44 = vadd.f32 %v1706_v23, %v10038_v52 }
 0x466   : > { %v8850_v48 = vpop.eup %8849  ;;  %1792 = vst.msk [vmem:[#allocation2 + $0x9] sm:$0xff] %vm579_vm2, %v1776_v19  ;;  %v1778_v13 = vmul.f32 %v1762_v40, %v1650_v43  ;;  %v1764_v36 = vadd.f32 1.0, %v8848_v33  ;;  %8855 = vtanh.f32 %v1736_v26  ;;  %v1737_v59 = vmul.f32 0.7978846, %v1721_v14 }
 0x467   : > { %v8852_v41 = vpop.eup %8851  ;;  %1793 = vst.msk [vmem:[#allocation2 + $0x11] sm:$0xff] %vm579_vm2, %v1777_v34  ;;  %v1779_v42 = vmul.f32 %v1763_v61, %v1651_v47  ;;  %v1765_v56 = vadd.f32 1.0, %v8850_v48  ;;  %v1738_v0 = vmul.f32 0.7978846, %v1722_v44  ;;  %v1676_v47 = vmul.f32 0.044715, %v10060_v31 }
 0x468   : > { %1794 = vst.msk [vmem:[#allocation2 + $0x19] sm:$0xff] %vm579_vm2, %v1778_v13  ;;  %v1780_v49 = vmul.f32 %v1764_v36, %v1652_v5  ;;  %v1766_v29 = vadd.f32 1.0, %v8852_v41  ;;  %8857 = vtanh.f32 %v1737_v59  ;;  %v1827_v5 = vld [vmem:[#allocation7 + $0x18] sm:$0xff]  ;;  %v1691_v37 = vmul.f32 %v1675_v38, %v10055_v54 }
 0x469   : > { %1795 = vst.msk [vmem:[#allocation2 + $0x21] sm:$0xff] %vm579_vm2, %v1779_v42  ;;  %v1781_v43 = vmul.f32 %v1765_v56, %v1653_v24  ;;  %8859 = vtanh.f32 %v1738_v0  ;;  %v1622_v24 = vmul.f32 %v9937_v46, %v1599_v10  ;;  %v1692_v60 = vmul.f32 %v1676_v47, %v10060_v31 }
 0x46a   : > { %1796 = vst.msk [vmem:[#allocation2 + $0x29] sm:$0xff] %vm579_vm2, %v1780_v49  ;;  %v1782_v57 = vmul.f32 %v1766_v29, %v1654_v30  ;;  %v1623_v7 = vmul.f32 %v9937_v46, %v1600_v58  ;;  %v1707_v45 = vmul.f32 %v1691_v37, %v10055_v54  ;;  %v8346_v25 = vpack.c.bf16 %v1827_v5, %v1826_v39 }
 0x46b   : > { %1797 = vst.msk [vmem:[#allocation2 + $0x31] sm:$0xff] %vm579_vm2, %v1781_v43  ;;  %v10089_v11 = vadd.f32 %v9947_v12, %v1622_v24  ;;  %v1708_v8 = vmul.f32 %v1692_v60, %v10060_v31  ;;  %v10101_v15 = vpack.c.bf16 %v2125_v1, %v2124_v18  ;;  %v1656_v40 = vmul.f32 0.5, %v10023_v22 }
 0x46c   : > { %1798 = vst.msk [vmem:[#allocation2 + $0x39] sm:$0xff] %vm579_vm2, %v1782_v57  ;;  %v10094_v10 = vadd.f32 %v9947_v12, %v1623_v7  ;;  %v1723_v27 = vadd.f32 %v1707_v45, %v10055_v54  ;;  %v1655_v12 = vmul.f32 0.5, %v10020_v51  ;;  %v1658_v41 = vmul.f32 0.5, %v10038_v52 }
 0x46d   : > { %v1829_v9 = vld [vmem:[#allocation2 + $0x1] ss:$2 sm:$0xff]  ;;  %v1677_v46 = vmul.f32 0.044715, %v10089_v11  ;;  %v1724_v17 = vadd.f32 %v1708_v8, %v10060_v31  ;;  %v1659_v38 = vmul.f32 0.5, %v10055_v54  ;;  %v1660_v47 = vmul.f32 0.5, %v10060_v31 }
 0x46e   : > { %7721 = vmatprep.mubr.msk.f32.mxu1 %vm579_vm2, %v1829_v9  ;;  %v1678_v32 = vmul.f32 0.044715, %v10094_v10  ;;  %v1739_v6 = vmul.f32 0.7978846, %v1723_v27  ;;  %v1661_v7 = vmul.f32 0.5, %v10089_v11  ;;  %v1662_v54 = vmul.f32 0.5, %v10094_v10 }
 0x46f   : > { %v1831_v16 = vld [vmem:[#allocation2 + $0x11] ss:$2 sm:$0xff]  ;;  %v8854_v28 = vpop.eup %8853  ;;  %v1693_v19 = vmul.f32 %v1677_v46, %v10089_v11  ;;  %v1740_v23 = vmul.f32 0.7978846, %v1724_v17  ;;  %v2126_v8 = vld [vmem:[#allocation7 + $0x50] sm:$0xff] }
 0x470   : > { %7722 = vmatmul.mubr.msk.f32.vlgmr.msra.gmra.mrb[4].mxu1 %vm579_vm2, %v1831_v16  ;;  %v8856_v53 = vpop.eup %8855  ;;  %v1767_v35 = vadd.f32 1.0, %v8854_v28  ;;  %v1694_v33 = vmul.f32 %v1678_v32, %v10094_v10  ;;  %8861 = vtanh.f32 %v1739_v6  ;;  %v2127_v16 = vld [vmem:[#allocation7 + $0x58] sm:$0xff]  ;;  %v1809_v27 = vld [vmem:[#allocation2] ss:$2 sm:$0xff] }
 0x471   : > { %v1833_v4 = vld [vmem:[#allocation2 + $0x21] ss:$2 sm:$0xff]  ;;  %8345 = vmatpush3.bf16.msra.mxu1 %v9931_v55  ;;  %v1768_v21 = vadd.f32 1.0, %v8856_v53  ;;  %v1657_v55 = vmul.f32 0.5, %v10034_v50  ;;  %v1709_v51 = vmul.f32 %v1693_v19, %v10089_v11  ;;  %8863 = vtanh.f32 %v1740_v23  ;;  %v1813_v36 = vld [vmem:[#allocation2 + $0x20] ss:$2 sm:$0xff] }
 0x472   : > { %7724 = vmatprep.mubr.msk.f32.mxu1 %vm579_vm2, %v1833_v4  ;;  %8347 = vmatprep.subr.bf16.mxu1 %v8346_v25  ;;  %v8858_v34 = vpop.eup %8857  ;;  %v1783_v26 = vmul.f32 %v1767_v35, %v1655_v12  ;;  %v1710_v22 = vmul.f32 %v1694_v33, %v10094_v10  ;;  %v10113_v44 = vld [vmem:[#allocation2 + $0x22] ss:$2 sm:$0xff]  ;;  %v2110_v4 = vld [vmem:[#allocation2 + $0x12] ss:$2 sm:$0xff] }
 0x473   : > { %v1835_v61 = vld [vmem:[#allocation2 + $0x31] ss:$2 sm:$0xff]  ;;  %v8860_v14 = vpop.eup %8859  ;;  %v1784_v48 = vmul.f32 %v1768_v21, %v1656_v40  ;;  %v1769_v13 = vadd.f32 1.0, %v8858_v34  ;;  %v1725_v50 = vadd.f32 %v1709_v51, %v10089_v11  ;;  %3223 = vst.msk [vmem:[#allocation2 + $0x21] sm:$0xf] %vm1807_vm4, %v9243_v3  ;;  %v8354_v11 = vpack.c.bf16 %v2127_v16, %v2126_v8 }
 0x474   : > { %7725 = vmatmul.mubr.msk.f32.gmra.mrb[6].mxu1 %vm579_vm2, %v1835_v61  ;;  %1799 = vst.msk [vmem:[#allocation2 + $0x41] sm:$0xff] %vm579_vm2, %v1783_v26  ;;  %v1770_v42 = vadd.f32 1.0, %v8860_v14  ;;  %v1726_v59 = vadd.f32 %v1710_v22, %v10094_v10  ;;  %v1811_v10 = vld [vmem:[#allocation2 + $0x10] ss:$2 sm:$0xff]  ;;  %v7069_v21 = vld [vmem:[#allocation9 + $0x1] ss:$0 sm:$0xff] }
 0x475   : > { %8349 = vmatpush3.bf16.msra.mxu1 %v8346_v25  ;;  %1800 = vst.msk [vmem:[#allocation2 + $0x49] sm:$0xff] %vm579_vm2, %v1784_v48  ;;  %v1785_v56 = vmul.f32 %v1769_v13, %v1657_v55  ;;  %v1741_v30 = vmul.f32 0.7978846, %v1725_v50  ;;  %v1815_v46 = vld [vmem:[#allocation2 + $0x30] ss:$2 sm:$0xff] }
 0x476   : > { %8351 = vmatprep.subr.bf16.mxu1 %v10101_v15  ;;  %v1786_v49 = vmul.f32 %v1770_v42, %v1658_v41  ;;  %v1742_v29 = vmul.f32 0.7978846, %v1726_v59  ;;  %v2114_v12 = vld [vmem:[#allocation2 + $0x32] ss:$2 sm:$0xff] }
 0x477   : > { %1801 = vst.msk [vmem:[#allocation2 + $0x51] sm:$0xff] %vm579_vm2, %v1785_v56  ;;  %8865 = vtanh.f32 %v1741_v30 }
 0x478   : > { %1802 = vst.msk [vmem:[#allocation2 + $0x59] sm:$0xff] %vm579_vm2, %v1786_v49  ;;  %8867 = vtanh.f32 %v1742_v29 }
 0x47a   : > { %v8862_v52 = vpop.eup %8861 }
 0x47b   : > { %v8864_v43 = vpop.eup %8863  ;;  %v1771_v57 = vadd.f32 1.0, %v8862_v52 }
 0x47c   : > { %v1837_v0 = vld [vmem:[#allocation2 + $0x41] ss:$2 sm:$0xff]  ;;  %v1772_v58 = vadd.f32 1.0, %v8864_v43  ;;  %v1817_v28 = vld [vmem:[#allocation2 + $0x40] ss:$2 sm:$0xff] }
 0x47d   : > { %7727 = vmatprep.mubr.msk.f32.mxu1 %vm579_vm2, %v1837_v0  ;;  %v1787_v5 = vmul.f32 %v1771_v57, %v1659_v38  ;;  %v2116_v35 = vld [vmem:[#allocation2 + $0x42] ss:$2 sm:$0xff] }
 0x47e   : > { %v1788_v37 = vmul.f32 %v1772_v58, %v1660_v47 }
 0x47f   : > { %v1839_v39 = vld [vmem:[#allocation2 + $0x51] ss:$2 sm:$0xff]  ;;  %1803 = vst.msk [vmem:[#allocation2 + $0x61] sm:$0xff] %vm579_vm2, %v1787_v5  ;;  %v1819_v17 = vld [vmem:[#allocation2 + $0x50] ss:$2 sm:$0xff] }
 0x480   : > { %7728 = vmatmul.mubr.msk.f32.gmra.mrb[8].mxu1 %vm579_vm2, %v1839_v39  ;;  %1804 = vst.msk [vmem:[#allocation2 + $0x69] sm:$0xff] %vm579_vm2, %v1788_v37  ;;  %v2118_v6 = vld [vmem:[#allocation2 + $0x52] ss:$2 sm:$0xff] }
 0x481   : > { %v8866_v24 = vpop.eup %8865 }
 0x482   : > { %v8868_v60 = vpop.eup %8867  ;;  %v1773_v9 = vadd.f32 1.0, %v8866_v24 }
 0x483   : > { %v1774_v45 = vadd.f32 1.0, %v8868_v60 }
 0x484   : > { %v1789_v18 = vmul.f32 %v1773_v9, %v1661_v7 }
 0x485   : > { %v1790_v31 = vmul.f32 %v1774_v45, %v1662_v54 }
 0x486   : > { %1805 = vst.msk [vmem:[#allocation2 + $0x71] sm:$0xff] %vm579_vm2, %v1789_v18 }
 0x487   : > { %1806 = vst.msk [vmem:[#allocation2 + $0x79] sm:$0xff] %vm579_vm2, %v1790_v31  ;;  %v1841_v1 = vld [vmem:[#allocation2 + $0x61] ss:$2 sm:$0xff]  ;;  %v1821_v32 = vld [vmem:[#allocation2 + $0x60] ss:$2 sm:$0xff] }
 0x488   : > { %7730 = vmatprep.mubr.msk.f32.mxu1 %vm579_vm2, %v1841_v1  ;;  %v2120_v19 = vld [vmem:[#allocation2 + $0x62] ss:$2 sm:$0xff] }
 0x48e   : > { %v1843_v25 = vld [vmem:[#allocation2 + $0x71] ss:$2 sm:$0xff]  ;;  %v1823_v53 = vld [vmem:[#allocation2 + $0x70] ss:$2 sm:$0xff] }
 0x48f   : > { %7731 = vmatmul.mubr.msk.f32.gmra.mrb[10].mxu1 %vm579_vm2, %v1843_v25  ;;  %v2122_v40 = vld [vmem:[#allocation2 + $0x72] ss:$2 sm:$0xff] }
 0x490   : > { %7741 = vmatprep.mubr.msk.f32.mxu1 %vm579_vm2, %v1809_v27 }
 0x493   : > { %7742 = vmatmul.mubr.msk.f32.vlgmr.msra.gmra.mrb[4].mxu1 %vm579_vm2, %v1811_v10 }
 0x494   : > { %7744 = vmatprep.mubr.msk.f32.mxu1 %vm579_vm2, %v1813_v36  ;;  %8353 = vmatpush3.bf16.msra.mxu1 %v10101_v15  ;;  %v2108_v15 = vld [vmem:[#allocation2 + $0x2] ss:$2 sm:$0xff] }
 0x495   : > { %8355 = vmatprep.subr.bf16.mxu1 %v8354_v11 }
 0x497   : > { %7745 = vmatmul.mubr.msk.f32.gmra.mrb[6].mxu1 %vm579_vm2, %v1815_v46 }
 0x498   : > { %7747 = vmatprep.mubr.msk.f32.mxu1 %vm579_vm2, %v1817_v28  ;;  %8357 = vmatpush3.bf16.msra.mxu1 %v8354_v11 }
 0x499   : > { %8358 = vmatprep.subr.bf16.mxu1 %v9241_v63 }
 0x49b   : > { %7748 = vmatmul.mubr.msk.f32.gmra.mrb[8].mxu1 %vm579_vm2, %v1819_v17 }
 0x49c   : > { %7750 = vmatprep.mubr.msk.f32.mxu1 %vm579_vm2, %v1821_v32 }
 0x49f   : > { %7751 = vmatmul.mubr.msk.f32.gmra.mrb[10].mxu1 %vm579_vm2, %v1823_v53 }
 0x4a0   : > { %7761 = vmatprep.mubr.msk.f32.mxu1 %vm579_vm2, %v2108_v15 }
 0x4a3   : > { %7762 = vmatmul.mubr.msk.f32.vlgmr.msra.gmra.mrb[4].mxu1 %vm579_vm2, %v2110_v4 }
 0x4a4   : > { %7764 = vmatprep.mubr.msk.f32.mxu1 %vm579_vm2, %v10113_v44  ;;  %8360 = vmatpush3.bf16.msra.mxu1 %v9725_v62 }
 0x4a5   : > { %8361 = vmatprep.subr.bf16.mxu1 %v9241_v63 }
 0x4a7   : > { %7765 = vmatmul.mubr.msk.f32.gmra.mrb[6].mxu1 %vm579_vm2, %v2114_v12 }
 0x4a8   : > { %7767 = vmatprep.mubr.msk.f32.mxu1 %vm579_vm2, %v2116_v35  ;;  %8363 = vmatpush3.bf16.msra.mxu1 %v9736_v2 }
 0x4a9   : > { %8364 = vmatprep.subr.bf16.mxu1 %v9241_v63 }
 0x4ab   : > { %7768 = vmatmul.mubr.msk.f32.gmra.mrb[8].mxu1 %vm579_vm2, %v2118_v6 }
 0x4ac   : > { %7770 = vmatprep.mubr.msk.f32.mxu1 %vm579_vm2, %v2120_v19 }
 0x4af   : > { %7771 = vmatmul.mubr.msk.f32.gmra.mrb[10].mxu1 %vm579_vm2, %v2122_v40 }
 0x4b0   : > { %7781 = vmatprep.mubr.msk.f32.mxu1 %vm9242_vm3, %v9243_v3 }
 0x576   : > { %v7763_v23 = vpop.f32.mrb[4].mxu1 }
 0x577   : > { %v2274_v33 = vadd.f32 %v7763_v23, %v7069_v21  ;;  %v2218_v34 = vpop.f32.mrb[5].mxu1 }
 0x578   : > { %v2273_v61 = vadd.f32 %v7069_v21, %v2218_v34 }
 0x579   : > { %v2282_v26 = vsel %vm579_vm2, %v2274_v33, 0.0 }
 0x57a   : > { %v2281_v55 = vsel %vm579_vm2, %v2273_v61, 0.0  ;;  %v7766_v51 = vpop.f32.mrb[6].mxu1 }
 0x57b   : > { %v2228_v14 = vpop.f32.mrb[7].mxu1  ;;  %v2276_v48 = vadd.f32 %v7766_v51, %v7069_v21  ;;  %v2283_v22 = vadd.f32 %v2282_v26, %v2281_v55 }
 0x57c   : > { %v2275_v13 = vadd.f32 %v7069_v21, %v2228_v14 }
 0x57d   : > { %v2286_v50 = vsel %vm579_vm2, %v2276_v48, 0.0 }
 0x57e   : > { %v2284_v36 = vsel %vm579_vm2, %v2275_v13, 0.0  ;;  %v7769_v44 = vpop.f32.mrb[8].mxu1 }
 0x57f   : > { %v2285_v41 = vadd.f32 %v2284_v36, %v2283_v22  ;;  %v2238_v42 = vpop.f32.mrb[9].mxu1  ;;  %v2278_v56 = vadd.f32 %v7769_v44, %v7069_v21 }
 0x580   : > { %v2277_v59 = vadd.f32 %v7069_v21, %v2238_v42 }
 0x581   : > { %v2287_v49 = vadd.f32 %v2286_v50, %v2285_v41  ;;  %v2290_v43 = vsel %vm579_vm2, %v2278_v56, 0.0 }
 0x582   : > { %v2288_v30 = vsel %vm579_vm2, %v2277_v59, 0.0  ;;  %v7772_v29 = vpop.f32.mrb[10].mxu1 }
 0x583   : > { %v2289_v52 = vadd.f32 %v2288_v30, %v2287_v49  ;;  %v2248_v0 = vpop.f32.mrb[11].mxu1  ;;  %v2280_v38 = vadd.f32 %v7772_v29, %v7069_v21  ;;  %v2639_v30 = vld [vmem:[#allocation7 + $0x80] sm:$0xff]  ;;  %v2640_v29 = vld [vmem:[#allocation7 + $0x88] sm:$0xff] }
 0x584   : > { %v2279_v57 = vadd.f32 %v7069_v21, %v2248_v0  ;;  %v8370_v0 = vpack.c.bf16 %v2640_v29, %v2639_v30 }
 0x585   : > { %v2291_v47 = vadd.f32 %v2290_v43, %v2289_v52  ;;  %v2294_v5 = vsel %vm579_vm2, %v2280_v38, 0.0  ;;  %v2641_v52 = vld [vmem:[#allocation7 + $0x90] sm:$0xff]  ;;  %v2642_v43 = vld [vmem:[#allocation7 + $0x98] sm:$0xff] }
 0x586   : > { %v2292_v58 = vsel %vm579_vm2, %v2279_v57, 0.0 }
 0x587   : > { %v2293_v39 = vadd.f32 %v2292_v58, %v2291_v47  ;;  %v2627_v47 = vld [vmem:[#allocation7 + $0x68] sm:$0xff] }
 0x589   : > { %v2295_v37 = vadd.f32 %v2294_v5, %v2293_v39 }
 0x58b   : > { %v2296_v24 = vrot.slane %v2295_v37, 4 }
 0x58d   : > { %v2297_v60 = vadd.f32 %v2296_v24, %v2295_v37 }
 0x58f   : > { %v2298_v7 = vrot.slane %v2297_v60, 2 }
 0x591   : > { %v2299_v9 = vadd.f32 %v2298_v7, %v2297_v60 }
 0x593   : > { %v2300_v54 = vrot.slane %v2299_v9, 1 }
 0x595   : > { %v2301_v45 = vadd.f32 %v2300_v54, %v2299_v9  ;;  %v7072_v9 = vld [vmem:[#allocation10 + $0x1] ss:$0 sm:$0xff] }
 0x597   : > { %7782 = vmatmul.mubr.msk.f32.vlgmr.msra.gmra.mrb[12].mxu1 %vm579_vm2, %v2301_v45 }
 0x598   : > { %8366 = vmatpush3.bf16.msra.mxu1 %v9725_v62  ;;  %7792 = vmatprep.mubr.msk.f32.mxu1 %vm9242_vm3, %v9243_v3 }
 0x599   : > { %8367 = vmatprep.subr.bf16.mxu1 %v9241_v63 }
 0x59c   : > { %8369 = vmatpush3.bf16.msra.mxu1 %v9736_v2 }
 0x59d   : > { %8371 = vmatprep.subr.bf16.mxu1 %v8370_v0 }
 0x66a   : > { %v2371_v18 = vpop.f32.mrb[12].mxu1 }
 0x66b   : > { %v2375_v31 = vmul.f32 0.0078125, %v2371_v18  ;;  %v7783_v1 = vpop.f32.mrb[13].mxu1 }
 0x66d   : > { %v2379_v25 = vrot.slane %v2375_v31, %v9831_v20 }
 0x66f   : > { %v2380_v8 = vsub.f32 %v2273_v61, %v2379_v25  ;;  %v2381_v16 = vsub.f32 %v2274_v33, %v2379_v25  ;;  %v2382_v27 = vsub.f32 %v2275_v13, %v2379_v25  ;;  %v2383_v11 = vsub.f32 %v2276_v48, %v2379_v25 }
 0x670   : > { %v2384_v10 = vsub.f32 %v2277_v59, %v2379_v25  ;;  %v2385_v32 = vsub.f32 %v2278_v56, %v2379_v25  ;;  %v2386_v35 = vsub.f32 %v2279_v57, %v2379_v25  ;;  %v2387_v21 = vsub.f32 %v2280_v38, %v2379_v25  ;;  %v2626_v57 = vld [vmem:[#allocation7 + $0x60] sm:$0xff] }
 0x671   : > { %v2388_v46 = vmul.f32 %v2380_v8, %v2380_v8  ;;  %v2389_v28 = vmul.f32 %v2381_v16, %v2381_v16  ;;  %v2390_v17 = vmul.f32 %v2382_v27, %v2382_v27  ;;  %v2391_v53 = vmul.f32 %v2383_v11, %v2383_v11 }
 0x672   : > { %v2392_v6 = vmul.f32 %v2384_v10, %v2384_v10  ;;  %v2393_v23 = vmul.f32 %v2385_v32, %v2385_v32  ;;  %v2394_v61 = vmul.f32 %v2386_v35, %v2386_v35  ;;  %v2395_v51 = vmul.f32 %v2387_v21, %v2387_v21 }
 0x673   : > { %v2396_v15 = vsel %vm579_vm2, %v2388_v46, 0.0  ;;  %v2397_v4 = vsel %vm579_vm2, %v2389_v28, 0.0  ;;  %v2399_v19 = vsel %vm579_vm2, %v2390_v17, 0.0  ;;  %v2401_v33 = vsel %vm579_vm2, %v2391_v53, 0.0  ;;  %v7073_v17 = vld [vmem:[#allocation12 + $0x1] ss:$0 sm:$0xff] }
 0x674   : > { %v2398_v12 = vadd.f32 %v2397_v4, %v2396_v15  ;;  %v2403_v26 = vsel %vm579_vm2, %v2392_v6, 0.0  ;;  %v2405_v14 = vsel %vm579_vm2, %v2393_v23, 0.0  ;;  %v2407_v13 = vsel %vm579_vm2, %v2394_v61, 0.0 }
 0x675   : > { %v2409_v36 = vsel %vm579_vm2, %v2395_v51, 0.0  ;;  %v8374_v38 = vpack.c.bf16 %v2642_v43, %v2641_v52  ;;  %v10186_v58 = vpack.c.bf16 %v2627_v47, %v2626_v57 }
 0x676   : > { %v2400_v40 = vadd.f32 %v2399_v19, %v2398_v12 }
 0x678   : > { %v2402_v34 = vadd.f32 %v2401_v33, %v2400_v40 }
 0x67a   : > { %v2404_v55 = vadd.f32 %v2403_v26, %v2402_v34 }
 0x67c   : > { %v2406_v48 = vadd.f32 %v2405_v14, %v2404_v55 }
 0x67e   : > { %v2408_v22 = vadd.f32 %v2407_v13, %v2406_v48 }
 0x680   : > { %v2410_v44 = vadd.f32 %v2409_v36, %v2408_v22 }
 0x682   : > { %v2411_v41 = vrot.slane %v2410_v44, 4 }
 0x684   : > { %v2412_v42 = vadd.f32 %v2411_v41, %v2410_v44 }
 0x686   : > { %v2413_v50 = vrot.slane %v2412_v42, 2 }
 0x688   : > { %v2414_v56 = vadd.f32 %v2413_v50, %v2412_v42 }
 0x68a   : > { %v2415_v59 = vrot.slane %v2414_v56, 1 }
 0x68c   : > { %v2416_v49 = vadd.f32 %v2415_v59, %v2414_v56 }
 0x68e   : > { %7793 = vmatmul.mubr.msk.f32.vlgmr.msra.gmra.mrb[14].mxu1 %vm579_vm2, %v2416_v49 }
 0x68f   : > { %8373 = vmatpush3.bf16.msra.mxu1 %v8370_v0 }
 0x690   : > { %8375 = vmatprep.subr.bf16.mxu1 %v8374_v38 }
 0x693   : > { %8377 = vmatpush3.bf16.msra.mxu1 %v8374_v38 }
 0x694   : > { %8379 = vmatprep.subr.bf16.mxu1 %v10186_v58 }
 0x761   : > { %v2486_v39 = vpop.f32.mrb[14].mxu1 }
 0x762   : > { %v2490_v5 = vmul.f32 0.0078125, %v2486_v39  ;;  %v7794_v37 = vpop.f32.mrb[15].mxu1 }
 0x764   : > { %v2491_v24 = vadd.f32 1e-05, %v2490_v5 }
 0x766   : > { %8869 = vrsqrt.f32 %v2491_v24 }
 0x770   : > { %v8870_v60 = vpop.eup %8869 }
 0x771   : > { %v2496_v7 = vrot.slane %v8870_v60, %v9831_v20 }
 0x773   : > { %v2497_v54 = vmul.f32 %v2496_v7, %v2380_v8  ;;  %v2498_v45 = vmul.f32 %v2496_v7, %v2381_v16  ;;  %v2499_v18 = vmul.f32 %v2496_v7, %v2382_v27  ;;  %v2500_v31 = vmul.f32 %v2496_v7, %v2383_v11 }
 0x774   : > { %v2501_v1 = vmul.f32 %v2496_v7, %v2384_v10  ;;  %v2502_v25 = vmul.f32 %v2496_v7, %v2385_v32  ;;  %v2503_v46 = vmul.f32 %v2496_v7, %v2386_v35  ;;  %v2504_v28 = vmul.f32 %v2496_v7, %v2387_v21 }
 0x775   : > { %v2513_v53 = vmul.f32 %v7072_v9, %v2497_v54  ;;  %v2514_v15 = vmul.f32 %v7072_v9, %v2498_v45  ;;  %v2515_v4 = vmul.f32 %v7072_v9, %v2499_v18  ;;  %v2516_v12 = vmul.f32 %v7072_v9, %v2500_v31 }
 0x776   : > { %v2517_v6 = vmul.f32 %v7072_v9, %v2501_v1  ;;  %v2518_v19 = vmul.f32 %v7072_v9, %v2502_v25  ;;  %v2519_v40 = vmul.f32 %v7072_v9, %v2503_v46  ;;  %v2520_v23 = vmul.f32 %v7072_v9, %v2504_v28 }
 0x777   : > { %v2529_v33 = vadd.f32 %v7073_v17, %v2513_v53  ;;  %v2530_v34 = vadd.f32 %v7073_v17, %v2514_v15  ;;  %v10190_v61 = vadd.f32 %v7073_v17, %v2515_v4  ;;  %v10192_v8 = vadd.f32 %v7073_v17, %v2516_v12 }
 0x778   : > { %v10194_v16 = vadd.f32 %v7073_v17, %v2517_v6  ;;  %v10196_v27 = vadd.f32 %v7073_v17, %v2518_v19  ;;  %v10200_v21 = vadd.f32 %v7073_v17, %v2519_v40  ;;  %v10202_v26 = vadd.f32 %v7073_v17, %v2520_v23 }
 0x779   : > { %v2545_v11 = vmul.f32 0.044715, %v2529_v33  ;;  %v2546_v10 = vmul.f32 0.044715, %v2530_v34  ;;  %v2547_v32 = vmul.f32 0.044715, %v10190_v61 }
 0x77a   : > { %v2548_v35 = vmul.f32 0.044715, %v10192_v8  ;;  %v2549_v13 = vmul.f32 0.044715, %v10194_v16  ;;  %v2550_v22 = vmul.f32 0.044715, %v10196_v27 }
 0x77b   : > { %v2553_v55 = vmul.f32 %v2545_v11, %v2529_v33  ;;  %v2554_v51 = vmul.f32 %v2546_v10, %v2530_v34  ;;  %v2555_v14 = vmul.f32 %v2547_v32, %v10190_v61  ;;  %v2551_v30 = vmul.f32 0.044715, %v10200_v21 }
 0x77c   : > { %v2556_v48 = vmul.f32 %v2548_v35, %v10192_v8  ;;  %v2557_v50 = vmul.f32 %v2549_v13, %v10194_v16  ;;  %v2558_v56 = vmul.f32 %v2550_v22, %v10196_v27  ;;  %v2552_v29 = vmul.f32 0.044715, %v10202_v26 }
 0x77d   : > { %v2561_v36 = vmul.f32 %v2553_v55, %v2529_v33  ;;  %v2562_v44 = vmul.f32 %v2554_v51, %v2530_v34  ;;  %v2563_v41 = vmul.f32 %v2555_v14, %v10190_v61  ;;  %v2559_v39 = vmul.f32 %v2551_v30, %v10200_v21 }
 0x77e   : > { %v2564_v42 = vmul.f32 %v2556_v48, %v10192_v8  ;;  %v2565_v43 = vmul.f32 %v2557_v50, %v10194_v16  ;;  %v2566_v38 = vmul.f32 %v2558_v56, %v10196_v27  ;;  %v2560_v5 = vmul.f32 %v2552_v29, %v10202_v26  ;;  %v2846_v29 = vld [vmem:[#allocation7 + $0xa0] sm:$0xff] }
 0x77f   : > { %v2569_v59 = vadd.f32 %v2561_v36, %v2529_v33  ;;  %v2570_v49 = vadd.f32 %v2562_v44, %v2530_v34  ;;  %v2571_v52 = vadd.f32 %v2563_v41, %v10190_v61  ;;  %v2567_v9 = vmul.f32 %v2559_v39, %v10200_v21  ;;  %v2848_v39 = vld [vmem:[#allocation7 + $0xb0] sm:$0xff] }
 0x780   : > { %v2572_v0 = vadd.f32 %v2564_v42, %v10192_v8  ;;  %v2573_v60 = vadd.f32 %v2565_v43, %v10194_v16  ;;  %v2574_v7 = vadd.f32 %v2566_v38, %v10196_v27  ;;  %v2568_v54 = vmul.f32 %v2560_v5, %v10202_v26  ;;  %v2849_v5 = vld [vmem:[#allocation7 + $0xb8] sm:$0xff] }
 0x781   : > { %v2577_v57 = vmul.f32 0.7978846, %v2569_v59  ;;  %v2578_v47 = vmul.f32 0.7978846, %v2570_v49  ;;  %v2579_v37 = vmul.f32 0.7978846, %v2571_v52  ;;  %v2575_v31 = vadd.f32 %v2567_v9, %v10200_v21 }
 0x782   : > { %v2580_v24 = vmul.f32 0.7978846, %v2572_v0  ;;  %v2581_v45 = vmul.f32 0.7978846, %v2573_v60  ;;  %v2582_v18 = vmul.f32 0.7978846, %v2574_v7  ;;  %v2576_v1 = vadd.f32 %v2568_v54, %v10202_v26 }
 0x783   : > { %8871 = vtanh.f32 %v2577_v57  ;;  %v2583_v25 = vmul.f32 0.7978846, %v2575_v31  ;;  %v2537_v53 = vmul.f32 0.5, %v2529_v33  ;;  %v2538_v12 = vmul.f32 0.5, %v2530_v34  ;;  %v2628_v59 = vld [vmem:[#allocation7 + $0x70] sm:$0xff]  ;;  %v2629_v49 = vld [vmem:[#allocation7 + $0x78] sm:$0xff] }
 0x784   : > { %8873 = vtanh.f32 %v2578_v47  ;;  %v2584_v46 = vmul.f32 0.7978846, %v2576_v1  ;;  %v2539_v23 = vmul.f32 0.5, %v10190_v61  ;;  %v2540_v35 = vmul.f32 0.5, %v10192_v8  ;;  %v2847_v52 = vld [vmem:[#allocation7 + $0xa8] sm:$0xff] }
 0x785   : > { %8875 = vtanh.f32 %v2579_v37  ;;  %v2541_v33 = vmul.f32 0.5, %v10194_v16  ;;  %v2542_v22 = vmul.f32 0.5, %v10196_v27  ;;  %v2543_v8 = vmul.f32 0.5, %v10200_v21 }
 0x786   : > { %8877 = vtanh.f32 %v2580_v24  ;;  %v2544_v16 = vmul.f32 0.5, %v10202_v26  ;;  %v8382_v30 = vpack.c.bf16 %v2629_v49, %v2628_v59  ;;  %v8386_v57 = vpack.c.bf16 %v2847_v52, %v2846_v29 }
 0x787   : > { %8879 = vtanh.f32 %v2581_v45  ;;  %v8390_v24 = vpack.c.bf16 %v2849_v5, %v2848_v39  ;;  %v7086_v45 = vld [vmem:[#allocation9 + $0x2] ss:$0 sm:$0xff]  ;;  %v3237_v5 = vld [vmem:[#allocation7 + $0xf8] sm:$0xff] }
 0x788   : > { %8881 = vtanh.f32 %v2582_v18 }
 0x789   : > { %8883 = vtanh.f32 %v2583_v25 }
 0x78a   : > { %8885 = vtanh.f32 %v2584_v46 }
 0x78d   : > { %v8872_v28 = vpop.eup %8871 }
 0x78e   : > { %v8874_v17 = vpop.eup %8873  ;;  %v2593_v15 = vadd.f32 1.0, %v8872_v28 }
 0x78f   : > { %v8876_v4 = vpop.eup %8875  ;;  %v2594_v6 = vadd.f32 1.0, %v8874_v17 }
 0x790   : > { %v8878_v19 = vpop.eup %8877  ;;  %v2601_v40 = vmul.f32 %v2593_v15, %v2537_v53  ;;  %v2595_v11 = vadd.f32 1.0, %v8876_v4 }
 0x791   : > { %v8880_v10 = vpop.eup %8879  ;;  %v2602_v32 = vmul.f32 %v2594_v6, %v2538_v12  ;;  %v2596_v55 = vadd.f32 1.0, %v8878_v19 }
 0x792   : > { %v8882_v51 = vpop.eup %8881  ;;  %2609 = vst.msk [vmem:[#allocation3 + $0x1] sm:$0xff] %vm579_vm2, %v2601_v40  ;;  %v2603_v14 = vmul.f32 %v2595_v11, %v2539_v23  ;;  %v2597_v48 = vadd.f32 1.0, %v8880_v10 }
 0x793   : > { %v8884_v13 = vpop.eup %8883  ;;  %2610 = vst.msk [vmem:[#allocation3 + $0x9] sm:$0xff] %vm579_vm2, %v2602_v32  ;;  %v2604_v34 = vmul.f32 %v2596_v55, %v2540_v35  ;;  %v2598_v61 = vadd.f32 1.0, %v8882_v51 }
 0x794   : > { %v8886_v36 = vpop.eup %8885  ;;  %2611 = vst.msk [vmem:[#allocation3 + $0x11] sm:$0xff] %vm579_vm2, %v2603_v14  ;;  %v2605_v44 = vmul.f32 %v2597_v48, %v2541_v33  ;;  %v2599_v41 = vadd.f32 1.0, %v8884_v13 }
 0x795   : > { %2612 = vst.msk [vmem:[#allocation3 + $0x19] sm:$0xff] %vm579_vm2, %v2604_v34  ;;  %v2606_v42 = vmul.f32 %v2598_v61, %v2542_v22  ;;  %v2600_v50 = vadd.f32 1.0, %v8886_v36 }
 0x796   : > { %2613 = vst.msk [vmem:[#allocation3 + $0x21] sm:$0xff] %vm579_vm2, %v2605_v44  ;;  %v2607_v56 = vmul.f32 %v2599_v41, %v2543_v8 }
 0x797   : > { %2614 = vst.msk [vmem:[#allocation3 + $0x29] sm:$0xff] %vm579_vm2, %v2606_v42  ;;  %v2608_v27 = vmul.f32 %v2600_v50, %v2544_v16 }
 0x798   : > { %2615 = vst.msk [vmem:[#allocation3 + $0x31] sm:$0xff] %vm579_vm2, %v2607_v56 }
 0x799   : > { %2616 = vst.msk [vmem:[#allocation3 + $0x39] sm:$0xff] %vm579_vm2, %v2608_v27 }
 0x79a   : > { %v2631_v21 = vld [vmem:[#allocation3 + $0x1] ss:$2 sm:$0xff]  ;;  %v2618_v37 = vld [vmem:[#allocation3] ss:$2 sm:$0xff] }
 0x79b   : > { %7803 = vmatprep.mubr.msk.f32.mxu1 %vm579_vm2, %v2631_v21  ;;  %v2838_v7 = vld [vmem:[#allocation3 + $0x2] ss:$2 sm:$0xff] }
 0x79c   : > { %v2633_v26 = vld [vmem:[#allocation3 + $0x11] ss:$2 sm:$0xff]  ;;  %v2620_v0 = vld [vmem:[#allocation3 + $0x10] ss:$2 sm:$0xff] }
 0x79d   : > { %v2840_v43 = vld [vmem:[#allocation3 + $0x12] ss:$2 sm:$0xff]  ;;  %7804 = vmatmul.mubr.msk.f32.vlgmr.msra.gmra.mrb[16].mxu1 %vm579_vm2, %v2633_v26 }
 0x79e   : > { %3722 = vst.msk [vmem:[#allocation3 + $0x11] sm:$0xf] %vm1807_vm4, %v9243_v3  ;;  %v2635_v38 = vld [vmem:[#allocation3 + $0x21] ss:$2 sm:$0xff]  ;;  %8381 = vmatpush3.bf16.msra.mxu1 %v10186_v58  ;;  %v2622_v60 = vld [vmem:[#allocation3 + $0x20] ss:$2 sm:$0xff] }
 0x79f   : > { %7806 = vmatprep.mubr.msk.f32.mxu1 %vm579_vm2, %v2635_v38  ;;  %8383 = vmatprep.subr.bf16.mxu1 %v8382_v30  ;;  %v2842_v9 = vld [vmem:[#allocation3 + $0x22] ss:$2 sm:$0xff] }
 0x7a0   : > { %v2637_v47 = vld [vmem:[#allocation3 + $0x31] ss:$2 sm:$0xff]  ;;  %v2624_v58 = vld [vmem:[#allocation3 + $0x30] ss:$2 sm:$0xff] }
 0x7a1   : > { %7807 = vmatmul.mubr.msk.f32.gmra.mrb[18].mxu1 %vm579_vm2, %v2637_v47  ;;  %v2844_v54 = vld [vmem:[#allocation3 + $0x32] ss:$2 sm:$0xff] }
 0x7a2   : > { %8385 = vmatpush3.bf16.msra.mxu1 %v8382_v30  ;;  %7817 = vmatprep.mubr.msk.f32.mxu1 %vm579_vm2, %v2618_v37  ;;  %v3234_v38 = vld [vmem:[#allocation7 + $0xe0] sm:$0xff]  ;;  %v3236_v47 = vld [vmem:[#allocation7 + $0xf0] sm:$0xff] }
 0x7a3   : > { %8387 = vmatprep.subr.bf16.mxu1 %v8386_v57  ;;  %v8410_v37 = vpack.c.bf16 %v3237_v5, %v3236_v47 }
 0x7a5   : > { %7818 = vmatmul.mubr.msk.f32.vlgmr.msra.gmra.mrb[16].mxu1 %vm579_vm2, %v2620_v0 }
 0x7a6   : > { %7820 = vmatprep.mubr.msk.f32.mxu1 %vm579_vm2, %v2622_v60  ;;  %8389 = vmatpush3.bf16.msra.mxu1 %v8386_v57  ;;  %v3235_v57 = vld [vmem:[#allocation7 + $0xe8] sm:$0xff] }
 0x7a7   : > { %8391 = vmatprep.subr.bf16.mxu1 %v8390_v24  ;;  %v8406_v39 = vpack.c.bf16 %v3235_v57, %v3234_v38  ;;  %v3228_v60 = vld [vmem:[#allocation7 + $0xc8] sm:$0xff] }
 0x7a9   : > { %7821 = vmatmul.mubr.msk.f32.gmra.mrb[18].mxu1 %vm579_vm2, %v2624_v58 }
 0x7aa   : > { %8393 = vmatpush3.bf16.msra.mxu1 %v8390_v24  ;;  %7831 = vmatprep.mubr.msk.f32.mxu1 %vm579_vm2, %v2838_v7  ;;  %v3227_v24 = vld [vmem:[#allocation7 + $0xc0] sm:$0xff] }
 0x7ab   : > { %8407 = vmatprep.subr.bf16.mxu1 %v8406_v39  ;;  %v10278_v58 = vpack.c.bf16 %v3228_v60, %v3227_v24  ;;  %v3229_v24 = vld [vmem:[#allocation7 + $0xd0] sm:$0xff]  ;;  %v3230_v60 = vld [vmem:[#allocation7 + $0xd8] sm:$0xff] }
 0x7ad   : > { %7832 = vmatmul.mubr.msk.f32.vlgmr.msra.gmra.mrb[16].mxu1 %vm579_vm2, %v2840_v43 }
 0x7ae   : > { %7834 = vmatprep.mubr.msk.f32.mxu1 %vm579_vm2, %v2842_v9  ;;  %8409 = vmatpush3.bf16.msra.mxu1 %v8406_v39 }
 0x7af   : > { %8411 = vmatprep.subr.bf16.mxu1 %v8410_v37 }
 0x7b1   : > { %7835 = vmatmul.mubr.msk.f32.gmra.mrb[18].mxu1 %vm579_vm2, %v2844_v54 }
 0x7b2   : > { %8413 = vmatpush3.bf16.msra.mxu1 %v8410_v37 }
 0x7b3   : > { %8415 = vmatprep.subr.bf16.mxu1 %v10278_v58 }
 0x880   : > { %v7833_v18 = vpop.f32.mrb[16].mxu1 }
 0x881   : > { %v2960_v31 = vadd.f32 %v7833_v18, %v7086_v45  ;;  %v2928_v1 = vpop.f32.mrb[17].mxu1 }
 0x882   : > { %v2959_v25 = vadd.f32 %v7086_v45, %v2928_v1  ;;  %v7089_v1 = vld [vmem:[#allocation10 + $0x2] ss:$0 sm:$0xff] }
 0x883   : > { %v2964_v46 = vsel %vm579_vm2, %v2960_v31, 0.0 }
 0x884   : > { %v2963_v28 = vsel %vm579_vm2, %v2959_v25, 0.0  ;;  %v7836_v17 = vpop.f32.mrb[18].mxu1 }
 0x885   : > { %v2938_v53 = vpop.f32.mrb[19].mxu1  ;;  %v2962_v15 = vadd.f32 %v7836_v17, %v7086_v45  ;;  %v2965_v12 = vadd.f32 %v2964_v46, %v2963_v28 }
 0x886   : > { %v2961_v4 = vadd.f32 %v7086_v45, %v2938_v53  ;;  %v7090_v53 = vld [vmem:[#allocation12 + $0x2] ss:$0 sm:$0xff] }
 0x887   : > { %v2968_v40 = vsel %vm579_vm2, %v2962_v15, 0.0 }
 0x888   : > { %v2966_v6 = vsel %vm579_vm2, %v2961_v4, 0.0 }
 0x889   : > { %v2967_v19 = vadd.f32 %v2966_v6, %v2965_v12 }
 0x88b   : > { %v2969_v23 = vadd.f32 %v2968_v40, %v2967_v19 }
 0x88d   : > { %v2970_v11 = vrot.slane %v2969_v23, 4 }
 0x88f   : > { %v2971_v10 = vadd.f32 %v2970_v11, %v2969_v23 }
 0x891   : > { %v2972_v32 = vrot.slane %v2971_v10, 2 }
 0x893   : > { %v2973_v35 = vadd.f32 %v2972_v32, %v2971_v10 }
 0x895   : > { %v2974_v55 = vrot.slane %v2973_v35, 1 }
 0x897   : > { %v2975_v51 = vadd.f32 %v2974_v55, %v2973_v35 }
 0x899   : > { %7846 = vmatmul.mubr.msk.f32.vlgmr.msra.gmra.mrb[16].mxu0 %vm579_vm2, %v2975_v51 }
 0x89a   : > { %8402 = vmatpush3.bf16.msra.mxu0 %v9725_v62  ;;  %7856 = vmatprep.mubr.msk.f32.mxu0 %vm9242_vm3, %v9243_v3 }
 0x89b   : > { %8403 = vmatprep.subr.bf16.mxu0 %v9241_v63 }
 0x89e   : > { %8405 = vmatpush3.bf16.msra.mxu0 %v9736_v2 }
 0x89f   : > { %8430 = vmatprep.subr.bf16.mxu0 %v9241_v63 }
 0x96c   : > { %v3045_v14 = vpop.f32.mrb[16].mxu0 }
 0x96d   : > { %v3049_v33 = vmul.f32 0.015625, %v3045_v14  ;;  %v7847_v48 = vpop.f32.mrb[17].mxu0 }
 0x96f   : > { %v3053_v13 = vrot.slane %v3049_v33, %v9831_v20 }
 0x971   : > { %v3054_v34 = vsub.f32 %v2959_v25, %v3053_v13  ;;  %v3055_v22 = vsub.f32 %v2960_v31, %v3053_v13  ;;  %v3056_v61 = vsub.f32 %v2961_v4, %v3053_v13  ;;  %v3057_v36 = vsub.f32 %v2962_v15, %v3053_v13 }
 0x973   : > { %v3058_v44 = vmul.f32 %v3054_v34, %v3054_v34  ;;  %v3059_v8 = vmul.f32 %v3055_v22, %v3055_v22  ;;  %v3060_v41 = vmul.f32 %v3056_v61, %v3056_v61  ;;  %v3061_v42 = vmul.f32 %v3057_v36, %v3057_v36 }
 0x975   : > { %v3062_v16 = vsel %vm579_vm2, %v3058_v44, 0.0  ;;  %v3063_v50 = vsel %vm579_vm2, %v3059_v8, 0.0  ;;  %v3065_v27 = vsel %vm579_vm2, %v3060_v41, 0.0  ;;  %v3067_v49 = vsel %vm579_vm2, %v3061_v42, 0.0 }
 0x976   : > { %v3064_v56 = vadd.f32 %v3063_v50, %v3062_v16 }
 0x978   : > { %v3066_v59 = vadd.f32 %v3065_v27, %v3064_v56 }
 0x97a   : > { %v3068_v21 = vadd.f32 %v3067_v49, %v3066_v59 }
 0x97c   : > { %v3069_v30 = vrot.slane %v3068_v21, 4 }
 0x97e   : > { %v3070_v29 = vadd.f32 %v3069_v30, %v3068_v21 }
 0x980   : > { %v3071_v52 = vrot.slane %v3070_v29, 2 }
 0x982   : > { %v3072_v26 = vadd.f32 %v3071_v52, %v3070_v29 }
 0x984   : > { %v3073_v0 = vrot.slane %v3072_v26, 1 }
 0x986   : > { %v3074_v43 = vadd.f32 %v3073_v0, %v3072_v26 }
 0x988   : > { %7857 = vmatmul.mubr.msk.f32.vlgmr.msra.gmra.mrb[18].mxu0 %vm579_vm2, %v3074_v43 }
 0x989   : > { %8432 = vmatpush3.bf16.msra.mxu0 %v9725_v62  ;;  %7900 = vmatprep.mubr.msk.f32.mxu0 %vm9242_vm3, %v9243_v3 }
 0x98a   : > { %8433 = vmatprep.subr.bf16.mxu0 %v9241_v63 }
 0x98d   : > { %8435 = vmatpush3.bf16.msra.mxu0 %v9736_v2 }
 0x98e   : > { %8436 = vmatprep.subr.bf16.mxu0 %v9241_v63 }
 0xa5b   : > { %v3144_v7 = vpop.f32.mrb[18].mxu0 }
 0xa5c   : > { %v3148_v9 = vmul.f32 0.015625, %v3144_v7  ;;  %v7858_v54 = vpop.f32.mrb[19].mxu0 }
 0xa5e   : > { %v3149_v45 = vadd.f32 1e-05, %v3148_v9 }
 0xa60   : > { %8887 = vrsqrt.f32 %v3149_v45  ;;  %v8418_v45 = vpack.c.bf16 %v3230_v60, %v3229_v24 }
 0xa6a   : > { %v8888_v18 = vpop.eup %8887 }
 0xa6b   : > { %v3154_v31 = vrot.slane %v8888_v18, %v9831_v20 }
 0xa6d   : > { %v3155_v25 = vmul.f32 %v3154_v31, %v3054_v34  ;;  %v3156_v46 = vmul.f32 %v3154_v31, %v3055_v22  ;;  %v3157_v28 = vmul.f32 %v3154_v31, %v3056_v61  ;;  %v3158_v17 = vmul.f32 %v3154_v31, %v3057_v36  ;;  %v3403_v31 = vld [vmem:[#allocation7 + $0x100] sm:$0xff] }
 0xa6f   : > { %v3167_v15 = vmul.f32 %v7089_v1, %v3155_v25  ;;  %v3168_v4 = vmul.f32 %v7089_v1, %v3156_v46  ;;  %v3169_v12 = vmul.f32 %v7089_v1, %v3157_v28  ;;  %v3170_v6 = vmul.f32 %v7089_v1, %v3158_v17  ;;  %v3404_v1 = vld [vmem:[#allocation7 + $0x108] sm:$0xff]  ;;  %v3405_v46 = vld [vmem:[#allocation7 + $0x110] sm:$0xff]  ;;  %v3406_v28 = vld [vmem:[#allocation7 + $0x118] sm:$0xff] }
 0xa70   : > { %v8422_v25 = vpack.c.bf16 %v3404_v1, %v3403_v31  ;;  %v8426_v17 = vpack.c.bf16 %v3406_v28, %v3405_v46  ;;  %v7101_v1 = vld [vmem:[#allocation12 + $0x3] ss:$0 sm:$0xff] }
 0xa71   : > { %v3179_v19 = vadd.f32 %v7090_v53, %v3167_v15  ;;  %v3180_v40 = vadd.f32 %v7090_v53, %v3168_v4  ;;  %v3181_v23 = vadd.f32 %v7090_v53, %v3169_v12  ;;  %v3182_v11 = vadd.f32 %v7090_v53, %v3170_v6  ;;  %v7097_v15 = vld [vmem:[#allocation9 + $0x3] ss:$0 sm:$0xff] }
 0xa73   : > { %v3187_v10 = vmul.f32 0.044715, %v3179_v19  ;;  %v3188_v32 = vmul.f32 0.044715, %v3180_v40  ;;  %v3189_v35 = vmul.f32 0.044715, %v3181_v23 }
 0xa74   : > { %v3190_v55 = vmul.f32 0.044715, %v3182_v11  ;;  %v3183_v49 = vmul.f32 0.5, %v3179_v19  ;;  %v3184_v29 = vmul.f32 0.5, %v3180_v40  ;;  %v3185_v0 = vmul.f32 0.5, %v3181_v23 }
 0xa75   : > { %v3191_v51 = vmul.f32 %v3187_v10, %v3179_v19  ;;  %v3192_v14 = vmul.f32 %v3188_v32, %v3180_v40  ;;  %v3193_v33 = vmul.f32 %v3189_v35, %v3181_v23  ;;  %v3186_v57 = vmul.f32 0.5, %v3182_v11 }
 0xa76   : > { %v3194_v48 = vmul.f32 %v3190_v55, %v3182_v11 }
 0xa77   : > { %v3195_v13 = vmul.f32 %v3191_v51, %v3179_v19  ;;  %v3196_v34 = vmul.f32 %v3192_v14, %v3180_v40  ;;  %v3197_v22 = vmul.f32 %v3193_v33, %v3181_v23 }
 0xa78   : > { %v3198_v61 = vmul.f32 %v3194_v48, %v3182_v11 }
 0xa79   : > { %v3199_v36 = vadd.f32 %v3195_v13, %v3179_v19  ;;  %v3200_v44 = vadd.f32 %v3196_v34, %v3180_v40  ;;  %v3201_v8 = vadd.f32 %v3197_v22, %v3181_v23 }
 0xa7a   : > { %v3202_v41 = vadd.f32 %v3198_v61, %v3182_v11 }
 0xa7b   : > { %v3203_v42 = vmul.f32 0.7978846, %v3199_v36  ;;  %v3204_v16 = vmul.f32 0.7978846, %v3200_v44  ;;  %v3205_v50 = vmul.f32 0.7978846, %v3201_v8 }
 0xa7c   : > { %v3206_v56 = vmul.f32 0.7978846, %v3202_v41 }
 0xa7d   : > { %8889 = vtanh.f32 %v3203_v42 }
 0xa7e   : > { %8891 = vtanh.f32 %v3204_v16 }
 0xa7f   : > { %8893 = vtanh.f32 %v3205_v50 }
 0xa80   : > { %8895 = vtanh.f32 %v3206_v56 }
 0xa87   : > { %v8890_v27 = vpop.eup %8889 }
 0xa88   : > { %v8892_v59 = vpop.eup %8891  ;;  %v3211_v21 = vadd.f32 1.0, %v8890_v27 }
 0xa89   : > { %v8894_v30 = vpop.eup %8893  ;;  %v3212_v52 = vadd.f32 1.0, %v8892_v59 }
 0xa8a   : > { %v8896_v26 = vpop.eup %8895  ;;  %v3213_v43 = vadd.f32 1.0, %v8894_v30  ;;  %v3215_v38 = vmul.f32 %v3211_v21, %v3183_v49  ;;  %v3731_v21 = vld [vmem:[#allocation7 + $0x140] sm:$0xff]  ;;  %v3732_v30 = vld [vmem:[#allocation7 + $0x148] sm:$0xff] }
 0xa8b   : > { %v3214_v47 = vadd.f32 1.0, %v8896_v26  ;;  %v3216_v39 = vmul.f32 %v3212_v52, %v3184_v29  ;;  %v3725_v29 = vld [vmem:[#allocation7 + $0x120] sm:$0xff]  ;;  %v8443_v52 = vpack.c.bf16 %v3732_v30, %v3731_v21  ;;  %v3726_v26 = vld [vmem:[#allocation7 + $0x128] sm:$0xff] }
 0xa8c   : > { %v3217_v5 = vmul.f32 %v3213_v43, %v3185_v0  ;;  %3219 = vst.msk [vmem:[#allocation2 + $0x1] sm:$0xff] %vm579_vm2, %v3215_v38  ;;  %v3733_v0 = vld [vmem:[#allocation7 + $0x150] sm:$0xff]  ;;  %v3734_v43 = vld [vmem:[#allocation7 + $0x158] sm:$0xff]  ;;  %v8449_v38 = vpack.c.bf16 %v3726_v26, %v3725_v29  ;;  %v7105_v21 = vld [vmem:[#allocation9 + $0x4] ss:$0 sm:$0xff] }
 0xa8d   : > { %v3218_v37 = vmul.f32 %v3214_v47, %v3186_v57  ;;  %3220 = vst.msk [vmem:[#allocation2 + $0x9] sm:$0xff] %vm579_vm2, %v3216_v39  ;;  %v3727_v57 = vld [vmem:[#allocation7 + $0x130] sm:$0xff]  ;;  %v3728_v47 = vld [vmem:[#allocation7 + $0x138] sm:$0xff]  ;;  %v8446_v39 = vpack.c.bf16 %v3734_v43, %v3733_v0 }
 0xa8e   : > { %3221 = vst.msk [vmem:[#allocation2 + $0x11] sm:$0xff] %vm579_vm2, %v3217_v5  ;;  %v8452_v5 = vpack.c.bf16 %v3728_v47, %v3727_v57 }
 0xa8f   : > { %3222 = vst.msk [vmem:[#allocation2 + $0x19] sm:$0xff] %vm579_vm2, %v3218_v37 }
 0xa94   : > { %v3231_v7 = vld [vmem:[#allocation2 + $0x1] ss:$2 sm:$0xff]  ;;  %v3224_v9 = vld [vmem:[#allocation2] ss:$2 sm:$0xff] }
 0xa95   : > { %v3400_v54 = vld [vmem:[#allocation2 + $0x2] ss:$2 sm:$0xff]  ;;  %7867 = vmatprep.mubr.msk.f32.mxu1 %vm579_vm2, %v3231_v7 }
 0xa96   : > { %4173 = vst.msk [vmem:[#allocation2 + $0x9] sm:$0xf] %vm1807_vm4, %v9243_v3  ;;  %v3232_v18 = vld [vmem:[#allocation2 + $0x11] ss:$2 sm:$0xff]  ;;  %v3225_v53 = vld [vmem:[#allocation2 + $0x10] ss:$2 sm:$0xff] }
 0xa97   : > { %7868 = vmatmul.mubr.msk.f32.vlgmr.msra.gmra.mrb[20].mxu1 %vm579_vm2, %v3232_v18 }
 0xa98   : > { %8417 = vmatpush3.bf16.msra.mxu1 %v10278_v58  ;;  %7878 = vmatprep.mubr.msk.f32.mxu1 %vm579_vm2, %v3224_v9  ;;  %v3401_v58 = vld [vmem:[#allocation2 + $0x12] ss:$2 sm:$0xff] }
 0xa99   : > { %8419 = vmatprep.subr.bf16.mxu1 %v8418_v45 }
 0xa9c   : > { %8421 = vmatpush3.bf16.msra.mxu1 %v8418_v45  ;;  %v7100_v45 = vld [vmem:[#allocation10 + $0x3] ss:$0 sm:$0xff] }
 0xa9d   : > { %8423 = vmatprep.subr.bf16.mxu1 %v8422_v25 }
 0xa9f   : > { %7879 = vmatmul.mubr.msk.f32.vlgmr.msra.gmra.mrb[20].mxu1 %vm579_vm2, %v3225_v53 }
 0xaa0   : > { %8425 = vmatpush3.bf16.msra.mxu1 %v8422_v25  ;;  %7889 = vmatprep.mubr.msk.f32.mxu1 %vm579_vm2, %v3400_v54 }
 0xaa1   : > { %8427 = vmatprep.subr.bf16.mxu1 %v8426_v17 }
 0xaa4   : > { %8429 = vmatpush3.bf16.msra.mxu1 %v8426_v17 }
 0xaa5   : > { %8448 = vmatprep.subr.bf16.mxu1 %v9241_v63 }
 0xaa7   : > { %7890 = vmatmul.mubr.msk.f32.vlgmr.msra.gmra.mrb[20].mxu1 %vm579_vm2, %v3401_v58 }
 0xaa8   : > { %7933 = vmatprep.mubr.msk.f32.mxu1 %vm9242_vm3, %v9243_v3  ;;  %8450 = vmatpush3.bf16.msra.mxu1 %v8449_v38 }
 0xaa9   : > { %8451 = vmatprep.subr.bf16.mxu1 %v9241_v63 }
 0xaac   : > { %8453 = vmatpush3.bf16.msra.mxu1 %v8452_v5 }
 0xaad   : > { %8460 = vmatprep.subr.bf16.mxu1 %v9241_v63 }
 0xb7a   : > { %v7891_v4 = vpop.f32.mrb[20].mxu1 }
 0xb7b   : > { %v3499_v12 = vadd.f32 %v7891_v4, %v7097_v15  ;;  %v3479_v6 = vpop.f32.mrb[21].mxu1 }
 0xb7c   : > { %v3498_v19 = vadd.f32 %v7097_v15, %v3479_v6 }
 0xb7d   : > { %v3501_v40 = vsel %vm579_vm2, %v3499_v12, 0.0 }
 0xb7e   : > { %v3500_v23 = vsel %vm579_vm2, %v3498_v19, 0.0 }
 0xb7f   : > { %v3502_v11 = vadd.f32 %v3501_v40, %v3500_v23 }
 0xb81   : > { %v3503_v10 = vrot.slane %v3502_v11, 4 }
 0xb83   : > { %v3504_v32 = vadd.f32 %v3503_v10, %v3502_v11 }
 0xb85   : > { %v3505_v35 = vrot.slane %v3504_v32, 2 }
 0xb87   : > { %v3506_v55 = vadd.f32 %v3505_v35, %v3504_v32 }
 0xb89   : > { %v3507_v51 = vrot.slane %v3506_v55, 1 }
 0xb8b   : > { %v3508_v14 = vadd.f32 %v3507_v51, %v3506_v55 }
 0xb8d   : > { %7901 = vmatmul.mubr.msk.f32.vlgmr.msra.gmra.mrb[20].mxu0 %vm579_vm2, %v3508_v14 }
 0xb8e   : > { %8438 = vmatpush3.bf16.msra.mxu0 %v9725_v62  ;;  %7911 = vmatprep.mubr.msk.f32.mxu0 %vm9242_vm3, %v9243_v3 }
 0xb8f   : > { %8439 = vmatprep.subr.bf16.mxu0 %v9241_v63 }
 0xb92   : > { %8441 = vmatpush3.bf16.msra.mxu0 %v9736_v2 }
 0xb93   : > { %8442 = vmatprep.subr.bf16.mxu0 %v9241_v63 }
 0xc60   : > { %v3578_v33 = vpop.f32.mrb[20].mxu0 }
 0xc61   : > { %v3582_v48 = vmul.f32 0.03125, %v3578_v33  ;;  %v7902_v13 = vpop.f32.mrb[21].mxu0 }
 0xc62   : > { %v3883_v13 = vld [vmem:[#allocation7 + $0x160] sm:$0xff] }
 0xc63   : > { %v3586_v34 = vrot.slane %v3582_v48, %v9831_v20 }
 0xc65   : > { %v3587_v22 = vsub.f32 %v3498_v19, %v3586_v34  ;;  %v3588_v61 = vsub.f32 %v3499_v12, %v3586_v34  ;;  %v3884_v34 = vld [vmem:[#allocation7 + $0x168] sm:$0xff] }
 0xc67   : > { %v3589_v36 = vmul.f32 %v3587_v22, %v3587_v22  ;;  %v3590_v44 = vmul.f32 %v3588_v61, %v3588_v61 }
 0xc69   : > { %v3591_v8 = vsel %vm579_vm2, %v3589_v36, 0.0  ;;  %v3592_v41 = vsel %vm579_vm2, %v3590_v44, 0.0  ;;  %v3886_v36 = vld [vmem:[#allocation7 + $0x178] sm:$0xff] }
 0xc6a   : > { %v3593_v42 = vadd.f32 %v3592_v41, %v3591_v8 }
 0xc6c   : > { %v3594_v16 = vrot.slane %v3593_v42, 4 }
 0xc6e   : > { %v3595_v50 = vadd.f32 %v3594_v16, %v3593_v42 }
 0xc70   : > { %v3596_v56 = vrot.slane %v3595_v50, 2 }
 0xc72   : > { %v3597_v27 = vadd.f32 %v3596_v56, %v3595_v50 }
 0xc74   : > { %v3598_v59 = vrot.slane %v3597_v27, 1 }
 0xc76   : > { %v3599_v49 = vadd.f32 %v3598_v59, %v3597_v27 }
 0xc78   : > { %7912 = vmatmul.mubr.msk.f32.vlgmr.msra.gmra.mrb[22].mxu0 %vm579_vm2, %v3599_v49 }
 0xc79   : > { %7922 = vmatprep.mubr.msk.f32.mxu0 %vm9242_vm3, %v9243_v3  ;;  %8444 = vmatpush3.bf16.msra.mxu0 %v8443_v52 }
 0xc7a   : > { %8445 = vmatprep.subr.bf16.mxu0 %v9241_v63 }
 0xc7d   : > { %8447 = vmatpush3.bf16.msra.mxu0 %v8446_v39 }
 0xc7e   : > { %8454 = vmatprep.subr.bf16.mxu0 %v9241_v63 }
 0xd4b   : > { %v3669_v37 = vpop.f32.mrb[22].mxu0 }
 0xd4c   : > { %v3673_v24 = vmul.f32 0.03125, %v3669_v37  ;;  %v7913_v60 = vpop.f32.mrb[23].mxu0 }
 0xd4e   : > { %v3674_v7 = vadd.f32 1e-05, %v3673_v24 }
 0xd50   : > { %8897 = vrsqrt.f32 %v3674_v7 }
 0xd5a   : > { %v8898_v9 = vpop.eup %8897 }
 0xd5b   : > { %v3679_v54 = vrot.slane %v8898_v9, %v9831_v20 }
 0xd5d   : > { %v3680_v18 = vmul.f32 %v3679_v54, %v3587_v22  ;;  %v3681_v31 = vmul.f32 %v3679_v54, %v3588_v61  ;;  %v8455_v22 = vpack.c.bf16 %v3884_v34, %v3883_v13  ;;  %v3885_v61 = vld [vmem:[#allocation7 + $0x170] sm:$0xff] }
 0xd5e   : > { %v8458_v42 = vpack.c.bf16 %v3886_v36, %v3885_v61  ;;  %v7109_v13 = vld [vmem:[#allocation12 + $0x4] ss:$0 sm:$0xff] }
 0xd5f   : > { %v3690_v25 = vmul.f32 %v7100_v45, %v3680_v18  ;;  %v3691_v46 = vmul.f32 %v7100_v45, %v3681_v31 }
 0xd61   : > { %v3700_v28 = vadd.f32 %v7101_v1, %v3690_v25  ;;  %v3701_v17 = vadd.f32 %v7101_v1, %v3691_v46 }
 0xd63   : > { %v3704_v53 = vmul.f32 0.044715, %v3700_v28  ;;  %v3705_v58 = vmul.f32 0.044715, %v3701_v17  ;;  %v3702_v35 = vmul.f32 0.5, %v3700_v28  ;;  %v3703_v51 = vmul.f32 0.5, %v3701_v17 }
 0xd65   : > { %v3706_v15 = vmul.f32 %v3704_v53, %v3700_v28  ;;  %v3707_v4 = vmul.f32 %v3705_v58, %v3701_v17  ;;  %v4176_v53 = vld [vmem:[#allocation7 + $0x180] sm:$0xff] }
 0xd67   : > { %v3708_v12 = vmul.f32 %v3706_v15, %v3700_v28  ;;  %v3709_v6 = vmul.f32 %v3707_v4, %v3701_v17  ;;  %v4177_v15 = vld [vmem:[#allocation7 + $0x188] sm:$0xff]  ;;  %v4184_v4 = vld [vmem:[#allocation7 + $0x1b0] sm:$0xff] }
 0xd69   : > { %v3710_v19 = vadd.f32 %v3708_v12, %v3700_v28  ;;  %v3711_v40 = vadd.f32 %v3709_v6, %v3701_v17  ;;  %v4182_v28 = vld [vmem:[#allocation7 + $0x1a0] sm:$0xff]  ;;  %v4183_v17 = vld [vmem:[#allocation7 + $0x1a8] sm:$0xff]  ;;  %v4185_v12 = vld [vmem:[#allocation7 + $0x1b8] sm:$0xff]  ;;  %v8479_v6 = vpack.c.bf16 %v4177_v15, %v4176_v53 }
 0xd6a   : > { %v8473_v58 = vpack.c.bf16 %v4183_v17, %v4182_v28 }
 0xd6b   : > { %v3712_v23 = vmul.f32 0.7978846, %v3710_v19  ;;  %v3713_v11 = vmul.f32 0.7978846, %v3711_v40  ;;  %v4178_v19 = vld [vmem:[#allocation7 + $0x190] sm:$0xff]  ;;  %v4179_v40 = vld [vmem:[#allocation7 + $0x198] sm:$0xff] }
 0xd6d   : > { %8899 = vtanh.f32 %v3712_v23  ;;  %v8476_v23 = vpack.c.bf16 %v4185_v12, %v4184_v4 }
 0xd6e   : > { %8901 = vtanh.f32 %v3713_v11  ;;  %v8482_v11 = vpack.c.bf16 %v4179_v40, %v4178_v19 }
 0xd77   : > { %v8900_v10 = vpop.eup %8899 }
 0xd78   : > { %v8902_v32 = vpop.eup %8901  ;;  %v3716_v55 = vadd.f32 1.0, %v8900_v10 }
 0xd79   : > { %v3717_v14 = vadd.f32 1.0, %v8902_v32 }
 0xd7a   : > { %v3718_v33 = vmul.f32 %v3716_v55, %v3702_v35 }
 0xd7b   : > { %v3719_v48 = vmul.f32 %v3717_v14, %v3703_v51 }
 0xd7c   : > { %3720 = vst.msk [vmem:[#allocation3 + $0x1] sm:$0xff] %vm579_vm2, %v3718_v33  ;;  %v7108_v33 = vld [vmem:[#allocation10 + $0x4] ss:$0 sm:$0xff] }
 0xd7d   : > { %3721 = vst.msk [vmem:[#allocation3 + $0x9] sm:$0xff] %vm579_vm2, %v3719_v48 }
 0xd84   : > { %v3729_v44 = vld [vmem:[#allocation3 + $0x1] ss:$2 sm:$0xff]  ;;  %v3723_v8 = vld [vmem:[#allocation3] ss:$2 sm:$0xff] }
 0xd85   : > { %v3881_v41 = vld [vmem:[#allocation3 + $0x2] ss:$2 sm:$0xff]  ;;  %7923 = vmatmul.mubr.msk.f32.vlgmr.msra.gmra.mrb[24].mxu0 %vm579_vm2, %v3729_v44  ;;  %7934 = vmatmul.mubr.msk.f32.vlgmr.msra.gmra.mrb[22].mxu1 %vm579_vm2, %v3723_v8 }
 0xd86   : > { %4624 = vst.msk [vmem:[#allocation3 + $0x5] sm:$0xf] %vm1807_vm4, %v9243_v3  ;;  %8456 = vmatpush3.bf16.msra.mxu0 %v8455_v22  ;;  %7944 = vmatprep.mubr.msk.f32.mxu0 %vm9242_vm3, %v9243_v3 }
 0xd87   : > { %8457 = vmatprep.subr.bf16.mxu0 %v9241_v63  ;;  %8462 = vmatpush3.bf16.msra.mxu1 %v9725_v62 }
 0xd88   : > { %8463 = vmatprep.subr.bf16.mxu1 %v9241_v63  ;;  %7955 = vmatprep.mubr.msk.f32.mxu1 %vm9242_vm3, %v9243_v3 }
 0xd8a   : > { %8459 = vmatpush3.bf16.msra.mxu0 %v8458_v42 }
 0xd8b   : > { %8465 = vmatpush3.bf16.msra.mxu1 %v9736_v2  ;;  %8466 = vmatprep.subr.bf16.mxu0 %v9241_v63 }
 0xd8c   : > { %8472 = vmatprep.subr.bf16.mxu1 %v9241_v63 }
 0xd8d   : > { %7945 = vmatmul.mubr.msk.f32.vlgmr.msra.gmra.mrb[26].mxu0 %vm579_vm2, %v3881_v41 }
 0xd8e   : > { %8468 = vmatpush3.bf16.msra.mxu0 %v9725_v62  ;;  %7966 = vmatprep.mubr.msk.f32.mxu0 %vm9242_vm3, %v9243_v3 }
 0xd8f   : > { %8469 = vmatprep.subr.bf16.mxu0 %v9241_v63 }
 0xd92   : > { %8471 = vmatpush3.bf16.msra.mxu0 %v9736_v2 }
 0xd93   : > { %8478 = vmatprep.subr.bf16.mxu0 %v9241_v63 }
 0xe58   : > { %v3804_v16 = vpop.f32.mrb[24].mxu0  ;;  %v3877_v50 = vpop.f32.mrb[22].mxu1 }
 0xe59   : > { %v3878_v56 = vadd.f32 %v3877_v50, %v3804_v16  ;;  %v7924_v27 = vpop.f32.mrb[25].mxu0  ;;  %v7935_v59 = vpop.f32.mrb[23].mxu1 }
 0xe5a   : > { %v4334_v27 = vld [vmem:[#allocation7 + $0x1c0] sm:$0xff]  ;;  %v4335_v59 = vld [vmem:[#allocation7 + $0x1c8] sm:$0xff] }
 0xe60   : > { %v3956_v49 = vpop.f32.mrb[26].mxu0 }
 0xe61   : > { %v3960_v30 = vadd.f32 %v3956_v49, %v3878_v56  ;;  %v7946_v29 = vpop.f32.mrb[27].mxu0  ;;  %v8485_v49 = vpack.c.bf16 %v4335_v59, %v4334_v27  ;;  %v4631_v27 = vld [vmem:[#allocation4] sm:$0xf]  ;;  %v7134_v59 = vld [vmem:[%s10837_s7 + $0x80] sm:$0xff] }
 0xe63   : > { %v3969_v52 = vadd.f32 %v7105_v21, %v3960_v30  ;;  %v4336_v21 = vld [vmem:[#allocation7 + $0x1d0] sm:$0xff]  ;;  %v4337_v30 = vld [vmem:[#allocation7 + $0x1d8] sm:$0xff] }
 0xe65   : > { %v3970_v26 = vsel %vm579_vm2, %v3969_v52, 0.0 }
 0xe66   : > { %v3971_v0 = vrot.slane %v3970_v26, 4 }
 0xe68   : > { %v3972_v43 = vadd.f32 %v3971_v0, %v3970_v26  ;;  %v8488_v26 = vpack.c.bf16 %v4337_v30, %v4336_v21  ;;  %v4788_v21 = vld [vmem:[#allocation4 + $0x2] sm:$0xf] }
 0xe6a   : > { %v3973_v38 = vrot.slane %v3972_v43, 2 }
 0xe6c   : > { %v3974_v57 = vadd.f32 %v3973_v38, %v3972_v43 }
 0xe6e   : > { %v3975_v47 = vrot.slane %v3974_v57, 1 }
 0xe70   : > { %v3976_v39 = vadd.f32 %v3975_v47, %v3974_v57 }
 0xe72   : > { %7956 = vmatmul.mubr.msk.f32.vlgmr.msra.gmra.mrb[24].mxu1 %vm579_vm2, %v3976_v39 }
 0xe73   : > { %7977 = vmatprep.mubr.msk.f32.mxu1 %vm9242_vm3, %v9243_v3  ;;  %8474 = vmatpush3.bf16.msra.mxu1 %v8473_v58 }
 0xe74   : > { %8475 = vmatprep.subr.bf16.mxu1 %v9241_v63 }
 0xe77   : > { %8477 = vmatpush3.bf16.msra.mxu1 %v8476_v23  ;;  %v7118_v23 = vld [vmem:[%s10837_s7 + $0x20] sm:$0xff] }
 0xe78   : > { %8484 = vmatprep.subr.bf16.mxu1 %v9241_v63 }
 0xf45   : > { %v4046_v5 = vpop.f32.mrb[24].mxu1 }
 0xf46   : > { %v4050_v37 = vmul.f32 0.0625, %v4046_v5  ;;  %v7957_v24 = vpop.f32.mrb[25].mxu1 }
 0xf48   : > { %v4054_v60 = vrot.slane %v4050_v37, %v9831_v20  ;;  %v7113_v37 = vld [vmem:[#allocation9 + $0x5] ss:$0 sm:$0xff] }
 0xf4a   : > { %v4055_v7 = vsub.f32 %v3969_v52, %v4054_v60 }
 0xf4c   : > { %v4056_v9 = vmul.f32 %v4055_v7, %v4055_v7 }
 0xf4e   : > { %v4057_v54 = vsel %vm579_vm2, %v4056_v9, 0.0 }
 0xf4f   : > { %v4058_v45 = vrot.slane %v4057_v54, 4 }
 0xf51   : > { %v4059_v18 = vadd.f32 %v4058_v45, %v4057_v54 }
 0xf53   : > { %v4060_v31 = vrot.slane %v4059_v18, 2 }
 0xf55   : > { %v4061_v1 = vadd.f32 %v4060_v31, %v4059_v18 }
 0xf57   : > { %v4062_v25 = vrot.slane %v4061_v1, 1 }
 0xf59   : > { %v4063_v46 = vadd.f32 %v4062_v25, %v4061_v1 }
 0xf5b   : > { %7967 = vmatmul.mubr.msk.f32.vlgmr.msra.gmra.mrb[28].mxu0 %vm579_vm2, %v4063_v46 }
 0xf5c   : > { %7988 = vmatprep.mubr.msk.f32.mxu0 %vm9242_vm3, %v9243_v3  ;;  %8480 = vmatpush3.bf16.msra.mxu0 %v8479_v6 }
 0xf5d   : > { %8481 = vmatprep.subr.bf16.mxu0 %v9241_v63 }
 0xf60   : > { %8483 = vmatpush3.bf16.msra.mxu0 %v8482_v11  ;;  %v7119_v11 = vld [vmem:[%s10837_s7 + $0x28] sm:$0xff] }
 0xf61   : > { %8490 = vmatprep.subr.bf16.mxu0 %v9241_v63 }
0x102e   : > { %v4133_v10 = vpop.f32.mrb[28].mxu0 }
0x102f   : > { %v4137_v32 = vmul.f32 0.0625, %v4133_v10  ;;  %v7968_v35 = vpop.f32.mrb[29].mxu0  ;;  %v8503_v10 = vpack.c.bf16 %v7119_v11, %v7118_v23  ;;  %v5188_v11 = vld [vmem:[#allocation4 + $0x7] sm:$0xf] }
0x1030   : > { %v7121_v35 = vld [vmem:[%s10837_s7 + $0x38] sm:$0xff] }
0x1031   : > { %v4138_v55 = vadd.f32 1e-05, %v4137_v32  ;;  %v7120_v32 = vld [vmem:[%s10837_s7 + $0x30] sm:$0xff] }
0x1033   : > { %8903 = vrsqrt.f32 %v4138_v55  ;;  %v8506_v55 = vpack.c.bf16 %v7121_v35, %v7120_v32  ;;  %v7159_v32 = vld [vmem:[%s10837_s7 + $0x120] sm:$0xff]  ;;  %v7160_v35 = vld [vmem:[%s10837_s7 + $0x128] sm:$0xff] }
0x103d   : > { %v8904_v51 = vpop.eup %8903 }
0x103e   : > { %v4143_v14 = vrot.slane %v8904_v51, %v9831_v20  ;;  %v4632_v51 = vld [vmem:[%s10837_s7] sm:$0xff] }
0x1040   : > { %v4144_v48 = vmul.f32 %v4143_v14, %v4055_v7  ;;  %v4633_v14 = vld [vmem:[%s10837_s7 + $0x8] sm:$0xff] }
0x1042   : > { %v4153_v34 = vmul.f32 %v7108_v33, %v4144_v48  ;;  %v8509_v33 = vpack.c.bf16 %v4633_v14, %v4632_v51  ;;  %v7124_v48 = vld [vmem:[%s10837_s7 + $0x40] sm:$0xff]  ;;  %v8557_v51 = vpack.c.bf16 %v7160_v35, %v7159_v32  ;;  %v7165_v14 = vld [vmem:[%s10837_s7 + $0x148] sm:$0xff] }
0x1043   : > { %v7190_v32 = vld [vmem:[%s10837_s7 + $0x1e8] sm:$0xff]  ;;  %v7194_v35 = vld [vmem:[%s10837_s7 + $0x200] sm:$0xff] }
0x1044   : > { %v4162_v22 = vadd.f32 %v7109_v13, %v4153_v34  ;;  %v7125_v13 = vld [vmem:[%s10837_s7 + $0x48] sm:$0xff] }
0x1045   : > { %v8515_v34 = vpack.c.bf16 %v7125_v13, %v7124_v48  ;;  %v7162_v48 = vld [vmem:[%s10837_s7 + $0x138] sm:$0xff] }
0x1046   : > { %v4164_v61 = vmul.f32 0.044715, %v4162_v22  ;;  %v4163_v16 = vmul.f32 0.5, %v4162_v22 }
0x1048   : > { %v4165_v36 = vmul.f32 %v4164_v61, %v4162_v22  ;;  %v4634_v61 = vld [vmem:[%s10837_s7 + $0x10] sm:$0xff] }
0x104a   : > { %v4166_v44 = vmul.f32 %v4165_v36, %v4162_v22  ;;  %v4635_v36 = vld [vmem:[%s10837_s7 + $0x18] sm:$0xff] }
0x104c   : > { %v4167_v8 = vadd.f32 %v4166_v44, %v4162_v22  ;;  %v4636_v22 = vld [vmem:[#allocation4 + $0x1] sm:$0xf]  ;;  %v8512_v44 = vpack.c.bf16 %v4635_v36, %v4634_v61 }
0x104e   : > { %v4168_v41 = vmul.f32 0.7978846, %v4167_v8  ;;  %v7126_v8 = vld [vmem:[%s10837_s7 + $0x50] sm:$0xff] }
0x1050   : > { %8905 = vtanh.f32 %v4168_v41  ;;  %v7127_v41 = vld [vmem:[%s10837_s7 + $0x58] sm:$0xff] }
0x105a   : > { %v8906_v42 = vpop.eup %8905 }
0x105b   : > { %v4170_v50 = vadd.f32 1.0, %v8906_v42  ;;  %v8518_v42 = vpack.c.bf16 %v7127_v41, %v7126_v8 }
0x105d   : > { %v4171_v56 = vmul.f32 %v4170_v50, %v4163_v16  ;;  %v7129_v16 = vld [vmem:[%s10837_s7 + $0x60] sm:$0xff]  ;;  %v7130_v50 = vld [vmem:[%s10837_s7 + $0x68] sm:$0xff] }
0x105f   : > { %4172 = vst.msk [vmem:[#allocation2 + $0x1] sm:$0xff] %vm579_vm2, %v4171_v56  ;;  %v8521_v56 = vpack.c.bf16 %v7130_v50, %v7129_v16 }
0x1066   : > { %v4180_v29 = vld [vmem:[#allocation2 + $0x1] ss:$2 sm:$0xf]  ;;  %v4174_v52 = vld [vmem:[#allocation2] ss:$2 sm:$0xf] }
0x1067   : > { %7978 = vmatmul.mubr.msk.f32.vlgmr.msra.gmra.mrb[26].mxu1 %vm579_vm2, %v4180_v29  ;;  %7989 = vmatmul.mubr.msk.f32.vlgmr.msra.gmra.mrb[30].mxu0 %vm579_vm2, %v4174_v52  ;;  %v4332_v0 = vld [vmem:[#allocation2 + $0x2] ss:$2 sm:$0xf]  ;;  %v7131_v29 = vld [vmem:[%s10837_s7 + $0x70] sm:$0xff]  ;;  %v7132_v52 = vld [vmem:[%s10837_s7 + $0x78] sm:$0xff] }
0x1068   : > { %8486 = vmatpush3.bf16.msra.mxu1 %v8485_v49  ;;  %7999 = vmatprep.mubr.msk.f32.mxu1 %vm9242_vm3, %v9243_v3  ;;  %v7135_v49 = vld [vmem:[%s10837_s7 + $0x88] sm:$0xff] }
0x1069   : > { %8487 = vmatprep.subr.bf16.mxu1 %v9241_v63  ;;  %8492 = vmatpush3.bf16.msra.mxu0 %v9725_v62  ;;  %v8527_v30 = vpack.c.bf16 %v7135_v49, %v7134_v59  ;;  %v7117_v59 = vld [vmem:[#allocation12 + $0x5] ss:$0 sm:$0xff] }
0x106a   : > { %8493 = vmatprep.subr.bf16.mxu0 %v9241_v63  ;;  %8010 = vmatprep.mubr.msk.f32.mxu0 %vm9242_vm3, %v9243_v3 }
0x106c   : > { %8489 = vmatpush3.bf16.msra.mxu1 %v8488_v26  ;;  %v8524_v26 = vpack.c.bf16 %v7132_v52, %v7131_v29 }
0x106d   : > { %8495 = vmatpush3.bf16.msra.mxu0 %v9736_v2  ;;  %8496 = vmatprep.subr.bf16.mxu1 %v9241_v63 }
0x106e   : > { %8502 = vmatprep.subr.bf16.mxu0 %v9241_v63 }
0x106f   : > { %8000 = vmatmul.mubr.msk.f32.vlgmr.msra.gmra.mrb[28].mxu1 %vm579_vm2, %v4332_v0  ;;  %v7136_v0 = vld [vmem:[%s10837_s7 + $0x90] sm:$0xff] }
0x1070   : > { %8498 = vmatpush3.bf16.msra.mxu1 %v9725_v62  ;;  %8021 = vmatprep.mubr.msk.f32.mxu1 %vm9242_vm3, %v9243_v3 }
0x1071   : > { %8499 = vmatprep.subr.bf16.mxu1 %v9241_v63 }
0x1074   : > { %8501 = vmatpush3.bf16.msra.mxu1 %v9736_v2 }
0x1075   : > { %8508 = vmatprep.subr.bf16.mxu1 %v9241_v63 }
0x113a   : > { %v4255_v43 = vpop.f32.mrb[26].mxu1  ;;  %v4328_v38 = vpop.f32.mrb[30].mxu0 }
0x113b   : > { %v4329_v57 = vadd.f32 %v4328_v38, %v4255_v43  ;;  %v7979_v47 = vpop.f32.mrb[27].mxu1  ;;  %v7990_v39 = vpop.f32.mrb[31].mxu0  ;;  %v7137_v43 = vld [vmem:[%s10837_s7 + $0x98] sm:$0xff] }
0x113c   : > { %v8530_v38 = vpack.c.bf16 %v7137_v43, %v7136_v0  ;;  %v7140_v47 = vld [vmem:[%s10837_s7 + $0xa8] sm:$0xff] }
0x1142   : > { %v4407_v5 = vpop.f32.mrb[28].mxu1 }
0x1143   : > { %v4411_v24 = vadd.f32 %v4407_v5, %v4329_v57  ;;  %v8001_v60 = vpop.f32.mrb[29].mxu1  ;;  %v7139_v57 = vld [vmem:[%s10837_s7 + $0xa0] sm:$0xff]  ;;  %v4868_v5 = vld [vmem:[#allocation4 + $0x3] sm:$0xf] }
0x1144   : > { %v8533_v39 = vpack.c.bf16 %v7140_v47, %v7139_v57 }
0x1145   : > { %v4420_v7 = vadd.f32 %v7113_v37, %v4411_v24  ;;  %v7144_v37 = vld [vmem:[%s10837_s7 + $0xc0] sm:$0xff]  ;;  %v7145_v24 = vld [vmem:[%s10837_s7 + $0xc8] sm:$0xff] }
0x1146   : > { %v8539_v60 = vpack.c.bf16 %v7145_v24, %v7144_v37  ;;  %v7175_v37 = vld [vmem:[%s10837_s7 + $0x188] sm:$0xff] }
0x1147   : > { %v4421_v62 = vsel %vm1807_vm4, %v4420_v7, 0.0 }
0x1148   : > { %v4422_v9 = vrot.slane %v4421_v62, 4 }
0x114a   : > { %v4423_v54 = vadd.f32 %v4422_v9, %v4421_v62  ;;  %v7141_v62 = vld [vmem:[%s10837_s7 + $0xb0] sm:$0xff]  ;;  %v7142_v9 = vld [vmem:[%s10837_s7 + $0xb8] sm:$0xff] }
0x114c   : > { %v4424_v45 = vrot.slane %v4423_v54, 2 }
0x114e   : > { %v4425_v18 = vadd.f32 %v4424_v45, %v4423_v54  ;;  %v8536_v54 = vpack.c.bf16 %v7142_v9, %v7141_v62  ;;  %v7146_v45 = vld [vmem:[%s10837_s7 + $0xd0] sm:$0xff]  ;;  %v7172_v62 = vld [vmem:[%s10837_s7 + $0x178] sm:$0xff] }
0x114f   : > { %v7176_v9 = vld [vmem:[%s10837_s7 + $0x190] sm:$0xff] }
0x1150   : > { %v4426_v31 = vrot.slane %v4425_v18, 1 }
0x1152   : > { %v4427_v2 = vadd.f32 %v4426_v31, %v4425_v18  ;;  %v7147_v18 = vld [vmem:[%s10837_s7 + $0xd8] sm:$0xff] }
0x1153   : > { %v8542_v31 = vpack.c.bf16 %v7147_v18, %v7146_v45 }
0x1154   : > { %8011 = vmatmul.mubr.msk.f32.vlgmr.msra.gmra.mrb[32].mxu0 %vm579_vm2, %v4427_v2  ;;  %v7149_v2 = vld [vmem:[%s10837_s7 + $0xe0] sm:$0xff] }
0x1155   : > { %8032 = vmatprep.mubr.msk.f32.mxu0 %vm9242_vm3, %v9243_v3  ;;  %8504 = vmatpush3.bf16.msra.mxu0 %v8503_v10  ;;  %v5268_v10 = vld [vmem:[#allocation4 + $0x8] sm:$0xf] }
0x1156   : > { %8505 = vmatprep.subr.bf16.mxu0 %v9241_v63 }
0x1159   : > { %8507 = vmatpush3.bf16.msra.mxu0 %v8506_v55  ;;  %v7164_v55 = vld [vmem:[%s10837_s7 + $0x140] sm:$0xff] }
0x115a   : > { %8514 = vmatprep.subr.bf16.mxu0 %v9241_v63  ;;  %v8563_v13 = vpack.c.bf16 %v7165_v14, %v7164_v55  ;;  %v7195_v55 = vld [vmem:[%s10837_s7 + $0x208] sm:$0xff] }
0x115b   : > { %v8599_v14 = vpack.c.bf16 %v7195_v55, %v7194_v35  ;;  %v7230_v35 = vld [vmem:[%s10837_s7 + $0x2e8] sm:$0xff]  ;;  %v7234_v55 = vld [vmem:[%s10837_s7 + $0x300] sm:$0xff] }
0x115c   : > { %8033 = vmatmul.mubr.msk.f32.vlgmr.msra.gmra.mrb[34].mxu0 %vm579_vm2, %v4636_v22  ;;  %v7167_v22 = vld [vmem:[%s10837_s7 + $0x158] sm:$0xff] }
0x115d   : > { %8516 = vmatpush3.bf16.msra.mxu0 %v8515_v34  ;;  %8054 = vmatprep.mubr.msk.f32.mxu0 %vm9242_vm3, %v9243_v3  ;;  %v7166_v34 = vld [vmem:[%s10837_s7 + $0x150] sm:$0xff] }
0x115e   : > { %8517 = vmatprep.subr.bf16.mxu0 %v9241_v63  ;;  %v8566_v36 = vpack.c.bf16 %v7167_v22, %v7166_v34  ;;  %v7197_v34 = vld [vmem:[%s10837_s7 + $0x218] sm:$0xff] }
0x1161   : > { %8519 = vmatpush3.bf16.msra.mxu0 %v8518_v42 }
0x1162   : > { %8526 = vmatprep.subr.bf16.mxu0 %v9241_v63 }
0x1164   : > { %8055 = vmatmul.mubr.msk.f32.vlgmr.msra.gmra.mrb[36].mxu0 %vm579_vm2, %v4788_v21 }
0x1165   : > { %8528 = vmatpush3.bf16.msra.mxu0 %v8527_v30  ;;  %8076 = vmatprep.mubr.msk.f32.mxu0 %vm9242_vm3, %v9243_v3 }
0x1166   : > { %8529 = vmatprep.subr.bf16.mxu0 %v9241_v63 }
0x1169   : > { %8531 = vmatpush3.bf16.msra.mxu0 %v8530_v38 }
0x116a   : > { %8538 = vmatprep.subr.bf16.mxu0 %v9241_v63 }
0x1227   : > { %v4497_v1 = vpop.f32.mrb[32].mxu0 }
0x1228   : > { %v4501_v25 = vmul.f32 0.125, %v4497_v1  ;;  %v8012_v46 = vpop.f32.mrb[33].mxu0  ;;  %v7150_v1 = vld [vmem:[%s10837_s7 + $0xe8] sm:$0xff] }
0x1229   : > { %v5028_v46 = vld [vmem:[#allocation4 + $0x5] sm:$0xf] }
0x122a   : > { %v4505_v28 = vrot.slane %v4501_v25, %v9831_v20  ;;  %v8545_v25 = vpack.c.bf16 %v7150_v1, %v7149_v2  ;;  %v7179_v1 = vld [vmem:[%s10837_s7 + $0x1a0] sm:$0xff] }
0x122c   : > { %v10380_v17 = vsub.f32 %v4420_v7, %v4505_v28  ;;  %v4948_v7 = vld [vmem:[#allocation4 + $0x4] sm:$0xf]  ;;  %v7154_v28 = vld [vmem:[%s10837_s7 + $0x100] sm:$0xff] }
0x122d   : > { %8077 = vmatmul.mubr.msk.f32.vlgmr.msra.gmra.mrb[38].mxu0 %vm579_vm2, %v4948_v7  ;;  %v7171_v7 = vld [vmem:[%s10837_s7 + $0x170] sm:$0xff] }
0x122e   : > { %v4507_v53 = vmul.f32 %v10380_v17, %v10380_v17  ;;  %8540 = vmatpush3.bf16.msra.mxu0 %v8539_v60  ;;  %8098 = vmatprep.mubr.msk.f32.mxu0 %vm9242_vm3, %v9243_v3 }
0x122f   : > { %8541 = vmatprep.subr.bf16.mxu0 %v9241_v63 }
0x1230   : > { %v4508_v58 = vsel %vm1807_vm4, %v4507_v53, 0.0  ;;  %v7155_v53 = vld [vmem:[%s10837_s7 + $0x108] sm:$0xff] }
0x1231   : > { %v4509_v15 = vrot.slane %v4508_v58, 4 }
0x1232   : > { %8543 = vmatpush3.bf16.msra.mxu0 %v8542_v31  ;;  %v8572_v31 = vpack.c.bf16 %v7172_v62, %v7171_v7  ;;  %v7217_v7 = vld [vmem:[%s10837_s7 + $0x298] sm:$0xff] }
0x1233   : > { %v4510_v4 = vadd.f32 %v4509_v15, %v4508_v58  ;;  %8550 = vmatprep.subr.bf16.mxu0 %v9241_v63  ;;  %v8551_v58 = vpack.c.bf16 %v7155_v53, %v7154_v28  ;;  %v5108_v15 = vld [vmem:[#allocation4 + $0x6] sm:$0xf]  ;;  %v7185_v28 = vld [vmem:[%s10837_s7 + $0x1c8] sm:$0xff] }
0x1235   : > { %v4511_v12 = vrot.slane %v4510_v4, 2  ;;  %8099 = vmatmul.mubr.msk.f32.vlgmr.msra.gmra.mrb[40].mxu0 %vm579_vm2, %v5108_v15  ;;  %v7181_v15 = vld [vmem:[%s10837_s7 + $0x1b0] sm:$0xff] }
0x1236   : > { %8552 = vmatpush3.bf16.msra.mxu0 %v8551_v58  ;;  %8120 = vmatprep.mubr.msk.f32.mxu0 %vm9242_vm3, %v9243_v3 }
0x1237   : > { %v4512_v6 = vadd.f32 %v4511_v12, %v4510_v4  ;;  %v7151_v4 = vld [vmem:[%s10837_s7 + $0xf0] sm:$0xff]  ;;  %v7152_v12 = vld [vmem:[%s10837_s7 + $0xf8] sm:$0xff]  ;;  %8553 = vmatprep.subr.bf16.mxu0 %v9241_v63 }
0x1239   : > { %v4513_v19 = vrot.slane %v4512_v6, 1 }
0x123b   : > { %v4514_v40 = vadd.f32 %v4513_v19, %v4512_v6  ;;  %v8548_v6 = vpack.c.bf16 %v7152_v12, %v7151_v4  ;;  %v7156_v19 = vld [vmem:[%s10837_s7 + $0x110] sm:$0xff]  ;;  %v7182_v4 = vld [vmem:[%s10837_s7 + $0x1b8] sm:$0xff] }
0x123c   : > { %v7186_v12 = vld [vmem:[%s10837_s7 + $0x1d0] sm:$0xff] }
0x123d   : > { %8022 = vmatmul.mubr.msk.f32.vlgmr.msra.gmra.mrb[30].mxu1 %vm579_vm2, %v4514_v40  ;;  %v7157_v40 = vld [vmem:[%s10837_s7 + $0x118] sm:$0xff] }
0x123e   : > { %8043 = vmatprep.mubr.msk.f32.mxu1 %vm9242_vm3, %v9243_v3  ;;  %8510 = vmatpush3.bf16.msra.mxu1 %v8509_v33  ;;  %v8554_v23 = vpack.c.bf16 %v7157_v40, %v7156_v19  ;;  %v7161_v33 = vld [vmem:[%s10837_s7 + $0x130] sm:$0xff] }
0x123f   : > { %8511 = vmatprep.subr.bf16.mxu1 %v9241_v63  ;;  %v8560_v61 = vpack.c.bf16 %v7162_v48, %v7161_v33  ;;  %v7191_v33 = vld [vmem:[%s10837_s7 + $0x1f0] sm:$0xff]  ;;  %v7192_v48 = vld [vmem:[%s10837_s7 + $0x1f8] sm:$0xff] }
0x1240   : > { %8555 = vmatpush3.bf16.msra.mxu0 %v8554_v23  ;;  %v8584_v23 = vpack.c.bf16 %v7182_v4, %v7181_v15  ;;  %v7222_v15 = vld [vmem:[%s10837_s7 + $0x2b8] sm:$0xff]  ;;  %v7226_v4 = vld [vmem:[%s10837_s7 + $0x2d0] sm:$0xff] }
0x1241   : > { %8562 = vmatprep.subr.bf16.mxu0 %v9241_v63 }
0x1242   : > { %8513 = vmatpush3.bf16.msra.mxu1 %v8512_v44 }
0x1243   : > { %8520 = vmatprep.subr.bf16.mxu1 %v9241_v63  ;;  %8121 = vmatmul.mubr.msk.f32.vlgmr.msra.gmra.mrb[42].mxu0 %vm579_vm2, %v5268_v10  ;;  %v7189_v10 = vld [vmem:[%s10837_s7 + $0x1e0] sm:$0xff] }
0x1244   : > { %8142 = vmatprep.mubr.msk.f32.mxu0 %vm9242_vm3, %v9243_v3  ;;  %8564 = vmatpush3.bf16.msra.mxu0 %v8563_v13  ;;  %v7196_v13 = vld [vmem:[%s10837_s7 + $0x210] sm:$0xff] }
0x1245   : > { %8044 = vmatmul.mubr.msk.f32.vlgmr.msra.gmra.mrb[32].mxu1 %vm579_vm2, %v4631_v27  ;;  %8565 = vmatprep.subr.bf16.mxu0 %v9241_v63 }
0x1246   : > { %8522 = vmatpush3.bf16.msra.mxu1 %v8521_v56  ;;  %8065 = vmatprep.mubr.msk.f32.mxu1 %vm9242_vm3, %v9243_v3  ;;  %v7116_v56 = vld [vmem:[#allocation10 + $0x5] ss:$0 sm:$0xff] }
0x1247   : > { %8523 = vmatprep.subr.bf16.mxu1 %v9241_v63 }
0x1248   : > { %8567 = vmatpush3.bf16.msra.mxu0 %v8566_v36  ;;  %v8596_v36 = vpack.c.bf16 %v7192_v48, %v7191_v33  ;;  %v6308_v48 = vld [vmem:[#allocation4 + $0x15] sm:$0xf] }
0x1249   : > { %8574 = vmatprep.subr.bf16.mxu0 %v9241_v63 }
0x124a   : > { %8525 = vmatpush3.bf16.msra.mxu1 %v8524_v26 }
0x124b   : > { %8532 = vmatprep.subr.bf16.mxu1 %v9241_v63 }
0x124d   : > { %8066 = vmatmul.mubr.msk.f32.vlgmr.msra.gmra.mrb[34].mxu1 %vm579_vm2, %v4868_v5  ;;  %v7174_v5 = vld [vmem:[%s10837_s7 + $0x180] sm:$0xff] }
0x124e   : > { %8534 = vmatpush3.bf16.msra.mxu1 %v8533_v39  ;;  %8087 = vmatprep.mubr.msk.f32.mxu1 %vm9242_vm3, %v9243_v3  ;;  %v8575_v60 = vpack.c.bf16 %v7175_v37, %v7174_v5  ;;  %v7211_v37 = vld [vmem:[%s10837_s7 + $0x270] sm:$0xff] }
0x124f   : > { %8535 = vmatprep.subr.bf16.mxu1 %v9241_v63 }
0x1252   : > { %8537 = vmatpush3.bf16.msra.mxu1 %v8536_v54  ;;  %v7177_v54 = vld [vmem:[%s10837_s7 + $0x198] sm:$0xff] }
0x1253   : > { %8544 = vmatprep.subr.bf16.mxu1 %v9241_v63  ;;  %v8578_v2 = vpack.c.bf16 %v7177_v54, %v7176_v9  ;;  %v7219_v54 = vld [vmem:[%s10837_s7 + $0x2a0] sm:$0xff] }
0x1255   : > { %8088 = vmatmul.mubr.msk.f32.vlgmr.msra.gmra.mrb[36].mxu1 %vm579_vm2, %v5028_v46  ;;  %v7184_v46 = vld [vmem:[%s10837_s7 + $0x1c0] sm:$0xff] }
0x1256   : > { %8546 = vmatpush3.bf16.msra.mxu1 %v8545_v25  ;;  %8109 = vmatprep.mubr.msk.f32.mxu1 %vm9242_vm3, %v9243_v3  ;;  %v7180_v25 = vld [vmem:[%s10837_s7 + $0x1a8] sm:$0xff]  ;;  %v8587_v58 = vpack.c.bf16 %v7185_v28, %v7184_v46  ;;  %v6228_v28 = vld [vmem:[#allocation4 + $0x14] sm:$0xf] }
0x1257   : > { %8547 = vmatprep.subr.bf16.mxu1 %v9241_v63  ;;  %v8581_v53 = vpack.c.bf16 %v7180_v25, %v7179_v1  ;;  %v6148_v25 = vld [vmem:[#allocation4 + $0x13] sm:$0xf] }
0x125a   : > { %8549 = vmatpush3.bf16.msra.mxu1 %v8548_v6  ;;  %v7187_v6 = vld [vmem:[%s10837_s7 + $0x1d8] sm:$0xff] }
0x125b   : > { %8556 = vmatprep.subr.bf16.mxu1 %v9241_v63 }
0x125d   : > { %8110 = vmatmul.mubr.msk.f32.vlgmr.msra.gmra.mrb[38].mxu1 %vm579_vm2, %v5188_v11  ;;  %v8590_v11 = vpack.c.bf16 %v7187_v6, %v7186_v12  ;;  %v7227_v12 = vld [vmem:[%s10837_s7 + $0x2d8] sm:$0xff] }
0x125e   : > { %8131 = vmatprep.mubr.msk.f32.mxu1 %vm9242_vm3, %v9243_v3  ;;  %8558 = vmatpush3.bf16.msra.mxu1 %v8557_v51  ;;  %v8593_v51 = vpack.c.bf16 %v7190_v32, %v7189_v10  ;;  %v7229_v10 = vld [vmem:[%s10837_s7 + $0x2e0] sm:$0xff] }
0x125f   : > { %8559 = vmatprep.subr.bf16.mxu1 %v9241_v63 }
0x1262   : > { %8561 = vmatpush3.bf16.msra.mxu1 %v8560_v61 }
0x1263   : > { %8568 = vmatprep.subr.bf16.mxu1 %v9241_v63 }
0x1310   : > { %v4584_v44 = vpop.f32.mrb[30].mxu1 }
0x1311   : > { %v4588_v8 = vmul.f32 0.125, %v4584_v44  ;;  %v8023_v41 = vpop.f32.mrb[31].mxu1  ;;  %v8602_v44 = vpack.c.bf16 %v7197_v34, %v7196_v13  ;;  %v8641_v13 = vpack.c.bf16 %v7230_v35, %v7229_v10  ;;  %v6388_v34 = vld [vmem:[#allocation4 + $0x16] sm:$0xf] }
0x1312   : > { %v7200_v41 = vld [vmem:[%s10837_s7 + $0x228] sm:$0xff] }
0x1313   : > { %v4589_v42 = vadd.f32 1e-05, %v4588_v8  ;;  %v7199_v8 = vld [vmem:[%s10837_s7 + $0x220] sm:$0xff] }
0x1315   : > { %8907 = vrsqrt.f32 %v4589_v42  ;;  %v7204_v42 = vld [vmem:[%s10837_s7 + $0x240] sm:$0xff] }
0x1318   : > { %v4784_v6 = vpop.f32.mrb[32].mxu1 }
0x131f   : > { %v8908_v16 = vpop.eup %8907 }
0x1320   : > { %v4594_v50 = vrot.slane %v8908_v16, %v9831_v20  ;;  %v7169_v20 = vld [vmem:[%s10837_s7 + $0x160] sm:$0xff]  ;;  %v7205_v16 = vld [vmem:[%s10837_s7 + $0x248] sm:$0xff] }
0x1322   : > { %v4595_v27 = vmul.f32 %v4594_v50, %v10380_v17  ;;  %v7170_v17 = vld [vmem:[%s10837_s7 + $0x168] sm:$0xff]  ;;  %v8605_v50 = vpack.c.bf16 %v7200_v41, %v7199_v8  ;;  %v7237_v8 = vld [vmem:[%s10837_s7 + $0x318] sm:$0xff] }
0x1323   : > { %v8569_v24 = vpack.c.bf16 %v7170_v17, %v7169_v20  ;;  %v6068_v17 = vld [vmem:[#allocation4 + $0x12] sm:$0xf] }
0x1324   : > { %v4604_v49 = vmul.f32 %v7116_v56, %v4595_v27  ;;  %v5908_v56 = vld [vmem:[#allocation4 + $0x10] sm:$0xf]  ;;  %v8611_v27 = vpack.c.bf16 %v7205_v16, %v7204_v42 }
0x1326   : > { %v4613_v21 = vadd.f32 %v7117_v59, %v4604_v49  ;;  %v7201_v59 = vld [vmem:[%s10837_s7 + $0x230] sm:$0xff]  ;;  %v7202_v49 = vld [vmem:[%s10837_s7 + $0x238] sm:$0xff] }
0x1328   : > { %v4615_v30 = vmul.f32 0.044715, %v4613_v21  ;;  %v4614_v38 = vmul.f32 0.5, %v4613_v21 }
0x132a   : > { %v4616_v29 = vmul.f32 %v4615_v30, %v4613_v21  ;;  %v7207_v30 = vld [vmem:[%s10837_s7 + $0x258] sm:$0xff] }
0x132c   : > { %v4617_v52 = vmul.f32 %v4616_v29, %v4613_v21 }
0x132e   : > { %v4618_v26 = vadd.f32 %v4617_v52, %v4613_v21  ;;  %v7206_v21 = vld [vmem:[%s10837_s7 + $0x250] sm:$0xff]  ;;  %v8608_v52 = vpack.c.bf16 %v7202_v49, %v7201_v59 }
0x1330   : > { %v4619_v0 = vmul.f32 0.7978846, %v4618_v26  ;;  %v8614_v26 = vpack.c.bf16 %v7207_v30, %v7206_v21  ;;  %v6468_v21 = vld [vmem:[#allocation4 + $0x17] sm:$0xf] }
0x1331   : > { %v6548_v30 = vld [vmem:[#allocation4 + $0x18] sm:$0xf] }
0x1332   : > { %8909 = vtanh.f32 %v4619_v0  ;;  %v7209_v0 = vld [vmem:[%s10837_s7 + $0x260] sm:$0xff] }
0x133c   : > { %v8910_v43 = vpop.eup %8909 }
0x133d   : > { %v4621_v57 = vadd.f32 1.0, %v8910_v43  ;;  %v7210_v43 = vld [vmem:[%s10837_s7 + $0x268] sm:$0xff] }
0x133e   : > { %v8617_v20 = vpack.c.bf16 %v7210_v43, %v7209_v0 }
0x133f   : > { %v4622_v47 = vmul.f32 %v4621_v57, %v4614_v38  ;;  %v7214_v38 = vld [vmem:[%s10837_s7 + $0x280] sm:$0xff]  ;;  %v7215_v57 = vld [vmem:[%s10837_s7 + $0x288] sm:$0xff] }
0x1340   : > { %v8623_v5 = vpack.c.bf16 %v7215_v57, %v7214_v38 }
0x1341   : > { %4623 = vst.msk [vmem:[#allocation3 + $0x1] sm:$0xf] %vm1807_vm4, %v4622_v47  ;;  %v5988_v47 = vld [vmem:[#allocation4 + $0x11] sm:$0xf] }
0x1348   : > { %v10572_v39 = vld [vmem:[#allocation3 + $0x1] sm:$0xf] }
0x1349   : > { %4630 = vst.msk [vmem:[#allocation4 + $0xc] sm:$0xf] %vm1807_vm4, %v10572_v39 }
0x1350   : > { %v5348_v45 = vld [vmem:[#allocation4 + $0x9] sm:$0xf]  ;;  %v5668_v22 = vld [vmem:[#allocation4 + $0xd] sm:$0xf] }
0x1351   : > { %v5428_v18 = vld [vmem:[#allocation4 + $0xa] sm:$0xf]  ;;  %8132 = vmatmul.mubr.msk.f32.vlgmr.msra.gmra.mrb[40].mxu1 %vm579_vm2, %v5348_v45  ;;  %v5748_v61 = vld [vmem:[#allocation4 + $0xe] sm:$0xf]  ;;  %v4711_v45 = vpop.f32.mrb[34].mxu0 }
0x1352   : > { %8143 = vmatmul.mubr.msk.f32.vlgmr.msra.gmra.mrb[44].mxu0 %vm579_vm2, %v5428_v18  ;;  %8570 = vmatpush3.bf16.msra.mxu1 %v8569_v24  ;;  %v5508_v19 = vld [vmem:[#allocation4 + $0xb] sm:$0xf]  ;;  %v5828_v29 = vld [vmem:[#allocation4 + $0xf] sm:$0xf]  ;;  %v7220_v18 = vld [vmem:[%s10837_s7 + $0x2a8] sm:$0xff]  ;;  %v8034_v1 = vpop.f32.mrb[35].mxu0 }
0x1353   : > { %8576 = vmatpush3.bf16.msra.mxu0 %v8575_v60  ;;  %8571 = vmatprep.subr.bf16.mxu1 %v9241_v63  ;;  %v5588_v40 = vld [vmem:[#allocation4 + $0xc] sm:$0xf]  ;;  %v7216_v60 = vld [vmem:[%s10837_s7 + $0x290] sm:$0xff]  ;;  %v8629_v46 = vpack.c.bf16 %v7220_v18, %v7219_v54  ;;  %v4863_v32 = vpop.f32.mrb[36].mxu0 }
0x1354   : > { %8577 = vmatprep.subr.bf16.mxu0 %v9241_v63  ;;  %8153 = vmatprep.mubr.msk.f32.mxu1 %vm9242_vm3, %v9243_v3  ;;  %v7212_v24 = vld [vmem:[%s10837_s7 + $0x278] sm:$0xff]  ;;  %v8626_v9 = vpack.c.bf16 %v7217_v7, %v7216_v60  ;;  %v8056_v33 = vpop.f32.mrb[37].mxu0 }
0x1355   : > { %8164 = vmatprep.mubr.msk.f32.mxu0 %vm9242_vm3, %v9243_v3  ;;  %v8620_v62 = vpack.c.bf16 %v7212_v24, %v7211_v37 }
0x1356   : > { %8573 = vmatpush3.bf16.msra.mxu1 %v8572_v31  ;;  %v7224_v31 = vld [vmem:[%s10837_s7 + $0x2c0] sm:$0xff] }
0x1357   : > { %8579 = vmatpush3.bf16.msra.mxu0 %v8578_v2  ;;  %8580 = vmatprep.subr.bf16.mxu1 %v9241_v63  ;;  %v7225_v2 = vld [vmem:[%s10837_s7 + $0x2c8] sm:$0xff] }
0x1358   : > { %8586 = vmatprep.subr.bf16.mxu0 %v9241_v63 }
0x1359   : > { %8154 = vmatmul.mubr.msk.f32.vlgmr.msra.gmra.mrb[42].mxu1 %vm579_vm2, %v5508_v19  ;;  %v4785_v19 = vadd.f32 %v4784_v6, %v4711_v45 }
0x135a   : > { %8165 = vmatmul.mubr.msk.f32.vlgmr.msra.gmra.mrb[46].mxu0 %vm579_vm2, %v5588_v40  ;;  %8582 = vmatpush3.bf16.msra.mxu1 %v8581_v53  ;;  %v8635_v53 = vpack.c.bf16 %v7225_v2, %v7224_v31  ;;  %v8045_v40 = vpop.f32.mrb[33].mxu1 }
0x135b   : > { %8588 = vmatpush3.bf16.msra.mxu0 %v8587_v58  ;;  %8583 = vmatprep.subr.bf16.mxu1 %v9241_v63  ;;  %v7221_v58 = vld [vmem:[%s10837_s7 + $0x2b0] sm:$0xff]  ;;  %v4943_v41 = vpop.f32.mrb[34].mxu1 }
0x135c   : > { %8589 = vmatprep.subr.bf16.mxu0 %v9241_v63  ;;  %8175 = vmatprep.mubr.msk.f32.mxu1 %vm9242_vm3, %v9243_v3  ;;  %v8067_v16 = vpop.f32.mrb[35].mxu1 }
0x135d   : > { %8186 = vmatprep.mubr.msk.f32.mxu0 %vm9242_vm3, %v9243_v3 }
0x135e   : > { %8585 = vmatpush3.bf16.msra.mxu1 %v8584_v23  ;;  %v8632_v23 = vpack.c.bf16 %v7222_v15, %v7221_v58 }
0x135f   : > { %8591 = vmatpush3.bf16.msra.mxu0 %v8590_v11  ;;  %8592 = vmatprep.subr.bf16.mxu1 %v9241_v63  ;;  %v8638_v11 = vpack.c.bf16 %v7227_v12, %v7226_v4 }
0x1360   : > { %8598 = vmatprep.subr.bf16.mxu0 %v9241_v63 }
0x1361   : > { %8176 = vmatmul.mubr.msk.f32.vlgmr.msra.gmra.mrb[44].mxu1 %vm579_vm2, %v5668_v22 }
0x1362   : > { %8187 = vmatmul.mubr.msk.f32.vlgmr.msra.gmra.mrb[48].mxu0 %vm579_vm2, %v5748_v61  ;;  %8594 = vmatpush3.bf16.msra.mxu1 %v8593_v51  ;;  %v7235_v51 = vld [vmem:[%s10837_s7 + $0x308] sm:$0xff]  ;;  %v7231_v61 = vld [vmem:[%s10837_s7 + $0x2f0] sm:$0xff] }
0x1363   : > { %8600 = vmatpush3.bf16.msra.mxu0 %v8599_v14  ;;  %8595 = vmatprep.subr.bf16.mxu1 %v9241_v63  ;;  %v4867_v14 = vadd.f32 %v4863_v32, %v4785_v19  ;;  %v8647_v22 = vpack.c.bf16 %v7235_v51, %v7234_v55 }
0x1364   : > { %8601 = vmatprep.subr.bf16.mxu0 %v9241_v63  ;;  %8197 = vmatprep.mubr.msk.f32.mxu1 %vm9242_vm3, %v9243_v3 }
0x1365   : > { %8208 = vmatprep.mubr.msk.f32.mxu0 %vm9242_vm3, %v9243_v3  ;;  %v4947_v42 = vadd.f32 %v4943_v41, %v4867_v14 }
0x1366   : > { %8597 = vmatpush3.bf16.msra.mxu1 %v8596_v36  ;;  %v7232_v36 = vld [vmem:[%s10837_s7 + $0x2f8] sm:$0xff] }
0x1367   : > { %8603 = vmatpush3.bf16.msra.mxu0 %v8602_v44  ;;  %8604 = vmatprep.subr.bf16.mxu1 %v9241_v63  ;;  %v7236_v44 = vld [vmem:[%s10837_s7 + $0x310] sm:$0xff] }
0x1368   : > { %8610 = vmatprep.subr.bf16.mxu0 %v9241_v63 }
0x1369   : > { %8198 = vmatmul.mubr.msk.f32.vlgmr.msra.gmra.mrb[46].mxu1 %vm579_vm2, %v5828_v29  ;;  %v5103_v29 = vpop.f32.mrb[36].mxu1 }
0x136a   : > { %8209 = vmatmul.mubr.msk.f32.vlgmr.msra.gmra.mrb[50].mxu0 %vm579_vm2, %v5908_v56  ;;  %8606 = vmatpush3.bf16.msra.mxu1 %v8605_v50  ;;  %v8644_v50 = vpack.c.bf16 %v7232_v36, %v7231_v61  ;;  %v8650_v56 = vpack.c.bf16 %v7237_v8, %v7236_v44 }
0x136b   : > { %8612 = vmatpush3.bf16.msra.mxu0 %v8611_v27  ;;  %8607 = vmatprep.subr.bf16.mxu1 %v9241_v63  ;;  %v5023_v27 = vpop.f32.mrb[38].mxu0 }
0x136c   : > { %8613 = vmatprep.subr.bf16.mxu0 %v9241_v63  ;;  %8219 = vmatprep.mubr.msk.f32.mxu1 %vm9242_vm3, %v9243_v3  ;;  %v5027_v59 = vadd.f32 %v5023_v27, %v4947_v42  ;;  %v8078_v49 = vpop.f32.mrb[39].mxu0 }
0x136d   : > { %8230 = vmatprep.mubr.msk.f32.mxu0 %vm9242_vm3, %v9243_v3  ;;  %v5183_v0 = vpop.f32.mrb[40].mxu0  ;;  %v7239_v49 = vld [vmem:[#allocation13] ss:$0 sm:$0xff] }
0x136e   : > { %8609 = vmatpush3.bf16.msra.mxu1 %v8608_v52  ;;  %v5107_v52 = vadd.f32 %v5103_v29, %v5027_v59  ;;  %v8100_v38 = vpop.f32.mrb[41].mxu0 }
0x136f   : > { %8615 = vmatpush3.bf16.msra.mxu0 %v8614_v26  ;;  %8616 = vmatprep.subr.bf16.mxu1 %v9241_v63  ;;  %v8089_v26 = vpop.f32.mrb[37].mxu1 }
0x1370   : > { %8622 = vmatprep.subr.bf16.mxu0 %v9241_v63  ;;  %v5187_v43 = vadd.f32 %v5183_v0, %v5107_v52  ;;  %v5263_v57 = vpop.f32.mrb[38].mxu1 }
0x1371   : > { %8220 = vmatmul.mubr.msk.f32.vlgmr.msra.gmra.mrb[48].mxu1 %vm579_vm2, %v5988_v47 }
0x1372   : > { %8231 = vmatmul.mubr.msk.f32.vlgmr.msra.gmra.mrb[52].mxu0 %vm579_vm2, %v6068_v17  ;;  %8618 = vmatpush3.bf16.msra.mxu1 %v8617_v20  ;;  %v5267_v47 = vadd.f32 %v5263_v57, %v5187_v43  ;;  %v8111_v20 = vpop.f32.mrb[39].mxu1  ;;  %v5343_v17 = vpop.f32.mrb[42].mxu0 }
0x1373   : > { %8624 = vmatpush3.bf16.msra.mxu0 %v8623_v5  ;;  %8619 = vmatprep.subr.bf16.mxu1 %v9241_v63  ;;  %v8122_v37 = vpop.f32.mrb[43].mxu0 }
0x1374   : > { %8625 = vmatprep.subr.bf16.mxu0 %v9241_v63  ;;  %8241 = vmatprep.mubr.msk.f32.mxu1 %vm9242_vm3, %v9243_v3  ;;  %v5347_v5 = vadd.f32 %v5343_v17, %v5267_v47 }
0x1375   : > { %8252 = vmatprep.mubr.msk.f32.mxu0 %vm9242_vm3, %v9243_v3 }
0x1376   : > { %8621 = vmatpush3.bf16.msra.mxu1 %v8620_v62 }
0x1377   : > { %8627 = vmatpush3.bf16.msra.mxu0 %v8626_v9  ;;  %8628 = vmatprep.subr.bf16.mxu1 %v9241_v63 }
0x1378   : > { %8634 = vmatprep.subr.bf16.mxu0 %v9241_v63 }
0x1379   : > { %8242 = vmatmul.mubr.msk.f32.vlgmr.msra.gmra.mrb[50].mxu1 %vm579_vm2, %v6148_v25 }
0x137a   : > { %8253 = vmatmul.mubr.msk.f32.vlgmr.msra.gmra.mrb[54].mxu0 %vm579_vm2, %v6228_v28  ;;  %8630 = vmatpush3.bf16.msra.mxu1 %v8629_v46 }
0x137b   : > { %8636 = vmatpush3.bf16.msra.mxu0 %v8635_v53  ;;  %8631 = vmatprep.subr.bf16.mxu1 %v9241_v63 }
0x137c   : > { %8637 = vmatprep.subr.bf16.mxu0 %v9241_v63  ;;  %8263 = vmatprep.mubr.msk.f32.mxu1 %vm9242_vm3, %v9243_v3 }
0x137d   : > { %8274 = vmatprep.mubr.msk.f32.mxu0 %vm9242_vm3, %v9243_v3 }
0x137e   : > { %8633 = vmatpush3.bf16.msra.mxu1 %v8632_v23 }
0x137f   : > { %8639 = vmatpush3.bf16.msra.mxu0 %v8638_v11  ;;  %8640 = vmatprep.subr.bf16.mxu1 %v9241_v63 }
0x1380   : > { %8646 = vmatprep.subr.bf16.mxu0 %v9241_v63 }
0x1381   : > { %8264 = vmatmul.mubr.msk.f32.vlgmr.msra.gmra.mrb[52].mxu1 %vm579_vm2, %v6308_v48 }
0x1382   : > { %8275 = vmatmul.mubr.msk.f32.vlgmr.msra.gmra.mrb[56].mxu0 %vm579_vm2, %v6388_v34  ;;  %8642 = vmatpush3.bf16.msra.mxu1 %v8641_v13 }
0x1383   : > { %8648 = vmatpush3.bf16.msra.mxu0 %v8647_v22  ;;  %8643 = vmatprep.subr.bf16.mxu1 %v9241_v63 }
0x1384   : > { %8649 = vmatprep.subr.bf16.mxu0 %v9241_v63  ;;  %8285 = vmatprep.mubr.msk.f32.mxu1 %vm9242_vm3, %v9243_v3 }
0x1385   : > { %8296 = vmatprep.mubr.msk.f32.mxu0 %vm9242_vm3, %v9243_v3 }
0x1386   : > { %8645 = vmatpush3.bf16.msra.mxu1 %v8644_v50 }
0x1387   : > { %8651 = vmatpush3.bf16.msra.mxu0 %v8650_v56  ;;  %8652 = vmatprep.subr.bf16.mxu1 %v9241_v63 }
0x1389   : > { %8286 = vmatmul.mubr.msk.f32.vlgmr.msra.gmra.mrb[54].mxu1 %vm579_vm2, %v6468_v21 }
0x138a   : > { %8297 = vmatmul.mubr.msk.f32.vlgmr.msra.gmra.mrb[58].mxu0 %vm579_vm2, %v6548_v30  ;;  %8307 = vmatprep.mubr.msk.f32.mxu1 %vm9242_vm3, %v9243_v3 }
0x1424   : > { %v5423_v24 = vpop.f32.mrb[40].mxu1 }
0x1425   : > { %v5503_v60 = vpop.f32.mrb[44].mxu0  ;;  %v5427_v7 = vadd.f32 %v5423_v24, %v5347_v5  ;;  %v8133_v62 = vpop.f32.mrb[41].mxu1 }
0x1426   : > { %v8144_v9 = vpop.f32.mrb[45].mxu0 }
0x1427   : > { %v5507_v54 = vadd.f32 %v5503_v60, %v5427_v7  ;;  %v6676_v9 = vld [vmem:[#allocation18] sm:$0xff] }
0x142c   : > { %v5583_v45 = vpop.f32.mrb[42].mxu1 }
0x142d   : > { %v5663_v18 = vpop.f32.mrb[46].mxu0  ;;  %v5587_v31 = vadd.f32 %v5583_v45, %v5507_v54  ;;  %v8155_v2 = vpop.f32.mrb[43].mxu1  ;;  %v6677_v54 = vld [vmem:[#allocation18 + $0x8] sm:$0xff] }
0x142e   : > { %v8166_v1 = vpop.f32.mrb[47].mxu0  ;;  %v8653_v45 = vpack.c.bf16 %v6677_v54, %v6676_v9 }
0x142f   : > { %v5667_v3 = vadd.f32 %v5663_v18, %v5587_v31  ;;  %v6678_v18 = vld [vmem:[#allocation18 + $0x10] sm:$0xff]  ;;  %v6679_v31 = vld [vmem:[#allocation18 + $0x18] sm:$0xff] }
0x1430   : > { %8654 = vmatpush3.bf16.msra.mxu1 %v8653_v45  ;;  %v8656_v2 = vpack.c.bf16 %v6679_v31, %v6678_v18 }
0x1431   : > { %8655 = vmatprep.subr.bf16.mxu1 %v9241_v63  ;;  %v9244_v63 = vmov -5.0  }
0x1432   : > { %6761 = vst.msk [vmem:[%s578_s30] sm:$0x1] %vm6760_vm5, %v9244_v63 }
0x1434   : > { %v5743_v25 = vpop.f32.mrb[44].mxu1  ;;  %8657 = vmatpush3.bf16.msra.mxu1 %v8656_v2 }
0x1435   : > { %v5823_v46 = vpop.f32.mrb[48].mxu0  ;;  %v5747_v28 = vadd.f32 %v5743_v25, %v5667_v3  ;;  %v8177_v53 = vpop.f32.mrb[45].mxu1 }
0x1436   : > { %v8188_v58 = vpop.f32.mrb[49].mxu0  ;;  %v7241_v53 = vld [vmem:[#allocation16] ss:$0 sm:$0xff] }
0x1437   : > { %v5827_v15 = vadd.f32 %v5823_v46, %v5747_v28  ;;  %v7240_v46 = vld [vmem:[#allocation15] ss:$0 sm:$0xff] }
0x143c   : > { %v5903_v4 = vpop.f32.mrb[46].mxu1 }
0x143d   : > { %v5983_v12 = vpop.f32.mrb[50].mxu0  ;;  %v5907_v6 = vadd.f32 %v5903_v4, %v5827_v15  ;;  %v8199_v19 = vpop.f32.mrb[47].mxu1  ;;  %v7242_v4 = vld [vmem:[#allocation19] ss:$0 sm:$0xff] }
0x143e   : > { %v8210_v40 = vpop.f32.mrb[51].mxu0 }
0x143f   : > { %v5987_v23 = vadd.f32 %v5983_v12, %v5907_v6 }
0x1444   : > { %v6063_v11 = vpop.f32.mrb[48].mxu1 }
0x1445   : > { %v6143_v10 = vpop.f32.mrb[52].mxu0  ;;  %v6067_v32 = vadd.f32 %v6063_v11, %v5987_v23  ;;  %v8221_v35 = vpop.f32.mrb[49].mxu1 }
0x1446   : > { %v8232_v55 = vpop.f32.mrb[53].mxu0 }
0x1447   : > { %v6147_v51 = vadd.f32 %v6143_v10, %v6067_v32 }
0x144c   : > { %v6223_v14 = vpop.f32.mrb[50].mxu1 }
0x144d   : > { %v6303_v33 = vpop.f32.mrb[54].mxu0  ;;  %v6227_v48 = vadd.f32 %v6223_v14, %v6147_v51  ;;  %v8243_v13 = vpop.f32.mrb[51].mxu1 }
0x144e   : > { %v8254_v34 = vpop.f32.mrb[55].mxu0 }
0x144f   : > { %v6307_v22 = vadd.f32 %v6303_v33, %v6227_v48 }
0x1454   : > { %v6383_v61 = vpop.f32.mrb[52].mxu1 }
0x1455   : > { %v6463_v36 = vpop.f32.mrb[56].mxu0  ;;  %v6387_v44 = vadd.f32 %v6383_v61, %v6307_v22  ;;  %v8265_v8 = vpop.f32.mrb[53].mxu1 }
0x1456   : > { %v8276_v41 = vpop.f32.mrb[57].mxu0 }
0x1457   : > { %v6467_v42 = vadd.f32 %v6463_v36, %v6387_v44 }
0x145c   : > { %v6543_v16 = vpop.f32.mrb[54].mxu1 }
0x145d   : > { %v6623_v50 = vpop.f32.mrb[58].mxu0  ;;  %v6547_v56 = vadd.f32 %v6543_v16, %v6467_v42  ;;  %v8287_v27 = vpop.f32.mrb[55].mxu1 }
0x145e   : > { %v8298_v59 = vpop.f32.mrb[59].mxu0 }
0x145f   : > { %v6627_v21 = vadd.f32 %v6623_v50, %v6547_v56 }
0x1461   : > { %v6635_v30 = vadd.f32 %v7239_v49, %v6627_v21 }
0x1463   : > { %v6637_v29 = vmul.f32 0.044715, %v6635_v30  ;;  %v6636_v57 = vmul.f32 0.5, %v6635_v30 }
0x1465   : > { %v6638_v52 = vmul.f32 %v6637_v29, %v6635_v30 }
0x1467   : > { %v6639_v26 = vmul.f32 %v6638_v52, %v6635_v30 }
0x1469   : > { %v6640_v0 = vadd.f32 %v6639_v26, %v6635_v30 }
0x146b   : > { %v6641_v43 = vmul.f32 0.7978846, %v6640_v0 }
0x146d   : > { %8911 = vtanh.f32 %v6641_v43 }
0x1477   : > { %v8912_v38 = vpop.eup %8911 }
0x1478   : > { %v6643_v47 = vadd.f32 1.0, %v8912_v38 }
0x147a   : > { %v6644_v20 = vmul.f32 %v6643_v47, %v6636_v57 }
0x147c   : > { %v6645_v17 = vadd.f32 %v6644_v20, %v10572_v39 }
0x147e   : > { %v6646_v5 = vsel %vm1807_vm4, %v6645_v17, 0.0 }
0x147f   : > { %6647 = vadd.xlane.f32.xlu0 %v6646_v5 }
0x150c   : > { %v6648_v37 = vpop.xlane.xlu0 %6647 }
0x150d   : > { %v6650_v24 = vmul.f32 0.03125, %v6648_v37 }
0x150f   : > { %v6651_v60 = vsub.f32 %v6645_v17, %v6650_v24 }
0x1511   : > { %v6652_v7 = vmul.f32 %v6651_v60, %v6651_v60 }
0x1513   : > { %v6653_v62 = vsel %vm1807_vm4, %v6652_v7, 0.0 }
0x1514   : > { %6654 = vadd.xlane.f32.xlu0 %v6653_v62 }
0x15a1   : > { %v6655_v39 = vpop.xlane.xlu0 %6654 }
0x15a2   : > { %v6656_v1 = vmul.f32 0.03125, %v6655_v39 }
0x15a4   : > { %v6657_v3 = vadd.f32 1e-05, %v6656_v1 }
0x15a6   : > { %8913 = vrsqrt.f32 %v6657_v3 }
0x15b0   : > { %v8914_v25 = vpop.eup %8913 }
0x15b1   : > { %v6659_v28 = vmul.f32 %v8914_v25, %v6651_v60 }
0x15b3   : > { %v6667_v58 = vmul.f32 %v7240_v46, %v6659_v28 }
0x15b5   : > { %v6675_v15 = vadd.f32 %v7241_v53, %v6667_v58 }
0x15b7   : > { %8308 = vmatmul.mubr.msk.f32.vlgmr.msra.gmra.mrb[56].mxu1 %vm579_vm2, %v6675_v15 }
0x168a   : > { %v6756_v12 = vpop.f32.mrb[56].mxu1 }
0x168b   : > { %v6757_v6 = vadd.f32 %v7242_v4, %v6756_v12  ;;  %v8309_v19 = vpop.f32.mrb[57].mxu1 }
0x168d   : > { %6763 = vst.msk [vmem:[%s578_s30 + $0x1] sm:$0xf] %vm6762_vm6, %v6757_v6 }
0x168e PF: > { %s10879_s23 = sld [smem:[#allocation27_spill]] }
0x1694   : > { %s29_s25 = sadd.s32 1, %s10879_s23  }
0x1695   : > { %p26_p0 = scmp.ge.s32.totalorder %s29_s25, 4  }
0x1697   :  { %28 = sbr.rel (!%p26_p0) target bundleno = 9 (0x9), region = 279 }
0x169e   :  { %6783 = vsyncpa [#allocation6], 1 }
0x169f   :  { %6785 = vsyncpa [#allocation6 + $0x1], 1 }
0x16a0   :  { %6786 = vsyncpa [#allocation8], 1 }
0x16a1   :  { %6787 = vsyncpa [#allocation11], 1 }
0x16a2   :  { %6788 = vsyncpa [#allocation14], 1 }
0x16a3   :  { %6789 = vsyncpa [#allocation17], 1 }
0x16a4   :  { %6790 = vsyncpa [#allocation20], 1 }

</bundles_post_ra>
